<compile_context>
chip_gen: v7x
topology: tpu7x:2x2x1
jax: 0.10.0
libtpu: 0.0.40
codegen_flags: <defaults>
</compile_context>

<pallas_src>
import functools

import jax
import jax.numpy as jnp
from jax.experimental import pallas as pl
from jax.experimental.pallas import tpu as pltpu


# ---------------------------------------------------------------------------
# Fused kernel: conv1(m), conv2(p), conv_1 squeeze, pooled channel attention,
# weighted sum.  Grid = (B,), everything for one image stays in VMEM.
# ---------------------------------------------------------------------------
def _mlaf_kernel(m_ref, p_ref,
                 w1c0_ref, b1c0_ref, w1c1_ref, b1c1_ref,
                 w2c0_ref, b2c0_ref, w2c1_ref, b2c1_ref,
                 w1a_m_ref, w1a_p_ref, b1a_ref, w1b_ref, b1b_ref,
                 wmlp_ref, bmlp_ref,
                 m_out_ref, p_out_ref, f_out_ref,
                 pad_m_ref, pad_p_ref, pad_c_ref,
                 *, H, W):
    f32 = jnp.float32
    bf16 = jnp.bfloat16
    C = b1c1_ref.shape[-1]                       # inter_channels

    def conv3x3(pad_ref, x_img, w_ref, b_ref, relu):
        # x_img: (H, W, Cin) f32.  Zero the padded VMEM scratch, drop the tile
        # in its centre, stack the 9 shifted taps along the channel axis,
        # flatten once to (H*W, 9*Cin) and do a single MXU matmul
        # (bf16 operands, f32 accumulate).
        cin = x_img.shape[-1]
        pad_ref[...] = jnp.zeros_like(pad_ref)
        pad_ref[1:H + 1, 1:W + 1, :] = x_img
        xp = pad_ref[...]                                     # (H+2, W+2, Cin)
        taps = [xp[dy:dy + H, dx:dx + W, :]
                for dy in range(3) for dx in range(3)]
        col = jnp.concatenate(taps, axis=-1)                  # (H, W, 9*Cin)
        col = col.reshape(H * W, 9 * cin).astype(bf16)
        y = jnp.dot(col, w_ref[...], preferred_element_type=f32)
        y = y + b_ref[...]                                    # (HW,Cout)+(1,Cout)
        if relu:
            y = jnp.maximum(y, 0.0)
        return y                                              # (H*W, Cout) f32

    # ---- branch m : Conv3x3 -> ReLU -> Conv3x3 ----------------------------
    a = conv3x3(pad_m_ref, m_ref[0], w1c0_ref, b1c0_ref, relu=True)
    m2 = conv3x3(pad_c_ref, a.reshape(H, W, C), w1c1_ref, b1c1_ref, relu=False)

    # ---- branch p : Conv3x3 -> ReLU -> Conv3x3 ----------------------------
    a = conv3x3(pad_p_ref, p_ref[0], w2c0_ref, b2c0_ref, relu=True)
    p2 = conv3x3(pad_c_ref, a.reshape(H, W, C), w2c1_ref, b2c1_ref, relu=False)

    # ---- fusion tail (f32 elementwise) -------------------------------------
    # conv_1 squeeze: relu([m|p] @ w1a + b1a), with the channel concat removed
    # by splitting w1a into its m/p halves in the wrapper.
    h = jnp.dot(m2, w1a_m_ref[...], preferred_element_type=f32)
    h = h + jnp.dot(p2, w1a_p_ref[...], preferred_element_type=f32)
    h = jnp.maximum(h + b1a_ref[...], 0.0)                    # (HW, Ch)

    # AdaptiveAvgPool2d(1) of (h @ w1b + b1b): mean is linear -> pool first.
    avg_h = jnp.mean(h, axis=0, keepdims=True)                # (1, Ch)
    avg_u = jnp.dot(avg_h, w1b_ref[...],
                    preferred_element_type=f32) + b1b_ref[...]  # (1, 2C)

    # MLP_1 / MLP_2 fused into one (2C, 2C) matmul, then split + sigmoid.
    ca = jax.nn.sigmoid(
        jnp.dot(avg_u, wmlp_ref[...], preferred_element_type=f32)
        + bmlp_ref[...])                                      # (1, 2C)
    ca_m = ca[:, :C]
    ca_p = ca[:, C:]

    f2 = ca_m * m2 + ca_p * p2                                # (HW, C)

    m_out_ref[0] = m2.astype(m_out_ref.dtype)
    p_out_ref[0] = p2.astype(p_out_ref.dtype)
    f_out_ref[0] = f2.astype(f_out_ref.dtype)


# ---------------------------------------------------------------------------
# Wrapper: weight preprocessing + one pallas_call over the batch.
# ---------------------------------------------------------------------------
def mlaf_forward(m_in, p_in, params):
    B, H, W, Cm = m_in.shape
    Cp = p_in.shape[-1]
    C = params["conv1_b0"].shape[0]              # inter_channels
    Ch = params["conv_1_b0"].shape[0]            # inter_channels // ca_ratio
    bf16 = jnp.bfloat16

    # im2col weight layout + bf16 operands for the conv matmuls.
    w1c0 = params["conv1_w0"].reshape(9 * Cm, C).astype(bf16)
    w1c1 = params["conv1_w1"].reshape(9 * C, C).astype(bf16)
    w2c0 = params["conv2_w0"].reshape(9 * Cp, C).astype(bf16)
    w2c1 = params["conv2_w1"].reshape(9 * C, C).astype(bf16)
    b1c0 = params["conv1_b0"].reshape(1, C)
    b1c1 = params["conv1_b1"].reshape(1, C)
    b2c0 = params["conv2_b0"].reshape(1, C)
    b2c1 = params["conv2_b1"].reshape(1, C)

    # conv_1 squeeze split into m/p halves (avoids an in-kernel lane concat).
    w1a = params["conv_1_w0"]                    # (2C, Ch)
    w1a_m, w1a_p = w1a[:C, :], w1a[C:, :]
    b1a = params["conv_1_b0"].reshape(1, Ch)
    w1b = params["conv_1_w1"]                    # (Ch, 2C)
    b1b = params["conv_1_b1"].reshape(1, 2 * C)

    # Fused MLP heads: one (2C, 2C) matmul, split in-kernel.
    wmlp = jnp.concatenate([params["mlp1_w"], params["mlp2_w"]], axis=-1)
    bmlp = jnp.concatenate([params["mlp1_b"], params["mlp2_b"]])[None, :]

    kernel = functools.partial(_mlaf_kernel, H=H, W=W)
    full2 = lambda r, c: pl.BlockSpec((r, c), lambda b: (0, 0))
    img_in = lambda c: pl.BlockSpec((1, H, W, c), lambda b: (b, 0, 0, 0))
    out_spec = pl.BlockSpec((1, H * W, C), lambda b: (b, 0, 0))
    out_sds = jax.ShapeDtypeStruct((B, H * W, C), m_in.dtype)

    m2, p2, f2 = pl.pallas_call(
        kernel,
        out_shape=(out_sds, out_sds, out_sds),
        grid=(B,),
        in_specs=[
            img_in(Cm), img_in(Cp),
            full2(9 * Cm, C), full2(1, C), full2(9 * C, C), full2(1, C),
            full2(9 * Cp, C), full2(1, C), full2(9 * C, C), full2(1, C),
            full2(C, Ch), full2(C, Ch), full2(1, Ch),
            full2(Ch, 2 * C), full2(1, 2 * C),
            full2(2 * C, 2 * C), full2(1, 2 * C),
        ],
        out_specs=(out_spec, out_spec, out_spec),
        scratch_shapes=[
            pltpu.VMEM((H + 2, W + 2, Cm), jnp.float32),   # pad, m layer 1
            pltpu.VMEM((H + 2, W + 2, Cp), jnp.float32),   # pad, p layer 1
            pltpu.VMEM((H + 2, W + 2, C), jnp.float32),    # pad, reused layer 2
        ],
        compiler_params=pltpu.CompilerParams(
            dimension_semantics=("parallel",)),
    )(m_in, p_in,
      w1c0, b1c0, w1c1, b1c1,
      w2c0, b2c0, w2c1, b2c1,
      w1a_m, w1a_p, b1a, w1b, b1b, wmlp, bmlp)

    # Free metadata reshapes on contiguous HBM results back to NHWC.
    return (m2.reshape(B, H, W, C),
            p2.reshape(B, H, W, C),
            f2.reshape(B, H, W, C))


# ---------------------------------------------------------------------------
# Pure-JAX reference (original op order; same bf16 rounding for conv matmuls)
# ---------------------------------------------------------------------------
def mlaf_reference(m_in, p_in, params):
    f32, bf16 = jnp.float32, jnp.bfloat16
    hi = jax.lax.Precision.HIGHEST

    def conv3x3(x, w, b, relu):
        B, H, W, _ = x.shape
        xp = jnp.pad(x, ((0, 0), (1, 1), (1, 1), (0, 0))).astype(bf16)
        wb = w.astype(bf16)
        acc = jnp.zeros((B, H, W, w.shape[-1]), f32)
        for dy in range(3):
            for dx in range(3):
                acc = acc + jnp.einsum(
                    "bhwc,cd->bhwd", xp[:, dy:dy + H, dx:dx + W, :], wb[dy, dx],
                    preferred_element_type=f32)
        acc = acc + b
        return jnp.maximum(acc, 0.0) if relu else acc

    m = conv3x3(m_in, params["conv1_w0"], params["conv1_b0"], True)
    m = conv3x3(m, params["conv1_w1"], params["conv1_b1"], False)
    p = conv3x3(p_in, params["conv2_w0"], params["conv2_b0"], True)
    p = conv3x3(p, params["conv2_w1"], params["conv2_b1"], False)

    u = jnp.concatenate([m, p], axis=-1)
    h = jnp.maximum(jnp.einsum("bhwc,cd->bhwd", u, params["conv_1_w0"],
                               precision=hi) + params["conv_1_b0"], 0.0)
    u = jnp.einsum("bhwc,cd->bhwd", h, params["conv_1_w1"],
                   precision=hi) + params["conv_1_b1"]
    avg = jnp.mean(u, axis=(1, 2), keepdims=True)
    ca_m = jax.nn.sigmoid(jnp.einsum("bhwc,cd->bhwd", avg, params["mlp1_w"],
                                     precision=hi) + params["mlp1_b"])
    ca_p = jax.nn.sigmoid(jnp.einsum("bhwc,cd->bhwd", avg, params["mlp2_w"],
                                     precision=hi) + params["mlp2_b"])
    return m, p, ca_m * m + ca_p * p


# ---------------------------------------------------------------------------
# Parameter init (weights generated directly in JAX, HWIO conv layout)
# ---------------------------------------------------------------------------
def init_params(key, in_m, in_p, inter=64, ca_ratio=16):
    hidden = inter // ca_ratio
    keys = jax.random.split(key, 16)

    def w(k, shape, fan_in):
        return jax.random.normal(k, shape, jnp.float32) / jnp.sqrt(fan_in)

    def b(k, shape):
        return 0.01 * jax.random.normal(k, shape, jnp.float32)

    return {
        "conv1_w0": w(keys[0], (3, 3, in_m, inter), 9 * in_m),
        "conv1_b0": b(keys[1], (inter,)),
        "conv1_w1": w(keys[2], (3, 3, inter, inter), 9 * inter),
        "conv1_b1": b(keys[3], (inter,)),
        "conv2_w0": w(keys[4], (3, 3, in_p, inter), 9 * in_p),
        "conv2_b0": b(keys[5], (inter,)),
        "conv2_w1": w(keys[6], (3, 3, inter, inter), 9 * inter),
        "conv2_b1": b(keys[7], (inter,)),
        "conv_1_w0": w(keys[8], (2 * inter, hidden), 2 * inter),
        "conv_1_b0": b(keys[9], (hidden,)),
        "conv_1_w1": w(keys[10], (hidden, 2 * inter), hidden),
        "conv_1_b1": b(keys[11], (2 * inter,)),
        "mlp1_w": w(keys[12], (2 * inter, inter), 2 * inter),
        "mlp1_b": b(keys[13], (inter,)),
        "mlp2_w": w(keys[14], (2 * inter, inter), 2 * inter),
        "mlp2_b": b(keys[15], (inter,)),
    }


if __name__ == "__main__":
    key = jax.random.PRNGKey(0)
    k_m, k_p, k_w = jax.random.split(key, 3)

    B, H, W = 2, 16, 16
    in_channels_m, in_channels_p = 4, 4
    inter_channels, ca_ratio = 64, 16

    # NHWC inputs (PyTorch NCHW equivalent: (2, 4, 16, 16)).
    m_in = jax.random.normal(k_m, (B, H, W, in_channels_m), jnp.float32)
    p_in = jax.random.normal(k_p, (B, H, W, in_channels_p), jnp.float32)

    params = init_params(k_w, in_channels_m, in_channels_p,
                         inter_channels, ca_ratio)

    fwd = jax.jit(mlaf_forward)
    m_out, p_out, f_out = fwd(m_in, p_in, params)
    jax.block_until_ready((m_out, p_out, f_out))

    assert m_out.shape == (B, H, W, inter_channels)
    assert p_out.shape == (B, H, W, inter_channels)
    assert f_out.shape == (B, H, W, inter_channels)

    # Validate against a pure-JAX reference in the ORIGINAL op order (checks
    # the concat-removal / pool-before-expand / fused-MLP reorderings).
    m_r, p_r, f_r = mlaf_reference(m_in, p_in, params)
    for got, want in ((m_out, m_r), (p_out, p_r), (f_out, f_r)):
        err = float(jnp.max(jnp.abs(got - want)))
        assert err < 2e-2, f"max abs err {err}"

    print("KERNEL_OK")
</pallas_src>

<mosaic_0001>
module attributes {stable_mosaic.version = 11 : i64} {
  func.func @_mlaf_kernel(%arg0: i32, %arg1: memref<1x16x16x4xf32, #tpu.memory_space<vmem>>, %arg2: memref<1x16x16x4xf32, #tpu.memory_space<vmem>>, %arg3: memref<36x64xbf16, #tpu.memory_space<vmem>>, %arg4: memref<1x64xf32, #tpu.memory_space<vmem>>, %arg5: memref<576x64xbf16, #tpu.memory_space<vmem>>, %arg6: memref<1x64xf32, #tpu.memory_space<vmem>>, %arg7: memref<36x64xbf16, #tpu.memory_space<vmem>>, %arg8: memref<1x64xf32, #tpu.memory_space<vmem>>, %arg9: memref<576x64xbf16, #tpu.memory_space<vmem>>, %arg10: memref<1x64xf32, #tpu.memory_space<vmem>>, %arg11: memref<64x4xf32, #tpu.memory_space<vmem>>, %arg12: memref<64x4xf32, #tpu.memory_space<vmem>>, %arg13: memref<1x4xf32, #tpu.memory_space<vmem>>, %arg14: memref<4x128xf32, #tpu.memory_space<vmem>>, %arg15: memref<1x128xf32, #tpu.memory_space<vmem>>, %arg16: memref<128x128xf32, #tpu.memory_space<vmem>>, %arg17: memref<1x128xf32, #tpu.memory_space<vmem>>, %arg18: memref<1x256x64xf32, #tpu.memory_space<vmem>>, %arg19: memref<1x256x64xf32, #tpu.memory_space<vmem>>, %arg20: memref<1x256x64xf32, #tpu.memory_space<vmem>>, %arg21: memref<18x18x4xf32, #tpu.memory_space<vmem>>, %arg22: memref<18x18x4xf32, #tpu.memory_space<vmem>>, %arg23: memref<18x18x64xf32, #tpu.memory_space<vmem>>) attributes {dimension_semantics = [#tpu.dimension_semantics<parallel>], iteration_bounds = array<i64: 2>, scalar_prefetch = 0 : i64, scratch_operands = 3 : i64, tpu.core_type = #tpu.core_type<tc>, window_params = [{transform_indices = @transform_0, window_bounds = array<i64: 1, 16, 16, 4>}, {transform_indices = @transform_1, window_bounds = array<i64: 1, 16, 16, 4>}, {pipeline_mode = #tpu.pipeline_mode<synchronous>, transform_indices = @transform_2, window_bounds = array<i64: 36, 64>}, {pipeline_mode = #tpu.pipeline_mode<synchronous>, transform_indices = @transform_3, window_bounds = array<i64: 1, 64>}, {pipeline_mode = #tpu.pipeline_mode<synchronous>, transform_indices = @transform_4, window_bounds = array<i64: 576, 64>}, {pipeline_mode = #tpu.pipeline_mode<synchronous>, transform_indices = @transform_5, window_bounds = array<i64: 1, 64>}, {pipeline_mode = #tpu.pipeline_mode<synchronous>, transform_indices = @transform_6, window_bounds = array<i64: 36, 64>}, {pipeline_mode = #tpu.pipeline_mode<synchronous>, transform_indices = @transform_7, window_bounds = array<i64: 1, 64>}, {pipeline_mode = #tpu.pipeline_mode<synchronous>, transform_indices = @transform_8, window_bounds = array<i64: 576, 64>}, {pipeline_mode = #tpu.pipeline_mode<synchronous>, transform_indices = @transform_9, window_bounds = array<i64: 1, 64>}, {pipeline_mode = #tpu.pipeline_mode<synchronous>, transform_indices = @transform_10, window_bounds = array<i64: 64, 4>}, {pipeline_mode = #tpu.pipeline_mode<synchronous>, transform_indices = @transform_11, window_bounds = array<i64: 64, 4>}, {pipeline_mode = #tpu.pipeline_mode<synchronous>, transform_indices = @transform_12, window_bounds = array<i64: 1, 4>}, {pipeline_mode = #tpu.pipeline_mode<synchronous>, transform_indices = @transform_13, window_bounds = array<i64: 4, 128>}, {pipeline_mode = #tpu.pipeline_mode<synchronous>, transform_indices = @transform_14, window_bounds = array<i64: 1, 128>}, {pipeline_mode = #tpu.pipeline_mode<synchronous>, transform_indices = @transform_15, window_bounds = array<i64: 128, 128>}, {pipeline_mode = #tpu.pipeline_mode<synchronous>, transform_indices = @transform_16, window_bounds = array<i64: 1, 128>}, {transform_indices = @transform_17, window_bounds = array<i64: 1, 256, 64>}, {transform_indices = @transform_18, window_bounds = array<i64: 1, 256, 64>}, {transform_indices = @transform_19, window_bounds = array<i64: 1, 256, 64>}]} {
    %c0 = arith.constant 0 : index
    %c0_0 = arith.constant 0 : index
    %c0_1 = arith.constant 0 : index
    %c0_2 = arith.constant 0 : index
    %0 = vector.load %arg1[%c0, %c0_0, %c0_1, %c0_2] : memref<1x16x16x4xf32, #tpu.memory_space<vmem>>, vector<1x16x16x4xf32>
    %1 = vector.shape_cast %0 : vector<1x16x16x4xf32> to vector<16x16x4xf32>
    %cst = arith.constant 0.000000e+00 : f32
    %2 = vector.broadcast %cst : f32 to vector<18x18x4xf32>
    %c0_3 = arith.constant 0 : index
    %c0_4 = arith.constant 0 : index
    %c0_5 = arith.constant 0 : index
    %3 = vector.load %arg21[%c0_3, %c0_4, %c0_5] : memref<18x18x4xf32, #tpu.memory_space<vmem>>, vector<18x18x4xf32>
    tpu.vector_store %arg21[%c0_3, %c0_4, %c0_5], %2 {strides = array<i32>} : memref<18x18x4xf32, #tpu.memory_space<vmem>>, vector<18x18x4xf32>,
    %c1 = arith.constant 1 : index
    %c1_6 = arith.constant 1 : index
    %c0_7 = arith.constant 0 : index
    %4 = vector.load %arg21[%c1, %c1_6, %c0_7] : memref<18x18x4xf32, #tpu.memory_space<vmem>>, vector<16x16x4xf32>
    tpu.vector_store %arg21[%c1, %c1_6, %c0_7], %1 {strides = array<i32>} : memref<18x18x4xf32, #tpu.memory_space<vmem>>, vector<16x16x4xf32>,
    %c0_8 = arith.constant 0 : index
    %c0_9 = arith.constant 0 : index
    %c0_10 = arith.constant 0 : index
    %5 = vector.load %arg21[%c0_8, %c0_9, %c0_10] : memref<18x18x4xf32, #tpu.memory_space<vmem>>, vector<18x18x4xf32>
    %6 = vector.extract_strided_slice %5 {offsets = [0, 0, 0], sizes = [16, 16, 4], strides = [1, 1, 1]} : vector<18x18x4xf32> to vector<16x16x4xf32>
    %7 = vector.extract_strided_slice %5 {offsets = [0, 1, 0], sizes = [16, 16, 4], strides = [1, 1, 1]} : vector<18x18x4xf32> to vector<16x16x4xf32>
    %8 = vector.extract_strided_slice %5 {offsets = [0, 2, 0], sizes = [16, 16, 4], strides = [1, 1, 1]} : vector<18x18x4xf32> to vector<16x16x4xf32>
    %9 = vector.extract_strided_slice %5 {offsets = [1, 0, 0], sizes = [16, 16, 4], strides = [1, 1, 1]} : vector<18x18x4xf32> to vector<16x16x4xf32>
    %10 = vector.extract_strided_slice %5 {offsets = [1, 1, 0], sizes = [16, 16, 4], strides = [1, 1, 1]} : vector<18x18x4xf32> to vector<16x16x4xf32>
    %11 = vector.extract_strided_slice %5 {offsets = [1, 2, 0], sizes = [16, 16, 4], strides = [1, 1, 1]} : vector<18x18x4xf32> to vector<16x16x4xf32>
    %12 = vector.extract_strided_slice %5 {offsets = [2, 0, 0], sizes = [16, 16, 4], strides = [1, 1, 1]} : vector<18x18x4xf32> to vector<16x16x4xf32>
    %13 = vector.extract_strided_slice %5 {offsets = [2, 1, 0], sizes = [16, 16, 4], strides = [1, 1, 1]} : vector<18x18x4xf32> to vector<16x16x4xf32>
    %14 = vector.extract_strided_slice %5 {offsets = [2, 2, 0], sizes = [16, 16, 4], strides = [1, 1, 1]} : vector<18x18x4xf32> to vector<16x16x4xf32>
    %15 = tpu.concatenate %6, %7, %8, %9, %10, %11, %12, %13, %14 in 2 : vector<16x16x4xf32>, vector<16x16x4xf32>, vector<16x16x4xf32>, vector<16x16x4xf32>, vector<16x16x4xf32>, vector<16x16x4xf32>, vector<16x16x4xf32>, vector<16x16x4xf32>, vector<16x16x4xf32> -> vector<16x16x36xf32>
    %16 = vector.shape_cast %15 : vector<16x16x36xf32> to vector<256x36xf32>
    %17 = arith.truncf %16 : vector<256x36xf32> to vector<256x36xbf16>
    %c0_11 = arith.constant 0 : index
    %c0_12 = arith.constant 0 : index
    %18 = vector.load %arg3[%c0_11, %c0_12] : memref<36x64xbf16, #tpu.memory_space<vmem>>, vector<36x64xbf16>
    %cst_13 = arith.constant dense<0.000000e+00> : vector<256x64xf32>
    %19 = tpu.matmul %17, %18, %cst_13 {dimension_numbers = #tpu.dot_dimension_numbers<[1], [0], [0], [1], [0, 0, 1, 1], [], []>} : vector<256x36xbf16>, vector<36x64xbf16>, vector<256x64xf32> -> vector<256x64xf32>
    %c0_14 = arith.constant 0 : index
    %c0_15 = arith.constant 0 : index
    %20 = vector.load %arg4[%c0_14, %c0_15] : memref<1x64xf32, #tpu.memory_space<vmem>>, vector<1x64xf32>
    %21 = vector.broadcast %20 : vector<1x64xf32> to vector<256x64xf32>
    %22 = arith.addf %19, %21 : vector<256x64xf32>
    %cst_16 = arith.constant 0.000000e+00 : f32
    %23 = vector.broadcast %cst_16 : f32 to vector<256x64xf32>
    %24 = arith.maximumf %22, %23 : vector<256x64xf32>
    %25 = vector.shape_cast %24 : vector<256x64xf32> to vector<16x16x64xf32>
    %cst_17 = arith.constant 0.000000e+00 : f32
    %26 = vector.broadcast %cst_17 : f32 to vector<18x18x64xf32>
    %c0_18 = arith.constant 0 : index
    %c0_19 = arith.constant 0 : index
    %c0_20 = arith.constant 0 : index
    %27 = vector.load %arg23[%c0_18, %c0_19, %c0_20] : memref<18x18x64xf32, #tpu.memory_space<vmem>>, vector<18x18x64xf32>
    tpu.vector_store %arg23[%c0_18, %c0_19, %c0_20], %26 {strides = array<i32>} : memref<18x18x64xf32, #tpu.memory_space<vmem>>, vector<18x18x64xf32>,
    %c1_21 = arith.constant 1 : index
    %c1_22 = arith.constant 1 : index
    %c0_23 = arith.constant 0 : index
    %28 = vector.load %arg23[%c1_21, %c1_22, %c0_23] : memref<18x18x64xf32, #tpu.memory_space<vmem>>, vector<16x16x64xf32>
    tpu.vector_store %arg23[%c1_21, %c1_22, %c0_23], %25 {strides = array<i32>} : memref<18x18x64xf32, #tpu.memory_space<vmem>>, vector<16x16x64xf32>,
    %c0_24 = arith.constant 0 : index
    %c0_25 = arith.constant 0 : index
    %c0_26 = arith.constant 0 : index
    %29 = vector.load %arg23[%c0_24, %c0_25, %c0_26] : memref<18x18x64xf32, #tpu.memory_space<vmem>>, vector<18x18x64xf32>
    %30 = vector.extract_strided_slice %29 {offsets = [0, 0, 0], sizes = [16, 16, 64], strides = [1, 1, 1]} : vector<18x18x64xf32> to vector<16x16x64xf32>
    %31 = vector.extract_strided_slice %29 {offsets = [0, 1, 0], sizes = [16, 16, 64], strides = [1, 1, 1]} : vector<18x18x64xf32> to vector<16x16x64xf32>
    %32 = vector.extract_strided_slice %29 {offsets = [0, 2, 0], sizes = [16, 16, 64], strides = [1, 1, 1]} : vector<18x18x64xf32> to vector<16x16x64xf32>
    %33 = vector.extract_strided_slice %29 {offsets = [1, 0, 0], sizes = [16, 16, 64], strides = [1, 1, 1]} : vector<18x18x64xf32> to vector<16x16x64xf32>
    %34 = vector.extract_strided_slice %29 {offsets = [1, 1, 0], sizes = [16, 16, 64], strides = [1, 1, 1]} : vector<18x18x64xf32> to vector<16x16x64xf32>
    %35 = vector.extract_strided_slice %29 {offsets = [1, 2, 0], sizes = [16, 16, 64], strides = [1, 1, 1]} : vector<18x18x64xf32> to vector<16x16x64xf32>
    %36 = vector.extract_strided_slice %29 {offsets = [2, 0, 0], sizes = [16, 16, 64], strides = [1, 1, 1]} : vector<18x18x64xf32> to vector<16x16x64xf32>
    %37 = vector.extract_strided_slice %29 {offsets = [2, 1, 0], sizes = [16, 16, 64], strides = [1, 1, 1]} : vector<18x18x64xf32> to vector<16x16x64xf32>
    %38 = vector.extract_strided_slice %29 {offsets = [2, 2, 0], sizes = [16, 16, 64], strides = [1, 1, 1]} : vector<18x18x64xf32> to vector<16x16x64xf32>
    %39 = tpu.concatenate %30, %31, %32, %33, %34, %35, %36, %37, %38 in 2 : vector<16x16x64xf32>, vector<16x16x64xf32>, vector<16x16x64xf32>, vector<16x16x64xf32>, vector<16x16x64xf32>, vector<16x16x64xf32>, vector<16x16x64xf32>, vector<16x16x64xf32>, vector<16x16x64xf32> -> vector<16x16x576xf32>
    %40 = vector.shape_cast %39 : vector<16x16x576xf32> to vector<256x576xf32>
    %41 = arith.truncf %40 : vector<256x576xf32> to vector<256x576xbf16>
    %c0_27 = arith.constant 0 : index
    %c0_28 = arith.constant 0 : index
    %42 = vector.load %arg5[%c0_27, %c0_28] : memref<576x64xbf16, #tpu.memory_space<vmem>>, vector<576x64xbf16>
    %cst_29 = arith.constant dense<0.000000e+00> : vector<256x64xf32>
    %43 = tpu.matmul %41, %42, %cst_29 {dimension_numbers = #tpu.dot_dimension_numbers<[1], [0], [0], [1], [0, 0, 1, 1], [], []>} : vector<256x576xbf16>, vector<576x64xbf16>, vector<256x64xf32> -> vector<256x64xf32>
    %c0_30 = arith.constant 0 : index
    %c0_31 = arith.constant 0 : index
    %44 = vector.load %arg6[%c0_30, %c0_31] : memref<1x64xf32, #tpu.memory_space<vmem>>, vector<1x64xf32>
    %45 = vector.broadcast %44 : vector<1x64xf32> to vector<256x64xf32>
    %46 = arith.addf %43, %45 : vector<256x64xf32>
    %c0_32 = arith.constant 0 : index
    %c0_33 = arith.constant 0 : index
    %c0_34 = arith.constant 0 : index
    %c0_35 = arith.constant 0 : index
    %47 = vector.load %arg2[%c0_32, %c0_33, %c0_34, %c0_35] : memref<1x16x16x4xf32, #tpu.memory_space<vmem>>, vector<1x16x16x4xf32>
    %48 = vector.shape_cast %47 : vector<1x16x16x4xf32> to vector<16x16x4xf32>
    %cst_36 = arith.constant 0.000000e+00 : f32
    %49 = vector.broadcast %cst_36 : f32 to vector<18x18x4xf32>
    %c0_37 = arith.constant 0 : index
    %c0_38 = arith.constant 0 : index
    %c0_39 = arith.constant 0 : index
    %50 = vector.load %arg22[%c0_37, %c0_38, %c0_39] : memref<18x18x4xf32, #tpu.memory_space<vmem>>, vector<18x18x4xf32>
    tpu.vector_store %arg22[%c0_37, %c0_38, %c0_39], %49 {strides = array<i32>} : memref<18x18x4xf32, #tpu.memory_space<vmem>>, vector<18x18x4xf32>,
    %c1_40 = arith.constant 1 : index
    %c1_41 = arith.constant 1 : index
    %c0_42 = arith.constant 0 : index
    %51 = vector.load %arg22[%c1_40, %c1_41, %c0_42] : memref<18x18x4xf32, #tpu.memory_space<vmem>>, vector<16x16x4xf32>
    tpu.vector_store %arg22[%c1_40, %c1_41, %c0_42], %48 {strides = array<i32>} : memref<18x18x4xf32, #tpu.memory_space<vmem>>, vector<16x16x4xf32>,
    %c0_43 = arith.constant 0 : index
    %c0_44 = arith.constant 0 : index
    %c0_45 = arith.constant 0 : index
    %52 = vector.load %arg22[%c0_43, %c0_44, %c0_45] : memref<18x18x4xf32, #tpu.memory_space<vmem>>, vector<18x18x4xf32>
    %53 = vector.extract_strided_slice %52 {offsets = [0, 0, 0], sizes = [16, 16, 4], strides = [1, 1, 1]} : vector<18x18x4xf32> to vector<16x16x4xf32>
    %54 = vector.extract_strided_slice %52 {offsets = [0, 1, 0], sizes = [16, 16, 4], strides = [1, 1, 1]} : vector<18x18x4xf32> to vector<16x16x4xf32>
    %55 = vector.extract_strided_slice %52 {offsets = [0, 2, 0], sizes = [16, 16, 4], strides = [1, 1, 1]} : vector<18x18x4xf32> to vector<16x16x4xf32>
    %56 = vector.extract_strided_slice %52 {offsets = [1, 0, 0], sizes = [16, 16, 4], strides = [1, 1, 1]} : vector<18x18x4xf32> to vector<16x16x4xf32>
    %57 = vector.extract_strided_slice %52 {offsets = [1, 1, 0], sizes = [16, 16, 4], strides = [1, 1, 1]} : vector<18x18x4xf32> to vector<16x16x4xf32>
    %58 = vector.extract_strided_slice %52 {offsets = [1, 2, 0], sizes = [16, 16, 4], strides = [1, 1, 1]} : vector<18x18x4xf32> to vector<16x16x4xf32>
    %59 = vector.extract_strided_slice %52 {offsets = [2, 0, 0], sizes = [16, 16, 4], strides = [1, 1, 1]} : vector<18x18x4xf32> to vector<16x16x4xf32>
    %60 = vector.extract_strided_slice %52 {offsets = [2, 1, 0], sizes = [16, 16, 4], strides = [1, 1, 1]} : vector<18x18x4xf32> to vector<16x16x4xf32>
    %61 = vector.extract_strided_slice %52 {offsets = [2, 2, 0], sizes = [16, 16, 4], strides = [1, 1, 1]} : vector<18x18x4xf32> to vector<16x16x4xf32>
    %62 = tpu.concatenate %53, %54, %55, %56, %57, %58, %59, %60, %61 in 2 : vector<16x16x4xf32>, vector<16x16x4xf32>, vector<16x16x4xf32>, vector<16x16x4xf32>, vector<16x16x4xf32>, vector<16x16x4xf32>, vector<16x16x4xf32>, vector<16x16x4xf32>, vector<16x16x4xf32> -> vector<16x16x36xf32>
    %63 = vector.shape_cast %62 : vector<16x16x36xf32> to vector<256x36xf32>
    %64 = arith.truncf %63 : vector<256x36xf32> to vector<256x36xbf16>
    %c0_46 = arith.constant 0 : index
    %c0_47 = arith.constant 0 : index
    %65 = vector.load %arg7[%c0_46, %c0_47] : memref<36x64xbf16, #tpu.memory_space<vmem>>, vector<36x64xbf16>
    %cst_48 = arith.constant dense<0.000000e+00> : vector<256x64xf32>
    %66 = tpu.matmul %64, %65, %cst_48 {dimension_numbers = #tpu.dot_dimension_numbers<[1], [0], [0], [1], [0, 0, 1, 1], [], []>} : vector<256x36xbf16>, vector<36x64xbf16>, vector<256x64xf32> -> vector<256x64xf32>
    %c0_49 = arith.constant 0 : index
    %c0_50 = arith.constant 0 : index
    %67 = vector.load %arg8[%c0_49, %c0_50] : memref<1x64xf32, #tpu.memory_space<vmem>>, vector<1x64xf32>
    %68 = vector.broadcast %67 : vector<1x64xf32> to vector<256x64xf32>
    %69 = arith.addf %66, %68 : vector<256x64xf32>
    %cst_51 = arith.constant 0.000000e+00 : f32
    %70 = vector.broadcast %cst_51 : f32 to vector<256x64xf32>
    %71 = arith.maximumf %69, %70 : vector<256x64xf32>
    %72 = vector.shape_cast %71 : vector<256x64xf32> to vector<16x16x64xf32>
    %cst_52 = arith.constant 0.000000e+00 : f32
    %73 = vector.broadcast %cst_52 : f32 to vector<18x18x64xf32>
    %c0_53 = arith.constant 0 : index
    %c0_54 = arith.constant 0 : index
    %c0_55 = arith.constant 0 : index
    %74 = vector.load %arg23[%c0_53, %c0_54, %c0_55] : memref<18x18x64xf32, #tpu.memory_space<vmem>>, vector<18x18x64xf32>
    tpu.vector_store %arg23[%c0_53, %c0_54, %c0_55], %73 {strides = array<i32>} : memref<18x18x64xf32, #tpu.memory_space<vmem>>, vector<18x18x64xf32>,
    %c1_56 = arith.constant 1 : index
    %c1_57 = arith.constant 1 : index
    %c0_58 = arith.constant 0 : index
    %75 = vector.load %arg23[%c1_56, %c1_57, %c0_58] : memref<18x18x64xf32, #tpu.memory_space<vmem>>, vector<16x16x64xf32>
    tpu.vector_store %arg23[%c1_56, %c1_57, %c0_58], %72 {strides = array<i32>} : memref<18x18x64xf32, #tpu.memory_space<vmem>>, vector<16x16x64xf32>,
    %c0_59 = arith.constant 0 : index
    %c0_60 = arith.constant 0 : index
    %c0_61 = arith.constant 0 : index
    %76 = vector.load %arg23[%c0_59, %c0_60, %c0_61] : memref<18x18x64xf32, #tpu.memory_space<vmem>>, vector<18x18x64xf32>
    %77 = vector.extract_strided_slice %76 {offsets = [0, 0, 0], sizes = [16, 16, 64], strides = [1, 1, 1]} : vector<18x18x64xf32> to vector<16x16x64xf32>
    %78 = vector.extract_strided_slice %76 {offsets = [0, 1, 0], sizes = [16, 16, 64], strides = [1, 1, 1]} : vector<18x18x64xf32> to vector<16x16x64xf32>
    %79 = vector.extract_strided_slice %76 {offsets = [0, 2, 0], sizes = [16, 16, 64], strides = [1, 1, 1]} : vector<18x18x64xf32> to vector<16x16x64xf32>
    %80 = vector.extract_strided_slice %76 {offsets = [1, 0, 0], sizes = [16, 16, 64], strides = [1, 1, 1]} : vector<18x18x64xf32> to vector<16x16x64xf32>
    %81 = vector.extract_strided_slice %76 {offsets = [1, 1, 0], sizes = [16, 16, 64], strides = [1, 1, 1]} : vector<18x18x64xf32> to vector<16x16x64xf32>
    %82 = vector.extract_strided_slice %76 {offsets = [1, 2, 0], sizes = [16, 16, 64], strides = [1, 1, 1]} : vector<18x18x64xf32> to vector<16x16x64xf32>
    %83 = vector.extract_strided_slice %76 {offsets = [2, 0, 0], sizes = [16, 16, 64], strides = [1, 1, 1]} : vector<18x18x64xf32> to vector<16x16x64xf32>
    %84 = vector.extract_strided_slice %76 {offsets = [2, 1, 0], sizes = [16, 16, 64], strides = [1, 1, 1]} : vector<18x18x64xf32> to vector<16x16x64xf32>
    %85 = vector.extract_strided_slice %76 {offsets = [2, 2, 0], sizes = [16, 16, 64], strides = [1, 1, 1]} : vector<18x18x64xf32> to vector<16x16x64xf32>
    %86 = tpu.concatenate %77, %78, %79, %80, %81, %82, %83, %84, %85 in 2 : vector<16x16x64xf32>, vector<16x16x64xf32>, vector<16x16x64xf32>, vector<16x16x64xf32>, vector<16x16x64xf32>, vector<16x16x64xf32>, vector<16x16x64xf32>, vector<16x16x64xf32>, vector<16x16x64xf32> -> vector<16x16x576xf32>
    %87 = vector.shape_cast %86 : vector<16x16x576xf32> to vector<256x576xf32>
    %88 = arith.truncf %87 : vector<256x576xf32> to vector<256x576xbf16>
    %c0_62 = arith.constant 0 : index
    %c0_63 = arith.constant 0 : index
    %89 = vector.load %arg9[%c0_62, %c0_63] : memref<576x64xbf16, #tpu.memory_space<vmem>>, vector<576x64xbf16>
    %cst_64 = arith.constant dense<0.000000e+00> : vector<256x64xf32>
    %90 = tpu.matmul %88, %89, %cst_64 {dimension_numbers = #tpu.dot_dimension_numbers<[1], [0], [0], [1], [0, 0, 1, 1], [], []>} : vector<256x576xbf16>, vector<576x64xbf16>, vector<256x64xf32> -> vector<256x64xf32>
    %c0_65 = arith.constant 0 : index
    %c0_66 = arith.constant 0 : index
    %91 = vector.load %arg10[%c0_65, %c0_66] : memref<1x64xf32, #tpu.memory_space<vmem>>, vector<1x64xf32>
    %92 = vector.broadcast %91 : vector<1x64xf32> to vector<256x64xf32>
    %93 = arith.addf %90, %92 : vector<256x64xf32>
    %c0_67 = arith.constant 0 : index
    %c0_68 = arith.constant 0 : index
    %94 = vector.load %arg11[%c0_67, %c0_68] : memref<64x4xf32, #tpu.memory_space<vmem>>, vector<64x4xf32>
    %cst_69 = arith.constant dense<0.000000e+00> : vector<256x4xf32>
    %95 = tpu.matmul %46, %94, %cst_69 {dimension_numbers = #tpu.dot_dimension_numbers<[1], [0], [0], [1], [0, 0, 1, 1], [], []>} : vector<256x64xf32>, vector<64x4xf32>, vector<256x4xf32> -> vector<256x4xf32>
    %c0_70 = arith.constant 0 : index
    %c0_71 = arith.constant 0 : index
    %96 = vector.load %arg12[%c0_70, %c0_71] : memref<64x4xf32, #tpu.memory_space<vmem>>, vector<64x4xf32>
    %cst_72 = arith.constant dense<0.000000e+00> : vector<256x4xf32>
    %97 = tpu.matmul %93, %96, %cst_72 {dimension_numbers = #tpu.dot_dimension_numbers<[1], [0], [0], [1], [0, 0, 1, 1], [], []>} : vector<256x64xf32>, vector<64x4xf32>, vector<256x4xf32> -> vector<256x4xf32>
    %98 = arith.addf %95, %97 : vector<256x4xf32>
    %c0_73 = arith.constant 0 : index
    %c0_74 = arith.constant 0 : index
    %99 = vector.load %arg13[%c0_73, %c0_74] : memref<1x4xf32, #tpu.memory_space<vmem>>, vector<1x4xf32>
    %100 = vector.broadcast %99 : vector<1x4xf32> to vector<256x4xf32>
    %101 = arith.addf %98, %100 : vector<256x4xf32>
    %cst_75 = arith.constant 0.000000e+00 : f32
    %102 = vector.broadcast %cst_75 : f32 to vector<256x4xf32>
    %103 = arith.maximumf %101, %102 : vector<256x4xf32>
    %cst_76 = arith.constant dense<0.000000e+00> : vector<4xf32>
    %104 = vector.multi_reduction <add>, %103, %cst_76 [0] : vector<256x4xf32> to vector<4xf32>
    %105 = vector.shape_cast %104 : vector<4xf32> to vector<1x4xf32>
    %cst_77 = arith.constant 2.560000e+02 : f32
    %106 = vector.broadcast %cst_77 : f32 to vector<1x4xf32>
    %107 = arith.divf %105, %106 : vector<1x4xf32>
    %c0_78 = arith.constant 0 : index
    %c0_79 = arith.constant 0 : index
    %108 = vector.load %arg14[%c0_78, %c0_79] : memref<4x128xf32, #tpu.memory_space<vmem>>, vector<4x128xf32>
    %cst_80 = arith.constant dense<0.000000e+00> : vector<1x128xf32>
    %109 = tpu.matmul %107, %108, %cst_80 {dimension_numbers = #tpu.dot_dimension_numbers<[1], [0], [0], [1], [0, 0, 1, 1], [], []>} : vector<1x4xf32>, vector<4x128xf32>, vector<1x128xf32> -> vector<1x128xf32>
    %c0_81 = arith.constant 0 : index
    %c0_82 = arith.constant 0 : index
    %110 = vector.load %arg15[%c0_81, %c0_82] : memref<1x128xf32, #tpu.memory_space<vmem>>, vector<1x128xf32>
    %111 = arith.addf %109, %110 : vector<1x128xf32>
    %c0_83 = arith.constant 0 : index
    %c0_84 = arith.constant 0 : index
    %112 = vector.load %arg16[%c0_83, %c0_84] : memref<128x128xf32, #tpu.memory_space<vmem>>, vector<128x128xf32>
    %cst_85 = arith.constant dense<0.000000e+00> : vector<1x128xf32>
    %113 = tpu.matmul %111, %112, %cst_85 {dimension_numbers = #tpu.dot_dimension_numbers<[1], [0], [0], [1], [0, 0, 1, 1], [], []>} : vector<1x128xf32>, vector<128x128xf32>, vector<1x128xf32> -> vector<1x128xf32>
    %c0_86 = arith.constant 0 : index
    %c0_87 = arith.constant 0 : index
    %114 = vector.load %arg17[%c0_86, %c0_87] : memref<1x128xf32, #tpu.memory_space<vmem>>, vector<1x128xf32>
    %115 = arith.addf %113, %114 : vector<1x128xf32>
    %116 = arith.negf %115 : vector<1x128xf32>
    %117 = math.exp %116 : vector<1x128xf32>
    %cst_88 = arith.constant 1.000000e+00 : f32
    %118 = vector.broadcast %cst_88 : f32 to vector<1x128xf32>
    %119 = arith.addf %118, %117 : vector<1x128xf32>
    %120 = arith.divf %118, %119 : vector<1x128xf32>
    %121 = vector.extract_strided_slice %120 {offsets = [0, 0], sizes = [1, 64], strides = [1, 1]} : vector<1x128xf32> to vector<1x64xf32>
    %122 = vector.extract_strided_slice %120 {offsets = [0, 64], sizes = [1, 64], strides = [1, 1]} : vector<1x128xf32> to vector<1x64xf32>
    %123 = vector.broadcast %121 : vector<1x64xf32> to vector<256x64xf32>
    %124 = arith.mulf %123, %46 : vector<256x64xf32>
    %125 = vector.broadcast %122 : vector<1x64xf32> to vector<256x64xf32>
    %126 = arith.mulf %125, %93 : vector<256x64xf32>
    %127 = arith.addf %124, %126 : vector<256x64xf32>
    %c0_89 = arith.constant 0 : index
    %c0_90 = arith.constant 0 : index
    %c0_91 = arith.constant 0 : index
    %128 = vector.load %arg18[%c0_89, %c0_90, %c0_91] : memref<1x256x64xf32, #tpu.memory_space<vmem>>, vector<1x256x64xf32>
    %129 = vector.shape_cast %128 : vector<1x256x64xf32> to vector<256x64xf32>
    %130 = vector.shape_cast %46 : vector<256x64xf32> to vector<1x256x64xf32>
    tpu.vector_store %arg18[%c0_89, %c0_90, %c0_91], %130 {strides = array<i32>} : memref<1x256x64xf32, #tpu.memory_space<vmem>>, vector<1x256x64xf32>,
    %c0_92 = arith.constant 0 : index
    %c0_93 = arith.constant 0 : index
    %c0_94 = arith.constant 0 : index
    %131 = vector.load %arg19[%c0_92, %c0_93, %c0_94] : memref<1x256x64xf32, #tpu.memory_space<vmem>>, vector<1x256x64xf32>
    %132 = vector.shape_cast %131 : vector<1x256x64xf32> to vector<256x64xf32>
    %133 = vector.shape_cast %93 : vector<256x64xf32> to vector<1x256x64xf32>
    tpu.vector_store %arg19[%c0_92, %c0_93, %c0_94], %133 {strides = array<i32>} : memref<1x256x64xf32, #tpu.memory_space<vmem>>, vector<1x256x64xf32>,
    %c0_95 = arith.constant 0 : index
    %c0_96 = arith.constant 0 : index
    %c0_97 = arith.constant 0 : index
    %134 = vector.load %arg20[%c0_95, %c0_96, %c0_97] : memref<1x256x64xf32, #tpu.memory_space<vmem>>, vector<1x256x64xf32>
    %135 = vector.shape_cast %134 : vector<1x256x64xf32> to vector<256x64xf32>
    %136 = vector.shape_cast %127 : vector<256x64xf32> to vector<1x256x64xf32>
    tpu.vector_store %arg20[%c0_95, %c0_96, %c0_97], %136 {strides = array<i32>} : memref<1x256x64xf32, #tpu.memory_space<vmem>>, vector<1x256x64xf32>,
    return
  }
  func.func @transform_0(%arg0: i32) -> (i32, i32, i32, i32) {
    %c0_i32 = arith.constant 0 : i32
    %c0_i32_0 = arith.constant 0 : i32
    %c0_i32_1 = arith.constant 0 : i32
    %c0_i32_2 = arith.constant 0 : i32
    return %arg0, %c0_i32, %c0_i32_0, %c0_i32_1 : i32, i32, i32, i32
  }
  func.func @transform_1(%arg0: i32) -> (i32, i32, i32, i32) {
    %c0_i32 = arith.constant 0 : i32
    %c0_i32_0 = arith.constant 0 : i32
    %c0_i32_1 = arith.constant 0 : i32
    %c0_i32_2 = arith.constant 0 : i32
    return %arg0, %c0_i32, %c0_i32_0, %c0_i32_1 : i32, i32, i32, i32
  }
  func.func @transform_2(%arg0: i32) -> (i32, i32) {
    %c0_i32 = arith.constant 0 : i32
    %c0_i32_0 = arith.constant 0 : i32
    %c0_i32_1 = arith.constant 0 : i32
    return %c0_i32, %c0_i32_0 : i32, i32
  }
  func.func @transform_3(%arg0: i32) -> (i32, i32) {
    %c0_i32 = arith.constant 0 : i32
    %c0_i32_0 = arith.constant 0 : i32
    %c0_i32_1 = arith.constant 0 : i32
    return %c0_i32, %c0_i32_0 : i32, i32
  }
  func.func @transform_4(%arg0: i32) -> (i32, i32) {
    %c0_i32 = arith.constant 0 : i32
    %c0_i32_0 = arith.constant 0 : i32
    %c0_i32_1 = arith.constant 0 : i32
    return %c0_i32, %c0_i32_0 : i32, i32
  }
  func.func @transform_5(%arg0: i32) -> (i32, i32) {
    %c0_i32 = arith.constant 0 : i32
    %c0_i32_0 = arith.constant 0 : i32
    %c0_i32_1 = arith.constant 0 : i32
    return %c0_i32, %c0_i32_0 : i32, i32
  }
  func.func @transform_6(%arg0: i32) -> (i32, i32) {
    %c0_i32 = arith.constant 0 : i32
    %c0_i32_0 = arith.constant 0 : i32
    %c0_i32_1 = arith.constant 0 : i32
    return %c0_i32, %c0_i32_0 : i32, i32
  }
  func.func @transform_7(%arg0: i32) -> (i32, i32) {
    %c0_i32 = arith.constant 0 : i32
    %c0_i32_0 = arith.constant 0 : i32
    %c0_i32_1 = arith.constant 0 : i32
    return %c0_i32, %c0_i32_0 : i32, i32
  }
  func.func @transform_8(%arg0: i32) -> (i32, i32) {
    %c0_i32 = arith.constant 0 : i32
    %c0_i32_0 = arith.constant 0 : i32
    %c0_i32_1 = arith.constant 0 : i32
    return %c0_i32, %c0_i32_0 : i32, i32
  }
  func.func @transform_9(%arg0: i32) -> (i32, i32) {
    %c0_i32 = arith.constant 0 : i32
    %c0_i32_0 = arith.constant 0 : i32
    %c0_i32_1 = arith.constant 0 : i32
    return %c0_i32, %c0_i32_0 : i32, i32
  }
  func.func @transform_10(%arg0: i32) -> (i32, i32) {
    %c0_i32 = arith.constant 0 : i32
    %c0_i32_0 = arith.constant 0 : i32
    %c0_i32_1 = arith.constant 0 : i32
    return %c0_i32, %c0_i32_0 : i32, i32
  }
  func.func @transform_11(%arg0: i32) -> (i32, i32) {
    %c0_i32 = arith.constant 0 : i32
    %c0_i32_0 = arith.constant 0 : i32
    %c0_i32_1 = arith.constant 0 : i32
    return %c0_i32, %c0_i32_0 : i32, i32
  }
  func.func @transform_12(%arg0: i32) -> (i32, i32) {
    %c0_i32 = arith.constant 0 : i32
    %c0_i32_0 = arith.constant 0 : i32
    %c0_i32_1 = arith.constant 0 : i32
    return %c0_i32, %c0_i32_0 : i32, i32
  }
  func.func @transform_13(%arg0: i32) -> (i32, i32) {
    %c0_i32 = arith.constant 0 : i32
    %c0_i32_0 = arith.constant 0 : i32
    %c0_i32_1 = arith.constant 0 : i32
    return %c0_i32, %c0_i32_0 : i32, i32
  }
  func.func @transform_14(%arg0: i32) -> (i32, i32) {
    %c0_i32 = arith.constant 0 : i32
    %c0_i32_0 = arith.constant 0 : i32
    %c0_i32_1 = arith.constant 0 : i32
    return %c0_i32, %c0_i32_0 : i32, i32
  }
  func.func @transform_15(%arg0: i32) -> (i32, i32) {
    %c0_i32 = arith.constant 0 : i32
    %c0_i32_0 = arith.constant 0 : i32
    %c0_i32_1 = arith.constant 0 : i32
    return %c0_i32, %c0_i32_0 : i32, i32
  }
  func.func @transform_16(%arg0: i32) -> (i32, i32) {
    %c0_i32 = arith.constant 0 : i32
    %c0_i32_0 = arith.constant 0 : i32
    %c0_i32_1 = arith.constant 0 : i32
    return %c0_i32, %c0_i32_0 : i32, i32
  }
  func.func @transform_17(%arg0: i32) -> (i32, i32, i32) {
    %c0_i32 = arith.constant 0 : i32
    %c0_i32_0 = arith.constant 0 : i32
    %c0_i32_1 = arith.constant 0 : i32
    return %arg0, %c0_i32, %c0_i32_0 : i32, i32, i32
  }
  func.func @transform_18(%arg0: i32) -> (i32, i32, i32) {
    %c0_i32 = arith.constant 0 : i32
    %c0_i32_0 = arith.constant 0 : i32
    %c0_i32_1 = arith.constant 0 : i32
    return %arg0, %c0_i32, %c0_i32_0 : i32, i32, i32
  }
  func.func @transform_19(%arg0: i32) -> (i32, i32, i32) {
    %c0_i32 = arith.constant 0 : i32
    %c0_i32_0 = arith.constant 0 : i32
    %c0_i32_1 = arith.constant 0 : i32
    return %arg0, %c0_i32, %c0_i32_0 : i32, i32, i32
  }
}

</mosaic_0001>

<bundles_post_ra>
// kernel: mlaf_forward.1
= control target key start
LH: loop header
LB: loop body
LE: loop exit
PB: predicated region body
PF: predicated region fallthrough
CT: control target
= control target key end

     0   :  { %s18960_s0 = inlined_call_operand.vmem [shape: f32[2,16,16,4], index: 0, kind: input, shape index: {}]   ;;  %s18961_s1 = inlined_call_operand.vmem [shape: f32[2,16,16,4], index: 1, kind: input, shape index: {}]   ;;  %s18962_s2 = inlined_call_operand.vmem [shape: bf16[36,64], index: 2, kind: input, shape index: {}]   ;;  %s18963_s3 = inlined_call_operand.vmem [shape: f32[1,64], index: 3, kind: input, shape index: {}]   ;;  %s18964_s4 = inlined_call_operand.vmem [shape: bf16[576,64], index: 4, kind: input, shape index: {}]   ;;  %s18965_s5 = inlined_call_operand.vmem [shape: f32[1,64], index: 5, kind: input, shape index: {}]   ;;  %s18966_s6 = inlined_call_operand.vmem [shape: bf16[36,64], index: 6, kind: input, shape index: {}]   ;;  %s18967_s7 = inlined_call_operand.vmem [shape: f32[1,64], index: 7, kind: input, shape index: {}]   ;;  %s18968_s8 = inlined_call_operand.vmem [shape: bf16[576,64], index: 8, kind: input, shape index: {}]   ;;  %s18969_s9 = inlined_call_operand.vmem [shape: f32[1,64], index: 9, kind: input, shape index: {}]   ;;  %s18970_s10 = inlined_call_operand.vmem [shape: f32[64,4], index: 10, kind: input, shape index: {}]   ;;  %s18971_s11 = inlined_call_operand.vmem [shape: f32[64,4], index: 11, kind: input, shape index: {}]   ;;  %s18972_s12 = inlined_call_operand.vmem [shape: f32[1,4], index: 12, kind: input, shape index: {}]   ;;  %s18973_s13 = inlined_call_operand.vmem [shape: f32[4,128], index: 13, kind: input, shape index: {}]   ;;  %s18974_s14 = inlined_call_operand.vmem [shape: f32[1,128], index: 14, kind: input, shape index: {}]   ;;  %s18975_s15 = inlined_call_operand.vmem [shape: f32[128,128], index: 15, kind: input, shape index: {}]   ;;  %s18976_s16 = inlined_call_operand.vmem [shape: f32[1,128], index: 16, kind: input, shape index: {}]   ;;  %s18977_s17 = inlined_call_operand.hbm [shape: f32[2,256,64], index: 17, kind: output, shape index: {0}]   ;;  %s18978_s18 = inlined_call_operand.hbm [shape: f32[2,256,64], index: 18, kind: output, shape index: {1}]   ;;  %s18979_s19 = inlined_call_operand.hbm [shape: f32[2,256,64], index: 19, kind: output, shape index: {2}]  }
   0x1   :  { %19312 = sst [smem:[#allocation158_spill]] %s18960_s0 }
   0x2   :  { %19313 = sst [smem:[#allocation159_spill]] %s18961_s1 }
   0x3   :  { %19314 = sst [smem:[#allocation160_spill]] %s18962_s2 }
   0x4   :  { %19315 = sst [smem:[#allocation161_spill]] %s18963_s3 }
   0x5   :  { %19316 = sst [smem:[#allocation162_spill]] %s18964_s4 }
   0x6   :  { %19317 = sst [smem:[#allocation163_spill]] %s18965_s5 }
   0x7   :  { %19318 = sst [smem:[#allocation164_spill]] %s18977_s17 }
   0x8   :  { %19319 = sst [smem:[#allocation165_spill]] %s18978_s18 }
   0x9   :  { %19320 = sst [smem:[#allocation166_spill]] %s18979_s19 }
   0xa   :  { %25 = vsyncpa [#allocation6], 0 }
   0xb   :  { %27 = vsyncpa [#allocation6 + $0x1], 0 }
   0xc   :  { %28 = vsyncpa [#allocation8], 0 }
   0xd   :  { %30 = vsyncpa [#allocation8 + $0x1], 0  ;;  %s12691_s0 = smov 0   ;;  %s12693_s30 = smov 0  }
   0xe   :  { %s12695_s20 = smov 0   ;;  %s12697_s21 = smov 0  }
   0xf LB: > { %19321 = sst [smem:[#allocation12_spill]] %s12561_s0  ;;  %s12712_s1 = sadd.s32 4294967295, %s12573_s21   ;;  %s12573_s21 = sphi %s12697_s21, %s19909_s21   ;;  %s12569_s20 = sphi %s12695_s20, %s19911_s20   ;;  %s12565_s30 = sphi %s12693_s30, %s19913_s30   ;;  %s12561_s0 = sphi %s12691_s0, %s19912_s0  }
  0x10   : > { %19322 = sst [smem:[#allocation13_spill]] %s12569_s20  ;;  %s18982_s22 = sadd.s32 4294967294, %s12573_s21  }
  0x11   : > { %19323 = sst [smem:[#allocation14_spill]] %s12573_s21  ;;  %s12716_s2 = sadd.s32 1, %s12573_s21  }
  0x12   : > { %19324 = sst [smem:[#allocation15_spill]] %s12712_s1  ;;  %s410_s23 = sadd.s32 1, %s12569_s20 }
  0x13   : > { %19325 = sst [smem:[#allocation16_spill]] %s12716_s2  ;;  %s407_s24 = ssub.s32 %s12573_s21, %s12716_s2 }
  0x14   : > { %p420_p0 = scmp.ne.s32.totalorder %s12569_s20, %s12565_s30  ;;  %p408_p1 = scmp.eq.s32.totalorder %s407_s24, 0 }
  0x15   : > { %p421_p2 = scmp.eq.s32.totalorder %s12712_s1, 1  ;;  %p426_p3 = scmp.ne.s32.totalorder %s12565_s30, %s12561_s0 }
  0x16   : > { %p427_p4 = scmp.eq.s32.totalorder %s18982_s22, 1  ;;  %p9146_p7 = scmp.ge.s32.totalorder %s12573_s21, 1 }
  0x17   : > { %s12729_s25 = scalar_select %p408_p1, %s12569_s20, %s410_s23  }
  0x18   : > { %p12731_p5 = por %p421_p2, %p420_p0  ;;  %p12735_p6 = por %p427_p4, %p426_p3 }
  0x19   : > { %19326 = sst [smem:[#allocation17_spill]] %s12729_s25  ;;  %p558_p8 = scmp.lt.s32.totalorder %s12573_s21, 3 }
  0x1a   : > { %s19327_s3 = scalar_select %p12731_p5, 1, 0 }
  0x1b   : > { %s19329_s26 = scalar_select %p12735_p6, 1, 0 }
  0x1c   : > { %19328 = sst [smem:[#allocation18_spill]] %s19327_s3  ;;  %p559_p9 = pnand %p9146_p7, %p558_p8 }
  0x1d   : > { %19330 = sst [smem:[#allocation19_spill]] %s19329_s26 }
  0x1e   : > { %562 = sbr.rel (%p559_p9) target bundleno = 2579 (0xa13), region = 88 }
  0x25   : > { %vm672_vm0 = vcmask 31744   ;;  %vm675_vm1 = vcmask 25600   ;;  %v19017_v0 = vmov 0.0   ;;  %p629_p10 = scmp.lt.s32.totalorder %s12712_s1, 1  ;;  %s19331_s24 = sld [smem:[#allocation158_spill]]  ;;  %vm1040_vm2 = vcmask 1045504  }
  0x26   : > { %673 = vst.msk [vmem:[#allocation2] sm:$0xff] %vm672_vm0, %v19017_v0  ;;  %674 = vst.msk [vmem:[#allocation2 + $0x8] sm:$0xff] %vm672_vm0, %v19017_v0  ;;  %vm863_vm3 = vcmask 1046528   ;;  %s18987_s29 = smov 8   ;;  %s18993_s23 = smov 4   ;;  %vm2174_vm4 = vcmask 1041408  }
  0x27   : > { %676 = vst.msk [vmem:[#allocation2 + $0x10] sm:$0x3] %vm675_vm1, %v19017_v0  ;;  %679 = vst.msk [vmem:[#allocation2 + $0x28] sm:$0x3] %vm675_vm1, %v19017_v0  ;;  %s12959_s27 = scalar_select %p629_p10, %s12712_s1, 1  ;;  %vm1851_vm5 = vcmask 64512  }
  0x28   : > { %677 = vst.msk [vmem:[#allocation2 + $0x18] sm:$0xff] %vm672_vm0, %v19017_v0  ;;  %678 = vst.msk [vmem:[#allocation2 + $0x20] sm:$0xff] %vm672_vm0, %v19017_v0  ;;  %s19332_s25 = sld [smem:[#allocation160_spill]]  ;;  %s18989_s20 = smov 16   ;;  %vm1884_vm6 = vcmask 97280   ;;  %vm1917_vm7 = vcmask 130048  }
  0x29   : > { %680 = vst.msk [vmem:[#allocation2 + $0x30] sm:$0xff] %vm672_vm0, %v19017_v0  ;;  %681 = vst.msk [vmem:[#allocation2 + $0x38] sm:$0xff] %vm672_vm0, %v19017_v0  ;;  %s18983_s28 = sshll.u32 %s12959_s27, 8  ;;  %s19339_s2 = smov 32   ;;  %vm1950_vm8 = vcmask 162816   ;;  %vm1983_vm9 = vcmask 195584  }
  0x2a   : > { %682 = vst.msk [vmem:[#allocation2 + $0x40] sm:$0x3] %vm675_vm1, %v19017_v0  ;;  %685 = vst.msk [vmem:[#allocation2 + $0x58] sm:$0x3] %vm675_vm1, %v19017_v0  ;;  %s19340_s26 = smov 4   ;;  %vm2016_vm10 = vcmask 228352  }
  0x2b   : > { %683 = vst.msk [vmem:[#allocation2 + $0x48] sm:$0xff] %vm672_vm0, %v19017_v0  ;;  %684 = vst.msk [vmem:[#allocation2 + $0x50] sm:$0xff] %vm672_vm0, %v19017_v0  ;;  %s12967_s22 = scalar_lea.vmem %s19331_s24, %s18983_s28  ;;  %s18984_s24 = smov 12   ;;  %vm2049_vm11 = vcmask 261120   ;;  %vm2125_vm12 = vcmask 293888   ;;  %vm2371_vm13 = vcmask 523264  }
  0x2c   : > { %686 = vst.msk [vmem:[#allocation2 + $0x60] sm:$0xff] %vm672_vm0, %v19017_v0  ;;  %687 = vst.msk [vmem:[#allocation2 + $0x68] sm:$0xff] %vm672_vm0, %v19017_v0  ;;  %v642_v1 = vld [vmem:[%s12967_s22 + $0x10] sm:$0xff]  ;;  %v643_v2 = vld [vmem:[%s12967_s22 + $0x18] sm:$0xff]  ;;  %s18995_s28 = smov 32   ;;  %vm2374_vm14 = vcmask 517120  }
  0x2d   : > { %688 = vst.msk [vmem:[#allocation2 + $0x70] sm:$0x3] %vm675_vm1, %v19017_v0  ;;  %691 = vst.msk [vmem:[#allocation2 + $0x88] sm:$0x3] %vm675_vm1, %v19017_v0  ;;  %v640_v3 = vld [vmem:[%s12967_s22] sm:$0xff]  ;;  %v762_v5 = vld [vmem:[#allocation2 + $0x8] sm:$0xff] }
  0x2e   : > { %689 = vst.msk [vmem:[#allocation2 + $0x78] sm:$0xff] %vm672_vm0, %v19017_v0  ;;  %690 = vst.msk [vmem:[#allocation2 + $0x80] sm:$0xff] %vm672_vm0, %v19017_v0  ;;  %v761_v4 = vld [vmem:[#allocation2] sm:$0xff]  ;;  %v763_v6 = vld [vmem:[#allocation2 + $0x10] sm:$0x3]  ;;  %v1042_v8 = vrot.slane %v762_v5, 2 }
  0x2f   : > { %692 = vst.msk [vmem:[#allocation2 + $0x90] sm:$0xff] %vm672_vm0, %v19017_v0  ;;  %693 = vst.msk [vmem:[#allocation2 + $0x98] sm:$0xff] %vm672_vm0, %v19017_v0  ;;  %v1041_v7 = vrot.slane %v761_v4, 2  ;;  %v1044_v9 = vrot.slane %v763_v6, 2  ;;  %v864_v10 = vrot.slane %v761_v4, 1  ;;  %v641_v11 = vld [vmem:[%s12967_s22 + $0x8] sm:$0xff] }
  0x30   : > { %694 = vst.msk [vmem:[#allocation2 + $0xa0] sm:$0x3] %vm675_vm1, %v19017_v0  ;;  %697 = vst.msk [vmem:[#allocation2 + $0xb8] sm:$0x3] %vm675_vm1, %v19017_v0  ;;  %v644_v12 = vld [vmem:[%s12967_s22 + $0x20] sm:$0xff]  ;;  %v865_v13 = vrot.slane %v762_v5, 1 }
  0x31   : > { %695 = vst.msk [vmem:[#allocation2 + $0xa8] sm:$0xff] %vm672_vm0, %v19017_v0  ;;  %696 = vst.msk [vmem:[#allocation2 + $0xb0] sm:$0xff] %vm672_vm0, %v19017_v0  ;;  %v867_v14 = vrot.slane %v763_v6, 1  ;;  %v645_v15 = vld [vmem:[%s12967_s22 + $0x28] sm:$0xff]  ;;  %v646_v16 = vld [vmem:[%s12967_s22 + $0x30] sm:$0xff]  ;;  %v1043_v18 = vsel %vm1040_vm2, %v1041_v7, %v1042_v8  ;;  %v1045_v19 = vsel %vm1040_vm2, %v1042_v8, %v1044_v9  ;;  %s19342_s19 = sld [smem:[#allocation159_spill]] }
  0x32   : > { %698 = vst.msk [vmem:[#allocation2 + $0xc0] sm:$0xff] %vm672_vm0, %v19017_v0  ;;  %699 = vst.msk [vmem:[#allocation2 + $0xc8] sm:$0xff] %vm672_vm0, %v19017_v0  ;;  %v647_v17 = vld [vmem:[%s12967_s22 + $0x38] sm:$0xff]  ;;  %v648_v20 = vld [vmem:[%s12967_s22 + $0x40] sm:$0xff]  ;;  %v10498_v23 = vpack.i.bf16 %v1045_v19, %v1043_v18  ;;  %v866_v24 = vsel %vm863_vm3, %v864_v10, %v865_v13  ;;  %s19346_s4 = sld [smem:[#allocation162_spill]]  ;;  %s19347_s0 = sld [smem:[#allocation161_spill]] }
  0x33   : > { %700 = vst.msk [vmem:[#allocation2 + $0xd0] sm:$0x3] %vm675_vm1, %v19017_v0  ;;  %703 = vst.msk [vmem:[#allocation2 + $0xe8] sm:$0x3] %vm675_vm1, %v19017_v0  ;;  %v649_v21 = vld [vmem:[%s12967_s22 + $0x48] sm:$0xff]  ;;  %v650_v22 = vld [vmem:[%s12967_s22 + $0x50] sm:$0xff]  ;;  %v868_v25 = vsel %vm863_vm3, %v865_v13, %v867_v14 }
  0x34   : > { %701 = vst.msk [vmem:[#allocation2 + $0xd8] sm:$0xff] %vm672_vm0, %v19017_v0  ;;  %702 = vst.msk [vmem:[#allocation2 + $0xe0] sm:$0xff] %vm672_vm0, %v19017_v0  ;;  %v651_v26 = vld [vmem:[%s12967_s22 + $0x58] sm:$0xff]  ;;  %v652_v27 = vld [vmem:[%s12967_s22 + $0x60] sm:$0xff]  ;;  %v10493_v29 = vpack.i.bf16 %v868_v25, %v866_v24  ;;  %10499 = vrot.lane.b32.xlu1 %v10498_v23, %s18987_s29  ;;  %s19717_s5 = sld [smem:[#allocation163_spill]]  ;;  %vm8365_vm15 = vcmask 1043456  }
  0x35   : > { %704 = vst.msk [vmem:[#allocation2 + $0xf0] sm:$0xff] %vm672_vm0, %v19017_v0  ;;  %705 = vst.msk [vmem:[#allocation2 + $0xf8] sm:$0xff] %vm672_vm0, %v19017_v0  ;;  %v653_v28 = vld [vmem:[%s12967_s22 + $0x68] sm:$0xff]  ;;  %v654_v30 = vld [vmem:[%s12967_s22 + $0x70] sm:$0xff]  ;;  %s19898_s3 = sld [smem:[#allocation15_spill]] }
  0x36   : > { %706 = vst.msk [vmem:[#allocation2 + $0x100] sm:$0x3] %vm675_vm1, %v19017_v0  ;;  %709 = vst.msk [vmem:[#allocation2 + $0x118] sm:$0x3] %vm675_vm1, %v19017_v0  ;;  %v655_v31 = vld [vmem:[%s12967_s22 + $0x78] sm:$0xff]  ;;  %v656_v32 = vld [vmem:[%s12967_s22 + $0x80] sm:$0xff]  ;;  %10494 = vrot.lane.b32.xlu0 %v10493_v29, %s18993_s23 }
  0x37   : > { %707 = vst.msk [vmem:[#allocation2 + $0x108] sm:$0xff] %vm672_vm0, %v19017_v0  ;;  %708 = vst.msk [vmem:[#allocation2 + $0x110] sm:$0xff] %vm672_vm0, %v19017_v0  ;;  %v657_v33 = vld [vmem:[%s12967_s22 + $0x88] sm:$0xff]  ;;  %v658_v34 = vld [vmem:[%s12967_s22 + $0x90] sm:$0xff] }
  0x38   : > { %710 = vst.msk [vmem:[#allocation2 + $0x120] sm:$0xff] %vm672_vm0, %v19017_v0  ;;  %711 = vst.msk [vmem:[#allocation2 + $0x128] sm:$0xff] %vm672_vm0, %v19017_v0  ;;  %v659_v35 = vld [vmem:[%s12967_s22 + $0x98] sm:$0xff]  ;;  %v12273_v7 = vld [vmem:[%s19332_s25] sm:$0xff]   ;;  %s19348_s18 = smov %s19347_s0 }
  0x39   : > { %712 = vst.msk [vmem:[#allocation2 + $0x130] sm:$0x3] %vm675_vm1, %v19017_v0  ;;  %715 = vst.msk [vmem:[#allocation2 + $0x148] sm:$0x3] %vm675_vm1, %v19017_v0  ;;  %v660_v8 = vld [vmem:[%s12967_s22 + $0xa0] sm:$0xff]  ;;  %v661_v9 = vld [vmem:[%s12967_s22 + $0xa8] sm:$0xff]  ;;  %10009 = vmatprep.subr.bf16.mxu0 %v12273_v7 }
  0x3a   : > { %713 = vst.msk [vmem:[#allocation2 + $0x138] sm:$0xff] %vm672_vm0, %v19017_v0  ;;  %714 = vst.msk [vmem:[#allocation2 + $0x140] sm:$0xff] %vm672_vm0, %v19017_v0  ;;  %10010 = vmatpush3.bf16.msra.mxu0 %v12273_v7  ;;  %v12274_v14 = vld [vmem:[%s19332_s25 + $0x8] sm:$0xff]   ;;  %v663_v29 = vld [vmem:[%s12967_s22 + $0xb8] sm:$0xff] }
  0x3b   : > { %716 = vst.msk [vmem:[#allocation2 + $0x150] sm:$0xff] %vm672_vm0, %v19017_v0  ;;  %717 = vst.msk [vmem:[#allocation2 + $0x158] sm:$0xff] %vm672_vm0, %v19017_v0  ;;  %10011 = vmatprep.subr.bf16.mxu0 %v12274_v14  ;;  %s18688_s21 = sshll.u32 %s19898_s3, 12 }
  0x3c   : > { %718 = vst.msk [vmem:[#allocation2 + $0x160] sm:$0x3] %vm675_vm1, %v19017_v0  ;;  %721 = vst.msk [vmem:[#allocation2 + $0x178] sm:$0x3] %vm675_vm1, %v19017_v0 }
  0x3d   : > { %719 = vst.msk [vmem:[#allocation2 + $0x168] sm:$0xff] %vm672_vm0, %v19017_v0  ;;  %720 = vst.msk [vmem:[#allocation2 + $0x170] sm:$0xff] %vm672_vm0, %v19017_v0 }
  0x3e   : > { %722 = vst.msk [vmem:[#allocation2 + $0x180] sm:$0xff] %vm672_vm0, %v19017_v0  ;;  %723 = vst.msk [vmem:[#allocation2 + $0x188] sm:$0xff] %vm672_vm0, %v19017_v0  ;;  %10012 = vmatpush3.bf16.msra.mxu0 %v12274_v14 }
  0x3f   : > { %724 = vst.msk [vmem:[#allocation2 + $0x190] sm:$0x3] %vm675_vm1, %v19017_v0  ;;  %727 = vst.msk [vmem:[#allocation2 + $0x1a8] sm:$0x3] %vm675_vm1, %v19017_v0 }
  0x40   : > { %725 = vst.msk [vmem:[#allocation2 + $0x198] sm:$0xff] %vm672_vm0, %v19017_v0  ;;  %726 = vst.msk [vmem:[#allocation2 + $0x1a0] sm:$0xff] %vm672_vm0, %v19017_v0 }
  0x41   : > { %4140 = vst.msk [vmem:[#allocation3] sm:$0xff] %vm672_vm0, %v19017_v0  ;;  %4141 = vst.msk [vmem:[#allocation3 + $0x8] sm:$0xff] %vm672_vm0, %v19017_v0 }
  0x42   : > { %4142 = vst.msk [vmem:[#allocation3 + $0x10] sm:$0x3] %vm675_vm1, %v19017_v0  ;;  %4145 = vst.msk [vmem:[#allocation3 + $0x28] sm:$0x3] %vm675_vm1, %v19017_v0 }
  0x43   : > { %4143 = vst.msk [vmem:[#allocation3 + $0x18] sm:$0xff] %vm672_vm0, %v19017_v0  ;;  %4144 = vst.msk [vmem:[#allocation3 + $0x20] sm:$0xff] %vm672_vm0, %v19017_v0 }
  0x44   : > { %4146 = vst.msk [vmem:[#allocation3 + $0x30] sm:$0xff] %vm672_vm0, %v19017_v0  ;;  %4147 = vst.msk [vmem:[#allocation3 + $0x38] sm:$0xff] %vm672_vm0, %v19017_v0 }
  0x45   : > { %4148 = vst.msk [vmem:[#allocation3 + $0x40] sm:$0x3] %vm675_vm1, %v19017_v0  ;;  %4151 = vst.msk [vmem:[#allocation3 + $0x58] sm:$0x3] %vm675_vm1, %v19017_v0 }
  0x46   : > { %4149 = vst.msk [vmem:[#allocation3 + $0x48] sm:$0xff] %vm672_vm0, %v19017_v0  ;;  %4150 = vst.msk [vmem:[#allocation3 + $0x50] sm:$0xff] %vm672_vm0, %v19017_v0 }
  0x47   : > { %4152 = vst.msk [vmem:[#allocation3 + $0x60] sm:$0xff] %vm672_vm0, %v19017_v0  ;;  %4153 = vst.msk [vmem:[#allocation3 + $0x68] sm:$0xff] %vm672_vm0, %v19017_v0 }
  0x48   : > { %4154 = vst.msk [vmem:[#allocation3 + $0x70] sm:$0x3] %vm675_vm1, %v19017_v0  ;;  %4157 = vst.msk [vmem:[#allocation3 + $0x88] sm:$0x3] %vm675_vm1, %v19017_v0 }
  0x49   : > { %4155 = vst.msk [vmem:[#allocation3 + $0x78] sm:$0xff] %vm672_vm0, %v19017_v0  ;;  %4156 = vst.msk [vmem:[#allocation3 + $0x80] sm:$0xff] %vm672_vm0, %v19017_v0 }
  0x4a   : > { %4158 = vst.msk [vmem:[#allocation3 + $0x90] sm:$0xff] %vm672_vm0, %v19017_v0  ;;  %4159 = vst.msk [vmem:[#allocation3 + $0x98] sm:$0xff] %vm672_vm0, %v19017_v0 }
  0x4b   : > { %4160 = vst.msk [vmem:[#allocation3 + $0xa0] sm:$0x3] %vm675_vm1, %v19017_v0  ;;  %4163 = vst.msk [vmem:[#allocation3 + $0xb8] sm:$0x3] %vm675_vm1, %v19017_v0 }
  0x4c   : > { %4161 = vst.msk [vmem:[#allocation3 + $0xa8] sm:$0xff] %vm672_vm0, %v19017_v0  ;;  %4162 = vst.msk [vmem:[#allocation3 + $0xb0] sm:$0xff] %vm672_vm0, %v19017_v0 }
  0x4d   : > { %4164 = vst.msk [vmem:[#allocation3 + $0xc0] sm:$0xff] %vm672_vm0, %v19017_v0  ;;  %4165 = vst.msk [vmem:[#allocation3 + $0xc8] sm:$0xff] %vm672_vm0, %v19017_v0 }
  0x4e   : > { %4166 = vst.msk [vmem:[#allocation3 + $0xd0] sm:$0x3] %vm675_vm1, %v19017_v0  ;;  %4169 = vst.msk [vmem:[#allocation3 + $0xe8] sm:$0x3] %vm675_vm1, %v19017_v0 }
  0x4f   : > { %4167 = vst.msk [vmem:[#allocation3 + $0xd8] sm:$0xff] %vm672_vm0, %v19017_v0  ;;  %4168 = vst.msk [vmem:[#allocation3 + $0xe0] sm:$0xff] %vm672_vm0, %v19017_v0 }
  0x50   : > { %4170 = vst.msk [vmem:[#allocation3 + $0xf0] sm:$0xff] %vm672_vm0, %v19017_v0  ;;  %4171 = vst.msk [vmem:[#allocation3 + $0xf8] sm:$0xff] %vm672_vm0, %v19017_v0 }
  0x51   : > { %4172 = vst.msk [vmem:[#allocation3 + $0x100] sm:$0x3] %vm675_vm1, %v19017_v0  ;;  %4175 = vst.msk [vmem:[#allocation3 + $0x118] sm:$0x3] %vm675_vm1, %v19017_v0 }
  0x52   : > { %4173 = vst.msk [vmem:[#allocation3 + $0x108] sm:$0xff] %vm672_vm0, %v19017_v0  ;;  %4174 = vst.msk [vmem:[#allocation3 + $0x110] sm:$0xff] %vm672_vm0, %v19017_v0 }
  0x53   : > { %4176 = vst.msk [vmem:[#allocation3 + $0x120] sm:$0xff] %vm672_vm0, %v19017_v0  ;;  %4177 = vst.msk [vmem:[#allocation3 + $0x128] sm:$0xff] %vm672_vm0, %v19017_v0 }
  0x54   : > { %4178 = vst.msk [vmem:[#allocation3 + $0x130] sm:$0x3] %vm675_vm1, %v19017_v0  ;;  %4181 = vst.msk [vmem:[#allocation3 + $0x148] sm:$0x3] %vm675_vm1, %v19017_v0 }
  0x55   : > { %4179 = vst.msk [vmem:[#allocation3 + $0x138] sm:$0xff] %vm672_vm0, %v19017_v0  ;;  %4180 = vst.msk [vmem:[#allocation3 + $0x140] sm:$0xff] %vm672_vm0, %v19017_v0 }
  0x56   : > { %4182 = vst.msk [vmem:[#allocation3 + $0x150] sm:$0xff] %vm672_vm0, %v19017_v0  ;;  %4183 = vst.msk [vmem:[#allocation3 + $0x158] sm:$0xff] %vm672_vm0, %v19017_v0 }
  0x57   : > { %4184 = vst.msk [vmem:[#allocation3 + $0x160] sm:$0x3] %vm675_vm1, %v19017_v0  ;;  %4187 = vst.msk [vmem:[#allocation3 + $0x178] sm:$0x3] %vm675_vm1, %v19017_v0 }
  0x58   : > { %4185 = vst.msk [vmem:[#allocation3 + $0x168] sm:$0xff] %vm672_vm0, %v19017_v0  ;;  %4186 = vst.msk [vmem:[#allocation3 + $0x170] sm:$0xff] %vm672_vm0, %v19017_v0 }
  0x59   : > { %4188 = vst.msk [vmem:[#allocation3 + $0x180] sm:$0xff] %vm672_vm0, %v19017_v0  ;;  %4189 = vst.msk [vmem:[#allocation3 + $0x188] sm:$0xff] %vm672_vm0, %v19017_v0 }
  0x5a   : > { %4190 = vst.msk [vmem:[#allocation3 + $0x190] sm:$0x3] %vm675_vm1, %v19017_v0  ;;  %4193 = vst.msk [vmem:[#allocation3 + $0x1a8] sm:$0x3] %vm675_vm1, %v19017_v0  ;;  %vm12585_vm1 = vmmov 0  }
  0x5b   : > { %4191 = vst.msk [vmem:[#allocation3 + $0x198] sm:$0xff] %vm672_vm0, %v19017_v0  ;;  %4192 = vst.msk [vmem:[#allocation3 + $0x1a0] sm:$0xff] %vm672_vm0, %v19017_v0 }
  0x5c   : > { %731 = vst.msk [vmem:[#allocation2 + $0x31] sm:$0xff] %vm672_vm0, %v642_v1  ;;  %732 = vst.msk [vmem:[#allocation2 + $0x39] sm:$0xff] %vm672_vm0, %v643_v2 }
  0x5d   : > { %729 = vst.msk [vmem:[#allocation2 + $0x19] sm:$0xff] %vm672_vm0, %v640_v3  ;;  %730 = vst.msk [vmem:[#allocation2 + $0x21] sm:$0xff] %vm672_vm0, %v641_v11 }
  0x5e   : > { %733 = vst.msk [vmem:[#allocation2 + $0x49] sm:$0xff] %vm672_vm0, %v644_v12  ;;  %734 = vst.msk [vmem:[#allocation2 + $0x51] sm:$0xff] %vm672_vm0, %v645_v15 }
  0x5f   : > { %735 = vst.msk [vmem:[#allocation2 + $0x61] sm:$0xff] %vm672_vm0, %v646_v16  ;;  %736 = vst.msk [vmem:[#allocation2 + $0x69] sm:$0xff] %vm672_vm0, %v647_v17 }
  0x60   : > { %737 = vst.msk [vmem:[#allocation2 + $0x79] sm:$0xff] %vm672_vm0, %v648_v20  ;;  %738 = vst.msk [vmem:[#allocation2 + $0x81] sm:$0xff] %vm672_vm0, %v649_v21 }
  0x61   : > { %739 = vst.msk [vmem:[#allocation2 + $0x91] sm:$0xff] %vm672_vm0, %v650_v22  ;;  %740 = vst.msk [vmem:[#allocation2 + $0x99] sm:$0xff] %vm672_vm0, %v651_v26 }
  0x62   : > { %741 = vst.msk [vmem:[#allocation2 + $0xa9] sm:$0xff] %vm672_vm0, %v652_v27  ;;  %742 = vst.msk [vmem:[#allocation2 + $0xb1] sm:$0xff] %vm672_vm0, %v653_v28  ;;  %v662_v28 = vld [vmem:[%s12967_s22 + $0xb0] sm:$0xff] }
  0x63   : > { %743 = vst.msk [vmem:[#allocation2 + $0xc1] sm:$0xff] %vm672_vm0, %v654_v30  ;;  %744 = vst.msk [vmem:[#allocation2 + $0xc9] sm:$0xff] %vm672_vm0, %v655_v31  ;;  %v767_v36 = vld [vmem:[#allocation2 + $0x30] sm:$0xff]  ;;  %v768_v37 = vld [vmem:[#allocation2 + $0x38] sm:$0xff] }
  0x64   : > { %745 = vst.msk [vmem:[#allocation2 + $0xd9] sm:$0xff] %vm672_vm0, %v656_v32  ;;  %v13012_v38 = vld [vmem:[#allocation2 + $0x18] sm:$0xff]  ;;  %746 = vst.msk [vmem:[#allocation2 + $0xe1] sm:$0xff] %vm672_vm0, %v657_v33  ;;  %v10508_v39 = vpack.i.bf16 %v768_v37, %v767_v36  ;;  %v769_v42 = vld [vmem:[#allocation2 + $0x40] sm:$0x3]  ;;  %v874_v43 = vrot.slane %v767_v36, 1 }
  0x65   : > { %747 = vst.msk [vmem:[#allocation2 + $0xf1] sm:$0xff] %vm672_vm0, %v658_v34  ;;  %748 = vst.msk [vmem:[#allocation2 + $0xf9] sm:$0xff] %vm672_vm0, %v659_v35  ;;  %v1046_v40 = vrot.slane %v13012_v38, 2  ;;  %v869_v41 = vrot.slane %v13012_v38, 1  ;;  %v13019_v44 = vld [vmem:[#allocation2 + $0x20] sm:$0xff]  ;;  %v875_v46 = vrot.slane %v768_v37, 1 }
  0x66   : > { %v766_v45 = vld [vmem:[#allocation2 + $0x28] sm:$0x3]  ;;  %v877_v47 = vrot.slane %v769_v42, 1  ;;  %10509 = vrot.lane.b32.xlu1 %v10508_v39, %s18984_s24  ;;  %v10503_v48 = vpack.i.bf16 %v13019_v44, %v13012_v38  ;;  %v1047_v49 = vrot.slane %v13019_v44, 2  ;;  %v870_v51 = vrot.slane %v13019_v44, 1  ;;  %v771_v5 = vld [vmem:[#allocation2 + $0x50] sm:$0xff] }
  0x67   : > { %v1049_v50 = vrot.slane %v766_v45, 2  ;;  %v872_v52 = vrot.slane %v766_v45, 1  ;;  %v876_v53 = vsel %vm863_vm3, %v874_v43, %v875_v46  ;;  %v1051_v55 = vrot.slane %v767_v36, 2  ;;  %v770_v4 = vld [vmem:[#allocation2 + $0x48] sm:$0xff]  ;;  %v772_v6 = vld [vmem:[#allocation2 + $0x58] sm:$0x3] }
  0x68   : > { %v878_v54 = vsel %vm863_vm3, %v875_v46, %v877_v47  ;;  %10504 = vrot.lane.b32.xlu0 %v10503_v48, %s18984_s24  ;;  %v1048_v56 = vsel %vm1040_vm2, %v1046_v40, %v1047_v49  ;;  %v871_v58 = vsel %vm863_vm3, %v869_v41, %v870_v51  ;;  %v1052_v59 = vrot.slane %v768_v37, 2  ;;  %749 = vst.msk [vmem:[#allocation2 + $0x109] sm:$0xff] %vm672_vm0, %v660_v8  ;;  %s18999_s24 = smov 20   ;;  %v773_v24 = vld [vmem:[#allocation2 + $0x60] sm:$0xff]  ;;  %v774_v25 = vld [vmem:[#allocation2 + $0x68] sm:$0xff]  ;;  %v776_v40 = vld [vmem:[#allocation2 + $0x78] sm:$0xff] }
  0x69   : > { %v1050_v57 = vsel %vm1040_vm2, %v1047_v49, %v1049_v50  ;;  %v873_v61 = vsel %vm863_vm3, %v870_v51, %v872_v52  ;;  %v1054_v62 = vrot.slane %v769_v42, 2  ;;  %v10528_v1 = vpack.i.bf16 %v878_v54, %v876_v53  ;;  %750 = vst.msk [vmem:[#allocation2 + $0x111] sm:$0xff] %vm672_vm0, %v661_v9  ;;  %v775_v26 = vld [vmem:[#allocation2 + $0x70] sm:$0x3]  ;;  %751 = vst.msk [vmem:[#allocation2 + $0x121] sm:$0xff] %vm672_vm0, %v662_v28  ;;  %v777_v45 = vld [vmem:[#allocation2 + $0x80] sm:$0xff] }
  0x6a   : > { %v10518_v60 = vpack.i.bf16 %v1050_v57, %v1048_v56  ;;  %v10513_v63 = vpack.i.bf16 %v873_v61, %v871_v58  ;;  %v1053_v2 = vsel %vm1040_vm2, %v1051_v55, %v1052_v59  ;;  %v879_v11 = vrot.slane %v770_v4, 1  ;;  %752 = vst.msk [vmem:[#allocation2 + $0x129] sm:$0xff] %vm672_vm0, %v663_v29  ;;  %v12275_v46 = vld [vmem:[%s19332_s25 + $0x10] ss:$0 sps:$4 sm:$0x33]   ;;  %v664_v48 = vld [vmem:[%s12967_s22 + $0xc0] sm:$0xff] }
  0x6b   : > { %v1055_v3 = vsel %vm1040_vm2, %v1052_v59, %v1054_v62  ;;  %v880_v12 = vrot.slane %v771_v5, 1  ;;  %v882_v13 = vrot.slane %v772_v6, 1  ;;  %v10548_v15 = vpack.i.bf16 %v771_v5, %v770_v4  ;;  %v778_v47 = vld [vmem:[#allocation2 + $0x88] sm:$0x3]  ;;  %753 = vst.msk [vmem:[#allocation2 + $0x139] sm:$0xff] %vm672_vm0, %v664_v48  ;;  %10429 = vmatprep.subr.msk.bf16.mxu0 %vm2174_vm4, %v12275_v46  ;;  %v779_v61 = vld [vmem:[#allocation2 + $0x90] sm:$0xff] }
  0x6c   : > { %10519 = vrot.lane.b32.xlu1 %v10518_v60, %s18987_s29  ;;  %10514 = vrot.lane.b32.xlu0 %v10513_v63, %s18993_s23  ;;  %v10543_v10 = vpack.i.bf16 %v1055_v3, %v1053_v2  ;;  %v1056_v19 = vrot.slane %v770_v4, 2  ;;  %v1057_v20 = vrot.slane %v771_v5, 2  ;;  %v1059_v21 = vrot.slane %v772_v6, 2  ;;  %s18991_s29 = smov 28   ;;  %v665_v49 = vld [vmem:[%s12967_s22 + $0xc8] sm:$0xff]  ;;  %v780_v2 = vld [vmem:[#allocation2 + $0x98] sm:$0xff] }
  0x6d   : > { %v881_v16 = vsel %vm863_vm3, %v879_v11, %v880_v12  ;;  %v883_v17 = vsel %vm863_vm3, %v880_v12, %v882_v13  ;;  %v884_v30 = vrot.slane %v773_v24, 1  ;;  %v885_v31 = vrot.slane %v774_v25, 1  ;;  %754 = vst.msk [vmem:[#allocation2 + $0x141] sm:$0xff] %vm672_vm0, %v665_v49  ;;  %v781_v3 = vld [vmem:[#allocation2 + $0xa0] sm:$0x3]  ;;  %s19338_s25 = smov 28  }
  0x6e   : > { %v10558_v18 = vpack.i.bf16 %v883_v17, %v881_v16  ;;  %v1058_v22 = vsel %vm1040_vm2, %v1056_v19, %v1057_v20  ;;  %v1060_v23 = vsel %vm1040_vm2, %v1057_v20, %v1059_v21  ;;  %v887_v32 = vrot.slane %v775_v26, 1  ;;  %v666_v11 = vld [vmem:[%s12967_s22 + $0xd0] sm:$0xff]  ;;  %v667_v12 = vld [vmem:[%s12967_s22 + $0xd8] sm:$0xff]  ;;  %v782_v13 = vld [vmem:[#allocation2 + $0xa8] sm:$0xff]  ;;  %2424 = vst.msk [vmem:[#allocation4 + $0x198] sm:$0xff] %vm2371_vm13, %v19017_v0 }
  0x6f   : > { %v10573_v27 = vpack.i.bf16 %v1060_v23, %v1058_v22  ;;  %v10598_v33 = vpack.i.bf16 %v774_v25, %v773_v24  ;;  %v1061_v34 = vrot.slane %v773_v24, 2  ;;  %v886_v35 = vsel %vm863_vm3, %v884_v30, %v885_v31  ;;  %755 = vst.msk [vmem:[#allocation2 + $0x151] sm:$0xff] %vm672_vm0, %v666_v11  ;;  %756 = vst.msk [vmem:[#allocation2 + $0x159] sm:$0xff] %vm672_vm0, %v667_v12  ;;  %v783_v17 = vld [vmem:[#allocation2 + $0xb0] sm:$0xff] }
  0x70   : > { %10529 = vrot.lane.b32.xlu1 %v10528_v1, %s18989_s20  ;;  %10524 = vrot.lane.b32.xlu0 %v10513_v63, %s18989_s20  ;;  %s18997_s20 = smov 24   ;;  %v888_v36 = vsel %vm863_vm3, %v885_v31, %v887_v32  ;;  %v1062_v37 = vrot.slane %v774_v25, 2  ;;  %v889_v51 = vrot.slane %v776_v40, 1  ;;  %v890_v52 = vrot.slane %v777_v45, 1  ;;  %v668_v25 = vld [vmem:[%s12967_s22 + $0xe0] sm:$0xff]  ;;  %2425 = vst.msk [vmem:[#allocation4 + $0x1a0] sm:$0xff] %vm2371_vm13, %v19017_v0 }
  0x71   : > { %v10608_v41 = vpack.i.bf16 %v888_v36, %v886_v35  ;;  %v892_v53 = vrot.slane %v778_v47, 1  ;;  %v2176_v54 = vsel %vm2174_vm4, %v12275_v46, 0  ;;  %v1066_v55 = vrot.slane %v776_v40, 2  ;;  %757 = vst.msk [vmem:[#allocation2 + $0x169] sm:$0xff] %vm672_vm0, %v668_v25 }
  0x72   : > { %v1063_v42 = vsel %vm1040_vm2, %v1061_v34, %v1062_v37  ;;  %v1067_v56 = vrot.slane %v777_v45, 2  ;;  %v1069_v57 = vrot.slane %v778_v47, 2  ;;  %10014 = vmatpush3.bf16.msra.mxu0 %v2176_v54  ;;  %v10628_v58 = vpack.i.bf16 %v777_v45, %v776_v40  ;;  %v786_v40 = vld [vmem:[#allocation2 + $0xc8] sm:$0xff]  ;;  %2426 = vst.msk [vmem:[#allocation4 + $0x1a8] sm:$0x3] %vm2374_vm14, %v19017_v0 }
  0x73   : > { %v891_v59 = vsel %vm863_vm3, %v889_v51, %v890_v52  ;;  %v894_v5 = vrot.slane %v779_v61, 1  ;;  %v895_v6 = vrot.slane %v780_v2, 1  ;;  %v897_v7 = vrot.slane %v781_v3, 1  ;;  %2372 = vst.msk [vmem:[#allocation4] sm:$0xff] %vm2371_vm13, %v19017_v0  ;;  %2373 = vst.msk [vmem:[#allocation4 + $0x8] sm:$0xff] %vm2371_vm13, %v19017_v0 }
  0x74   : > { %10544 = vrot.lane.b32.xlu1 %v10543_v10, %s18999_s24  ;;  %10534 = vrot.lane.b32.xlu0 %v10518_v60, %s18999_s24  ;;  %s19335_s24 = smov 16   ;;  %v893_v60 = vsel %vm863_vm3, %v890_v52, %v892_v53  ;;  %v1068_v63 = vsel %vm1040_vm2, %v1066_v55, %v1067_v56  ;;  %v1071_v8 = vrot.slane %v779_v61, 2  ;;  %v1072_v9 = vrot.slane %v780_v2, 2  ;;  %2375 = vst.msk [vmem:[#allocation4 + $0x10] sm:$0x3] %vm2374_vm14, %v19017_v0 }
  0x75   : > { %v10638_v62 = vpack.i.bf16 %v893_v60, %v891_v59  ;;  %v10678_v14 = vpack.i.bf16 %v780_v2, %v779_v61  ;;  %v898_v16 = vsel %vm863_vm3, %v895_v6, %v897_v7  ;;  %v899_v20 = vrot.slane %v782_v13, 1  ;;  %v790_v59 = vld [vmem:[#allocation2 + $0xe8] sm:$0x3]  ;;  %2376 = vst.msk [vmem:[#allocation4 + $0x18] sm:$0xff] %vm2371_vm13, %v19017_v0  ;;  %2377 = vst.msk [vmem:[#allocation4 + $0x20] sm:$0xff] %vm2371_vm13, %v19017_v0 }
  0x76   : > { %v1073_v21 = vsel %vm1040_vm2, %v1071_v8, %v1072_v9  ;;  %v900_v23 = vrot.slane %v783_v17, 1  ;;  %v1076_v28 = vrot.slane %v782_v13, 2  ;;  %v1077_v29 = vrot.slane %v783_v17, 2  ;;  %2378 = vst.msk [vmem:[#allocation4 + $0x28] sm:$0x3] %vm2374_vm14, %v19017_v0 }
  0x77   : > { %v10708_v31 = vpack.i.bf16 %v783_v17, %v782_v13  ;;  %v905_v46 = vrot.slane %v786_v40, 1  ;;  %v1082_v52 = vrot.slane %v786_v40, 2  ;;  %v1089_v7 = vrot.slane %v790_v59, 2  ;;  %v793_v17 = vld [vmem:[#allocation2 + $0x100] sm:$0x3]  ;;  %2379 = vst.msk [vmem:[#allocation4 + $0x30] sm:$0xff] %vm2371_vm13, %v19017_v0 }
  0x78   : > { %10549 = vrot.lane.b32.xlu1 %v10548_v15, %s18997_s20  ;;  %10539 = vrot.lane.b32.xlu0 %v10508_v39, %s18997_s20  ;;  %v1064_v39 = vrot.slane %v775_v26, 2  ;;  %s19336_s20 = smov 20   ;;  %v669_v26 = vld [vmem:[%s12967_s22 + $0xe8] sm:$0xff]  ;;  %v901_v32 = vsel %vm863_vm3, %v899_v20, %v900_v23  ;;  %v1078_v35 = vsel %vm1040_vm2, %v1076_v28, %v1077_v29  ;;  %v1094_v25 = vrot.slane %v793_v17, 2  ;;  %v13185_v28 = vld [vmem:[#allocation2 + $0x110] sm:$0xff]  ;;  %2380 = vst.msk [vmem:[#allocation4 + $0x38] sm:$0xff] %vm2371_vm13, %v19017_v0 }
  0x79   : > { %758 = vst.msk [vmem:[#allocation2 + $0x171] sm:$0xff] %vm672_vm0, %v669_v26 }
  0x7a   : > { %v1065_v43 = vsel %vm1040_vm2, %v1062_v37, %v1064_v39  ;;  %v785_v39 = vld [vmem:[#allocation2 + $0xc0] sm:$0xff]  ;;  %2381 = vst.msk [vmem:[#allocation4 + $0x40] sm:$0x3] %vm2374_vm14, %v19017_v0  ;;  %2384 = vst.msk [vmem:[#allocation4 + $0x58] sm:$0x3] %vm2374_vm14, %v19017_v0 }
  0x7b   : > { %v10618_v50 = vpack.i.bf16 %v1065_v43, %v1063_v42  ;;  %v670_v42 = vld [vmem:[%s12967_s22 + $0xf0] sm:$0xff]  ;;  %v671_v43 = vld [vmem:[%s12967_s22 + $0xf8] sm:$0xff]  ;;  %v904_v45 = vrot.slane %v785_v39, 1  ;;  %v10758_v48 = vpack.i.bf16 %v786_v40, %v785_v39  ;;  %v1081_v49 = vrot.slane %v785_v39, 2  ;;  %s19341_s22 = sshll.u32 %s12959_s27, 8  ;;  %2382 = vst.msk [vmem:[#allocation4 + $0x48] sm:$0xff] %vm2371_vm13, %v19017_v0 }
  0x7c   : > { %10559 = vrot.lane.b32.xlu1 %v10558_v18, %s18991_s29  ;;  %10554 = vrot.lane.b32.xlu0 %v10528_v1, %s18991_s29  ;;  %s19333_s29 = smov 8   ;;  %759 = vst.msk [vmem:[#allocation2 + $0x181] sm:$0xff] %vm672_vm0, %v670_v42  ;;  %760 = vst.msk [vmem:[#allocation2 + $0x189] sm:$0xff] %vm672_vm0, %v671_v43  ;;  %s13353_s17 = scalar_lea.vmem %s19342_s19, %s19341_s22 }
  0x7d   : > { %v1083_v55 = vsel %vm1040_vm2, %v1081_v49, %v1082_v52  ;;  %2383 = vst.msk [vmem:[#allocation4 + $0x50] sm:$0xff] %vm2371_vm13, %v19017_v0  ;;  %2385 = vst.msk [vmem:[#allocation4 + $0x60] sm:$0xff] %vm2371_vm13, %v19017_v0  ;;  %s19010_s19 = smov 64   ;;  %s19357_s27 = smov 64  }
  0x7e   : > { %2386 = vst.msk [vmem:[#allocation4 + $0x68] sm:$0xff] %vm2371_vm13, %v19017_v0  ;;  %2388 = vst.msk [vmem:[#allocation4 + $0x78] sm:$0xff] %vm2371_vm13, %v19017_v0 }
  0x7f   : > { %2387 = vst.msk [vmem:[#allocation4 + $0x70] sm:$0x3] %vm2374_vm14, %v19017_v0  ;;  %2390 = vst.msk [vmem:[#allocation4 + $0x88] sm:$0x3] %vm2374_vm14, %v19017_v0 }
  0x80   : > { %10569 = vrot.lane.b32.xlu1 %v10528_v1, %s18993_s23  ;;  %10564 = vrot.lane.b32.xlu0 %v10543_v10, %s18995_s28  ;;  %v1070_v1 = vsel %vm1040_vm2, %v1067_v56, %v1069_v57  ;;  %v788_v57 = vld [vmem:[#allocation2 + $0xd8] sm:$0xff]  ;;  %2389 = vst.msk [vmem:[#allocation4 + $0x80] sm:$0xff] %vm2371_vm13, %v19017_v0  ;;  %2391 = vst.msk [vmem:[#allocation4 + $0x90] sm:$0xff] %vm2371_vm13, %v19017_v0 }
  0x81   : > { %v10648_v4 = vpack.i.bf16 %v1070_v1, %v1068_v63  ;;  %v909_v61 = vrot.slane %v788_v57, 1  ;;  %v912_v63 = vrot.slane %v790_v59, 1  ;;  %v1086_v2 = vrot.slane %v788_v57, 2  ;;  %2392 = vst.msk [vmem:[#allocation4 + $0x98] sm:$0xff] %vm2371_vm13, %v19017_v0  ;;  %2394 = vst.msk [vmem:[#allocation4 + $0xa8] sm:$0xff] %vm2371_vm13, %v19017_v0 }
  0x82   : > { %2393 = vst.msk [vmem:[#allocation4 + $0xa0] sm:$0x3] %vm2374_vm14, %v19017_v0  ;;  %2396 = vst.msk [vmem:[#allocation4 + $0xb8] sm:$0x3] %vm2374_vm14, %v19017_v0 }
  0x83   : > { %2395 = vst.msk [vmem:[#allocation4 + $0xb0] sm:$0xff] %vm2371_vm13, %v19017_v0  ;;  %2397 = vst.msk [vmem:[#allocation4 + $0xc0] sm:$0xff] %vm2371_vm13, %v19017_v0 }
  0x84   : > { %10579 = vrot.lane.b32.xlu1 %v10558_v18, %s18993_s23  ;;  %10574 = vrot.lane.b32.xlu0 %v10573_v27, %s18995_s28  ;;  %s19334_s23 = smov 12   ;;  %s19337_s28 = smov 24   ;;  %2398 = vst.msk [vmem:[#allocation4 + $0xc8] sm:$0xff] %vm2371_vm13, %v19017_v0  ;;  %2400 = vst.msk [vmem:[#allocation4 + $0xd8] sm:$0xff] %vm2371_vm13, %v19017_v0 }
  0x85   : > { %2399 = vst.msk [vmem:[#allocation4 + $0xd0] sm:$0x3] %vm2374_vm14, %v19017_v0  ;;  %2402 = vst.msk [vmem:[#allocation4 + $0xe8] sm:$0x3] %vm2374_vm14, %v19017_v0 }
  0x86   : > { %2401 = vst.msk [vmem:[#allocation4 + $0xe0] sm:$0xff] %vm2371_vm13, %v19017_v0  ;;  %2403 = vst.msk [vmem:[#allocation4 + $0xf0] sm:$0xff] %vm2371_vm13, %v19017_v0 }
  0x87   : > { %2404 = vst.msk [vmem:[#allocation4 + $0xf8] sm:$0xff] %vm2371_vm13, %v19017_v0  ;;  %2406 = vst.msk [vmem:[#allocation4 + $0x108] sm:$0xff] %vm2371_vm13, %v19017_v0 }
  0x88   : > { %10589 = vrot.lane.b32.xlu1 %v10573_v27, %s19333_s29  ;;  %10584 = vrot.lane.b32.xlu0 %v10543_v10, %s19333_s29  ;;  %v1074_v10 = vrot.slane %v781_v3, 2  ;;  %2405 = vst.msk [vmem:[#allocation4 + $0x100] sm:$0x3] %vm2374_vm14, %v19017_v0  ;;  %2408 = vst.msk [vmem:[#allocation4 + $0x118] sm:$0x3] %vm2374_vm14, %v19017_v0 }
  0x89   : > { %2407 = vst.msk [vmem:[#allocation4 + $0x110] sm:$0xff] %vm2371_vm13, %v19017_v0  ;;  %2409 = vst.msk [vmem:[#allocation4 + $0x120] sm:$0xff] %vm2371_vm13, %v19017_v0 }
  0x8a   : > { %v1075_v22 = vsel %vm1040_vm2, %v1072_v9, %v1074_v10  ;;  %2410 = vst.msk [vmem:[#allocation4 + $0x128] sm:$0xff] %vm2371_vm13, %v19017_v0  ;;  %2412 = vst.msk [vmem:[#allocation4 + $0x138] sm:$0xff] %vm2371_vm13, %v19017_v0 }
  0x8b   : > { %2411 = vst.msk [vmem:[#allocation4 + $0x130] sm:$0x3] %vm2374_vm14, %v19017_v0  ;;  %2414 = vst.msk [vmem:[#allocation4 + $0x148] sm:$0x3] %vm2374_vm14, %v19017_v0 }
  0x8c   : > { %10599 = vrot.lane.b32.xlu1 %v10598_v33, %s19334_s23  ;;  %10594 = vrot.lane.b32.xlu0 %v10548_v15, %s19334_s23  ;;  %v896_v15 = vsel %vm863_vm3, %v894_v5, %v895_v6  ;;  %2413 = vst.msk [vmem:[#allocation4 + $0x140] sm:$0xff] %vm2371_vm13, %v19017_v0  ;;  %2415 = vst.msk [vmem:[#allocation4 + $0x150] sm:$0xff] %vm2371_vm13, %v19017_v0 }
  0x8d   : > { %v10688_v19 = vpack.i.bf16 %v898_v16, %v896_v15  ;;  %v791_v15 = vld [vmem:[#allocation2 + $0xf0] sm:$0xff]  ;;  %v792_v16 = vld [vmem:[#allocation2 + $0xf8] sm:$0xff]  ;;  %2416 = vst.msk [vmem:[#allocation4 + $0x158] sm:$0xff] %vm2371_vm13, %v19017_v0  ;;  %2418 = vst.msk [vmem:[#allocation4 + $0x168] sm:$0xff] %vm2371_vm13, %v19017_v0 }
  0x8e   : > { %v914_v20 = vrot.slane %v791_v15, 1  ;;  %2417 = vst.msk [vmem:[#allocation4 + $0x160] sm:$0x3] %vm2374_vm14, %v19017_v0  ;;  %2420 = vst.msk [vmem:[#allocation4 + $0x178] sm:$0x3] %vm2374_vm14, %v19017_v0 }
  0x8f   : > { %2419 = vst.msk [vmem:[#allocation4 + $0x170] sm:$0xff] %vm2371_vm13, %v19017_v0  ;;  %2421 = vst.msk [vmem:[#allocation4 + $0x180] sm:$0xff] %vm2371_vm13, %v19017_v0 }
  0x90   : > { %10609 = vrot.lane.b32.xlu1 %v10608_v41, %s19335_s24  ;;  %10604 = vrot.lane.b32.xlu0 %v10558_v18, %s19335_s24  ;;  %v784_v18 = vld [vmem:[#allocation2 + $0xb8] sm:$0x3]  ;;  %2422 = vst.msk [vmem:[#allocation4 + $0x188] sm:$0xff] %vm2371_vm13, %v19017_v0 }
  0x91   : > { %v902_v24 = vrot.slane %v784_v18, 1  ;;  %v1079_v30 = vrot.slane %v784_v18, 2  ;;  %2423 = vst.msk [vmem:[#allocation4 + $0x190] sm:$0x3] %vm2374_vm14, %v19017_v0 }
  0x93   : > { %v1080_v36 = vsel %vm1040_vm2, %v1077_v29, %v1079_v30  ;;  %v13187_v29 = vld [vmem:[#allocation2 + $0x118] sm:$0x3] }
  0x94   : > { %10619 = vrot.lane.b32.xlu1 %v10618_v50, %s19336_s20  ;;  %10614 = vrot.lane.b32.xlu0 %v10573_v27, %s19336_s20  ;;  %v10698_v27 = vpack.i.bf16 %v1075_v22, %v1073_v21  ;;  %v10728_v37 = vpack.i.bf16 %v1080_v36, %v1078_v35  ;;  %v915_v21 = vrot.slane %v792_v16, 1  ;;  %v917_v22 = vrot.slane %v793_v17, 1 }
  0x95   : > { %v922_v39 = vrot.slane %v13187_v29, 1 }
  0x98   : > { %10629 = vrot.lane.b32.xlu1 %v10628_v58, %s19337_s28  ;;  %10624 = vrot.lane.b32.xlu0 %v10598_v33, %s19337_s28  ;;  %v903_v33 = vsel %vm863_vm3, %v900_v23, %v902_v24  ;;  %v1091_v23 = vrot.slane %v791_v15, 2  ;;  %v1092_v24 = vrot.slane %v792_v16, 2 }
  0x99   : > { %v10718_v34 = vpack.i.bf16 %v903_v33, %v901_v32  ;;  %v916_v32 = vsel %vm863_vm3, %v914_v20, %v915_v21  ;;  %v918_v33 = vsel %vm863_vm3, %v915_v21, %v917_v22 }
  0x9a   : > { %v1095_v35 = vsel %vm1040_vm2, %v1092_v24, %v1094_v25 }
  0x9c   : > { %10639 = vrot.lane.b32.xlu1 %v10638_v62, %s19338_s25  ;;  %10634 = vrot.lane.b32.xlu0 %v10608_v41, %s19338_s25 }
  0xa0   : > { %10649 = vrot.lane.b32.xlu1 %v10648_v4, %s19339_s2  ;;  %10644 = vrot.lane.b32.xlu0 %v10618_v50, %s19339_s2 }
  0xa4   : > { %10659 = vrot.lane.b32.xlu1 %v10638_v62, %s19340_s26  ;;  %10654 = vrot.lane.b32.xlu0 %v10608_v41, %s19340_s26  ;;  %v787_v41 = vld [vmem:[#allocation2 + $0xd0] sm:$0x3] }
  0xa5   : > { %v907_v47 = vrot.slane %v787_v41, 1  ;;  %v1084_v53 = vrot.slane %v787_v41, 2 }
  0xa6   : > { %v13153_v3 = vpop.permute.xlu1 %10499 }
  0xa7   : > { %v908_v51 = vsel %vm863_vm3, %v905_v46, %v907_v47  ;;  %v1085_v56 = vsel %vm1040_vm2, %v1082_v52, %v1084_v53  ;;  %v13209_v47 = vpack.i.bf16 %v918_v33, %v916_v32 }
  0xa8   : > { %10669 = vrot.lane.b32.xlu1 %v10648_v4, %s19333_s29  ;;  %10664 = vrot.lane.b32.xlu0 %v10618_v50, %s19333_s29  ;;  %v906_v50 = vsel %vm863_vm3, %v904_v45, %v905_v46  ;;  %v13145_v60 = vpack.i.bf16 %v1085_v56, %v1083_v55  ;;  %v13157_v8 = vpop.permute.xlu0 %10494  ;;  %v12356_v56 = vld [vmem:[#allocation2] sm:$0xff] }
  0xa9   : > { %v10768_v54 = vpack.i.bf16 %v908_v51, %v906_v50  ;;  %v10497_v40 = vunpack.i.h.bf16 %v13157_v8  ;;  %v10496_v41 = vunpack.i.l.bf16 %v13157_v8  ;;  %v10502_v50 = vunpack.i.h.bf16 %v13153_v3 }
  0xaa   : > { %v10501_v51 = vunpack.i.l.bf16 %v13153_v3 }
  0xac   : > { %10679 = vrot.lane.b32.xlu1 %v10678_v14, %s19334_s23  ;;  %10674 = vrot.lane.b32.xlu0 %v10628_v58, %s19334_s23  ;;  %v789_v58 = vld [vmem:[#allocation2 + $0xe0] sm:$0xff] }
  0xad   : > { %v13150_v1 = vpack.i.bf16 %v789_v58, %v788_v57  ;;  %v1087_v6 = vrot.slane %v789_v58, 2  ;;  %v1819_v57 = vsel %vm672_vm0, %v12356_v56, %v10496_v41 }
  0xaf   : > { %v1088_v11 = vsel %vm1040_vm2, %v1086_v2, %v1087_v6  ;;  %v1090_v12 = vsel %vm1040_vm2, %v1087_v6, %v1089_v7  ;;  %v1097_v6 = vrot.slane %v13185_v28, 2  ;;  %v1099_v7 = vrot.slane %v13187_v29, 2 }
  0xb0   : > { %10689 = vrot.lane.b32.xlu1 %v10688_v19, %s19335_s24  ;;  %10684 = vrot.lane.b32.xlu0 %v10638_v62, %s19335_s24  ;;  %v910_v62 = vrot.slane %v789_v58, 1 }
  0xb2   : > { %v913_v5 = vsel %vm863_vm3, %v910_v62, %v912_v63 }
  0xb4   : > { %10699 = vrot.lane.b32.xlu1 %v10698_v27, %s19336_s20  ;;  %10694 = vrot.lane.b32.xlu0 %v10648_v4, %s19336_s20  ;;  %v911_v4 = vsel %vm863_vm3, %v909_v61, %v910_v62 }
  0xb5   : > { %v13161_v9 = vpack.i.bf16 %v913_v5, %v911_v4 }
  0xb8   : > { %10709 = vrot.lane.b32.xlu1 %v10708_v31, %s19337_s28  ;;  %10704 = vrot.lane.b32.xlu0 %v10678_v14, %s19337_s28  ;;  %v13172_v14 = vpack.i.bf16 %v1090_v12, %v1088_v11  ;;  %v1852_v11 = vsel %vm1851_vm5, %v1819_v57, %v10501_v51 }
  0xbc   : > { %10719 = vrot.lane.b32.xlu1 %v10718_v34, %s19338_s25  ;;  %10714 = vrot.lane.b32.xlu0 %v10688_v19, %s19338_s25 }
  0xc0   : > { %10729 = vrot.lane.b32.xlu1 %v10728_v37, %s19339_s2  ;;  %10724 = vrot.lane.b32.xlu0 %v10698_v27, %s19339_s2 }
  0xc4   : > { %10739 = vrot.lane.b32.xlu1 %v10718_v34, %s19340_s26  ;;  %10734 = vrot.lane.b32.xlu0 %v10688_v19, %s19340_s26 }
  0xc8   : > { %10749 = vrot.lane.b32.xlu1 %v10728_v37, %s19333_s29  ;;  %10744 = vrot.lane.b32.xlu0 %v10698_v27, %s19333_s29  ;;  %v13183_v27 = vld [vmem:[#allocation2 + $0x108] sm:$0xff] }
  0xc9   : > { %v919_v36 = vrot.slane %v13183_v27, 1  ;;  %v13217_v49 = vpack.i.bf16 %v13185_v28, %v13183_v27  ;;  %v1096_v5 = vrot.slane %v13183_v27, 2 }
  0xcc   : > { %10759 = vrot.lane.b32.xlu1 %v10758_v48, %s19334_s23  ;;  %10754 = vrot.lane.b32.xlu0 %v10708_v31, %s19334_s23  ;;  %v13193_v31 = vpack.i.bf16 %v792_v16, %v791_v15 }
  0xd0   : > { %10769 = vrot.lane.b32.xlu1 %v10768_v54, %s19335_s24  ;;  %10764 = vrot.lane.b32.xlu0 %v10718_v34, %s19335_s24  ;;  %v1093_v34 = vsel %vm1040_vm2, %v1091_v23, %v1092_v24 }
  0xd4   : > { %10779 = vrot.lane.b32.xlu1 %v13145_v60, %s19336_s20  ;;  %10774 = vrot.lane.b32.xlu0 %v10728_v37, %s19336_s20  ;;  %v920_v37 = vrot.slane %v13185_v28, 1 }
  0xd6   : > { %v921_v52 = vsel %vm863_vm3, %v919_v36, %v920_v37  ;;  %v923_v53 = vsel %vm863_vm3, %v920_v37, %v922_v39 }
  0xd7   : > { %v13239_v4 = vpack.i.bf16 %v923_v53, %v921_v52 }
  0xd8   : > { %10789 = vrot.lane.b32.xlu1 %v13150_v1, %s19337_s28  ;;  %10784 = vrot.lane.b32.xlu0 %v10758_v48, %s19337_s28  ;;  %v13164_v10 = vpop.permute.xlu1 %10509  ;;  %v13213_v48 = vpack.i.bf16 %v1095_v35, %v1093_v34 }
  0xd9   : > { %v10512_v8 = vunpack.i.h.bf16 %v13164_v10 }
  0xda   : > { %v13168_v13 = vpop.permute.xlu0 %10504 }
  0xdb   : > { %v10506_v62 = vunpack.i.l.bf16 %v13168_v13 }
  0xdc   : > { %10799 = vrot.lane.b32.xlu1 %v13161_v9, %s19338_s25  ;;  %10794 = vrot.lane.b32.xlu0 %v10768_v54, %s19338_s25 }
  0xde   : > { %v13175_v18 = vpop.permute.xlu1 %10519  ;;  %v10515_v19 = vpop.permute.xlu0 %10514 }
  0xdf   : > { %v10517_v43 = vunpack.i.h.bf16 %v10515_v19  ;;  %v10516_v45 = vunpack.i.l.bf16 %v10515_v19  ;;  %v10522_v58 = vunpack.i.h.bf16 %v13175_v18  ;;  %v10521_v59 = vunpack.i.l.bf16 %v13175_v18 }
  0xe0   : > { %10809 = vrot.lane.b32.xlu1 %v13172_v14, %s19339_s2  ;;  %10804 = vrot.lane.b32.xlu0 %v13145_v60, %s19339_s2 }
  0xe1   : > { %v1822_v63 = vsel %vm672_vm0, %v13019_v44, %v10517_v43  ;;  %v1821_v2 = vsel %vm672_vm0, %v13012_v38, %v10516_v45  ;;  %v10511_v44 = vunpack.i.l.bf16 %v13164_v10  ;;  %v1885_v10 = vsel %vm1884_vm6, %v1852_v11, %v10506_v62 }
  0xe2   : > { %v13181_v26 = vpop.permute.xlu1 %10529  ;;  %v13189_v30 = vpop.permute.xlu0 %10524  ;;  %v1855_v12 = vsel %vm1851_vm5, %v1822_v63, %v10522_v58  ;;  %v1098_v62 = vsel %vm1040_vm2, %v1096_v5, %v1097_v6  ;;  %v1100_v5 = vsel %vm1040_vm2, %v1097_v6, %v1099_v7 }
  0xe3   : > { %v10527_v15 = vunpack.i.h.bf16 %v13189_v30  ;;  %v10526_v16 = vunpack.i.l.bf16 %v13189_v30  ;;  %v10531_v22 = vunpack.i.l.bf16 %v13181_v26  ;;  %v1888_v27 = vsel %vm1884_vm6, %v1855_v12, %v10512_v8  ;;  %v798_v12 = vld [vmem:[#allocation2 + $0x128] sm:$0xff] }
  0xe4   : > { %10819 = vrot.lane.b32.xlu1 %v13161_v9, %s19340_s26  ;;  %10814 = vrot.lane.b32.xlu0 %v10768_v54, %s19340_s26  ;;  %v12355_v54 = vld [vmem:[#allocation2 + $0x8] sm:$0xff]  ;;  %v13317_v29 = vpack.i.bf16 %v1100_v5, %v1098_v62  ;;  %v12357_v62 = vld [vmem:[#allocation2 + $0x50] sm:$0xff] }
  0xe5   : > { %v1820_v55 = vsel %vm672_vm0, %v12355_v54, %v10497_v40  ;;  %v1918_v34 = vsel %vm1917_vm7, %v1885_v10, %v10526_v16  ;;  %v925_v10 = vrot.slane %v798_v12, 1 }
  0xe6   : > { %v13205_v42 = vpop.permute.xlu1 %10544  ;;  %v13207_v46 = vpop.permute.xlu0 %10534  ;;  %v1853_v38 = vsel %vm1851_vm5, %v1820_v55, %v10502_v50 }
  0xe7   : > { %v10537_v19 = vunpack.i.h.bf16 %v13207_v46  ;;  %v10536_v20 = vunpack.i.l.bf16 %v13207_v46  ;;  %v10546_v35 = vunpack.i.l.bf16 %v13205_v42 }
  0xe8   : > { %10829 = vrot.lane.b32.xlu1 %v13172_v14, %s19333_s29  ;;  %10824 = vrot.lane.b32.xlu0 %v13145_v60, %s19333_s29  ;;  %v10507_v60 = vunpack.i.h.bf16 %v13168_v13  ;;  %v1854_v13 = vsel %vm1851_vm5, %v1821_v2, %v10521_v59 }
  0xe9   : > { %v1887_v25 = vsel %vm1884_vm6, %v1854_v13, %v10511_v44  ;;  %v1951_v37 = vsel %vm1950_vm8, %v1918_v34, %v10536_v20  ;;  %v799_v13 = vld [vmem:[#allocation2 + $0x130] sm:$0x3]  ;;  %v1102_v20 = vrot.slane %v798_v12, 2 }
  0xea   : > { %v13229_v61 = vpop.permute.xlu1 %10549  ;;  %v10540_v3 = vpop.permute.xlu0 %10539  ;;  %v1886_v18 = vsel %vm1884_vm6, %v1853_v38, %v10507_v60  ;;  %v1920_v54 = vsel %vm1917_vm7, %v1887_v25, %v10531_v22  ;;  %v797_v38 = vld [vmem:[#allocation2 + $0x120] sm:$0xff]  ;;  %v927_v6 = vrot.slane %v799_v13, 1 }
  0xeb   : > { %v10542_v23 = vunpack.i.h.bf16 %v10540_v3  ;;  %v10541_v24 = vunpack.i.l.bf16 %v10540_v3  ;;  %v1919_v33 = vsel %vm1917_vm7, %v1886_v18, %v10527_v15  ;;  %v10552_v40 = vunpack.i.h.bf16 %v13229_v61  ;;  %v13332_v25 = vld [vmem:[#allocation2 + $0x140] sm:$0xff] }
  0xec   : > { %10839 = vrot.lane.b32.xlu1 %v13193_v31, %s19334_s23  ;;  %10834 = vrot.lane.b32.xlu0 %v13150_v1, %s19334_s23  ;;  %v10532_v1 = vunpack.i.h.bf16 %v13181_v26  ;;  %v10547_v26 = vunpack.i.h.bf16 %v13205_v42  ;;  %v1952_v39 = vsel %vm1950_vm8, %v1919_v33, %v10537_v19  ;;  %v10551_v41 = vunpack.i.l.bf16 %v13229_v61 }
  0xed   : > { %v1984_v46 = vsel %vm1983_vm9, %v1951_v37, %v10541_v24  ;;  %v1985_v42 = vsel %vm1983_vm9, %v1952_v39, %v10542_v23  ;;  %v1953_v59 = vsel %vm1950_vm8, %v1920_v54, %v10546_v35  ;;  %v924_v28 = vrot.slane %v797_v38, 1  ;;  %v13330_v24 = vld [vmem:[#allocation2 + $0x138] sm:$0xff]  ;;  %v4108_v54 = vld [vmem:[%s13353_s17] sm:$0xff] }
  0xee   : > { %v10560_v17 = vpop.permute.xlu1 %10559  ;;  %v10555_v21 = vpop.permute.xlu0 %10554  ;;  %v1921_v55 = vsel %vm1917_vm7, %v1888_v27, %v10532_v1  ;;  %v1986_v63 = vsel %vm1983_vm9, %v1953_v59, %v10551_v41  ;;  %v1101_v19 = vrot.slane %v797_v38, 2  ;;  %v928_v23 = vsel %vm863_vm3, %v925_v10, %v927_v6  ;;  %4195 = vst.msk [vmem:[#allocation3 + $0x19] sm:$0xff] %vm672_vm0, %v4108_v54 }
  0xef   : > { %v10557_v30 = vunpack.i.h.bf16 %v10555_v21  ;;  %v10556_v32 = vunpack.i.l.bf16 %v10555_v21  ;;  %v10562_v50 = vunpack.i.h.bf16 %v10560_v17  ;;  %v10561_v51 = vunpack.i.l.bf16 %v10560_v17 }
  0xf0   : > { %10849 = vrot.lane.b32.xlu1 %v13209_v47, %s19335_s24  ;;  %10844 = vrot.lane.b32.xlu0 %v13161_v9, %s19335_s24  ;;  %v1954_v61 = vsel %vm1950_vm8, %v1921_v55, %v10547_v26  ;;  %v1104_v21 = vrot.slane %v799_v13, 2  ;;  %v926_v22 = vsel %vm863_vm3, %v924_v28, %v925_v10  ;;  %v13336_v27 = vpack.i.bf16 %v798_v12, %v797_v38  ;;  %v4109_v55 = vld [vmem:[%s13353_s17 + $0x8] sm:$0xff]  ;;  %v12360_v38 = vld [vmem:[#allocation2 + $0x30] sm:$0xff] }
  0xf1   : > { %v2017_v52 = vsel %vm2016_vm10, %v1984_v46, %v10556_v32  ;;  %v2018_v53 = vsel %vm2016_vm10, %v1985_v42, %v10557_v30  ;;  %v1987_v2 = vsel %vm1983_vm9, %v1954_v61, %v10552_v40  ;;  %v2019_v44 = vsel %vm2016_vm10, %v1986_v63, %v10561_v51  ;;  %v13338_v30 = vld [vmem:[#allocation2 + $0x148] sm:$0x3]  ;;  %4196 = vst.msk [vmem:[#allocation3 + $0x21] sm:$0xff] %vm672_vm0, %v4109_v55 }
  0xf2   : > { %v13270_v36 = vpop.permute.xlu1 %10569  ;;  %v10565_v43 = vpop.permute.xlu0 %10564  ;;  %v2020_v11 = vsel %vm2016_vm10, %v1987_v2, %v10562_v50  ;;  %v13343_v33 = vsel %vm1040_vm2, %v1101_v19, %v1102_v20  ;;  %v13346_v34 = vsel %vm1040_vm2, %v1102_v20, %v1104_v21  ;;  %v13357_v35 = vpack.i.bf16 %v928_v23, %v926_v22  ;;  %v12358_v2 = vld [vmem:[#allocation2 + $0x48] sm:$0xff] }
  0xf3   : > { %v10567_v9 = vunpack.i.h.bf16 %v10565_v43  ;;  %v10566_v45 = vunpack.i.l.bf16 %v10565_v43  ;;  %v13361_v37 = vpack.i.bf16 %v13332_v25, %v13330_v24  ;;  %v929_v39 = vrot.slane %v13330_v24, 1 }
  0xf4   : > { %10859 = vrot.lane.b32.xlu1 %v13213_v48, %s19336_s20  ;;  %10854 = vrot.lane.b32.xlu0 %v13172_v14, %s19336_s20  ;;  %v930_v40 = vrot.slane %v13332_v25, 1  ;;  %v932_v41 = vrot.slane %v13338_v30, 1  ;;  %v1106_v46 = vrot.slane %v13330_v24, 2  ;;  %v10572_v42 = vunpack.i.h.bf16 %v13270_v36 }
  0xf5   : > { %v2050_v57 = vsel %vm2049_vm11, %v2017_v52, %v10566_v45  ;;  %v2051_v58 = vsel %vm2049_vm11, %v2018_v53, %v10567_v9  ;;  %v13482_v45 = vpack.i.bf16 %v13346_v34, %v13343_v33  ;;  %v10571_v50 = vunpack.i.l.bf16 %v13270_v36 }
  0xf6   : > { %v13286_v56 = vpop.permute.xlu1 %10579  ;;  %v10575_v60 = vpop.permute.xlu0 %10574  ;;  %v2082_v14 = vpack.c.bf16 %v2051_v58, %v2050_v57  ;;  %v1107_v58 = vrot.slane %v13332_v25, 2  ;;  %v1109_v59 = vrot.slane %v13338_v30, 2 }
  0xf7   : > { %v10577_v3 = vunpack.i.h.bf16 %v10575_v60  ;;  %v10576_v8 = vunpack.i.l.bf16 %v10575_v60  ;;  %v10582_v43 = vunpack.i.h.bf16 %v13286_v56  ;;  %v10581_v9 = vunpack.i.l.bf16 %v13286_v56 }
  0xf8   : > { %10869 = vrot.lane.b32.xlu1 %v13217_v49, %s19337_s28  ;;  %10864 = vrot.lane.b32.xlu0 %v13193_v31, %s19337_s28  ;;  %v13506_v60 = vsel %vm863_vm3, %v929_v39, %v930_v40  ;;  %v1823_v12 = vsel %vm672_vm0, %v12360_v38, %v10571_v50 }
  0xf9   : > { %10015 = vmatprep.mubr.msk.bf16.mxu0 %vm2125_vm12, %v2082_v14  ;;  %v2052_v15 = vsel %vm2049_vm11, %v2019_v44, %v10576_v8  ;;  %v2053_v16 = vsel %vm2049_vm11, %v2020_v11, %v10577_v3  ;;  %v13509_v14 = vsel %vm863_vm3, %v930_v40, %v932_v41  ;;  %v1826_v63 = vsel %vm672_vm0, %v12357_v62, %v10582_v43  ;;  %v12359_v11 = vld [vmem:[#allocation2 + $0x38] sm:$0xff] }
  0xfa   : > { %v13311_v17 = vpop.permute.xlu1 %10589  ;;  %v13313_v18 = vpop.permute.xlu0 %10584  ;;  %v2083_v31 = vpack.c.bf16 %v2053_v16, %v2052_v15  ;;  %v1825_v3 = vsel %vm672_vm0, %v12358_v2, %v10581_v9  ;;  %v1824_v5 = vsel %vm672_vm0, %v12359_v11, %v10572_v42 }
  0xfb   : > { %v10592_v51 = vunpack.i.h.bf16 %v13311_v17  ;;  %v10591_v52 = vunpack.i.l.bf16 %v13311_v17  ;;  %v10586_v56 = vunpack.i.l.bf16 %v13313_v18  ;;  %v13521_v17 = vld [vmem:[#allocation4 + $0x198] sm:$0xff] }
  0xfc   : > { %10879 = vrot.lane.b32.xlu1 %v13239_v4, %s19338_s25  ;;  %10874 = vrot.lane.b32.xlu0 %v13209_v47, %s19338_s25  ;;  %19343 = vst [vmem:[#allocation20_spill] sm:$0xff] %v13521_v17  ;;  %5877 = vst.msk [vmem:[#allocation4 + $0x198] sm:$0xff] %vm2371_vm13, %v19017_v0 }
  0xfd   : > { %10016 = vmatmul.mubr.msk.bf16.vlgmr.msra.gmra.mrb[0].mxu0 %vm2125_vm12, %v2083_v31  ;;  %v1858_v13 = vsel %vm1851_vm5, %v1825_v3, %v10591_v52  ;;  %v1859_v15 = vsel %vm1851_vm5, %v1826_v63, %v10592_v51  ;;  %v13525_v31 = vld [vmem:[#allocation4 + $0x1a8] sm:$0x3] }
  0xfe   : > { %v13322_v7 = vpop.permute.xlu1 %10599  ;;  %v13324_v1 = vpop.permute.xlu0 %10594  ;;  %19345 = vst [vmem:[#allocation22_spill] sm:$0xff] %v13525_v31  ;;  %5879 = vst.msk [vmem:[#allocation4 + $0x1a8] sm:$0x3] %vm2374_vm14, %v19017_v0 }
  0xff   : > { %v10602_v36 = vunpack.i.h.bf16 %v13322_v7  ;;  %v10601_v61 = vunpack.i.l.bf16 %v13322_v7  ;;  %v10597_v8 = vunpack.i.h.bf16 %v13324_v1  ;;  %v10596_v44 = vunpack.i.l.bf16 %v13324_v1 }
 0x100   : > { %10889 = vrot.lane.b32.xlu1 %v13317_v29, %s19339_s2  ;;  %10884 = vrot.lane.b32.xlu0 %v13213_v48, %s19339_s2 }
 0x101   : > { %v1891_v19 = vsel %vm1884_vm6, %v1858_v13, %v10601_v61  ;;  %v1892_v20 = vsel %vm1884_vm6, %v1859_v15, %v10602_v36  ;;  %v4110_v36 = vld [vmem:[%s13353_s17 + $0x10] sm:$0xff]  ;;  %v4111_v61 = vld [vmem:[%s13353_s17 + $0x18] sm:$0xff] }
 0x102   : > { %v13340_v32 = vpop.permute.xlu1 %10609  ;;  %v13355_v26 = vpop.permute.xlu0 %10604  ;;  %4197 = vst.msk [vmem:[#allocation3 + $0x31] sm:$0xff] %vm672_vm0, %v4110_v36  ;;  %4198 = vst.msk [vmem:[#allocation3 + $0x39] sm:$0xff] %vm672_vm0, %v4111_v61 }
 0x103   : > { %v10612_v10 = vunpack.i.h.bf16 %v13340_v32  ;;  %v10611_v6 = vunpack.i.l.bf16 %v13340_v32  ;;  %v10607_v21 = vunpack.i.h.bf16 %v13355_v26  ;;  %v10606_v1 = vunpack.i.l.bf16 %v13355_v26 }
 0x104   : > { %10899 = vrot.lane.b32.xlu1 %v13239_v4, %s19340_s26  ;;  %10894 = vrot.lane.b32.xlu0 %v13209_v47, %s19340_s26  ;;  %v10587_v47 = vunpack.i.h.bf16 %v13313_v18  ;;  %v13523_v18 = vld [vmem:[#allocation4 + $0x1a0] sm:$0xff] }
 0x105   : > { %19344 = vst [vmem:[#allocation21_spill] sm:$0xff] %v13523_v18  ;;  %5878 = vst.msk [vmem:[#allocation4 + $0x1a0] sm:$0xff] %vm2371_vm13, %v19017_v0  ;;  %v1924_v43 = vsel %vm1917_vm7, %v1891_v19, %v10611_v6  ;;  %v1925_v9 = vsel %vm1917_vm7, %v1892_v20, %v10612_v10 }
 0x106   : > { %v13489_v53 = vpop.permute.xlu1 %10619  ;;  %v13495_v57 = vpop.permute.xlu0 %10614  ;;  %v1857_v28 = vsel %vm1851_vm5, %v1824_v5, %v10587_v47 }
 0x107   : > { %v1890_v23 = vsel %vm1884_vm6, %v1857_v28, %v10597_v8  ;;  %v10622_v32 = vunpack.i.h.bf16 %v13489_v53  ;;  %v10621_v33 = vunpack.i.l.bf16 %v13489_v53  ;;  %v10617_v34 = vunpack.i.h.bf16 %v13495_v57 }
 0x108   : > { %10909 = vrot.lane.b32.xlu1 %v13317_v29, %s19333_s29  ;;  %10904 = vrot.lane.b32.xlu0 %v13213_v48, %s19333_s29  ;;  %v1856_v48 = vsel %vm1851_vm5, %v1823_v12, %v10586_v56  ;;  %v10616_v39 = vunpack.i.l.bf16 %v13495_v57 }
 0x109   : > { %v1889_v22 = vsel %vm1884_vm6, %v1856_v48, %v10596_v44  ;;  %v1957_v55 = vsel %vm1950_vm8, %v1924_v43, %v10621_v33  ;;  %v1958_v47 = vsel %vm1950_vm8, %v1925_v9, %v10622_v32  ;;  %v1110_v32 = vsel %vm1040_vm2, %v1107_v58, %v1109_v59  ;;  %v805_v33 = vld [vmem:[#allocation2 + $0x160] sm:$0x3]  ;;  %v13621_v43 = vld [vmem:[#allocation2 + $0x168] sm:$0xff]  ;;  %v13623_v9 = vld [vmem:[#allocation2 + $0x170] sm:$0xff] }
 0x10a   : > { %v10630_v16 = vpop.permute.xlu1 %10629  ;;  %v10625_v7 = vpop.permute.xlu0 %10624  ;;  %v1922_v52 = vsel %vm1917_vm7, %v1889_v22, %v10606_v1 }
 0x10b   : > { %v10632_v40 = vunpack.i.h.bf16 %v10630_v16  ;;  %v10631_v26 = vunpack.i.l.bf16 %v10630_v16  ;;  %v10627_v42 = vunpack.i.h.bf16 %v10625_v7  ;;  %v10626_v50 = vunpack.i.l.bf16 %v10625_v7 }
 0x10c   : > { %10919 = vrot.lane.b32.xlu1 %v13336_v27, %s19334_s23  ;;  %10914 = vrot.lane.b32.xlu0 %v13217_v49, %s19334_s23  ;;  %v1923_v49 = vsel %vm1917_vm7, %v1890_v23, %v10607_v21  ;;  %v1955_v62 = vsel %vm1950_vm8, %v1922_v52, %v10616_v39  ;;  %v13591_v23 = vpack.i.bf16 %v13509_v14, %v13506_v60  ;;  %v803_v60 = vld [vmem:[#allocation2 + $0x150] sm:$0xff]  ;;  %v804_v14 = vld [vmem:[#allocation2 + $0x158] sm:$0xff]  ;;  %v1114_v39 = vrot.slane %v805_v33, 2 }
 0x10d   : > { %v1956_v63 = vsel %vm1950_vm8, %v1923_v49, %v10617_v34  ;;  %v1990_v2 = vsel %vm1983_vm9, %v1957_v55, %v10631_v26  ;;  %v1991_v3 = vsel %vm1983_vm9, %v1958_v47, %v10632_v40  ;;  %v1988_v44 = vsel %vm1983_vm9, %v1955_v62, %v10626_v50  ;;  %v4112_v40 = vld [vmem:[%s13353_s17 + $0x20] sm:$0xff]  ;;  %v4113_v26 = vld [vmem:[%s13353_s17 + $0x28] sm:$0xff]  ;;  %v13633_v52 = vld [vmem:[#allocation2 + $0x178] sm:$0x3] }
 0x10e   : > { %v10640_v41 = vpop.permute.xlu1 %10639  ;;  %v10635_v51 = vpop.permute.xlu0 %10634  ;;  %v1989_v11 = vsel %vm1983_vm9, %v1956_v63, %v10627_v42  ;;  %v934_v30 = vrot.slane %v803_v60, 1  ;;  %v935_v25 = vrot.slane %v804_v14, 1  ;;  %v1112_v59 = vrot.slane %v804_v14, 2  ;;  %4199 = vst.msk [vmem:[#allocation3 + $0x49] sm:$0xff] %vm672_vm0, %v4112_v40  ;;  %4200 = vst.msk [vmem:[#allocation3 + $0x51] sm:$0xff] %vm672_vm0, %v4113_v26 }
 0x10f   : > { %v10642_v53 = vunpack.i.h.bf16 %v10640_v41  ;;  %v10641_v54 = vunpack.i.l.bf16 %v10640_v41  ;;  %v10637_v56 = vunpack.i.h.bf16 %v10635_v51  ;;  %v10636_v57 = vunpack.i.l.bf16 %v10635_v51 }
 0x110   : > { %10929 = vrot.lane.b32.xlu1 %v13357_v35, %s19335_s24  ;;  %10924 = vrot.lane.b32.xlu0 %v13239_v4, %s19335_s24  ;;  %v936_v50 = vsel %vm863_vm3, %v934_v30, %v935_v25  ;;  %v940_v55 = vrot.slane %v13623_v9, 1  ;;  %v942_v61 = vrot.slane %v13633_v52, 1  ;;  %v13656_v63 = vpack.i.bf16 %v13623_v9, %v13621_v43 }
 0x111   : > { %v2023_v12 = vsel %vm2016_vm10, %v1990_v2, %v10641_v54  ;;  %v2024_v13 = vsel %vm2016_vm10, %v1991_v3, %v10642_v53  ;;  %v2021_v28 = vsel %vm2016_vm10, %v1988_v44, %v10636_v57  ;;  %v2022_v48 = vsel %vm2016_vm10, %v1989_v11, %v10637_v56 }
 0x112   : > { %v10650_v8 = vpop.permute.xlu1 %10649  ;;  %v10645_v38 = vpop.permute.xlu0 %10644  ;;  %v1115_v53 = vsel %vm1040_vm2, %v1112_v59, %v1114_v39  ;;  %v939_v54 = vrot.slane %v13621_v43, 1  ;;  %v13645_v57 = vpack.i.bf16 %v804_v14, %v803_v60 }
 0x113   : > { %v10652_v4 = vunpack.i.h.bf16 %v10650_v8  ;;  %v10651_v5 = vunpack.i.l.bf16 %v10650_v8  ;;  %v10647_v15 = vunpack.i.h.bf16 %v10645_v38  ;;  %v10646_v16 = vunpack.i.l.bf16 %v10645_v38 }
 0x114   : > { %10939 = vrot.lane.b32.xlu1 %v13482_v45, %s19336_s20  ;;  %10934 = vrot.lane.b32.xlu0 %v13317_v29, %s19336_s20  ;;  %v1108_v29 = vsel %vm1040_vm2, %v1106_v46, %v1107_v58  ;;  %v937_v46 = vrot.slane %v805_v33, 1  ;;  %v1111_v58 = vrot.slane %v803_v60, 2  ;;  %v13663_v8 = vsel %vm863_vm3, %v939_v54, %v940_v55  ;;  %v12364_v60 = vld [vmem:[#allocation2 + $0x60] sm:$0xff] }
 0x115   : > { %v2056_v10 = vsel %vm2049_vm11, %v2023_v12, %v10651_v5  ;;  %v2057_v6 = vsel %vm2049_vm11, %v2024_v13, %v10652_v4  ;;  %v2054_v7 = vsel %vm2049_vm11, %v2021_v28, %v10646_v16  ;;  %v2055_v19 = vsel %vm2049_vm11, %v2022_v48, %v10647_v15 }
 0x116   : > { %v13583_v20 = vpop.permute.xlu1 %10659  ;;  %v2085_v21 = vpack.c.bf16 %v2057_v6, %v2056_v10  ;;  %v13585_v1 = vpop.permute.xlu0 %10654  ;;  %v2084_v22 = vpack.c.bf16 %v2055_v19, %v2054_v7  ;;  %v13613_v24 = vpack.i.bf16 %v1110_v32, %v1108_v29  ;;  %v938_v51 = vsel %vm863_vm3, %v935_v25, %v937_v46  ;;  %v12361_v7 = vld [vmem:[#allocation2 + $0x80] sm:$0xff]  ;;  %v12363_v29 = vld [vmem:[#allocation2 + $0x68] sm:$0xff] }
 0x117   : > { %v1113_v49 = vsel %vm1040_vm2, %v1111_v58, %v1112_v59  ;;  %v13647_v36 = vpack.i.bf16 %v938_v51, %v936_v50  ;;  %v10662_v2 = vunpack.i.h.bf16 %v13583_v20  ;;  %v10661_v3 = vunpack.i.l.bf16 %v13583_v20  ;;  %v12362_v20 = vld [vmem:[#allocation2 + $0x78] sm:$0xff] }
 0x118   : > { %10949 = vrot.lane.b32.xlu1 %v13361_v37, %s19337_s28  ;;  %10944 = vrot.lane.b32.xlu0 %v13336_v27, %s19337_s28  ;;  %v13652_v62 = vpack.i.bf16 %v1115_v53, %v1113_v49  ;;  %v10657_v44 = vunpack.i.h.bf16 %v13585_v1  ;;  %v10656_v11 = vunpack.i.l.bf16 %v13585_v1  ;;  %v13672_v16 = vsel %vm863_vm3, %v940_v55, %v942_v61 }
 0x119   : > { %10019 = vmatprep.mubr.msk.bf16.mxu0 %vm2125_vm12, %v2084_v22  ;;  %v1117_v10 = vrot.slane %v13623_v9, 2  ;;  %v1119_v6 = vrot.slane %v13633_v52, 2  ;;  %v1830_v19 = vsel %vm672_vm0, %v12361_v7, %v10662_v2  ;;  %v13769_v52 = vld [vmem:[#allocation2 + $0x198] sm:$0xff] }
 0x11a   : > { %10020 = vmatmul.mubr.msk.bf16.gmra.mrb[4].mxu0 %vm2125_vm12, %v2085_v21  ;;  %v13607_v27 = vpop.permute.xlu1 %10669  ;;  %v13609_v34 = vpop.permute.xlu0 %10664  ;;  %v1829_v21 = vsel %vm672_vm0, %v12362_v20, %v10661_v3  ;;  %v1828_v32 = vsel %vm672_vm0, %v12363_v29, %v10657_v44  ;;  %v1827_v14 = vsel %vm672_vm0, %v12364_v60, %v10656_v11 }
 0x11b   : > { %v10672_v4 = vunpack.i.h.bf16 %v13607_v27  ;;  %v10671_v5 = vunpack.i.l.bf16 %v13607_v27  ;;  %v10667_v12 = vunpack.i.h.bf16 %v13609_v34  ;;  %v10666_v13 = vunpack.i.l.bf16 %v13609_v34 }
 0x11c   : > { %10959 = vrot.lane.b32.xlu1 %v13591_v23, %s19338_s25  ;;  %10954 = vrot.lane.b32.xlu0 %v13357_v35, %s19338_s25 }
 0x11d   : > { %v1862_v33 = vsel %vm1851_vm5, %v1829_v21, %v10671_v5  ;;  %v1863_v27 = vsel %vm1851_vm5, %v1830_v19, %v10672_v4  ;;  %v1860_v30 = vsel %vm1851_vm5, %v1827_v14, %v10666_v13  ;;  %v1861_v25 = vsel %vm1851_vm5, %v1828_v32, %v10667_v12 }
 0x11e   : > { %v13619_v41 = vpop.permute.xlu1 %10679  ;;  %v13627_v42 = vpop.permute.xlu0 %10674 }
 0x11f   : > { %v10682_v28 = vunpack.i.h.bf16 %v13619_v41  ;;  %v10681_v48 = vunpack.i.l.bf16 %v13619_v41  ;;  %v10677_v1 = vunpack.i.h.bf16 %v13627_v42  ;;  %v10676_v22 = vunpack.i.l.bf16 %v13627_v42 }
 0x120   : > { %10969 = vrot.lane.b32.xlu1 %v13613_v24, %s19339_s2  ;;  %10964 = vrot.lane.b32.xlu0 %v13482_v45, %s19339_s2 }
 0x121   : > { %v1895_v59 = vsel %vm1884_vm6, %v1862_v33, %v10681_v48  ;;  %v1896_v39 = vsel %vm1884_vm6, %v1863_v27, %v10682_v28  ;;  %v1893_v41 = vsel %vm1884_vm6, %v1860_v30, %v10676_v22  ;;  %v1894_v42 = vsel %vm1884_vm6, %v1861_v25, %v10677_v1  ;;  %v4114_v28 = vld [vmem:[%s13353_s17 + $0x30] sm:$0xff]  ;;  %v4115_v48 = vld [vmem:[%s13353_s17 + $0x38] sm:$0xff] }
 0x122   : > { %v13641_v47 = vpop.permute.xlu1 %10689  ;;  %v13643_v56 = vpop.permute.xlu0 %10684  ;;  %4201 = vst.msk [vmem:[#allocation3 + $0x61] sm:$0xff] %vm672_vm0, %v4114_v28  ;;  %4202 = vst.msk [vmem:[#allocation3 + $0x69] sm:$0xff] %vm672_vm0, %v4115_v48 }
 0x123   : > { %v10692_v46 = vunpack.i.h.bf16 %v13641_v47  ;;  %v10691_v58 = vunpack.i.l.bf16 %v13641_v47  ;;  %v10687_v40 = vunpack.i.h.bf16 %v13643_v56  ;;  %v10686_v26 = vunpack.i.l.bf16 %v13643_v56 }
 0x124   : > { %10979 = vrot.lane.b32.xlu1 %v13591_v23, %s19340_s26  ;;  %10974 = vrot.lane.b32.xlu0 %v13357_v35, %s19340_s26  ;;  %v1116_v35 = vrot.slane %v13621_v43, 2 }
 0x125   : > { %v1928_v56 = vsel %vm1917_vm7, %v1895_v59, %v10691_v58  ;;  %v1929_v61 = vsel %vm1917_vm7, %v1896_v39, %v10692_v46  ;;  %v1926_v11 = vsel %vm1917_vm7, %v1893_v41, %v10686_v26  ;;  %v1927_v4 = vsel %vm1917_vm7, %v1894_v42, %v10687_v40  ;;  %v809_v42 = vld [vmem:[#allocation2 + $0x180] sm:$0xff] }
 0x126   : > { %v10700_v38 = vpop.permute.xlu1 %10699  ;;  %v10695_v15 = vpop.permute.xlu0 %10694  ;;  %v1417_v43 = vrot.slane %v809_v42, 2 }
 0x127   : > { %v10702_v50 = vunpack.i.h.bf16 %v10700_v38  ;;  %v10701_v51 = vunpack.i.l.bf16 %v10700_v38  ;;  %v10697_v49 = vunpack.i.h.bf16 %v10695_v15  ;;  %v10696_v53 = vunpack.i.l.bf16 %v10695_v15 }
 0x128   : > { %10989 = vrot.lane.b32.xlu1 %v13613_v24, %s19333_s29  ;;  %10984 = vrot.lane.b32.xlu0 %v13482_v45, %s19333_s29 }
 0x129   : > { %v1961_v38 = vsel %vm1950_vm8, %v1928_v56, %v10701_v51  ;;  %v1962_v12 = vsel %vm1950_vm8, %v1929_v61, %v10702_v50  ;;  %v1959_v7 = vsel %vm1950_vm8, %v1926_v11, %v10696_v53  ;;  %v1960_v19 = vsel %vm1950_vm8, %v1927_v4, %v10697_v49  ;;  %v810_v50 = vld [vmem:[#allocation2 + $0x188] sm:$0xff]  ;;  %v4116_v56 = vld [vmem:[%s13353_s17 + $0x40] sm:$0xff] }
 0x12a   : > { %v10710_v34 = vpop.permute.xlu1 %10709  ;;  %v10705_v45 = vpop.permute.xlu0 %10704  ;;  %v13745_v51 = vpack.i.bf16 %v13672_v16, %v13663_v8  ;;  %v1118_v49 = vsel %vm1040_vm2, %v1116_v35, %v1117_v10  ;;  %v1120_v53 = vsel %vm1040_vm2, %v1117_v10, %v1119_v6  ;;  %v1317_v16 = vrot.slane %v810_v50, 1  ;;  %v13771_v10 = vld [vmem:[#allocation2 + $0x1a0] sm:$0xff]  ;;  %v814_v6 = vld [vmem:[#allocation2 + $0x1a8] sm:$0x3]  ;;  %4203 = vst.msk [vmem:[#allocation3 + $0x79] sm:$0xff] %vm672_vm0, %v4116_v56 }
 0x12b   : > { %v10712_v54 = vunpack.i.h.bf16 %v10710_v34  ;;  %v10711_v55 = vunpack.i.l.bf16 %v10710_v34  ;;  %v10707_v2 = vunpack.i.h.bf16 %v10705_v45  ;;  %v10706_v3 = vunpack.i.l.bf16 %v10705_v45  ;;  %v4117_v61 = vld [vmem:[%s13353_s17 + $0x48] sm:$0xff] }
 0x12c   : > { %10999 = vrot.lane.b32.xlu1 %v13645_v57, %s19334_s23  ;;  %10994 = vrot.lane.b32.xlu0 %v13361_v37, %s19334_s23  ;;  %v13767_v9 = vpack.i.bf16 %v1120_v53, %v1118_v49  ;;  %4204 = vst.msk [vmem:[#allocation3 + $0x81] sm:$0xff] %vm672_vm0, %v4117_v61  ;;  %v1721_v28 = vrot.slane %v814_v6, 2  ;;  %v12365_v49 = vld [vmem:[#allocation2 + $0xb0] sm:$0xff] }
 0x12d   : > { %v1994_v20 = vsel %vm1983_vm9, %v1961_v38, %v10711_v55  ;;  %v1995_v21 = vsel %vm1983_vm9, %v1962_v12, %v10712_v54  ;;  %v1992_v22 = vsel %vm1983_vm9, %v1959_v7, %v10706_v3  ;;  %v1993_v29 = vsel %vm1983_vm9, %v1960_v19, %v10707_v2 }
 0x12e   : > { %v10720_v47 = vpop.permute.xlu1 %10719  ;;  %v10715_v44 = vpop.permute.xlu0 %10714  ;;  %v1719_v38 = vrot.slane %v13771_v10, 2  ;;  %v1617_v12 = vrot.slane %v13769_v52, 1  ;;  %v13797_v7 = vpack.i.bf16 %v810_v50, %v809_v42 }
 0x12f   : > { %v10722_v5 = vunpack.i.h.bf16 %v10720_v47  ;;  %v10721_v37 = vunpack.i.l.bf16 %v10720_v47  ;;  %v10717_v13 = vunpack.i.h.bf16 %v10715_v44  ;;  %v10716_v15 = vunpack.i.l.bf16 %v10715_v44 }
 0x130   : > { %11009 = vrot.lane.b32.xlu1 %v13647_v36, %s19335_s24  ;;  %11004 = vrot.lane.b32.xlu0 %v13591_v23, %s19335_s24  ;;  %v1418_v47 = vrot.slane %v810_v50, 2 }
 0x131   : > { %v2027_v14 = vsel %vm2016_vm10, %v1994_v20, %v10721_v37  ;;  %v2028_v33 = vsel %vm2016_vm10, %v1995_v21, %v10722_v5  ;;  %v2025_v30 = vsel %vm2016_vm10, %v1992_v22, %v10716_v15  ;;  %v2026_v25 = vsel %vm2016_vm10, %v1993_v29, %v10717_v13 }
 0x132   : > { %v10730_v1 = vpop.permute.xlu1 %10729  ;;  %v10725_v60 = vpop.permute.xlu0 %10724  ;;  %v1419_v4 = vsel %vm1040_vm2, %v1417_v43, %v1418_v47  ;;  %v1618_v37 = vrot.slane %v13771_v10, 1  ;;  %v1718_v13 = vrot.slane %v13769_v52, 2  ;;  %v1620_v15 = vrot.slane %v814_v6, 1 }
 0x133   : > { %v10732_v23 = vunpack.i.h.bf16 %v10730_v1  ;;  %v10731_v32 = vunpack.i.l.bf16 %v10730_v1  ;;  %v10727_v27 = vunpack.i.h.bf16 %v10725_v60  ;;  %v10726_v34 = vunpack.i.l.bf16 %v10725_v60 }
 0x134   : > { %11019 = vrot.lane.b32.xlu1 %v13652_v62, %s19336_s20  ;;  %11014 = vrot.lane.b32.xlu0 %v13613_v24, %s19336_s20  ;;  %v811_v24 = vld [vmem:[#allocation2 + $0x190] sm:$0x3]  ;;  %v11108_v1 = vpack.i.bf16 %v13771_v10, %v13769_v52  ;;  %v13810_v22 = vsel %vm863_vm3, %v1617_v12, %v1618_v37  ;;  %v13813_v29 = vsel %vm863_vm3, %v1618_v37, %v1620_v15 }
 0x135   : > { %v2060_v46 = vsel %vm2049_vm11, %v2027_v14, %v10731_v32  ;;  %v2061_v58 = vsel %vm2049_vm11, %v2028_v33, %v10732_v23  ;;  %v2058_v45 = vsel %vm2049_vm11, %v2025_v30, %v10726_v34  ;;  %v2059_v59 = vsel %vm2049_vm11, %v2026_v25, %v10727_v27  ;;  %v13826_v27 = vld [vmem:[#allocation3 + $0x18] sm:$0xff]  ;;  %v13828_v34 = vld [vmem:[#allocation3 + $0x20] sm:$0xff] }
 0x136   : > { %v13737_v39 = vpop.permute.xlu1 %10739  ;;  %v2087_v40 = vpack.c.bf16 %v2061_v58, %v2060_v46  ;;  %v13739_v26 = vpop.permute.xlu0 %10734  ;;  %v2086_v41 = vpack.c.bf16 %v2059_v59, %v2058_v45  ;;  %v1319_v55 = vrot.slane %v811_v24, 1  ;;  %v1420_v35 = vrot.slane %v811_v24, 2 }
 0x137   : > { %v13816_v23 = vsel %vm1040_vm2, %v1718_v13, %v1719_v38  ;;  %v10742_v32 = vunpack.i.h.bf16 %v13737_v39  ;;  %v10741_v60 = vunpack.i.l.bf16 %v13737_v39  ;;  %v13823_v14 = vsel %vm1040_vm2, %v1719_v38, %v1721_v28 }
 0x138   : > { %11029 = vrot.lane.b32.xlu1 %v13656_v63, %s19337_s28  ;;  %11024 = vrot.lane.b32.xlu0 %v13645_v57, %s19337_s28  ;;  %v1316_v57 = vrot.slane %v809_v42, 1  ;;  %v1320_v11 = vsel %vm863_vm3, %v1317_v16, %v1319_v55  ;;  %v1421_v5 = vsel %vm1040_vm2, %v1418_v47, %v1420_v35  ;;  %v3090_v33 = vrot.slane %v13521_v17, 1  ;;  %v12367_v55 = vld [vmem:[#allocation2 + $0x98] sm:$0xff]  ;;  %v12368_v47 = vld [vmem:[#allocation2 + $0x90] sm:$0xff] }
 0x139   : > { %10023 = vmatprep.mubr.msk.bf16.mxu0 %vm2125_vm12, %v2086_v41  ;;  %v13803_v21 = vpack.i.bf16 %v1421_v5, %v1419_v4  ;;  %v10737_v30 = vunpack.i.h.bf16 %v13739_v26  ;;  %v10736_v25 = vunpack.i.l.bf16 %v13739_v26  ;;  %v3093_v41 = vrot.slane %v13525_v31, 1 }
 0x13a   : > { %10024 = vmatmul.mubr.msk.bf16.gmra.mrb[8].mxu0 %vm2125_vm12, %v2087_v40  ;;  %v13761_v8 = vpop.permute.xlu1 %10749  ;;  %v13763_v54 = vpop.permute.xlu0 %10744  ;;  %v1318_v3 = vsel %vm863_vm3, %v1316_v57, %v1317_v16  ;;  %v3091_v40 = vrot.slane %v13523_v18, 1  ;;  %v4334_v26 = vrot.slane %v13826_v27, 1  ;;  %v4335_v24 = vrot.slane %v13828_v34, 1 }
 0x13b   : > { %v13799_v19 = vpack.i.bf16 %v1320_v11, %v1318_v3  ;;  %v10752_v46 = vunpack.i.h.bf16 %v13761_v8  ;;  %v10751_v58 = vunpack.i.l.bf16 %v13761_v8  ;;  %v10746_v59 = vunpack.i.l.bf16 %v13763_v54  ;;  %v12366_v8 = vld [vmem:[#allocation2 + $0xa8] sm:$0xff] }
 0x13c   : > { %11039 = vrot.lane.b32.xlu1 %v13745_v51, %s19338_s25  ;;  %11034 = vrot.lane.b32.xlu0 %v13647_v36, %s19338_s25  ;;  %v1834_v53 = vsel %vm672_vm0, %v12365_v49, %v10742_v32  ;;  %v1833_v57 = vsel %vm672_vm0, %v12366_v8, %v10741_v60  ;;  %v1832_v43 = vsel %vm672_vm0, %v12367_v55, %v10737_v30 }
 0x13d   : > { %v1831_v35 = vsel %vm672_vm0, %v12368_v47, %v10736_v25  ;;  %v1866_v6 = vsel %vm1851_vm5, %v1833_v57, %v10751_v58  ;;  %v1867_v56 = vsel %vm1851_vm5, %v1834_v53, %v10752_v46  ;;  %v4118_v57 = vld [vmem:[%s13353_s17 + $0x50] sm:$0xff]  ;;  %v3094_v52 = vsel %vm863_vm3, %v3091_v40, %v3093_v41 }
 0x13e   : > { %v13777_v2 = vpop.permute.xlu1 %10759  ;;  %v13782_v44 = vpop.permute.xlu0 %10754  ;;  %4205 = vst.msk [vmem:[#allocation3 + $0x91] sm:$0xff] %vm672_vm0, %v4118_v57  ;;  %v4510_v41 = vrot.slane %v13826_v27, 2 }
 0x13f   : > { %v10762_v42 = vunpack.i.h.bf16 %v13777_v2  ;;  %v10761_v50 = vunpack.i.l.bf16 %v13777_v2  ;;  %v10757_v16 = vunpack.i.h.bf16 %v13782_v44  ;;  %v1864_v2 = vsel %vm1851_vm5, %v1831_v35, %v10746_v59 }
 0x140   : > { %11049 = vrot.lane.b32.xlu1 %v13767_v9, %s19339_s2  ;;  %11044 = vrot.lane.b32.xlu0 %v13652_v62, %s19339_s2 }
 0x141   : > { %v1899_v4 = vsel %vm1884_vm6, %v1866_v6, %v10761_v50  ;;  %v1900_v5 = vsel %vm1884_vm6, %v1867_v56, %v10762_v42 }
 0x142   : > { %v13795_v48 = vpop.permute.xlu1 %10769  ;;  %v13801_v20 = vpop.permute.xlu0 %10764 }
 0x143   : > { %v10771_v11 = vunpack.i.l.bf16 %v13795_v48  ;;  %v10767_v37 = vunpack.i.h.bf16 %v13801_v20  ;;  %v10766_v38 = vunpack.i.l.bf16 %v13801_v20 }
 0x144   : > { %11059 = vrot.lane.b32.xlu1 %v13745_v51, %s19340_s26  ;;  %11054 = vrot.lane.b32.xlu0 %v13647_v36, %s19340_s26  ;;  %v10747_v36 = vunpack.i.h.bf16 %v13763_v54  ;;  %v10756_v54 = vunpack.i.l.bf16 %v13782_v44  ;;  %v10772_v44 = vunpack.i.h.bf16 %v13795_v48 }
 0x145   : > { %v1932_v20 = vsel %vm1917_vm7, %v1899_v4, %v10771_v11 }
 0x146   : > { %v10780_v45 = vpop.permute.xlu1 %10779  ;;  %v10775_v39 = vpop.permute.xlu0 %10774  ;;  %v1865_v3 = vsel %vm1851_vm5, %v1832_v43, %v10747_v36  ;;  %v1897_v12 = vsel %vm1884_vm6, %v1864_v2, %v10756_v54  ;;  %v1933_v46 = vsel %vm1917_vm7, %v1900_v5, %v10772_v44 }
 0x147   : > { %v1898_v13 = vsel %vm1884_vm6, %v1865_v3, %v10757_v16  ;;  %v10782_v15 = vunpack.i.h.bf16 %v10780_v45  ;;  %v10781_v28 = vunpack.i.l.bf16 %v10780_v45  ;;  %v10777_v48 = vunpack.i.h.bf16 %v10775_v39  ;;  %v4119_v16 = vld [vmem:[%s13353_s17 + $0x58] sm:$0xff] }
 0x148   : > { %11069 = vrot.lane.b32.xlu1 %v13767_v9, %s19333_s29  ;;  %11064 = vrot.lane.b32.xlu0 %v13652_v62, %s19333_s29  ;;  %v10776_v32 = vunpack.i.l.bf16 %v10775_v39  ;;  %v1930_v42 = vsel %vm1917_vm7, %v1897_v12, %v10766_v38  ;;  %v1931_v45 = vsel %vm1917_vm7, %v1898_v13, %v10767_v37  ;;  %4206 = vst.msk [vmem:[#allocation3 + $0x99] sm:$0xff] %vm672_vm0, %v4119_v16  ;;  %v13888_v3 = vld [vmem:[#allocation3 + $0x28] sm:$0x3] }
 0x149   : > { %v1965_v39 = vsel %vm1950_vm8, %v1932_v20, %v10781_v28  ;;  %v1966_v49 = vsel %vm1950_vm8, %v1933_v46, %v10782_v15  ;;  %v1964_v55 = vsel %vm1950_vm8, %v1931_v45, %v10777_v48  ;;  %v4229_v46 = vld [vmem:[#allocation3 + $0x10] sm:$0x3]  ;;  %v4513_v45 = vrot.slane %v13888_v3, 2 }
 0x14a   : > { %v10790_v61 = vpop.permute.xlu1 %10789  ;;  %v10785_v62 = vpop.permute.xlu0 %10784  ;;  %v1963_v54 = vsel %vm1950_vm8, %v1930_v42, %v10776_v32  ;;  %v4337_v32 = vrot.slane %v13888_v3, 1  ;;  %v4511_v42 = vrot.slane %v13828_v34, 2 }
 0x14b   : > { %v10792_v60 = vunpack.i.h.bf16 %v10790_v61  ;;  %v10791_v30 = vunpack.i.l.bf16 %v10790_v61  ;;  %v10787_v58 = vunpack.i.h.bf16 %v10785_v62  ;;  %v10786_v36 = vunpack.i.l.bf16 %v10785_v62 }
 0x14c   : > { %11079 = vrot.lane.b32.xlu1 %v13797_v7, %s19334_s23  ;;  %11074 = vrot.lane.b32.xlu0 %v13656_v63, %s19334_s23 }
 0x14d   : > { %v1998_v43 = vsel %vm1983_vm9, %v1965_v39, %v10791_v30  ;;  %v1999_v47 = vsel %vm1983_vm9, %v1966_v49, %v10792_v60  ;;  %v1996_v6 = vsel %vm1983_vm9, %v1963_v54, %v10786_v36  ;;  %v1997_v56 = vsel %vm1983_vm9, %v1964_v55, %v10787_v58  ;;  %v4227_v60 = vld [vmem:[#allocation3] sm:$0xff]  ;;  %v4228_v30 = vld [vmem:[#allocation3 + $0x8] sm:$0xff] }
 0x14e   : > { %v10800_v25 = vpop.permute.xlu1 %10799  ;;  %v10795_v59 = vpop.permute.xlu0 %10794  ;;  %v11128_v58 = vpack.i.bf16 %v13823_v14, %v13816_v23  ;;  %v3092_v36 = vsel %vm863_vm3, %v3090_v33, %v3091_v40  ;;  %v4329_v10 = vrot.slane %v4227_v60, 1  ;;  %v4235_v23 = vld [vmem:[#allocation3 + $0x40] sm:$0x3]  ;;  %v4336_v14 = vsel %vm863_vm3, %v4334_v26, %v4335_v24 }
 0x14f   : > { %v10802_v50 = vunpack.i.h.bf16 %v10800_v25  ;;  %v10801_v63 = vunpack.i.l.bf16 %v10800_v25  ;;  %v10797_v53 = vunpack.i.h.bf16 %v10795_v59  ;;  %v10796_v8 = vunpack.i.l.bf16 %v10795_v59 }
 0x150   : > { %11089 = vrot.lane.b32.xlu1 %v13799_v19, %s19335_s24  ;;  %11084 = vrot.lane.b32.xlu0 %v13745_v51, %s19335_s24  ;;  %v4338_v33 = vsel %vm863_vm3, %v4335_v24, %v4337_v32  ;;  %v4332_v40 = vrot.slane %v4229_v46, 1  ;;  %v4508_v39 = vrot.slane %v4229_v46, 2  ;;  %v4518_v57 = vrot.slane %v4235_v23, 2 }
 0x151   : > { %v2031_v44 = vsel %vm2016_vm10, %v1998_v43, %v10801_v63  ;;  %v2032_v11 = vsel %vm2016_vm10, %v1999_v47, %v10802_v50  ;;  %v2029_v5 = vsel %vm2016_vm10, %v1996_v6, %v10796_v8  ;;  %v2030_v37 = vsel %vm2016_vm10, %v1997_v56, %v10797_v53  ;;  %v13951_v43 = vld [vmem:[#allocation3 + $0x48] sm:$0xff]  ;;  %v13953_v47 = vld [vmem:[#allocation3 + $0x50] sm:$0xff] }
 0x152   : > { %v10810_v35 = vpop.permute.xlu1 %10809  ;;  %v10805_v2 = vpop.permute.xlu0 %10804  ;;  %v4505_v50 = vrot.slane %v4227_v60, 2  ;;  %v4506_v63 = vrot.slane %v4228_v30, 2  ;;  %v4342_v53 = vrot.slane %v4235_v23, 1  ;;  %v11133_v54 = vpack.i.bf16 %v3094_v52, %v3092_v36 }
 0x153   : > { %v10812_v51 = vunpack.i.h.bf16 %v10810_v35  ;;  %v10811_v61 = vunpack.i.l.bf16 %v10810_v35  ;;  %v10807_v62 = vunpack.i.h.bf16 %v10805_v2  ;;  %v10806_v4 = vunpack.i.l.bf16 %v10805_v2 }
 0x154   : > { %11099 = vrot.lane.b32.xlu1 %v13803_v21, %s19336_s20  ;;  %11094 = vrot.lane.b32.xlu0 %v13767_v9, %s19336_s20  ;;  %v11118_v9 = vpack.i.bf16 %v13813_v29, %v13810_v22  ;;  %v4233_v22 = vld [vmem:[#allocation3 + $0x30] sm:$0xff]  ;;  %v4234_v29 = vld [vmem:[#allocation3 + $0x38] sm:$0xff]  ;;  %v13949_v55 = vpack.i.bf16 %v4338_v33, %v4336_v14  ;;  %v13966_v2 = vsel %vm1040_vm2, %v4506_v63, %v4508_v39 }
 0x155   : > { %v2064_v38 = vsel %vm2049_vm11, %v2031_v44, %v10811_v61  ;;  %v2065_v12 = vsel %vm2049_vm11, %v2032_v11, %v10812_v51  ;;  %v2062_v13 = vsel %vm2049_vm11, %v2029_v5, %v10806_v4  ;;  %v2063_v15 = vsel %vm2049_vm11, %v2030_v37, %v10807_v62  ;;  %v13970_v11 = vld [vmem:[#allocation3 + $0x58] sm:$0x3] }
 0x156   : > { %v13902_v28 = vpop.permute.xlu1 %10819  ;;  %v2089_v48 = vpack.c.bf16 %v2065_v12, %v2064_v38  ;;  %v13905_v25 = vpop.permute.xlu0 %10814  ;;  %v2088_v20 = vpack.c.bf16 %v2063_v15, %v2062_v13  ;;  %v4339_v49 = vrot.slane %v4233_v22, 1  ;;  %v4340_v26 = vrot.slane %v4234_v29, 1 }
 0x157   : > { %v4515_v24 = vrot.slane %v4233_v22, 2  ;;  %v4516_v8 = vrot.slane %v4234_v29, 2  ;;  %v4514_v51 = vsel %vm1040_vm2, %v4511_v42, %v4513_v45  ;;  %v13963_v61 = vsel %vm1040_vm2, %v4505_v50, %v4506_v63  ;;  %v12369_v45 = vld [vmem:[#allocation2 + $0xe0] sm:$0xff]  ;;  %v12370_v50 = vld [vmem:[#allocation2 + $0xd8] sm:$0xff] }
 0x158   : > { %11109 = vrot.lane.b32.xlu1 %v11108_v1, %s19337_s28  ;;  %11104 = vrot.lane.b32.xlu0 %v13797_v7, %s19337_s28  ;;  %v4330_v1 = vrot.slane %v4228_v30, 1  ;;  %v4341_v3 = vsel %vm863_vm3, %v4339_v49, %v4340_v26  ;;  %v4343_v44 = vsel %vm863_vm3, %v4340_v26, %v4342_v53  ;;  %v4344_v5 = vrot.slane %v13951_v43, 1  ;;  %v12371_v26 = vld [vmem:[#allocation2 + $0xc8] sm:$0xff] }
 0x159   : > { %10027 = vmatprep.mubr.msk.bf16.mxu0 %vm2125_vm12, %v2088_v20  ;;  %v4517_v62 = vsel %vm1040_vm2, %v4515_v24, %v4516_v8  ;;  %v4519_v4 = vsel %vm1040_vm2, %v4516_v8, %v4518_v57  ;;  %v4345_v37 = vrot.slane %v13953_v47, 1  ;;  %v13986_v32 = vpack.i.bf16 %v4234_v29, %v4233_v22  ;;  %v12372_v24 = vld [vmem:[#allocation2 + $0xc0] sm:$0xff] }
 0x15a   : > { %10028 = vmatmul.mubr.msk.bf16.gmra.mrb[12].mxu0 %vm2125_vm12, %v2089_v48  ;;  %v13929_v7 = vpop.permute.xlu1 %10829  ;;  %v13940_v59 = vpop.permute.xlu0 %10824  ;;  %v4331_v6 = vsel %vm863_vm3, %v4329_v10, %v4330_v1  ;;  %v4333_v56 = vsel %vm863_vm3, %v4330_v1, %v4332_v40  ;;  %v11148_v48 = vpack.i.bf16 %v13966_v2, %v13963_v61  ;;  %v4347_v60 = vrot.slane %v13970_v11, 1 }
 0x15b   : > { %v11138_v12 = vpack.i.bf16 %v4333_v56, %v4331_v6  ;;  %v13993_v30 = vpack.i.bf16 %v4343_v44, %v4341_v3  ;;  %v13995_v20 = vpack.i.bf16 %v4519_v4, %v4517_v62  ;;  %v10822_v46 = vunpack.i.h.bf16 %v13902_v28 }
 0x15c   : > { %11119 = vrot.lane.b32.xlu1 %v11118_v9, %s19338_s25  ;;  %11114 = vrot.lane.b32.xlu0 %v13799_v19, %s19338_s25  ;;  %v4512_v19 = vsel %vm1040_vm2, %v4510_v41, %v4511_v42  ;;  %v10821_v9 = vunpack.i.l.bf16 %v13902_v28  ;;  %v14005_v36 = vsel %vm863_vm3, %v4344_v5, %v4345_v37  ;;  %v10817_v52 = vunpack.i.h.bf16 %v13905_v25 }
 0x15d   : > { %v13980_v13 = vpack.i.bf16 %v4514_v51, %v4512_v19  ;;  %v10816_v10 = vunpack.i.l.bf16 %v13905_v25  ;;  %v10832_v1 = vunpack.i.h.bf16 %v13929_v7  ;;  %v10831_v22 = vunpack.i.l.bf16 %v13929_v7 }
 0x15e   : > { %v13947_v16 = vpop.permute.xlu1 %10839  ;;  %v13955_v35 = vpop.permute.xlu0 %10834  ;;  %v10827_v28 = vunpack.i.h.bf16 %v13940_v59  ;;  %v10826_v23 = vunpack.i.l.bf16 %v13940_v59  ;;  %v14014_v33 = vsel %vm863_vm3, %v4345_v37, %v4347_v60  ;;  %v4520_v40 = vrot.slane %v13951_v43, 2 }
 0x15f   : > { %v10842_v41 = vunpack.i.h.bf16 %v13947_v16  ;;  %v10841_v42 = vunpack.i.l.bf16 %v13947_v16  ;;  %v4521_v25 = vrot.slane %v13953_v47, 2  ;;  %v4523_v7 = vrot.slane %v13970_v11, 2 }
 0x160   : > { %11129 = vrot.lane.b32.xlu1 %v11128_v58, %s19339_s2  ;;  %11124 = vrot.lane.b32.xlu0 %v13803_v21, %s19339_s2  ;;  %v11158_v21 = vpack.i.bf16 %v13828_v34, %v13826_v27  ;;  %v14002_v58 = vpack.i.bf16 %v13953_v47, %v13951_v43  ;;  %v1838_v59 = vsel %vm672_vm0, %v12369_v45, %v10822_v46  ;;  %v10837_v39 = vunpack.i.h.bf16 %v13955_v35 }
 0x161   : > { %v1837_v63 = vsel %vm672_vm0, %v12370_v50, %v10821_v9  ;;  %v10836_v49 = vunpack.i.l.bf16 %v13955_v35  ;;  %v1836_v53 = vsel %vm672_vm0, %v12371_v26, %v10817_v52  ;;  %v1835_v8 = vsel %vm672_vm0, %v12372_v24, %v10816_v10 }
 0x162   : > { %v13978_v38 = vpop.permute.xlu1 %10849  ;;  %v13982_v15 = vpop.permute.xlu0 %10844  ;;  %v1870_v57 = vsel %vm1851_vm5, %v1837_v63, %v10831_v22  ;;  %v1871_v16 = vsel %vm1851_vm5, %v1838_v59, %v10832_v1  ;;  %v1868_v6 = vsel %vm1851_vm5, %v1835_v8, %v10826_v23  ;;  %v1869_v56 = vsel %vm1851_vm5, %v1836_v53, %v10827_v28 }
 0x163   : > { %v10852_v19 = vunpack.i.h.bf16 %v13978_v38  ;;  %v10851_v35 = vunpack.i.l.bf16 %v13978_v38  ;;  %v1903_v61 = vsel %vm1884_vm6, %v1870_v57, %v10841_v42  ;;  %v1904_v2 = vsel %vm1884_vm6, %v1871_v16, %v10842_v41 }
 0x164   : > { %11144 = vrot.lane.b32.xlu1 %v13949_v55, %s19340_s26  ;;  %11134 = vrot.lane.b32.xlu0 %v11133_v54, %s19010_s19  ;;  %v10847_v3 = vunpack.i.h.bf16 %v13982_v15  ;;  %v10846_v44 = vunpack.i.l.bf16 %v13982_v15  ;;  %v1901_v62 = vsel %vm1884_vm6, %v1868_v6, %v10836_v49  ;;  %v1902_v4 = vsel %vm1884_vm6, %v1869_v56, %v10837_v39  ;;  %s12587_s19 = smov [#allocation7]  }
 0x165   : > { %v1936_v52 = vsel %vm1917_vm7, %v1903_v61, %v10851_v35  ;;  %v1937_v15 = vsel %vm1917_vm7, %v1904_v2, %v10852_v19 }
 0x166   : > { %v10860_v29 = vpop.permute.xlu1 %10859  ;;  %v10855_v14 = vpop.permute.xlu0 %10854  ;;  %v1934_v28 = vsel %vm1917_vm7, %v1901_v62, %v10846_v44  ;;  %v1935_v23 = vsel %vm1917_vm7, %v1902_v4, %v10847_v3  ;;  %v14083_v62 = vpack.i.bf16 %v14014_v33, %v14005_v36  ;;  %v4524_v4 = vsel %vm1040_vm2, %v4521_v25, %v4523_v7  ;;  %v4240_v36 = vld [vmem:[#allocation3 + $0x68] sm:$0xff]  ;;  %v4241_v33 = vld [vmem:[#allocation3 + $0x70] sm:$0x3] }
 0x167   : > { %v10862_v5 = vunpack.i.h.bf16 %v10860_v29  ;;  %v10861_v37 = vunpack.i.l.bf16 %v10860_v29  ;;  %v10857_v38 = vunpack.i.h.bf16 %v10855_v14  ;;  %v4350_v47 = vrot.slane %v4240_v36, 1 }
 0x168   : > { %11154 = vrot.lane.b32.xlu1 %v13980_v13, %s19333_s29  ;;  %11139 = vrot.lane.b32.xlu0 %v11138_v12, %s19340_s26  ;;  %v10856_v12 = vunpack.i.l.bf16 %v10855_v14  ;;  %v4526_v7 = vrot.slane %v4240_v36, 2 }
 0x169   : > { %v1970_v14 = vsel %vm1950_vm8, %v1937_v15, %v10862_v5  ;;  %v1968_v50 = vsel %vm1950_vm8, %v1935_v23, %v10857_v38  ;;  %v4239_v5 = vld [vmem:[#allocation3 + $0x60] sm:$0xff]  ;;  %v4528_v38 = vrot.slane %v4241_v33, 2 }
 0x16a   : > { %v10870_v54 = vpop.permute.xlu1 %10869  ;;  %v10865_v51 = vpop.permute.xlu0 %10864  ;;  %v1967_v59 = vsel %vm1950_vm8, %v1934_v28, %v10856_v12  ;;  %v4349_v11 = vrot.slane %v4239_v5, 1 }
 0x16b   : > { %v10872_v60 = vunpack.i.h.bf16 %v10870_v54  ;;  %v10871_v46 = vunpack.i.l.bf16 %v10870_v54  ;;  %v10867_v10 = vunpack.i.h.bf16 %v10865_v51  ;;  %v10866_v1 = vunpack.i.l.bf16 %v10865_v51 }
 0x16c   : > { %11164 = vrot.lane.b32.xlu1 %v13986_v32, %s19334_s23  ;;  %11149 = vrot.lane.b32.xlu0 %v11148_v48, %s19333_s29  ;;  %v1969_v48 = vsel %vm1950_vm8, %v1936_v52, %v10861_v37  ;;  %v4351_v52 = vsel %vm863_vm3, %v4349_v11, %v4350_v47  ;;  %v4529_v28 = vsel %vm1040_vm2, %v4526_v7, %v4528_v38 }
 0x16d   : > { %v2002_v63 = vsel %vm1983_vm9, %v1969_v48, %v10871_v46  ;;  %v2003_v39 = vsel %vm1983_vm9, %v1970_v14, %v10872_v60  ;;  %v2000_v26 = vsel %vm1983_vm9, %v1967_v59, %v10866_v1  ;;  %v2001_v53 = vsel %vm1983_vm9, %v1968_v50, %v10867_v10  ;;  %v14111_v60 = vld [vmem:[#allocation3 + $0x78] sm:$0xff]  ;;  %v14113_v46 = vld [vmem:[#allocation3 + $0x80] sm:$0xff]  ;;  %v14121_v10 = vld [vmem:[#allocation3 + $0x88] sm:$0x3] }
 0x16e   : > { %v10880_v9 = vpop.permute.xlu1 %10879  ;;  %v10875_v22 = vpop.permute.xlu0 %10874  ;;  %v4121_v1 = vld [vmem:[%s13353_s17 + $0x68] sm:$0xff]  ;;  %v4354_v23 = vrot.slane %v14111_v60, 1  ;;  %v14137_v14 = vpack.i.bf16 %v4240_v36, %v4239_v5  ;;  %v12376_v36 = vld [vmem:[#allocation2 + $0xf0] sm:$0xff] }
 0x16f   : > { %v10882_v41 = vunpack.i.h.bf16 %v10880_v9  ;;  %v10881_v29 = vunpack.i.l.bf16 %v10880_v9  ;;  %v10877_v42 = vunpack.i.h.bf16 %v10875_v22  ;;  %v10876_v45 = vunpack.i.l.bf16 %v10875_v22  ;;  %4208 = vst.msk [vmem:[#allocation3 + $0xb1] sm:$0xff] %vm672_vm0, %v4121_v1 }
 0x170   : > { %11174 = vrot.lane.b32.xlu1 %v13993_v30, %s19335_s24  ;;  %11159 = vrot.lane.b32.xlu0 %v11158_v21, %s19334_s23 }
 0x171   : > { %v2035_v16 = vsel %vm2016_vm10, %v2002_v63, %v10881_v29  ;;  %v2036_v27 = vsel %vm2016_vm10, %v2003_v39, %v10882_v41  ;;  %v2033_v54 = vsel %vm2016_vm10, %v2000_v26, %v10876_v45  ;;  %v2034_v6 = vsel %vm2016_vm10, %v2001_v53, %v10877_v42 }
 0x172   : > { %v10890_v49 = vpop.permute.xlu1 %10889  ;;  %v10885_v57 = vpop.permute.xlu0 %10884  ;;  %v4355_v41 = vrot.slane %v14113_v46, 1  ;;  %v4357_v42 = vrot.slane %v14121_v10, 1  ;;  %v14152_v39 = vpack.i.bf16 %v14113_v46, %v14111_v60 }
 0x173   : > { %v10892_v24 = vunpack.i.h.bf16 %v10890_v49  ;;  %v10891_v8 = vunpack.i.l.bf16 %v10890_v49  ;;  %v10887_v34 = vunpack.i.h.bf16 %v10885_v57  ;;  %v10886_v21 = vunpack.i.l.bf16 %v10885_v57 }
 0x174   : > { %11184 = vrot.lane.b32.xlu1 %v13995_v20, %s19336_s20  ;;  %11169 = vrot.lane.b32.xlu0 %v13949_v55, %s19335_s24  ;;  %v4522_v55 = vsel %vm1040_vm2, %v4520_v40, %v4521_v25  ;;  %v4352_v40 = vrot.slane %v4241_v33, 1  ;;  %v4525_v25 = vrot.slane %v4239_v5, 2  ;;  %v14155_v49 = vsel %vm863_vm3, %v4354_v23, %v4355_v41 }
 0x175   : > { %v2068_v56 = vsel %vm2049_vm11, %v2035_v16, %v10891_v8  ;;  %v2069_v19 = vsel %vm2049_vm11, %v2036_v27, %v10892_v24  ;;  %v2066_v35 = vsel %vm2049_vm11, %v2033_v54, %v10886_v21  ;;  %v2067_v51 = vsel %vm2049_vm11, %v2034_v6, %v10887_v34 }
 0x176   : > { %v14075_v61 = vpop.permute.xlu1 %10899  ;;  %v2091_v2 = vpack.c.bf16 %v2069_v19, %v2068_v56  ;;  %v14077_v3 = vpop.permute.xlu0 %10894  ;;  %v2090_v44 = vpack.c.bf16 %v2067_v51, %v2066_v35  ;;  %v14105_v43 = vpack.i.bf16 %v4524_v4, %v4522_v55  ;;  %v4353_v15 = vsel %vm863_vm3, %v4350_v47, %v4352_v40  ;;  %v12373_v51 = vld [vmem:[#allocation2 + $0x110] sm:$0xff]  ;;  %v12375_v4 = vld [vmem:[#allocation2 + $0xf8] sm:$0xff] }
 0x177   : > { %v4527_v22 = vsel %vm1040_vm2, %v4525_v25, %v4526_v7  ;;  %v14142_v45 = vpack.i.bf16 %v4353_v15, %v4351_v52  ;;  %v10902_v50 = vunpack.i.h.bf16 %v14075_v61  ;;  %v10901_v63 = vunpack.i.l.bf16 %v14075_v61 }
 0x178   : > { %11194 = vrot.lane.b32.xlu1 %v14002_v58, %s19337_s28  ;;  %10031 = vmatprep.mubr.msk.bf16.mxu0 %vm2125_vm12, %v2090_v44  ;;  %v14144_v59 = vpack.i.bf16 %v4529_v28, %v4527_v22  ;;  %v10897_v26 = vunpack.i.h.bf16 %v14077_v3  ;;  %v10896_v53 = vunpack.i.l.bf16 %v14077_v3  ;;  %v14164_v21 = vsel %vm863_vm3, %v4355_v41, %v4357_v42 }
 0x179   : > { %11179 = vrot.lane.b32.xlu0 %v13980_v13, %s19336_s20  ;;  %10032 = vmatmul.mubr.msk.bf16.gmra.mrb[16].mxu0 %vm2125_vm12, %v2091_v2  ;;  %v4530_v54 = vrot.slane %v14111_v60, 2  ;;  %v4531_v19 = vrot.slane %v14113_v46, 2  ;;  %v4533_v35 = vrot.slane %v14121_v10, 2  ;;  %v1842_v61 = vsel %vm672_vm0, %v12373_v51, %v10902_v50  ;;  %v12374_v2 = vld [vmem:[#allocation2 + $0x108] sm:$0xff]  ;;  %v14255_v46 = vld [vmem:[#allocation3 + $0xa0] sm:$0x3] }
 0x17a   : > { %v14099_v37 = vpop.permute.xlu1 %10909  ;;  %v14101_v13 = vpop.permute.xlu0 %10904  ;;  %v1841_v3 = vsel %vm672_vm0, %v12374_v2, %v10901_v63  ;;  %v1840_v5 = vsel %vm672_vm0, %v12375_v4, %v10897_v26  ;;  %v1839_v33 = vsel %vm672_vm0, %v12376_v36, %v10896_v53  ;;  %v14253_v10 = vld [vmem:[#allocation3 + $0x98] sm:$0xff] }
 0x17b   : > { %v10912_v24 = vunpack.i.h.bf16 %v14099_v37  ;;  %v10911_v8 = vunpack.i.l.bf16 %v14099_v37  ;;  %v10907_v16 = vunpack.i.h.bf16 %v14101_v13  ;;  %v10906_v27 = vunpack.i.l.bf16 %v14101_v13 }
 0x17c   : > { %11204 = vrot.lane.b32.xlu1 %v14083_v62, %s19338_s25 }
 0x17d   : > { %11189 = vrot.lane.b32.xlu0 %v13986_v32, %s19337_s28  ;;  %v4120_v32 = vld [vmem:[%s13353_s17 + $0x60] sm:$0xff]  ;;  %v1874_v37 = vsel %vm1851_vm5, %v1841_v3, %v10911_v8  ;;  %v1875_v13 = vsel %vm1851_vm5, %v1842_v61, %v10912_v24  ;;  %v1872_v47 = vsel %vm1851_vm5, %v1839_v33, %v10906_v27  ;;  %v1873_v40 = vsel %vm1851_vm5, %v1840_v5, %v10907_v16 }
 0x17e   : > { %v14109_v12 = vpop.permute.xlu1 %10919  ;;  %v14115_v9 = vpop.permute.xlu0 %10914  ;;  %4207 = vst.msk [vmem:[#allocation3 + $0xa9] sm:$0xff] %vm672_vm0, %v4120_v32 }
 0x17f   : > { %v10922_v6 = vunpack.i.h.bf16 %v14109_v12  ;;  %v10921_v56 = vunpack.i.l.bf16 %v14109_v12  ;;  %v10917_v44 = vunpack.i.h.bf16 %v14115_v9  ;;  %v10916_v55 = vunpack.i.l.bf16 %v14115_v9 }
 0x180   : > { %11214 = vrot.lane.b32.xlu1 %v14105_v43, %s19339_s2 }
 0x181   : > { %11199 = vrot.lane.b32.xlu0 %v13993_v30, %s19338_s25  ;;  %v1907_v38 = vsel %vm1884_vm6, %v1874_v37, %v10921_v56  ;;  %v1908_v12 = vsel %vm1884_vm6, %v1875_v13, %v10922_v6  ;;  %v1905_v15 = vsel %vm1884_vm6, %v1872_v47, %v10916_v55  ;;  %v1906_v32 = vsel %vm1884_vm6, %v1873_v40, %v10917_v44 }
 0x182   : > { %v14133_v29 = vpop.permute.xlu1 %10929  ;;  %v14135_v48 = vpop.permute.xlu0 %10924 }
 0x183   : > { %v10932_v25 = vunpack.i.h.bf16 %v14133_v29  ;;  %v10931_v7 = vunpack.i.l.bf16 %v14133_v29  ;;  %v10927_v9 = vunpack.i.h.bf16 %v14135_v48  ;;  %v10926_v52 = vunpack.i.l.bf16 %v14135_v48 }
 0x184   : > { %11224 = vrot.lane.b32.xlu1 %v14083_v62, %s19340_s26 }
 0x185   : > { %11209 = vrot.lane.b32.xlu0 %v13995_v20, %s19339_s2  ;;  %v1940_v50 = vsel %vm1917_vm7, %v1907_v38, %v10931_v7  ;;  %v1941_v48 = vsel %vm1917_vm7, %v1908_v12, %v10932_v25  ;;  %v1938_v24 = vsel %vm1917_vm7, %v1905_v15, %v10926_v52  ;;  %v1939_v8 = vsel %vm1917_vm7, %v1906_v32, %v10927_v9 }
 0x186   : > { %v10940_v57 = vpop.permute.xlu1 %10939  ;;  %v10935_v34 = vpop.permute.xlu0 %10934  ;;  %v14229_v15 = vpack.i.bf16 %v14164_v21, %v14155_v49  ;;  %v4534_v32 = vsel %vm1040_vm2, %v4531_v19, %v4533_v35 }
 0x187   : > { %v10942_v1 = vunpack.i.h.bf16 %v10940_v57  ;;  %v10941_v22 = vunpack.i.l.bf16 %v10940_v57  ;;  %v10937_v28 = vunpack.i.h.bf16 %v10935_v34  ;;  %v10936_v23 = vunpack.i.l.bf16 %v10935_v34 }
 0x188   : > { %11234 = vrot.lane.b32.xlu1 %v14105_v43, %s19333_s29 }
 0x189   : > { %11219 = vrot.lane.b32.xlu0 %v13993_v30, %s19340_s26  ;;  %v1974_v27 = vsel %vm1950_vm8, %v1941_v48, %v10942_v1  ;;  %v1971_v56 = vsel %vm1950_vm8, %v1938_v24, %v10936_v23  ;;  %v1972_v51 = vsel %vm1950_vm8, %v1939_v8, %v10937_v28  ;;  %v4360_v1 = vrot.slane %v14253_v10, 1 }
 0x18a   : > { %v10950_v11 = vpop.permute.xlu1 %10949  ;;  %v10945_v30 = vpop.permute.xlu0 %10944 }
 0x18b   : > { %v10952_v41 = vunpack.i.h.bf16 %v10950_v11  ;;  %v10951_v29 = vunpack.i.l.bf16 %v10950_v11  ;;  %v10947_v63 = vunpack.i.h.bf16 %v10945_v30  ;;  %v10946_v26 = vunpack.i.l.bf16 %v10945_v30 }
 0x18c   : > { %11244 = vrot.lane.b32.xlu1 %v14137_v14, %s19334_s23 }
 0x18d   : > { %11229 = vrot.lane.b32.xlu0 %v13995_v20, %s19333_s29  ;;  %v1973_v20 = vsel %vm1950_vm8, %v1940_v50, %v10941_v22  ;;  %v2007_v2 = vsel %vm1983_vm9, %v1974_v27, %v10952_v41  ;;  %v2004_v44 = vsel %vm1983_vm9, %v1971_v56, %v10946_v26  ;;  %v2005_v55 = vsel %vm1983_vm9, %v1972_v51, %v10947_v63  ;;  %v12378_v51 = vld [vmem:[#allocation2 + $0x138] sm:$0xff] }
 0x18e   : > { %v10960_v42 = vpop.permute.xlu1 %10959  ;;  %v10955_v53 = vpop.permute.xlu0 %10954  ;;  %v2006_v61 = vsel %vm1983_vm9, %v1973_v20, %v10951_v29 }
 0x18f   : > { %v10962_v57 = vunpack.i.h.bf16 %v10960_v42  ;;  %v10961_v16 = vunpack.i.l.bf16 %v10960_v42  ;;  %v10957_v34 = vunpack.i.h.bf16 %v10955_v53  ;;  %v10956_v6 = vunpack.i.l.bf16 %v10955_v53 }
 0x190   : > { %11254 = vrot.lane.b32.xlu1 %v14142_v45, %s19335_s24 }
 0x191   : > { %11239 = vrot.lane.b32.xlu0 %v14002_v58, %s19334_s23  ;;  %v2039_v33 = vsel %vm2016_vm10, %v2006_v61, %v10961_v16  ;;  %v2040_v58 = vsel %vm2016_vm10, %v2007_v2, %v10962_v57  ;;  %v2037_v11 = vsel %vm2016_vm10, %v2004_v44, %v10956_v6  ;;  %v2038_v47 = vsel %vm2016_vm10, %v2005_v55, %v10957_v34  ;;  %v12377_v6 = vld [vmem:[#allocation2 + $0x140] sm:$0xff]  ;;  %v12379_v44 = vld [vmem:[#allocation2 + $0x128] sm:$0xff] }
 0x192   : > { %v10970_v3 = vpop.permute.xlu1 %10969  ;;  %v10965_v36 = vpop.permute.xlu0 %10964 }
 0x193   : > { %v10972_v4 = vunpack.i.h.bf16 %v10970_v3  ;;  %v10971_v5 = vunpack.i.l.bf16 %v10970_v3  ;;  %v10967_v37 = vunpack.i.h.bf16 %v10965_v36  ;;  %v10966_v13 = vunpack.i.l.bf16 %v10965_v36 }
 0x194   : > { %11264 = vrot.lane.b32.xlu1 %v14144_v59, %s19336_s20 }
 0x195   : > { %v2072_v40 = vsel %vm2049_vm11, %v2039_v33, %v10971_v5  ;;  %v2073_v25 = vsel %vm2049_vm11, %v2040_v58, %v10972_v4  ;;  %11249 = vrot.lane.b32.xlu0 %v14083_v62, %s19335_s24  ;;  %v2070_v7 = vsel %vm2049_vm11, %v2037_v11, %v10966_v13  ;;  %v2071_v30 = vsel %vm2049_vm11, %v2038_v47, %v10967_v37  ;;  %v12380_v4 = vld [vmem:[#allocation2 + $0x120] sm:$0xff] }
 0x196   : > { %v10980_v38 = vpop.permute.xlu1 %10979  ;;  %v2093_v12 = vpack.c.bf16 %v2073_v25, %v2072_v40  ;;  %v10975_v9 = vpop.permute.xlu0 %10974  ;;  %v2092_v52 = vpack.c.bf16 %v2071_v30, %v2070_v7  ;;  %v4532_v62 = vsel %vm1040_vm2, %v4530_v54, %v4531_v19  ;;  %v14251_v54 = vld [vmem:[#allocation3 + $0x90] sm:$0xff] }
 0x197   : > { %v4359_v35 = vrot.slane %v14251_v54, 1  ;;  %v10982_v23 = vunpack.i.h.bf16 %v10980_v38  ;;  %v10981_v41 = vunpack.i.l.bf16 %v10980_v38  ;;  %v10977_v50 = vunpack.i.h.bf16 %v10975_v9 }
 0x198   : > { %11274 = vrot.lane.b32.xlu1 %v14152_v39, %s19337_s28  ;;  %10035 = vmatprep.mubr.msk.bf16.mxu0 %vm2125_vm12, %v2092_v52  ;;  %v10976_v48 = vunpack.i.l.bf16 %v10975_v9  ;;  %v14272_v16 = vpack.i.bf16 %v14253_v10, %v14251_v54 }
 0x199   : > { %11259 = vrot.lane.b32.xlu0 %v14105_v43, %s19336_s20  ;;  %10036 = vmatmul.mubr.msk.bf16.gmra.mrb[20].mxu0 %vm2125_vm12, %v2093_v12  ;;  %v14247_v43 = vpack.i.bf16 %v4534_v32, %v4532_v62  ;;  %v4361_v29 = vsel %vm863_vm3, %v4359_v35, %v4360_v1  ;;  %v1846_v56 = vsel %vm672_vm0, %v12377_v6, %v10982_v23 }
 0x19a   : > { %v10990_v49 = vpop.permute.xlu1 %10989  ;;  %v10985_v21 = vpop.permute.xlu0 %10984  ;;  %v1845_v61 = vsel %vm672_vm0, %v12378_v51, %v10981_v41  ;;  %v1844_v55 = vsel %vm672_vm0, %v12379_v44, %v10977_v50  ;;  %v1843_v5 = vsel %vm672_vm0, %v12380_v4, %v10976_v48 }
 0x19b   : > { %v10992_v63 = vunpack.i.h.bf16 %v10990_v49  ;;  %v10991_v26 = vunpack.i.l.bf16 %v10990_v49  ;;  %v10987_v24 = vunpack.i.h.bf16 %v10985_v21  ;;  %v10986_v8 = vunpack.i.l.bf16 %v10985_v21 }
 0x19c   : > { %11284 = vrot.lane.b32.xlu1 %v14229_v15, %s19338_s25 }
 0x19d   : > { %11269 = vrot.lane.b32.xlu0 %v14137_v14, %s19337_s28  ;;  %v4362_v14 = vrot.slane %v14255_v46, 1  ;;  %v1878_v36 = vsel %vm1851_vm5, %v1845_v61, %v10991_v26  ;;  %v1879_v33 = vsel %vm1851_vm5, %v1846_v56, %v10992_v63  ;;  %v1876_v37 = vsel %vm1851_vm5, %v1843_v5, %v10986_v8 }
 0x19e   : > { %v11000_v60 = vpop.permute.xlu1 %10999  ;;  %v10995_v19 = vpop.permute.xlu0 %10994  ;;  %v1877_v13 = vsel %vm1851_vm5, %v1844_v55, %v10987_v24 }
 0x19f   : > { %v4363_v42 = vsel %vm863_vm3, %v4360_v1, %v4362_v14  ;;  %v11002_v20 = vunpack.i.h.bf16 %v11000_v60  ;;  %v11001_v27 = vunpack.i.l.bf16 %v11000_v60  ;;  %v10997_v2 = vunpack.i.h.bf16 %v10995_v19 }
 0x1a0   : > { %11294 = vrot.lane.b32.xlu1 %v14247_v43, %s19339_s2  ;;  %v14276_v34 = vpack.i.bf16 %v4363_v42, %v4361_v29  ;;  %v10996_v3 = vunpack.i.l.bf16 %v10995_v19 }
 0x1a1   : > { %11279 = vrot.lane.b32.xlu0 %v14142_v45, %s19338_s25  ;;  %v1912_v25 = vsel %vm1884_vm6, %v1879_v33, %v11002_v20  ;;  %v1910_v12 = vsel %vm1884_vm6, %v1877_v13, %v10997_v2 }
 0x1a2   : > { %v11010_v22 = vpop.permute.xlu1 %11009  ;;  %v11005_v28 = vpop.permute.xlu0 %11004  ;;  %v1909_v38 = vsel %vm1884_vm6, %v1876_v37, %v10996_v3 }
 0x1a3   : > { %v11012_v11 = vunpack.i.h.bf16 %v11010_v22  ;;  %v11011_v47 = vunpack.i.l.bf16 %v11010_v22  ;;  %v11007_v7 = vunpack.i.h.bf16 %v11005_v28  ;;  %v11006_v30 = vunpack.i.l.bf16 %v11005_v28 }
 0x1a4   : > { %11304 = vrot.lane.b32.xlu1 %v14229_v15, %s19340_s26 }
 0x1a5   : > { %11289 = vrot.lane.b32.xlu0 %v14144_v59, %s19339_s2  ;;  %v1945_v35 = vsel %vm1917_vm7, %v1912_v25, %v11012_v11  ;;  %v1942_v28 = vsel %vm1917_vm7, %v1909_v38, %v11006_v30  ;;  %v1943_v23 = vsel %vm1917_vm7, %v1910_v12, %v11007_v7  ;;  %v12278_v7 = vld [vmem:[%s19346_s4 + $0xc8] sm:$0xff]  }
 0x1a6   : > { %v11020_v53 = vpop.permute.xlu1 %11019  ;;  %v11015_v57 = vpop.permute.xlu0 %11014  ;;  %v12279_v30 = vld [vmem:[%s19346_s4 + $0x88] sm:$0xff]  }
 0x1a7   : > { %v11022_v9 = vunpack.i.h.bf16 %v11020_v53  ;;  %v11021_v52 = vunpack.i.l.bf16 %v11020_v53  ;;  %v11017_v62 = vunpack.i.h.bf16 %v11015_v57  ;;  %v11016_v32 = vunpack.i.l.bf16 %v11015_v57 }
 0x1a8   : > { %11314 = vrot.lane.b32.xlu1 %v14247_v43, %s19333_s29 }
 0x1a9   : > { %11299 = vrot.lane.b32.xlu0 %v14142_v45, %s19340_s26  ;;  %v1911_v45 = vsel %vm1884_vm6, %v1878_v36, %v11001_v27  ;;  %v1978_v42 = vsel %vm1950_vm8, %v1945_v35, %v11022_v9  ;;  %v1975_v63 = vsel %vm1950_vm8, %v1942_v28, %v11016_v32  ;;  %v1976_v26 = vsel %vm1950_vm8, %v1943_v23, %v11017_v62  ;;  %v12280_v35 = vld [vmem:[%s19346_s4 + $0xd0] sm:$0xff]   ;;  %v12382_v23 = vld [vmem:[#allocation2 + $0x168] sm:$0xff] }
 0x1aa   : > { %v11030_v58 = vpop.permute.xlu1 %11029  ;;  %v11025_v40 = vpop.permute.xlu0 %11024  ;;  %v1944_v19 = vsel %vm1917_vm7, %v1911_v45, %v11011_v47 }
 0x1ab   : > { %v11032_v49 = vunpack.i.h.bf16 %v11030_v58  ;;  %v11031_v21 = vunpack.i.l.bf16 %v11030_v58  ;;  %v11027_v1 = vunpack.i.h.bf16 %v11025_v40  ;;  %v11026_v14 = vunpack.i.l.bf16 %v11025_v40  ;;  %v12276_v40 = vld [vmem:[%s19346_s4 + $0xc0] sm:$0xff]  }
 0x1ac   : > { %11324 = vrot.lane.b32.xlu1 %v14272_v16, %s19334_s23  ;;  %9515 = vmatprep.subr.bf16.mxu0 %v12276_v40 }
 0x1ad   : > { %11309 = vrot.lane.b32.xlu0 %v14144_v59, %s19333_s29  ;;  %v1977_v59 = vsel %vm1950_vm8, %v1944_v19, %v11021_v52  ;;  %v2011_v24 = vsel %vm1983_vm9, %v1978_v42, %v11032_v49  ;;  %v2008_v57 = vsel %vm1983_vm9, %v1975_v63, %v11026_v14  ;;  %v2009_v20 = vsel %vm1983_vm9, %v1976_v26, %v11027_v1  ;;  %v12281_v1 = vld [vmem:[%s19346_s4 + $0x90] sm:$0xff]  }
 0x1ae   : > { %v11040_v60 = vpop.permute.xlu1 %11039  ;;  %v11035_v22 = vpop.permute.xlu0 %11034  ;;  %v2010_v53 = vsel %vm1983_vm9, %v1977_v59, %v11031_v21  ;;  %v12381_v14 = vld [vmem:[#allocation2 + $0x170] sm:$0xff] }
 0x1af   : > { %v11042_v41 = vunpack.i.h.bf16 %v11040_v60  ;;  %v11041_v29 = vunpack.i.l.bf16 %v11040_v60  ;;  %v11037_v50 = vunpack.i.h.bf16 %v11035_v22  ;;  %v11036_v48 = vunpack.i.l.bf16 %v11035_v22  ;;  %v12384_v63 = vld [vmem:[#allocation2 + $0x150] sm:$0xff] }
 0x1b0   : > { %11334 = vrot.lane.b32.xlu1 %v14276_v34, %s19335_s24 }
 0x1b1   : > { %11319 = vrot.lane.b32.xlu0 %v14152_v39, %s19334_s23  ;;  %v2043_v51 = vsel %vm2016_vm10, %v2010_v53, %v11041_v29  ;;  %v2044_v39 = vsel %vm2016_vm10, %v2011_v24, %v11042_v41  ;;  %v2041_v3 = vsel %vm2016_vm10, %v2008_v57, %v11036_v48  ;;  %v2042_v44 = vsel %vm2016_vm10, %v2009_v20, %v11037_v50  ;;  %v12383_v29 = vld [vmem:[#allocation2 + $0x158] sm:$0xff] }
 0x1b2   : > { %v11050_v8 = vpop.permute.xlu1 %11049  ;;  %v11045_v56 = vpop.permute.xlu0 %11044 }
 0x1b3   : > { %v11052_v27 = vunpack.i.h.bf16 %v11050_v8  ;;  %v11051_v6 = vunpack.i.l.bf16 %v11050_v8  ;;  %v11047_v61 = vunpack.i.h.bf16 %v11045_v56  ;;  %v11046_v2 = vunpack.i.l.bf16 %v11045_v56  ;;  %v12282_v56 = vld [vmem:[%s19346_s4 + $0xd8] sm:$0xff]  }
 0x1b5   : > { %v2076_v55 = vsel %vm2049_vm11, %v2043_v51, %v11051_v6  ;;  %v2077_v4 = vsel %vm2049_vm11, %v2044_v39, %v11052_v27  ;;  %11329 = vrot.lane.b32.xlu0 %v14229_v15, %s19335_s24  ;;  %v2074_v5 = vsel %vm2049_vm11, %v2041_v3, %v11046_v2  ;;  %v2075_v36 = vsel %vm2049_vm11, %v2042_v44, %v11047_v61  ;;  %v12277_v15 = vld [vmem:[%s19346_s4 + $0x80] sm:$0xff]  }
 0x1b6   : > { %v11060_v33 = vpop.permute.xlu1 %11059  ;;  %v2095_v58 = vpack.c.bf16 %v2077_v4, %v2076_v55  ;;  %v11055_v37 = vpop.permute.xlu0 %11054  ;;  %v2094_v13 = vpack.c.bf16 %v2075_v36, %v2074_v5  ;;  %9516 = vmatpush3.bf16.msra.mxu0 %v12277_v15 }
 0x1b7   : > { %v11062_v38 = vunpack.i.h.bf16 %v11060_v33  ;;  %v11061_v9 = vunpack.i.l.bf16 %v11060_v33  ;;  %v11057_v52 = vunpack.i.h.bf16 %v11055_v37  ;;  %9517 = vmatprep.subr.bf16.mxu0 %v12278_v7  ;;  %v11056_v32 = vunpack.i.l.bf16 %v11055_v37 }
 0x1b8   : > { %10039 = vmatprep.mubr.msk.bf16.mxu0 %vm2125_vm12, %v2094_v13 }
 0x1b9   : > { %10040 = vmatmul.mubr.msk.bf16.gmra.mrb[24].mxu0 %vm2125_vm12, %v2095_v58  ;;  %v1850_v22 = vsel %vm672_vm0, %v12381_v14, %v11062_v38  ;;  %v1849_v41 = vsel %vm672_vm0, %v12382_v23, %v11061_v9  ;;  %v1848_v59 = vsel %vm672_vm0, %v12383_v29, %v11057_v52  ;;  %v1847_v26 = vsel %vm672_vm0, %v12384_v63, %v11056_v32  ;;  %v12283_v9 = vld [vmem:[%s19346_s4 + $0x98] sm:$0xff]  }
 0x1ba   : > { %v11070_v11 = vpop.permute.xlu1 %11069  ;;  %v11065_v47 = vpop.permute.xlu0 %11064  ;;  %9518 = vmatpush3.bf16.msra.mxu0 %v12279_v30 }
 0x1bb   : > { %v11072_v49 = vunpack.i.h.bf16 %v11070_v11  ;;  %v11071_v21 = vunpack.i.l.bf16 %v11070_v11  ;;  %v11067_v60 = vunpack.i.h.bf16 %v11065_v47  ;;  %v11066_v19 = vunpack.i.l.bf16 %v11065_v47  ;;  %9519 = vmatprep.subr.bf16.mxu0 %v12280_v35 }
 0x1bd   : > { %v1882_v53 = vsel %vm1851_vm5, %v1849_v41, %v11071_v21  ;;  %v1883_v24 = vsel %vm1851_vm5, %v1850_v22, %v11072_v49  ;;  %v1880_v57 = vsel %vm1851_vm5, %v1847_v26, %v11066_v19  ;;  %v1881_v20 = vsel %vm1851_vm5, %v1848_v59, %v11067_v60  ;;  %v12284_v59 = vld [vmem:[%s19346_s4 + $0xe0] sm:$0xff]  }
 0x1be   : > { %v11080_v45 = vpop.permute.xlu1 %11079  ;;  %v11075_v25 = vpop.permute.xlu0 %11074  ;;  %9520 = vmatpush3.bf16.msra.mxu0 %v12281_v1 }
 0x1bf   : > { %v11082_v42 = vunpack.i.h.bf16 %v11080_v45  ;;  %v11081_v50 = vunpack.i.l.bf16 %v11080_v45  ;;  %v11076_v8 = vunpack.i.l.bf16 %v11075_v25  ;;  %v11077_v27 = vunpack.i.h.bf16 %v11075_v25  ;;  %9521 = vmatprep.subr.bf16.mxu0 %v12282_v56 }
 0x1c1   : > { %v1915_v44 = vsel %vm1884_vm6, %v1882_v53, %v11081_v50  ;;  %v1916_v55 = vsel %vm1884_vm6, %v1883_v24, %v11082_v42  ;;  %v1913_v33 = vsel %vm1884_vm6, %v1880_v57, %v11076_v8  ;;  %v1914_v11 = vsel %vm1884_vm6, %v1881_v20, %v11077_v27  ;;  %v12285_v24 = vld [vmem:[%s19346_s4 + $0xa0] sm:$0xff]  }
 0x1c2   : > { %v11090_v12 = vpop.permute.xlu1 %11089  ;;  %v11085_v62 = vpop.permute.xlu0 %11084  ;;  %9522 = vmatpush3.bf16.msra.mxu0 %v12283_v9 }
 0x1c3   : > { %v11091_v6 = vunpack.i.l.bf16 %v11090_v12  ;;  %v11092_v51 = vunpack.i.h.bf16 %v11090_v12  ;;  %v11087_v39 = vunpack.i.h.bf16 %v11085_v62  ;;  %v11086_v61 = vunpack.i.l.bf16 %v11085_v62  ;;  %v14365_v12 = vld [vmem:[%s19347_s0] ss:$0 sm:$0xff]  ;;  %9523 = vmatprep.subr.bf16.mxu0 %v12284_v59 }
 0x1c5   : > { %v1948_v47 = vsel %vm1917_vm7, %v1915_v44, %v11091_v6  ;;  %v1949_v45 = vsel %vm1917_vm7, %v1916_v55, %v11092_v51  ;;  %v1946_v25 = vsel %vm1917_vm7, %v1913_v33, %v11086_v61  ;;  %v1947_v7 = vsel %vm1917_vm7, %v1914_v11, %v11087_v39 }
 0x1c6   : > { %v11100_v28 = vpop.permute.xlu1 %11099  ;;  %v11095_v48 = vpop.permute.xlu0 %11094  ;;  %9524 = vmatpush3.bf16.msra.mxu0 %v12285_v24 }
 0x1c7   : > { %v11101_v2 = vunpack.i.l.bf16 %v11100_v28  ;;  %v11102_v4 = vunpack.i.h.bf16 %v11100_v28  ;;  %v11096_v5 = vunpack.i.l.bf16 %v11095_v48  ;;  %v11097_v58 = vunpack.i.h.bf16 %v11095_v48 }
 0x1c9   : > { %v1981_v30 = vsel %vm1950_vm8, %v1948_v47, %v11101_v2  ;;  %v1982_v52 = vsel %vm1950_vm8, %v1949_v45, %v11102_v4  ;;  %v1979_v62 = vsel %vm1950_vm8, %v1946_v25, %v11096_v5  ;;  %v1980_v60 = vsel %vm1950_vm8, %v1947_v7, %v11097_v58  ;;  %v12286_v5 = vld [vmem:[%s19346_s4 + $0xe8] sm:$0xff]  }
 0x1ca   : > { %v11110_v3 = vpop.permute.xlu1 %11109  ;;  %v11105_v36 = vpop.permute.xlu0 %11104  ;;  %9525 = vmatprep.subr.bf16.mxu0 %v12286_v5 }
 0x1cb   : > { %v11112_v37 = vunpack.i.h.bf16 %v11110_v3  ;;  %v11111_v13 = vunpack.i.l.bf16 %v11110_v3  ;;  %v11107_v40 = vunpack.i.h.bf16 %v11105_v36  ;;  %v11106_v15 = vunpack.i.l.bf16 %v11105_v36 }
 0x1cd   : > { %v2014_v19 = vsel %vm1983_vm9, %v1981_v30, %v11111_v13  ;;  %v2015_v35 = vsel %vm1983_vm9, %v1982_v52, %v11112_v37  ;;  %v2012_v22 = vsel %vm1983_vm9, %v1979_v62, %v11106_v15  ;;  %v2013_v28 = vsel %vm1983_vm9, %v1980_v60, %v11107_v40  ;;  %v12287_v13 = vld [vmem:[%s19346_s4 + $0xa8] sm:$0xff]   ;;  %v12288_v40 = vld [vmem:[%s19346_s4 + $0xf0] sm:$0xff]  }
 0x1ce   : > { %v11120_v38 = vpop.permute.xlu1 %11119  ;;  %v11115_v21 = vpop.permute.xlu0 %11114  ;;  %9526 = vmatpush3.bf16.msra.mxu0 %v12287_v13  ;;  %v12289_v15 = vld [vmem:[%s19346_s4 + $0xb0] sm:$0xff]  }
 0x1cf   : > { %v11122_v32 = vunpack.i.h.bf16 %v11120_v38  ;;  %v11121_v49 = vunpack.i.l.bf16 %v11120_v38  ;;  %v11116_v1 = vunpack.i.l.bf16 %v11115_v21  ;;  %v11117_v23 = vunpack.i.h.bf16 %v11115_v21  ;;  %9527 = vmatprep.subr.bf16.mxu0 %v12288_v40 }
 0x1d0   : > { %v10017_v14 = vpop.f32.mrb[0].mxu0 }
 0x1d1   : > { %v2221_v41 = vadd.f32 %v10017_v14, %v14365_v12  ;;  %v2212_v29 = vpop.f32.mrb[1].mxu0  ;;  %v2047_v42 = vsel %vm2016_vm10, %v2014_v19, %v11121_v49  ;;  %v2048_v50 = vsel %vm2016_vm10, %v2015_v35, %v11122_v32  ;;  %v2045_v48 = vsel %vm2016_vm10, %v2012_v22, %v11116_v1  ;;  %v12290_v32 = vld [vmem:[%s19346_s4 + $0xf8] sm:$0xff]  }
 0x1d2   : > { %v2213_v63 = vadd.f32 %v14365_v12, %v2212_v29  ;;  %v10018_v26 = vpop.f32.mrb[2].mxu0  ;;  %v11130_v53 = vpop.permute.xlu1 %11129  ;;  %v2046_v3 = vsel %vm2016_vm10, %v2013_v28, %v11117_v23  ;;  %9528 = vmatpush3.bf16.msra.mxu0 %v12289_v15  ;;  %v12291_v22 = vld [vmem:[%s19346_s4 + $0xb8] sm:$0xff]   ;;  %v4122_v28 = vld [vmem:[%s13353_s17 + $0x70] sm:$0xff]  ;;  %v4535_v15 = vrot.slane %v14251_v54, 2 }
 0x1d3   : > { %v2341_v8 = vmax.f32 %v2221_v41, 0.0  ;;  %v2224_v57 = vadd.f32 %v10018_v26, %v14365_v12  ;;  %v11132_v20 = vunpack.i.h.bf16 %v11130_v53  ;;  %v11131_v27 = vunpack.i.l.bf16 %v11130_v53  ;;  %v11125_v6 = vpop.permute.xlu0 %11124  ;;  %v2215_v56 = vpop.f32.mrb[3].mxu0  ;;  %9529 = vmatprep.subr.bf16.mxu0 %v12290_v32  ;;  %4209 = vst.msk [vmem:[#allocation3 + $0xc1] sm:$0xff] %vm672_vm0, %v4122_v28 }
 0x1d4   : > { %v2339_v51 = vmax.f32 %v2213_v63, 0.0  ;;  %v11127_v39 = vunpack.i.h.bf16 %v11125_v6  ;;  %v11126_v61 = vunpack.i.l.bf16 %v11125_v6  ;;  %v2216_v2 = vadd.f32 %v14365_v12, %v2215_v56 }
 0x1d5   : > { %2430 = vst.msk [vmem:[#allocation4 + $0x31] sm:$0xff] %vm2371_vm13, %v2341_v8  ;;  %v2342_v44 = vmax.f32 %v2224_v57, 0.0  ;;  %v2080_v55 = vsel %vm2049_vm11, %v2047_v42, %v11131_v27  ;;  %v2081_v4 = vsel %vm2049_vm11, %v2048_v50, %v11132_v20  ;;  %v4123_v42 = vld [vmem:[%s13353_s17 + $0x78] sm:$0xff] }
 0x1d6   : > { %2428 = vst.msk [vmem:[#allocation4 + $0x19] sm:$0xff] %vm2371_vm13, %v2339_v51  ;;  %v2078_v36 = vsel %vm2049_vm11, %v2045_v48, %v11126_v61  ;;  %v2079_v33 = vsel %vm2049_vm11, %v2046_v3, %v11127_v39  ;;  %v2340_v58 = vmax.f32 %v2216_v2, 0.0  ;;  %v2097_v37 = vpack.c.bf16 %v2081_v4, %v2080_v55  ;;  %v14421_v7 = vpop.permute.xlu1 %11144  ;;  %9530 = vmatpush3.bf16.msra.mxu0 %v12291_v22 }
 0x1d7   : > { %2431 = vst.msk [vmem:[#allocation4 + $0x39] sm:$0xff] %vm2371_vm13, %v2342_v44  ;;  %v2096_v11 = vpack.c.bf16 %v2079_v33, %v2078_v36  ;;  %v14405_v47 = vpop.permute.xlu0 %11134 }
 0x1d8   : > { %2429 = vst.msk [vmem:[#allocation4 + $0x21] sm:$0xff] %vm2371_vm13, %v2340_v58  ;;  %19349 = vst [vmem:[#allocation23_spill] sm:$0xff] %v14405_v47 }
 0x1d9   : > { %10043 = vmatprep.mubr.msk.bf16.mxu0 %vm2125_vm12, %v2096_v11  ;;  %4210 = vst.msk [vmem:[#allocation3 + $0xc9] sm:$0xff] %vm672_vm0, %v4123_v42 }
 0x1da   : > { %10044 = vmatmul.mubr.msk.bf16.gmra.mrb[28].mxu0 %vm2125_vm12, %v2097_v37  ;;  %v14474_v53 = vpop.permute.xlu1 %11154 }
 0x1db   : > { %v14429_v62 = vpop.permute.xlu0 %11139  ;;  %19356 = vst [vmem:[#allocation30_spill] sm:$0xff] %v14474_v53 }
 0x1dc   : > { %v14415_v45 = vld [vmem:[#allocation4 + $0x30] sm:$0xff] }
 0x1dd   : > { %19350 = vst [vmem:[#allocation24_spill] sm:$0xff] %v14415_v45  ;;  %5832 = vst.msk [vmem:[#allocation4 + $0x30] sm:$0xff] %vm2371_vm13, %v19017_v0  ;;  %v14419_v25 = vld [vmem:[#allocation4 + $0x18] sm:$0xff]  ;;  %v2748_v9 = vrot.slane %v14415_v45, 2  ;;  %v2572_v52 = vrot.slane %v14415_v45, 1 }
 0x1de   : > { %19351 = vst [vmem:[#allocation25_spill] sm:$0xff] %v14419_v25  ;;  %v2468_v30 = vld [vmem:[#allocation4 + $0x40] sm:$0x3]  ;;  %v14423_v38 = vld [vmem:[#allocation4 + $0x38] sm:$0xff]  ;;  %5829 = vst.msk [vmem:[#allocation4 + $0x18] sm:$0xff] %vm2371_vm13, %v19017_v0  ;;  %v2743_v63 = vrot.slane %v14419_v25, 2  ;;  %v14489_v27 = vpop.permute.xlu1 %11164 }
 0x1df   : > { %19352 = vst [vmem:[#allocation26_spill] sm:$0xff] %v14423_v38  ;;  %5834 = vst.msk [vmem:[#allocation4 + $0x40] sm:$0x3] %vm2374_vm14, %v19017_v0  ;;  %v14436_v49 = vld [vmem:[#allocation4 + $0x28] sm:$0x3]  ;;  %v2749_v21 = vrot.slane %v14423_v38, 2  ;;  %v14484_v57 = vpop.permute.xlu0 %11149 }
 0x1e0   : > { %v2751_v60 = vrot.slane %v2468_v30, 2  ;;  %5833 = vst.msk [vmem:[#allocation4 + $0x38] sm:$0xff] %vm2371_vm13, %v19017_v0  ;;  %v2573_v19 = vrot.slane %v14423_v38, 1  ;;  %v2575_v35 = vrot.slane %v2468_v30, 1  ;;  %v14444_v1 = vld [vmem:[#allocation4 + $0x20] sm:$0xff]  ;;  %v2746_v14 = vrot.slane %v14436_v49, 2 }
 0x1e1   : > { %5831 = vst.msk [vmem:[#allocation4 + $0x28] sm:$0x3] %vm2374_vm14, %v19017_v0  ;;  %19353 = vst [vmem:[#allocation27_spill] sm:$0xff] %v14444_v1  ;;  %v14452_v23 = vsel %vm1040_vm2, %v2748_v9, %v2749_v21  ;;  %v2744_v26 = vrot.slane %v14444_v1, 2  ;;  %v4536_v30 = vrot.slane %v14253_v10, 2  ;;  %v4538_v9 = vrot.slane %v14255_v46, 2 }
 0x1e2   : > { %19354 = vst [vmem:[#allocation28_spill] sm:$0xff] %v14452_v23  ;;  %v14455_v41 = vsel %vm1040_vm2, %v2749_v21, %v2751_v60  ;;  %v14458_v29 = vsel %vm863_vm3, %v2572_v52, %v2573_v19  ;;  %v14461_v59 = vsel %vm863_vm3, %v2573_v19, %v2575_v35  ;;  %5830 = vst.msk [vmem:[#allocation4 + $0x20] sm:$0xff] %vm2371_vm13, %v19017_v0  ;;  %v14495_v3 = vpop.permute.xlu1 %11174 }
 0x1e3   : > { %19355 = vst [vmem:[#allocation29_spill] sm:$0xff] %v14455_v41  ;;  %v11343_v50 = vpack.i.bf16 %v14455_v41, %v14452_v23  ;;  %v11338_v48 = vpack.i.bf16 %v14461_v59, %v14458_v29  ;;  %v14479_v24 = vsel %vm1040_vm2, %v2743_v63, %v2744_v26  ;;  %v14482_v8 = vsel %vm1040_vm2, %v2744_v26, %v2746_v14  ;;  %v14491_v6 = vpop.permute.xlu0 %11159 }
 0x1e4   : > { %19358 = vst [vmem:[#allocation31_spill] sm:$0xff] %v14479_v24  ;;  %19359 = vst [vmem:[#allocation32_spill] sm:$0xff] %v14482_v8  ;;  %v11348_v20 = vpack.i.bf16 %v14482_v8, %v14479_v24  ;;  %v4539_v63 = vsel %vm1040_vm2, %v4536_v30, %v4538_v9 }
 0x1e5   : > { %11344 = vrot.lane.b32.xlu1 %v11343_v50, %s19357_s27  ;;  %11339 = vrot.lane.b32.xlu0 %v11338_v48, %s19357_s27  ;;  %19360 = vst [vmem:[#allocation33_spill] sm:$0xff] %v14484_v57  ;;  %19361 = vst [vmem:[#allocation34_spill] sm:$0xff] %v14489_v27  ;;  %v4537_v48 = vsel %vm1040_vm2, %v4535_v15, %v4536_v30 }
 0x1e6   : > { %19362 = vst [vmem:[#allocation35_spill] sm:$0xff] %v14491_v6  ;;  %19363 = vst [vmem:[#allocation36_spill] sm:$0xff] %v14495_v3  ;;  %v14505_v13 = vpop.permute.xlu1 %11184  ;;  %v4126_v6 = vld [vmem:[%s13353_s17 + $0x90] sm:$0xff]  ;;  %v4127_v3 = vld [vmem:[%s13353_s17 + $0x98] sm:$0xff] }
 0x1e7   : > { %v14498_v5 = vpop.permute.xlu0 %11169  ;;  %19365 = vst [vmem:[#allocation38_spill] sm:$0xff] %v14505_v13  ;;  %4213 = vst.msk [vmem:[#allocation3 + $0xf1] sm:$0xff] %vm672_vm0, %v4126_v6 }
 0x1e8   : > { %19364 = vst [vmem:[#allocation37_spill] sm:$0xff] %v14498_v5  ;;  %4214 = vst.msk [vmem:[#allocation3 + $0xf9] sm:$0xff] %vm672_vm0, %v4127_v3 }
 0x1e9   : > { %11349 = vrot.lane.b32.xlu1 %v11348_v20, %s19357_s27 }
 0x1ea   : > { %v14524_v54 = vpop.permute.xlu1 %11194 }
 0x1eb   : > { %v14507_v11 = vpop.permute.xlu0 %11179  ;;  %19369 = vst [vmem:[#allocation42_spill] sm:$0xff] %v14524_v54 }
 0x1ec   : > { %19366 = vst [vmem:[#allocation39_spill] sm:$0xff] %v14507_v11 }
 0x1ed   : > { %v10021_v56 = vpop.f32.mrb[4].mxu0 }
 0x1ee   : > { %v2237_v51 = vadd.f32 %v10021_v56, %v14365_v12  ;;  %v2228_v39 = vpop.f32.mrb[5].mxu0 }
 0x1ef   : > { %v2229_v61 = vadd.f32 %v14365_v12, %v2228_v39  ;;  %v10022_v2 = vpop.f32.mrb[6].mxu0  ;;  %v14532_v28 = vpop.permute.xlu0 %11189 }
 0x1f0   : > { %v2345_v44 = vmax.f32 %v2237_v51, 0.0  ;;  %v2240_v55 = vadd.f32 %v10022_v2, %v14365_v12  ;;  %v2231_v4 = vpop.f32.mrb[7].mxu0  ;;  %19370 = vst [vmem:[#allocation43_spill] sm:$0xff] %v14532_v28 }
 0x1f1   : > { %v2343_v36 = vmax.f32 %v2229_v61, 0.0  ;;  %v2232_v33 = vadd.f32 %v14365_v12, %v2231_v4 }
 0x1f2   : > { %2434 = vst.msk [vmem:[#allocation4 + $0x61] sm:$0xff] %vm2371_vm13, %v2345_v44  ;;  %v2346_v58 = vmax.f32 %v2240_v55, 0.0 }
 0x1f3   : > { %2432 = vst.msk [vmem:[#allocation4 + $0x49] sm:$0xff] %vm2371_vm13, %v2343_v36  ;;  %v2344_v37 = vmax.f32 %v2232_v33, 0.0  ;;  %v14568_v36 = vpack.i.bf16 %v4539_v63, %v4537_v48  ;;  %v14570_v33 = vpop.permute.xlu1 %11204  ;;  %v14576_v15 = vpop.permute.xlu0 %11199 }
 0x1f4   : > { %2435 = vst.msk [vmem:[#allocation4 + $0x69] sm:$0xff] %vm2371_vm13, %v2346_v58  ;;  %19374 = vst [vmem:[#allocation47_spill] sm:$0xff] %v14570_v33  ;;  %v14572_v58 = vld [vmem:[#allocation3 + $0xa8] sm:$0xff] }
 0x1f5   : > { %2433 = vst.msk [vmem:[#allocation4 + $0x51] sm:$0xff] %vm2371_vm13, %v2344_v37  ;;  %v14574_v37 = vld [vmem:[#allocation3 + $0xb0] sm:$0xff]  ;;  %19375 = vst [vmem:[#allocation48_spill] sm:$0xff] %v14576_v15 }
 0x1f6   : > { %v4541_v17 = vrot.slane %v14574_v37, 2 }
 0x1f9   : > { %v14509_v40 = vld [vmem:[#allocation4 + $0x60] sm:$0xff] }
 0x1fa   : > { %19367 = vst [vmem:[#allocation40_spill] sm:$0xff] %v14509_v40  ;;  %5838 = vst.msk [vmem:[#allocation4 + $0x60] sm:$0xff] %vm2371_vm13, %v19017_v0  ;;  %v14516_v52 = vld [vmem:[#allocation4 + $0x48] sm:$0xff]  ;;  %v2582_v60 = vrot.slane %v14509_v40, 1  ;;  %v2758_v19 = vrot.slane %v14509_v40, 2 }
 0x1fb   : > { %v2474_v32 = vld [vmem:[#allocation4 + $0x70] sm:$0x3]  ;;  %v14518_v21 = vld [vmem:[#allocation4 + $0x68] sm:$0xff]  ;;  %5835 = vst.msk [vmem:[#allocation4 + $0x48] sm:$0xff] %vm2371_vm13, %v19017_v0  ;;  %v2577_v2 = vrot.slane %v14516_v52, 1 }
 0x1fc   : > { %19368 = vst [vmem:[#allocation41_spill] sm:$0xff] %v14518_v21  ;;  %5840 = vst.msk [vmem:[#allocation4 + $0x70] sm:$0x3] %vm2374_vm14, %v19017_v0  ;;  %v2471_v10 = vld [vmem:[#allocation4 + $0x58] sm:$0x3]  ;;  %v2583_v46 = vrot.slane %v14518_v21, 1 }
 0x1fd   : > { %v2585_v35 = vrot.slane %v2474_v32, 1  ;;  %5839 = vst.msk [vmem:[#allocation4 + $0x68] sm:$0xff] %vm2371_vm13, %v19017_v0  ;;  %v2759_v14 = vrot.slane %v14518_v21, 2  ;;  %v2761_v22 = vrot.slane %v2474_v32, 2  ;;  %v14536_v42 = vld [vmem:[#allocation4 + $0x50] sm:$0xff]  ;;  %v2580_v50 = vrot.slane %v2471_v10, 1 }
 0x1fe   : > { %5837 = vst.msk [vmem:[#allocation4 + $0x58] sm:$0x3] %vm2374_vm14, %v19017_v0  ;;  %19371 = vst [vmem:[#allocation44_spill] sm:$0xff] %v14536_v42  ;;  %v14541_v26 = vsel %vm863_vm3, %v2582_v60, %v2583_v46  ;;  %v2578_v44 = vrot.slane %v14536_v42, 1  ;;  %v2754_v9 = vrot.slane %v14536_v42, 2  ;;  %v2756_v32 = vrot.slane %v2471_v10, 2  ;;  %v14597_v10 = vpop.permute.xlu0 %11209 }
 0x1ff   : > { %v14544_v20 = vsel %vm863_vm3, %v2583_v46, %v2585_v35  ;;  %v14547_v56 = vsel %vm1040_vm2, %v2758_v19, %v2759_v14  ;;  %v14550_v51 = vsel %vm1040_vm2, %v2759_v14, %v2761_v22  ;;  %5836 = vst.msk [vmem:[#allocation4 + $0x50] sm:$0xff] %vm2371_vm13, %v19017_v0  ;;  %v14586_v60 = vpack.i.bf16 %v14574_v37, %v14572_v58  ;;  %v14589_v46 = vpop.permute.xlu1 %11214 }
 0x200   : > { %19372 = vst [vmem:[#allocation45_spill] sm:$0xff] %v14547_v56  ;;  %19373 = vst [vmem:[#allocation46_spill] sm:$0xff] %v14550_v51  ;;  %v11353_v39 = vpack.i.bf16 %v14544_v20, %v14541_v26  ;;  %v11358_v61 = vpack.i.bf16 %v14550_v51, %v14547_v56  ;;  %v14563_v55 = vsel %vm863_vm3, %v2577_v2, %v2578_v44  ;;  %v2753_v19 = vrot.slane %v14516_v52, 2 }
 0x201   : > { %v14566_v4 = vsel %vm863_vm3, %v2578_v44, %v2580_v50  ;;  %19376 = vst [vmem:[#allocation49_spill] sm:$0xff] %v14589_v46  ;;  %v14595_v14 = vsel %vm1040_vm2, %v2754_v9, %v2756_v32  ;;  %19379 = vst [vmem:[#allocation52_spill] sm:$0xff] %v14597_v10 }
 0x202   : > { %11354 = vrot.lane.b32.xlu0 %v11353_v39, %s19357_s27  ;;  %11359 = vrot.lane.b32.xlu1 %v11358_v61, %s19357_s27  ;;  %v11363_v30 = vpack.i.bf16 %v14566_v4, %v14563_v55  ;;  %v14592_v35 = vsel %vm1040_vm2, %v2753_v19, %v2754_v9  ;;  %19378 = vst [vmem:[#allocation51_spill] sm:$0xff] %v14595_v14  ;;  %v14611_v61 = vpop.permute.xlu0 %11219 }
 0x203   : > { %19377 = vst [vmem:[#allocation50_spill] sm:$0xff] %v14592_v35  ;;  %v11388_v22 = vpack.i.bf16 %v14595_v14, %v14592_v35  ;;  %v14608_v48 = vpop.permute.xlu1 %11224  ;;  %19381 = vst [vmem:[#allocation54_spill] sm:$0xff] %v14611_v61  ;;  %v4540_v14 = vrot.slane %v14572_v58, 2 }
 0x204   : > { %19380 = vst [vmem:[#allocation53_spill] sm:$0xff] %v14608_v48 }
 0x206   : > { %11364 = vrot.lane.b32.xlu0 %v11363_v30, %s19357_s27  ;;  %11374 = vrot.lane.b32.xlu1 %v14568_v36, %s19336_s20  ;;  %v14621_v0 = vpop.permute.xlu0 %11229 }
 0x207   : > { %19383 = vst [vmem:[#allocation56_spill] sm:$0xff] %v14621_v0 }
 0x20a   : > { %11384 = vrot.lane.b32.xlu1 %v14586_v60, %s19337_s28  ;;  %11369 = vrot.lane.b32.xlu0 %v14247_v43, %s19336_s20 }
 0x20d   : > { %v10025_v50 = vpop.f32.mrb[8].mxu0 }
 0x20e   : > { %11389 = vrot.lane.b32.xlu1 %v11388_v22, %s19357_s27  ;;  %11379 = vrot.lane.b32.xlu0 %v14272_v16, %s19337_s28  ;;  %v2253_v63 = vadd.f32 %v10025_v50, %v14365_v12  ;;  %v2244_v39 = vpop.f32.mrb[9].mxu0  ;;  %v14618_v50 = vpop.permute.xlu1 %11234 }
 0x20f   : > { %v2245_v2 = vadd.f32 %v14365_v12, %v2244_v39  ;;  %v10026_v44 = vpop.f32.mrb[10].mxu0  ;;  %19382 = vst [vmem:[#allocation55_spill] sm:$0xff] %v14618_v50  ;;  %v4364_v39 = vrot.slane %v14572_v58, 1 }
 0x210   : > { %v2349_v43 = vmax.f32 %v2253_v63, 0.0  ;;  %v2256_v30 = vadd.f32 %v10026_v44, %v14365_v12  ;;  %v2247_v9 = vpop.f32.mrb[11].mxu0  ;;  %v4250_v63 = vld [vmem:[#allocation3 + $0xb8] sm:$0x3] }
 0x211   : > { %v2347_v32 = vmax.f32 %v2245_v2, 0.0  ;;  %v2248_v19 = vadd.f32 %v14365_v12, %v2247_v9  ;;  %v4365_v2 = vrot.slane %v14574_v37, 1  ;;  %v19386_v9 = vmov 0.0  }
 0x212   : > { %2438 = vst.msk [vmem:[#allocation4 + $0x91] sm:$0xff] %vm2371_vm13, %v2349_v43  ;;  %v2350_v16 = vmax.f32 %v2256_v30, 0.0  ;;  %v4367_v43 = vrot.slane %v4250_v63, 1  ;;  %v14628_v30 = vpop.permute.xlu1 %11244 }
 0x213   : > { %2436 = vst.msk [vmem:[#allocation4 + $0x79] sm:$0xff] %vm2371_vm13, %v2347_v32  ;;  %v2348_v22 = vmax.f32 %v2248_v19, 0.0  ;;  %19385 = vst [vmem:[#allocation58_spill] sm:$0xff] %v14628_v30  ;;  %v14634_v19 = vpop.permute.xlu0 %11239  ;;  %v4366_v56 = vsel %vm863_vm3, %v4364_v39, %v4365_v2 }
 0x214   : > { %2439 = vst.msk [vmem:[#allocation4 + $0x99] sm:$0xff] %vm2371_vm13, %v2350_v16  ;;  %19388 = vst [vmem:[#allocation60_spill] sm:$0xff] %v14634_v19  ;;  %v4368_v58 = vsel %vm863_vm3, %v4365_v2, %v4367_v43  ;;  %v4543_v19 = vrot.slane %v4250_v63, 2 }
 0x215   : > { %2437 = vst.msk [vmem:[#allocation4 + $0x81] sm:$0xff] %vm2371_vm13, %v2348_v22  ;;  %v14688_v43 = vpack.i.bf16 %v4368_v58, %v4366_v56 }
 0x219   : > { %v14626_v44 = vld [vmem:[#allocation4 + $0x90] sm:$0xff] }
 0x21a   : > { %19384 = vst [vmem:[#allocation57_spill] sm:$0xff] %v14626_v44  ;;  %5844 = vst.msk [vmem:[#allocation4 + $0x90] sm:$0xff] %vm2371_vm13, %v19386_v9  ;;  %v14632_v32 = vld [vmem:[#allocation4 + $0x78] sm:$0xff]  ;;  %v2592_v22 = vrot.slane %v14626_v44, 1  ;;  %v2768_v51 = vrot.slane %v14626_v44, 2 }
 0x21b   : > { %19387 = vst [vmem:[#allocation59_spill] sm:$0xff] %v14632_v32  ;;  %v2480_v16 = vld [vmem:[#allocation4 + $0xa0] sm:$0x3]  ;;  %v14636_v31 = vld [vmem:[#allocation4 + $0x98] sm:$0xff]  ;;  %5841 = vst.msk [vmem:[#allocation4 + $0x78] sm:$0xff] %vm2371_vm13, %v19386_v9  ;;  %v2587_v63 = vrot.slane %v14632_v32, 1 }
 0x21c   : > { %19389 = vst [vmem:[#allocation61_spill] sm:$0xff] %v14636_v31  ;;  %5846 = vst.msk [vmem:[#allocation4 + $0xa0] sm:$0x3] %vm2374_vm14, %v19386_v9  ;;  %v2477_v35 = vld [vmem:[#allocation4 + $0x88] sm:$0x3]  ;;  %v2593_v41 = vrot.slane %v14636_v31, 1 }
 0x21d   : > { %v2595_v23 = vrot.slane %v2480_v16, 1  ;;  %5845 = vst.msk [vmem:[#allocation4 + $0x98] sm:$0xff] %vm2371_vm13, %v19386_v9  ;;  %v2769_v8 = vrot.slane %v14636_v31, 2  ;;  %v2771_v24 = vrot.slane %v2480_v16, 2  ;;  %v14652_v18 = vld [vmem:[#allocation4 + $0x80] sm:$0xff]  ;;  %v2590_v39 = vrot.slane %v2477_v35, 1 }
 0x21e   : > { %5843 = vst.msk [vmem:[#allocation4 + $0x88] sm:$0x3] %vm2374_vm14, %v19386_v9  ;;  %19390 = vst [vmem:[#allocation62_spill] sm:$0xff] %v14652_v18  ;;  %v14657_v10 = vsel %vm863_vm3, %v2592_v22, %v2593_v41  ;;  %v4542_v22 = vsel %vm1040_vm2, %v4540_v14, %v4541_v17  ;;  %v2763_v56 = vrot.slane %v14632_v32, 2 }
 0x21f   : > { %v14660_v30 = vsel %vm863_vm3, %v2593_v41, %v2595_v23  ;;  %v14663_v0 = vsel %vm1040_vm2, %v2768_v51, %v2769_v8  ;;  %v14666_v16 = vsel %vm1040_vm2, %v2769_v8, %v2771_v24  ;;  %5842 = vst.msk [vmem:[#allocation4 + $0x80] sm:$0xff] %vm2371_vm13, %v19386_v9  ;;  %v2588_v23 = vrot.slane %v14652_v18, 1  ;;  %v14676_v41 = vpop.permute.xlu1 %11254  ;;  %v14678_v51 = vpop.permute.xlu0 %11249 }
 0x220   : > { %19391 = vst [vmem:[#allocation63_spill] sm:$0xff] %v14663_v0  ;;  %19392 = vst [vmem:[#allocation64_spill] sm:$0xff] %v14666_v16  ;;  %v11393_v2 = vpack.i.bf16 %v14660_v30, %v14657_v10  ;;  %v11398_v37 = vpack.i.bf16 %v14666_v16, %v14663_v0  ;;  %v4544_v16 = vsel %vm1040_vm2, %v4541_v17, %v4543_v19 }
 0x221   : > { %19393 = vst [vmem:[#allocation65_spill] sm:$0xff] %v14676_v41  ;;  %19394 = vst [vmem:[#allocation66_spill] sm:$0xff] %v14678_v51  ;;  %v14683_v24 = vsel %vm863_vm3, %v2587_v63, %v2588_v23  ;;  %v14686_v8 = vsel %vm863_vm3, %v2588_v23, %v2590_v39  ;;  %v2764_v51 = vrot.slane %v14652_v18, 2 }
 0x222   : > { %11394 = vrot.lane.b32.xlu0 %v11393_v2, %s19357_s27  ;;  %11399 = vrot.lane.b32.xlu1 %v11398_v37, %s19357_s27  ;;  %v11403_v0 = vpack.i.bf16 %v14686_v8, %v14683_v24  ;;  %v2766_v2 = vrot.slane %v2477_v35, 2  ;;  %v14698_v37 = vpack.i.bf16 %v4544_v16, %v4542_v22 }
 0x223   : > { %v14700_v39 = vpop.permute.xlu1 %11264  ;;  %v14703_v14 = vpop.permute.xlu0 %11259  ;;  %v14706_v17 = vsel %vm1040_vm2, %v2763_v56, %v2764_v51 }
 0x224   : > { %19395 = vst [vmem:[#allocation67_spill] sm:$0xff] %v14700_v39  ;;  %19396 = vst [vmem:[#allocation68_spill] sm:$0xff] %v14703_v14  ;;  %v14709_v19 = vsel %vm1040_vm2, %v2764_v51, %v2766_v2 }
 0x225   : > { %19397 = vst [vmem:[#allocation69_spill] sm:$0xff] %v14706_v17  ;;  %19398 = vst [vmem:[#allocation70_spill] sm:$0xff] %v14709_v19 }
 0x226   : > { %11404 = vrot.lane.b32.xlu0 %v11403_v0, %s19357_s27  ;;  %11414 = vrot.lane.b32.xlu1 %v14688_v43, %s19338_s25  ;;  %v11428_v0 = vpack.i.bf16 %v14709_v19, %v14706_v17 }
 0x227   : > { %v14717_v35 = vpop.permute.xlu1 %11274  ;;  %v14719_v58 = vpop.permute.xlu0 %11269 }
 0x228   : > { %19399 = vst [vmem:[#allocation71_spill] sm:$0xff] %v14717_v35  ;;  %19400 = vst [vmem:[#allocation72_spill] sm:$0xff] %v14719_v58 }
 0x22a   : > { %11424 = vrot.lane.b32.xlu1 %v14698_v37, %s19339_s2  ;;  %11409 = vrot.lane.b32.xlu0 %v14276_v34, %s19338_s25 }
 0x22b   : > { %v14728_v58 = vpop.permute.xlu1 %11284  ;;  %v14731_v35 = vpop.permute.xlu0 %11279 }
 0x22c   : > { %19401 = vst [vmem:[#allocation73_spill] sm:$0xff] %v14728_v58  ;;  %19402 = vst [vmem:[#allocation74_spill] sm:$0xff] %v14731_v35 }
 0x22d   : > { %v10029_v16 = vpop.f32.mrb[12].mxu0 }
 0x22e   : > { %11429 = vrot.lane.b32.xlu1 %v11428_v0, %s19357_s27  ;;  %11419 = vrot.lane.b32.xlu0 %v14568_v36, %s19339_s2  ;;  %v2269_v63 = vadd.f32 %v10029_v16, %v14365_v12  ;;  %v2260_v23 = vpop.f32.mrb[13].mxu0 }
 0x22f   : > { %v2261_v51 = vadd.f32 %v14365_v12, %v2260_v23  ;;  %v10030_v22 = vpop.f32.mrb[14].mxu0  ;;  %v14738_v23 = vpop.permute.xlu0 %11289 }
 0x230   : > { %v2353_v2 = vmax.f32 %v2269_v63, 0.0  ;;  %v2272_v56 = vadd.f32 %v10030_v22, %v14365_v12  ;;  %v2263_v19 = vpop.f32.mrb[15].mxu0  ;;  %v14736_v63 = vpop.permute.xlu1 %11294  ;;  %19404 = vst [vmem:[#allocation76_spill] sm:$0xff] %v14738_v23 }
 0x231   : > { %v2351_v17 = vmax.f32 %v2261_v51, 0.0  ;;  %v2264_v14 = vadd.f32 %v14365_v12, %v2263_v19  ;;  %19403 = vst [vmem:[#allocation75_spill] sm:$0xff] %v14736_v63 }
 0x232   : > { %2442 = vst.msk [vmem:[#allocation4 + $0xc1] sm:$0xff] %vm2371_vm13, %v2353_v2  ;;  %v2354_v0 = vmax.f32 %v2272_v56, 0.0 }
 0x233   : > { %2440 = vst.msk [vmem:[#allocation4 + $0xa9] sm:$0xff] %vm2371_vm13, %v2351_v17  ;;  %v2352_v16 = vmax.f32 %v2264_v14, 0.0 }
 0x234   : > { %2443 = vst.msk [vmem:[#allocation4 + $0xc9] sm:$0xff] %vm2371_vm13, %v2354_v0  ;;  %v14762_v39 = vpop.permute.xlu1 %11304 }
 0x235   : > { %2441 = vst.msk [vmem:[#allocation4 + $0xb1] sm:$0xff] %vm2371_vm13, %v2352_v16  ;;  %19408 = vst [vmem:[#allocation80_spill] sm:$0xff] %v14762_v39 }
 0x239   : > { %v14740_v51 = vld [vmem:[#allocation4 + $0xc0] sm:$0xff] }
 0x23a   : > { %19405 = vst [vmem:[#allocation77_spill] sm:$0xff] %v14740_v51  ;;  %5850 = vst.msk [vmem:[#allocation4 + $0xc0] sm:$0xff] %vm2371_vm13, %v19386_v9  ;;  %v14744_v19 = vld [vmem:[#allocation4 + $0xa8] sm:$0xff]  ;;  %v2602_v14 = vrot.slane %v14740_v51, 1  ;;  %v2778_v17 = vrot.slane %v14740_v51, 2 }
 0x23b   : > { %19406 = vst [vmem:[#allocation78_spill] sm:$0xff] %v14744_v19  ;;  %v2486_v22 = vld [vmem:[#allocation4 + $0xd0] sm:$0x3]  ;;  %v14746_v2 = vld [vmem:[#allocation4 + $0xc8] sm:$0xff]  ;;  %5847 = vst.msk [vmem:[#allocation4 + $0xa8] sm:$0xff] %vm2371_vm13, %v19386_v9 }
 0x23c   : > { %5852 = vst.msk [vmem:[#allocation4 + $0xd0] sm:$0x3] %vm2374_vm14, %v19386_v9  ;;  %v2483_v56 = vld [vmem:[#allocation4 + $0xb8] sm:$0x3]  ;;  %v2603_v0 = vrot.slane %v14746_v2, 1  ;;  %v2605_v16 = vrot.slane %v2486_v22, 1 }
 0x23d   : > { %5851 = vst.msk [vmem:[#allocation4 + $0xc8] sm:$0xff] %vm2371_vm13, %v19386_v9  ;;  %v2779_v23 = vrot.slane %v14746_v2, 2  ;;  %v2781_v63 = vrot.slane %v2486_v22, 2  ;;  %v14760_v35 = vld [vmem:[#allocation4 + $0xb0] sm:$0xff]  ;;  %v2600_v58 = vrot.slane %v2483_v56, 1  ;;  %v14778_v22 = vpop.permute.xlu0 %11299  ;;  %v2776_v46 = vrot.slane %v2483_v56, 2 }
 0x23e   : > { %5849 = vst.msk [vmem:[#allocation4 + $0xb8] sm:$0x3] %vm2374_vm14, %v19386_v9  ;;  %19407 = vst [vmem:[#allocation79_spill] sm:$0xff] %v14760_v35  ;;  %v14765_v41 = vsel %vm863_vm3, %v2602_v14, %v2603_v0  ;;  %v14768_v50 = vsel %vm863_vm3, %v2603_v0, %v2605_v16  ;;  %v2597_v0 = vrot.slane %v14744_v19, 1 }
 0x23f   : > { %v14771_v61 = vsel %vm1040_vm2, %v2778_v17, %v2779_v23  ;;  %v14774_v15 = vsel %vm1040_vm2, %v2779_v23, %v2781_v63  ;;  %5848 = vst.msk [vmem:[#allocation4 + $0xb0] sm:$0xff] %vm2371_vm13, %v19386_v9  ;;  %19411 = vst [vmem:[#allocation83_spill] sm:$0xff] %v14778_v22  ;;  %v11433_v39 = vpack.i.bf16 %v14768_v50, %v14765_v41  ;;  %v2598_v17 = vrot.slane %v14760_v35, 1 }
 0x240   : > { %19409 = vst [vmem:[#allocation81_spill] sm:$0xff] %v14771_v61  ;;  %19410 = vst [vmem:[#allocation82_spill] sm:$0xff] %v14774_v15  ;;  %v11438_v14 = vpack.i.bf16 %v14774_v15, %v14771_v61  ;;  %v14796_v15 = vpop.permute.xlu1 %11314  ;;  %v2774_v22 = vrot.slane %v14760_v35, 2 }
 0x241   : > { %11434 = vrot.lane.b32.xlu0 %v11433_v39, %s19357_s27  ;;  %v14789_v63 = vsel %vm863_vm3, %v2597_v0, %v2598_v17  ;;  %v14792_v23 = vsel %vm863_vm3, %v2598_v17, %v2600_v58  ;;  %19412 = vst [vmem:[#allocation84_spill] sm:$0xff] %v14796_v15  ;;  %v14798_v61 = vpop.permute.xlu0 %11309  ;;  %v2773_v39 = vrot.slane %v14744_v19, 2  ;;  %v4124_v0 = vld [vmem:[%s13353_s17 + $0x80] sm:$0xff]  ;;  %v4125_v17 = vld [vmem:[%s13353_s17 + $0x88] sm:$0xff] }
 0x242   : > { %11439 = vrot.lane.b32.xlu1 %v11438_v14, %s19357_s27  ;;  %v11443_v16 = vpack.i.bf16 %v14792_v23, %v14789_v63  ;;  %19413 = vst [vmem:[#allocation85_spill] sm:$0xff] %v14798_v61  ;;  %v14809_v14 = vsel %vm1040_vm2, %v2774_v22, %v2776_v46  ;;  %4211 = vst.msk [vmem:[#allocation3 + $0xd9] sm:$0xff] %vm672_vm0, %v4124_v0 }
 0x243   : > { %v14806_v58 = vsel %vm1040_vm2, %v2773_v39, %v2774_v22  ;;  %19415 = vst [vmem:[#allocation87_spill] sm:$0xff] %v14809_v14  ;;  %4212 = vst.msk [vmem:[#allocation3 + $0xe1] sm:$0xff] %vm672_vm0, %v4125_v17 }
 0x244   : > { %19414 = vst [vmem:[#allocation86_spill] sm:$0xff] %v14806_v58  ;;  %v14815_v61 = vpop.permute.xlu1 %11324  ;;  %v11468_v46 = vpack.i.bf16 %v14809_v14, %v14806_v58 }
 0x245   : > { %11444 = vrot.lane.b32.xlu0 %v11443_v16, %s19357_s27  ;;  %19416 = vst [vmem:[#allocation88_spill] sm:$0xff] %v14815_v61  ;;  %v14821_v56 = vpop.permute.xlu0 %11319 }
 0x246   : > { %11454 = vrot.lane.b32.xlu1 %v14688_v43, %s19340_s26  ;;  %19417 = vst [vmem:[#allocation89_spill] sm:$0xff] %v14821_v56 }
 0x248   : > { %v14830_v0 = vpop.permute.xlu1 %11334 }
 0x249   : > { %11449 = vrot.lane.b32.xlu0 %v14276_v34, %s19340_s26  ;;  %19418 = vst [vmem:[#allocation90_spill] sm:$0xff] %v14830_v0  ;;  %v14833_v48 = vpop.permute.xlu0 %11329 }
 0x24a   : > { %11464 = vrot.lane.b32.xlu1 %v14698_v37, %s19333_s29  ;;  %19419 = vst [vmem:[#allocation91_spill] sm:$0xff] %v14833_v48 }
 0x24c   : > { %v10033_v22 = vpop.f32.mrb[16].mxu0 }
 0x24d   : > { %11459 = vrot.lane.b32.xlu0 %v14568_v36, %s19333_s29  ;;  %v2285_v16 = vadd.f32 %v10033_v22, %v14365_v12  ;;  %v2276_v39 = vpop.f32.mrb[17].mxu0 }
 0x24e   : > { %11469 = vrot.lane.b32.xlu1 %v11468_v46, %s19357_s27  ;;  %v2277_v34 = vadd.f32 %v14365_v12, %v2276_v39  ;;  %v10034_v61 = vpop.f32.mrb[18].mxu0 }
 0x24f   : > { %v2357_v17 = vmax.f32 %v2285_v16, 0.0  ;;  %v2288_v56 = vadd.f32 %v10034_v61, %v14365_v12  ;;  %v2279_v15 = vpop.f32.mrb[19].mxu0  ;;  %v2568_v16 = vrot.slane %v14444_v1, 1  ;;  %v2570_v61 = vrot.slane %v14436_v49, 1 }
 0x250   : > { %v2355_v14 = vmax.f32 %v2277_v34, 0.0  ;;  %v2280_v46 = vadd.f32 %v14365_v12, %v2279_v15  ;;  %v14844_v15 = vld [vmem:[#allocation3 + $0xc0] sm:$0xff] }
 0x251   : > { %2446 = vst.msk [vmem:[#allocation4 + $0xf1] sm:$0xff] %vm2371_vm13, %v2357_v17  ;;  %v2358_v36 = vmax.f32 %v2288_v56, 0.0  ;;  %v14846_v17 = vld [vmem:[#allocation3 + $0xc8] sm:$0xff]  ;;  %v14850_v56 = vsel %vm863_vm3, %v2568_v16, %v2570_v61  ;;  %v14867_v61 = vld [vmem:[#allocation3 + $0xd0] sm:$0x3] }
 0x252   : > { %2444 = vst.msk [vmem:[#allocation4 + $0xd9] sm:$0xff] %vm2371_vm13, %v2355_v14  ;;  %v2356_v22 = vmax.f32 %v2280_v46, 0.0  ;;  %v2567_v14 = vrot.slane %v14419_v25, 1  ;;  %19420 = vst [vmem:[#allocation92_spill] sm:$0xff] %v14850_v56  ;;  %v4370_v28 = vrot.slane %v14846_v17, 1  ;;  %v4372_v13 = vrot.slane %v14867_v61, 1 }
 0x253   : > { %2447 = vst.msk [vmem:[#allocation4 + $0xf9] sm:$0xff] %vm2371_vm13, %v2358_v36 }
 0x254   : > { %2445 = vst.msk [vmem:[#allocation4 + $0xe1] sm:$0xff] %vm2371_vm13, %v2356_v22 }
 0x257   : > { %v14842_v39 = vpop.permute.xlu1 %11344  ;;  %v11340_v58 = vpop.permute.xlu0 %11339 }
 0x258   : > { %v11342_v34 = vunpack.i.h.bf16 %v11340_v58  ;;  %v11341_v48 = vunpack.i.l.bf16 %v11340_v58  ;;  %v14856_v36 = vld [vmem:[#allocation4 + $0xf0] sm:$0xff]  ;;  %v14859_v58 = vsel %vm863_vm3, %v2567_v14, %v2568_v16 }
 0x259   : > { %19421 = vst [vmem:[#allocation93_spill] sm:$0xff] %v14856_v36  ;;  %19422 = vst [vmem:[#allocation94_spill] sm:$0xff] %v14859_v58  ;;  %v14865_v33 = vld [vmem:[#allocation4 + $0xd8] sm:$0xff]  ;;  %v2612_v16 = vrot.slane %v14856_v36, 1  ;;  %v2788_v14 = vrot.slane %v14856_v36, 2 }
 0x25a   : > { %v3120_v46 = vsel %vm2371_vm13, %v14415_v45, %v11341_v48  ;;  %v3121_v49 = vsel %vm2371_vm13, %v14423_v38, %v11342_v34  ;;  %5856 = vst.msk [vmem:[#allocation4 + $0xf0] sm:$0xff] %vm2371_vm13, %v19386_v9  ;;  %19424 = vst [vmem:[#allocation96_spill] sm:$0xff] %v14865_v33  ;;  %v4369_v48 = vrot.slane %v14844_v15, 1  ;;  %v2492_v34 = vld [vmem:[#allocation4 + $0x100] sm:$0x3]  ;;  %v14871_v45 = vld [vmem:[#allocation4 + $0xf8] sm:$0xff] }
 0x25b   : > { %v11350_v22 = vpop.permute.xlu1 %11349  ;;  %v14861_v0 = vpack.c.bf16 %v3121_v49, %v3120_v46  ;;  %19425 = vst [vmem:[#allocation97_spill] sm:$0xff] %v14871_v45  ;;  %5853 = vst.msk [vmem:[#allocation4 + $0xd8] sm:$0xff] %vm2371_vm13, %v19386_v9  ;;  %v2489_v46 = vld [vmem:[#allocation4 + $0xe8] sm:$0x3]  ;;  %v2613_v49 = vrot.slane %v14871_v45, 1  ;;  %v2789_v1 = vrot.slane %v14871_v45, 2 }
 0x25c   : > { %v11352_v11 = vunpack.i.h.bf16 %v11350_v22  ;;  %v11351_v38 = vunpack.i.l.bf16 %v11350_v22  ;;  %5858 = vst.msk [vmem:[#allocation4 + $0x100] sm:$0x3] %vm2374_vm14, %v19386_v9  ;;  %v2615_v22 = vrot.slane %v2492_v34, 1  ;;  %v2791_v25 = vrot.slane %v2492_v34, 2  ;;  %5855 = vst.msk [vmem:[#allocation4 + $0xe8] sm:$0x3] %vm2374_vm14, %v19386_v9 }
 0x25d   : > { %19423 = vst [vmem:[#allocation95_spill] sm:$0xff] %v14861_v0  ;;  %3818 = vmatprep.mubr.bf16.mxu0 %v14861_v0  ;;  %5857 = vst.msk [vmem:[#allocation4 + $0xf8] sm:$0xff] %vm2371_vm13, %v19386_v9  ;;  %v14890_v5 = vld [vmem:[#allocation4 + $0xe0] sm:$0xff]  ;;  %v2610_v0 = vrot.slane %v2489_v46, 1  ;;  %v14896_v57 = vsel %vm863_vm3, %v2612_v16, %v2613_v49  ;;  %v14902_v53 = vsel %vm1040_vm2, %v2788_v14, %v2789_v1 }
 0x25e   : > { %v3181_v54 = vsel %vm2371_vm13, %v14850_v56, %v11352_v11  ;;  %v3180_v47 = vsel %vm2371_vm13, %v14859_v58, %v11351_v38  ;;  %19426 = vst [vmem:[#allocation98_spill] sm:$0xff] %v14890_v5  ;;  %v14899_v34 = vsel %vm863_vm3, %v2613_v49, %v2615_v22  ;;  %19427 = vst [vmem:[#allocation99_spill] sm:$0xff] %v14902_v53  ;;  %v2607_v11 = vrot.slane %v14865_v33, 1  ;;  %v19504_v58 = vld [vmem:[#allocation47_spill] sm:$0xff] }
 0x25f   : > { %v3218_v27 = vpack.c.bf16 %v3181_v54, %v3180_v47  ;;  %5854 = vst.msk [vmem:[#allocation4 + $0xe0] sm:$0xff] %vm2371_vm13, %v19386_v9  ;;  %v11473_v38 = vpack.i.bf16 %v14899_v34, %v14896_v57  ;;  %v14911_v47 = vsel %vm1040_vm2, %v2789_v1, %v2791_v25  ;;  %v2608_v54 = vrot.slane %v14890_v5, 1 }
 0x260   : > { %19428 = vst [vmem:[#allocation100_spill] sm:$0xff] %v14911_v47  ;;  %v11478_v16 = vpack.i.bf16 %v14911_v47, %v14902_v53  ;;  %v14927_v25 = vpack.i.bf16 %v14846_v17, %v14844_v15  ;;  %v4373_v14 = vsel %vm863_vm3, %v4370_v28, %v4372_v13  ;;  %v2784_v49 = vrot.slane %v14890_v5, 2 }
 0x261   : > { %3819 = vmatmul.mubr.bf16.vlgmr.msra.gmra.mrb[32].mxu0 %v3218_v27  ;;  %11474 = vrot.lane.b32.xlu0 %v11473_v38, %s19357_s27  ;;  %v14919_v6 = vsel %vm863_vm3, %v2607_v11, %v2608_v54  ;;  %v14922_v3 = vsel %vm863_vm3, %v2608_v54, %v2610_v0  ;;  %v4371_v27 = vsel %vm863_vm3, %v4369_v48, %v4370_v28  ;;  %v2786_v22 = vrot.slane %v2489_v46, 2  ;;  %v12292_v38 = vld [vmem:[%s18966_s6] sm:$0xff]   ;;  %v4129_v54 = vld [vmem:[%s13353_s17 + $0xa8] sm:$0xff] }
 0x262   : > { %11479 = vrot.lane.b32.xlu1 %v11478_v16, %s19357_s27  ;;  %v11483_v1 = vpack.i.bf16 %v14922_v3, %v14919_v6  ;;  %v14937_v0 = vpack.i.bf16 %v4373_v14, %v4371_v27  ;;  %v2783_v11 = vrot.slane %v14865_v33, 2  ;;  %10087 = vmatprep.subr.bf16.mxu0 %v12292_v38  ;;  %v4128_v48 = vld [vmem:[%s13353_s17 + $0xa0] sm:$0xff]  ;;  %4216 = vst.msk [vmem:[#allocation3 + $0x111] sm:$0xff] %vm672_vm0, %v4129_v54 }
 0x263   : > { %v14949_v28 = vsel %vm1040_vm2, %v2784_v49, %v2786_v22  ;;  %10088 = vmatpush3.bf16.msra.mxu0 %v12292_v38  ;;  %4215 = vst.msk [vmem:[#allocation3 + $0x109] sm:$0xff] %vm672_vm0, %v4128_v48 }
 0x264   : > { %v14946_v13 = vsel %vm1040_vm2, %v2783_v11, %v2784_v49  ;;  %19430 = vst [vmem:[#allocation102_spill] sm:$0xff] %v14949_v28 }
 0x265   : > { %11484 = vrot.lane.b32.xlu0 %v11483_v1, %s19357_s27  ;;  %19429 = vst [vmem:[#allocation101_spill] sm:$0xff] %v14946_v13  ;;  %v11508_v46 = vpack.i.bf16 %v14949_v28, %v14946_v13 }
 0x266   : > { %11494 = vrot.lane.b32.xlu1 %v14927_v25, %s19334_s23 }
 0x269   : > { %11489 = vrot.lane.b32.xlu0 %v14586_v60, %s19334_s23 }
 0x26a   : > { %11504 = vrot.lane.b32.xlu1 %v14937_v0, %s19335_s24 }
 0x26c   : > { %v10037_v16 = vpop.f32.mrb[20].mxu0 }
 0x26d   : > { %11499 = vrot.lane.b32.xlu0 %v14688_v43, %s19335_s24  ;;  %v2301_v1 = vadd.f32 %v10037_v16, %v14365_v12  ;;  %v2292_v60 = vpop.f32.mrb[21].mxu0 }
 0x26e   : > { %11509 = vrot.lane.b32.xlu1 %v11508_v46, %s19357_s27  ;;  %v2293_v27 = vadd.f32 %v14365_v12, %v2292_v60  ;;  %v10038_v14 = vpop.f32.mrb[22].mxu0  ;;  %v11347_v46 = vunpack.i.h.bf16 %v14842_v39 }
 0x26f   : > { %v2361_v49 = vmax.f32 %v2301_v1, 0.0  ;;  %v2304_v22 = vadd.f32 %v10038_v14, %v14365_v12  ;;  %v2295_v38 = vpop.f32.mrb[23].mxu0  ;;  %v11346_v1 = vunpack.i.l.bf16 %v14842_v39 }
 0x270   : > { %v2359_v11 = vmax.f32 %v2293_v27, 0.0  ;;  %v2296_v48 = vadd.f32 %v14365_v12, %v2295_v38 }
 0x271   : > { %2450 = vst.msk [vmem:[#allocation4 + $0x121] sm:$0xff] %vm2371_vm13, %v2361_v49  ;;  %v2362_v54 = vmax.f32 %v2304_v22, 0.0  ;;  %v3182_v38 = vsel %vm2371_vm13, %v14458_v29, %v11346_v1 }
 0x272   : > { %2448 = vst.msk [vmem:[#allocation4 + $0x109] sm:$0xff] %vm2371_vm13, %v2359_v11  ;;  %v2360_v43 = vmax.f32 %v2296_v48, 0.0  ;;  %v3183_v11 = vsel %vm2371_vm13, %v14461_v59, %v11347_v46 }
 0x273   : > { %2451 = vst.msk [vmem:[#allocation4 + $0x129] sm:$0xff] %vm2371_vm13, %v2362_v54  ;;  %v3223_v53 = vpack.c.bf16 %v3183_v11, %v3182_v38 }
 0x274   : > { %v11355_v16 = vpop.permute.xlu0 %11354  ;;  %v14968_v47 = vpop.permute.xlu1 %11359  ;;  %2449 = vst.msk [vmem:[#allocation4 + $0x111] sm:$0xff] %vm2371_vm13, %v2360_v43 }
 0x275   : > { %v11357_v60 = vunpack.i.h.bf16 %v11355_v16  ;;  %v11356_v27 = vunpack.i.l.bf16 %v11355_v16 }
 0x277   : > { %v3124_v48 = vsel %vm2371_vm13, %v14509_v40, %v11356_v27  ;;  %v3125_v39 = vsel %vm2371_vm13, %v14518_v21, %v11357_v60 }
 0x278   : > { %v11365_v12 = vpop.permute.xlu0 %11364  ;;  %v14974_v14 = vpop.permute.xlu1 %11374  ;;  %v14984_v54 = vld [vmem:[#allocation4 + $0x120] sm:$0xff]  ;;  %v15007_v28 = vpack.c.bf16 %v3125_v39, %v3124_v48  ;;  %v4131_v48 = vld [vmem:[%s13353_s17 + $0xb8] sm:$0xff] }
 0x279   : > { %19431 = vst [vmem:[#allocation103_spill] sm:$0xff] %v14974_v14  ;;  %v11367_v49 = vunpack.i.h.bf16 %v11365_v12  ;;  %v11366_v22 = vunpack.i.l.bf16 %v11365_v12  ;;  %19432 = vst [vmem:[#allocation104_spill] sm:$0xff] %v14984_v54  ;;  %v14992_v29 = vld [vmem:[#allocation4 + $0x108] sm:$0xff]  ;;  %v2622_v27 = vrot.slane %v14984_v54, 1  ;;  %v2798_v12 = vrot.slane %v14984_v54, 2 }
 0x27a   : > { %5862 = vst.msk [vmem:[#allocation4 + $0x120] sm:$0xff] %vm2371_vm13, %v19386_v9  ;;  %19433 = vst [vmem:[#allocation105_spill] sm:$0xff] %v14992_v29  ;;  %v2498_v59 = vld [vmem:[#allocation4 + $0x130] sm:$0x3]  ;;  %v14998_v60 = vld [vmem:[#allocation4 + $0x128] sm:$0xff] }
 0x27b   : > { %v3122_v43 = vsel %vm2371_vm13, %v14516_v52, %v11366_v22  ;;  %v3123_v16 = vsel %vm2371_vm13, %v14536_v42, %v11367_v49  ;;  %19436 = vst [vmem:[#allocation108_spill] sm:$0xff] %v14998_v60  ;;  %v2617_v22 = vrot.slane %v14992_v29, 1  ;;  %5859 = vst.msk [vmem:[#allocation4 + $0x108] sm:$0xff] %vm2371_vm13, %v19386_v9  ;;  %v2495_v49 = vld [vmem:[#allocation4 + $0x118] sm:$0x3]  ;;  %v15012_v13 = vld [vmem:[#allocation4 + $0x110] sm:$0xff] }
 0x27c   : > { %v14994_v46 = vpop.permute.xlu1 %11384  ;;  %v14996_v1 = vpack.c.bf16 %v3123_v16, %v3122_v43  ;;  %5864 = vst.msk [vmem:[#allocation4 + $0x130] sm:$0x3] %vm2374_vm14, %v19386_v9  ;;  %19437 = vst [vmem:[#allocation109_spill] sm:$0xff] %v15007_v28  ;;  %v2623_v43 = vrot.slane %v14998_v60, 1  ;;  %v2625_v16 = vrot.slane %v2498_v59, 1  ;;  %v2799_v14 = vrot.slane %v14998_v60, 2 }
 0x27d   : > { %19434 = vst [vmem:[#allocation106_spill] sm:$0xff] %v14994_v46  ;;  %5863 = vst.msk [vmem:[#allocation4 + $0x128] sm:$0xff] %vm2371_vm13, %v19386_v9  ;;  %v4130_v46 = vld [vmem:[%s13353_s17 + $0xb0] sm:$0xff]  ;;  %v2801_v21 = vrot.slane %v2498_v59, 2  ;;  %v2618_v38 = vrot.slane %v15012_v13, 1  ;;  %v2620_v11 = vrot.slane %v2495_v49, 1 }
 0x27e   : > { %19435 = vst [vmem:[#allocation107_spill] sm:$0xff] %v14996_v1  ;;  %19438 = vst [vmem:[#allocation110_spill] sm:$0xff] %v15012_v13  ;;  %3826 = vmatprep.mubr.bf16.mxu0 %v14996_v1  ;;  %v15025_v39 = vsel %vm863_vm3, %v2622_v27, %v2623_v43  ;;  %v15028_v40 = vsel %vm863_vm3, %v2623_v43, %v2625_v16  ;;  %v15035_v42 = vsel %vm1040_vm2, %v2798_v12, %v2799_v14 }
 0x27f   : > { %5861 = vst.msk [vmem:[#allocation4 + $0x118] sm:$0x3] %vm2374_vm14, %v19386_v9  ;;  %3827 = vmatmul.mubr.bf16.gmra.mrb[36].mxu0 %v3223_v53  ;;  %v11513_v59 = vpack.i.bf16 %v15028_v40, %v15025_v39  ;;  %19439 = vst [vmem:[#allocation111_spill] sm:$0xff] %v15035_v42  ;;  %v15041_v53 = vsel %vm863_vm3, %v2617_v22, %v2618_v38  ;;  %v2793_v12 = vrot.slane %v14992_v29, 2 }
 0x280   : > { %5860 = vst.msk [vmem:[#allocation4 + $0x110] sm:$0xff] %vm2371_vm13, %v19386_v9  ;;  %v11390_v1 = vpop.permute.xlu1 %11389  ;;  %3834 = vmatprep.mubr.bf16.mxu0 %v15007_v28 }
 0x281   : > { %4217 = vst.msk [vmem:[#allocation3 + $0x121] sm:$0xff] %vm672_vm0, %v4130_v46  ;;  %4218 = vst.msk [vmem:[#allocation3 + $0x129] sm:$0xff] %vm672_vm0, %v4131_v48  ;;  %v15038_v46 = vsel %vm1040_vm2, %v2799_v14, %v2801_v21  ;;  %v11392_v27 = vunpack.i.h.bf16 %v11390_v1  ;;  %v11391_v43 = vunpack.i.l.bf16 %v11390_v1  ;;  %v15046_v48 = vsel %vm863_vm3, %v2618_v38, %v2620_v11  ;;  %11514 = vrot.lane.b32.xlu0 %v11513_v59, %s19357_s27 }
 0x282   : > { %19440 = vst [vmem:[#allocation112_spill] sm:$0xff] %v15038_v46  ;;  %v11518_v16 = vpack.i.bf16 %v15038_v46, %v15035_v42  ;;  %v2794_v21 = vrot.slane %v15012_v13, 2  ;;  %v2796_v14 = vrot.slane %v2495_v49, 2  ;;  %v11523_v38 = vpack.i.bf16 %v15046_v48, %v15041_v53 }
 0x283   : > { %v3184_v1 = vsel %vm2371_vm13, %v14563_v55, %v11391_v43  ;;  %v3185_v22 = vsel %vm2371_vm13, %v14566_v4, %v11392_v27  ;;  %v15068_v55 = vpop.permute.xlu0 %11369  ;;  %v4132_v4 = vld [vmem:[%s13353_s17 + $0xc0] sm:$0xff]  ;;  %v4133_v27 = vld [vmem:[%s13353_s17 + $0xc8] sm:$0xff] }
 0x284   : > { %11519 = vrot.lane.b32.xlu1 %v11518_v16, %s19357_s27  ;;  %v15059_v11 = vsel %vm1040_vm2, %v2793_v12, %v2794_v21  ;;  %v15062_v59 = vsel %vm1040_vm2, %v2794_v21, %v2796_v14  ;;  %v3227_v46 = vpack.c.bf16 %v3185_v22, %v3184_v1  ;;  %19443 = vst [vmem:[#allocation115_spill] sm:$0xff] %v15068_v55  ;;  %4219 = vst.msk [vmem:[#allocation3 + $0x139] sm:$0xff] %vm672_vm0, %v4132_v4  ;;  %v15079_v12 = vld [vmem:[%s19348_s18] ss:$0 sm:$0xff] }
 0x285   : > { %19441 = vst [vmem:[#allocation113_spill] sm:$0xff] %v15059_v11  ;;  %19442 = vst [vmem:[#allocation114_spill] sm:$0xff] %v15062_v59  ;;  %v11528_v49 = vpack.i.bf16 %v15062_v59, %v15059_v11  ;;  %11524 = vrot.lane.b32.xlu0 %v11523_v38, %s19357_s27 }
 0x286   : > { %4220 = vst.msk [vmem:[#allocation3 + $0x141] sm:$0xff] %vm672_vm0, %v4133_v27 }
 0x287   : > { %3835 = vmatmul.mubr.bf16.gmra.mrb[40].mxu0 %v3227_v46  ;;  %v15074_v16 = vpop.permute.xlu0 %11379 }
 0x288   : > { %11529 = vrot.lane.b32.xlu1 %v11528_v49, %s19357_s27  ;;  %19444 = vst [vmem:[#allocation116_spill] sm:$0xff] %v15074_v16 }
 0x28c   : > { %v10041_v43 = vpop.f32.mrb[24].mxu0 }
 0x28d   : > { %v2317_v21 = vadd.f32 %v15079_v12, %v10041_v43  ;;  %v2308_v14 = vpop.f32.mrb[25].mxu0  ;;  %v11362_v43 = vunpack.i.h.bf16 %v14968_v47 }
 0x28e   : > { %v2309_v46 = vadd.f32 %v15079_v12, %v2308_v14  ;;  %v10042_v1 = vpop.f32.mrb[26].mxu0 }
 0x28f   : > { %v2365_v22 = vmax.f32 %v2317_v21, 0.0  ;;  %v2320_v38 = vadd.f32 %v15079_v12, %v10042_v1  ;;  %v2311_v49 = vpop.f32.mrb[27].mxu0  ;;  %v11361_v21 = vunpack.i.l.bf16 %v14968_v47  ;;  %v12293_v1 = vld [vmem:[%s18966_s6 + $0x8] sm:$0xff]   ;;  %v3187_v47 = vsel %vm2371_vm13, %v14544_v20, %v11362_v43 }
 0x290   : > { %v2363_v4 = vmax.f32 %v2309_v46, 0.0  ;;  %v2312_v27 = vadd.f32 %v15079_v12, %v2311_v49  ;;  %10089 = vmatprep.subr.bf16.mxu0 %v12293_v1 }
 0x291   : > { %2454 = vst.msk [vmem:[#allocation4 + $0x151] sm:$0xff] %vm2371_vm13, %v2365_v22  ;;  %v2366_v42 = vmax.f32 %v2320_v38, 0.0  ;;  %10090 = vmatpush3.bf16.msra.mxu0 %v12293_v1 }
 0x292   : > { %2452 = vst.msk [vmem:[#allocation4 + $0x139] sm:$0xff] %vm2371_vm13, %v2363_v4  ;;  %v2364_v59 = vmax.f32 %v2312_v27, 0.0 }
 0x293   : > { %2455 = vst.msk [vmem:[#allocation4 + $0x159] sm:$0xff] %vm2371_vm13, %v2366_v42  ;;  %v3186_v42 = vsel %vm2371_vm13, %v14541_v26, %v11361_v21 }
 0x294   : > { %v11395_v11 = vpop.permute.xlu0 %11394  ;;  %v15087_v28 = vpop.permute.xlu1 %11399  ;;  %2453 = vst.msk [vmem:[#allocation4 + $0x141] sm:$0xff] %vm2371_vm13, %v2364_v59  ;;  %v3231_v16 = vpack.c.bf16 %v3187_v47, %v3186_v42 }
 0x295   : > { %v11397_v14 = vunpack.i.h.bf16 %v11395_v11  ;;  %v11396_v46 = vunpack.i.l.bf16 %v11395_v11 }
 0x297   : > { %v3128_v11 = vsel %vm2371_vm13, %v14626_v44, %v11396_v46  ;;  %v3129_v59 = vsel %vm2371_vm13, %v14636_v31, %v11397_v14 }
 0x298   : > { %v11405_v22 = vpop.permute.xlu0 %11404  ;;  %v15096_v38 = vpop.permute.xlu1 %11414  ;;  %v15106_v27 = vld [vmem:[#allocation4 + $0x150] sm:$0xff] }
 0x299   : > { %19445 = vst [vmem:[#allocation117_spill] sm:$0xff] %v15096_v38  ;;  %v11407_v49 = vunpack.i.h.bf16 %v11405_v22  ;;  %v11406_v4 = vunpack.i.l.bf16 %v11405_v22  ;;  %19446 = vst [vmem:[#allocation118_spill] sm:$0xff] %v15106_v27  ;;  %v15114_v26 = vld [vmem:[#allocation4 + $0x138] sm:$0xff]  ;;  %v2632_v46 = vrot.slane %v15106_v27, 1  ;;  %v2808_v22 = vrot.slane %v15106_v27, 2 }
 0x29a   : > { %5868 = vst.msk [vmem:[#allocation4 + $0x150] sm:$0xff] %vm2371_vm13, %v19386_v9  ;;  %19447 = vst [vmem:[#allocation119_spill] sm:$0xff] %v15114_v26  ;;  %v2504_v20 = vld [vmem:[#allocation4 + $0x160] sm:$0x3]  ;;  %v15120_v14 = vld [vmem:[#allocation4 + $0x158] sm:$0xff] }
 0x29b   : > { %v3126_v38 = vsel %vm2371_vm13, %v14632_v32, %v11406_v4  ;;  %v3127_v1 = vsel %vm2371_vm13, %v14652_v18, %v11407_v49  ;;  %19450 = vst [vmem:[#allocation122_spill] sm:$0xff] %v15120_v14  ;;  %v2627_v4 = vrot.slane %v15114_v26, 1  ;;  %5865 = vst.msk [vmem:[#allocation4 + $0x138] sm:$0xff] %vm2371_vm13, %v19386_v9  ;;  %v2501_v49 = vld [vmem:[#allocation4 + $0x148] sm:$0x3]  ;;  %v15134_v55 = vld [vmem:[#allocation4 + $0x140] sm:$0xff] }
 0x29c   : > { %v15116_v43 = vpop.permute.xlu1 %11424  ;;  %v15118_v21 = vpack.c.bf16 %v3127_v1, %v3126_v38  ;;  %5870 = vst.msk [vmem:[#allocation4 + $0x160] sm:$0x3] %vm2374_vm14, %v19386_v9  ;;  %v2633_v38 = vrot.slane %v15120_v14, 1  ;;  %v2635_v1 = vrot.slane %v2504_v20, 1  ;;  %19452 = vst [vmem:[#allocation124_spill] sm:$0xff] %v15134_v55  ;;  %v4134_v18 = vld [vmem:[%s13353_s17 + $0xd0] sm:$0xff] }
 0x29d   : > { %19448 = vst [vmem:[#allocation120_spill] sm:$0xff] %v15116_v43  ;;  %v15129_v43 = vpack.c.bf16 %v3129_v59, %v3128_v11  ;;  %5869 = vst.msk [vmem:[#allocation4 + $0x158] sm:$0xff] %vm2371_vm13, %v19386_v9  ;;  %v2809_v32 = vrot.slane %v15120_v14, 2  ;;  %v2811_v31 = vrot.slane %v2504_v20, 2  ;;  %v2628_v42 = vrot.slane %v15134_v55, 1  ;;  %v4135_v11 = vld [vmem:[%s13353_s17 + $0xd8] sm:$0xff] }
 0x29e   : > { %19449 = vst [vmem:[#allocation121_spill] sm:$0xff] %v15118_v21  ;;  %5867 = vst.msk [vmem:[#allocation4 + $0x148] sm:$0x3] %vm2374_vm14, %v19386_v9  ;;  %3842 = vmatprep.mubr.bf16.mxu0 %v15118_v21  ;;  %v2630_v47 = vrot.slane %v2501_v49, 1  ;;  %v15147_v59 = vsel %vm863_vm3, %v2632_v46, %v2633_v38  ;;  %v15150_v44 = vsel %vm863_vm3, %v2633_v38, %v2635_v1 }
 0x29f   : > { %19451 = vst [vmem:[#allocation123_spill] sm:$0xff] %v15129_v43  ;;  %5866 = vst.msk [vmem:[#allocation4 + $0x140] sm:$0xff] %vm2371_vm13, %v19386_v9  ;;  %3843 = vmatmul.mubr.bf16.gmra.mrb[44].mxu0 %v3231_v16  ;;  %v11533_v20 = vpack.i.bf16 %v15150_v44, %v15147_v59  ;;  %v15157_v14 = vsel %vm1040_vm2, %v2808_v22, %v2809_v32  ;;  %v15163_v16 = vsel %vm863_vm3, %v2627_v4, %v2628_v42 }
 0x2a0   : > { %4221 = vst.msk [vmem:[#allocation3 + $0x151] sm:$0xff] %vm672_vm0, %v4134_v18  ;;  %19453 = vst [vmem:[#allocation125_spill] sm:$0xff] %v15147_v59  ;;  %v11430_v21 = vpop.permute.xlu1 %11429  ;;  %3850 = vmatprep.mubr.bf16.mxu0 %v15129_v43  ;;  %v15160_v18 = vsel %vm1040_vm2, %v2809_v32, %v2811_v31  ;;  %v2803_v22 = vrot.slane %v15114_v26, 2  ;;  %v2804_v31 = vrot.slane %v15134_v55, 2  ;;  %v2806_v32 = vrot.slane %v2501_v49, 2 }
 0x2a1   : > { %19454 = vst [vmem:[#allocation126_spill] sm:$0xff] %v15150_v44  ;;  %4222 = vst.msk [vmem:[#allocation3 + $0x159] sm:$0xff] %vm672_vm0, %v4135_v11  ;;  %v11432_v46 = vunpack.i.h.bf16 %v11430_v21  ;;  %v11431_v38 = vunpack.i.l.bf16 %v11430_v21  ;;  %v11538_v1 = vpack.i.bf16 %v15160_v18, %v15157_v14  ;;  %v15168_v11 = vsel %vm863_vm3, %v2628_v42, %v2630_v47  ;;  %11534 = vrot.lane.b32.xlu0 %v11533_v20, %s19357_s27 }
 0x2a2   : > { %19455 = vst [vmem:[#allocation127_spill] sm:$0xff] %v15157_v14  ;;  %19456 = vst [vmem:[#allocation128_spill] sm:$0xff] %v15160_v18  ;;  %v11543_v42 = vpack.i.bf16 %v15168_v11, %v15163_v16  ;;  %v15181_v47 = vsel %vm1040_vm2, %v2803_v22, %v2804_v31  ;;  %v15184_v20 = vsel %vm1040_vm2, %v2804_v31, %v2806_v32  ;;  %v4546_v44 = vrot.slane %v14846_v17, 2  ;;  %v12294_v17 = vld [vmem:[%s18966_s6 + $0x10] ss:$0 sps:$4 sm:$0x33]  }
 0x2a3   : > { %11539 = vrot.lane.b32.xlu1 %v11538_v1, %s19357_s27  ;;  %v3188_v21 = vsel %vm2371_vm13, %v14683_v24, %v11431_v38  ;;  %v3189_v4 = vsel %vm2371_vm13, %v14686_v8, %v11432_v46  ;;  %19457 = vst [vmem:[#allocation129_spill] sm:$0xff] %v15181_v47  ;;  %19458 = vst [vmem:[#allocation130_spill] sm:$0xff] %v15184_v20  ;;  %v11548_v49 = vpack.i.bf16 %v15184_v20, %v15181_v47  ;;  %v15190_v24 = vpop.permute.xlu0 %11409  ;;  %v4136_v8 = vld [vmem:[%s13353_s17 + $0xe0] sm:$0xff]  ;;  %v4137_v46 = vld [vmem:[%s13353_s17 + $0xe8] sm:$0xff] }
 0x2a4   : > { %v3235_v18 = vpack.c.bf16 %v3189_v4, %v3188_v21  ;;  %19459 = vst [vmem:[#allocation131_spill] sm:$0xff] %v15190_v24  ;;  %4223 = vst.msk [vmem:[#allocation3 + $0x169] sm:$0xff] %vm672_vm0, %v4136_v8  ;;  %10430 = vmatprep.subr.msk.bf16.mxu0 %vm2174_vm4, %v12294_v17 }
 0x2a5   : > { %11544 = vrot.lane.b32.xlu0 %v11543_v42, %s19357_s27  ;;  %4224 = vst.msk [vmem:[#allocation3 + $0x171] sm:$0xff] %vm672_vm0, %v4137_v46 }
 0x2a7   : > { %11549 = vrot.lane.b32.xlu1 %v11548_v49, %s19357_s27  ;;  %3851 = vmatmul.mubr.bf16.gmra.mrb[48].mxu0 %v3235_v18  ;;  %v15196_v1 = vpop.permute.xlu0 %11419 }
 0x2a8   : > { %19460 = vst [vmem:[#allocation132_spill] sm:$0xff] %v15196_v1 }
 0x2ad   : > { %v10045_v38 = vpop.f32.mrb[28].mxu0 }
 0x2ae   : > { %v2333_v22 = vadd.f32 %v15079_v12, %v10045_v38  ;;  %v2324_v31 = vpop.f32.mrb[29].mxu0  ;;  %v11402_v38 = vunpack.i.h.bf16 %v15087_v28 }
 0x2af   : > { %v2325_v32 = vadd.f32 %v15079_v12, %v2324_v31  ;;  %v10046_v21 = vpop.f32.mrb[30].mxu0  ;;  %v11401_v31 = vunpack.i.l.bf16 %v15087_v28 }
 0x2b0   : > { %v2369_v4 = vmax.f32 %v2333_v22, 0.0  ;;  %v2336_v18 = vadd.f32 %v15079_v12, %v10046_v21  ;;  %v2327_v42 = vpop.f32.mrb[31].mxu0 }
 0x2b1   : > { %v2367_v49 = vmax.f32 %v2325_v32, 0.0  ;;  %v2328_v14 = vadd.f32 %v15079_v12, %v2327_v42  ;;  %v3191_v42 = vsel %vm2371_vm13, %v14660_v30, %v11402_v38  ;;  %v4545_v38 = vrot.slane %v14844_v15, 2 }
 0x2b2   : > { %2458 = vst.msk [vmem:[#allocation4 + $0x181] sm:$0xff] %vm2371_vm13, %v2369_v4  ;;  %v2370_v8 = vmax.f32 %v2336_v18, 0.0 }
 0x2b3   : > { %2456 = vst.msk [vmem:[#allocation4 + $0x169] sm:$0xff] %vm2371_vm13, %v2367_v49  ;;  %v2368_v46 = vmax.f32 %v2328_v14, 0.0  ;;  %v11435_v20 = vpop.permute.xlu0 %11434  ;;  %v3190_v14 = vsel %vm2371_vm13, %v14657_v10, %v11401_v31  ;;  %v15235_v31 = vld [vmem:[#allocation4 + $0x10] sm:$0x3] }
 0x2b4   : > { %v15204_v47 = vpop.permute.xlu1 %11439  ;;  %2459 = vst.msk [vmem:[#allocation4 + $0x189] sm:$0xff] %vm2371_vm13, %v2370_v8  ;;  %v11437_v22 = vunpack.i.h.bf16 %v11435_v20  ;;  %v11436_v32 = vunpack.i.l.bf16 %v11435_v20  ;;  %v15222_v20 = vld [vmem:[#allocation4] sm:$0xff]  ;;  %19466 = vst [vmem:[#allocation138_spill] sm:$0xff] %v15235_v31 }
 0x2b5   : > { %2457 = vst.msk [vmem:[#allocation4 + $0x171] sm:$0xff] %vm2371_vm13, %v2368_v46  ;;  %19463 = vst [vmem:[#allocation135_spill] sm:$0xff] %v15222_v20  ;;  %v15224_v46 = vld [vmem:[#allocation4 + $0x8] sm:$0xff] }
 0x2b6   : > { %v3132_v28 = vsel %vm2371_vm13, %v14740_v51, %v11436_v32  ;;  %v3133_v49 = vsel %vm2371_vm13, %v14746_v2, %v11437_v22  ;;  %19464 = vst [vmem:[#allocation136_spill] sm:$0xff] %v15224_v46  ;;  %5826 = vst.msk [vmem:[#allocation4] sm:$0xff] %vm2371_vm13, %v19386_v9 }
 0x2b7   : > { %v11445_v12 = vpop.permute.xlu0 %11444  ;;  %5827 = vst.msk [vmem:[#allocation4 + $0x8] sm:$0xff] %vm2371_vm13, %v19386_v9 }
 0x2b8   : > { %v15210_v21 = vpop.permute.xlu1 %11454  ;;  %v11447_v4 = vunpack.i.h.bf16 %v11445_v12  ;;  %v11446_v18 = vunpack.i.l.bf16 %v11445_v12  ;;  %5828 = vst.msk [vmem:[#allocation4 + $0x10] sm:$0x3] %vm2374_vm14, %v19386_v9 }
 0x2b9   : > { %19461 = vst [vmem:[#allocation133_spill] sm:$0xff] %v15210_v21  ;;  %v15220_v8 = vld [vmem:[#allocation4 + $0x180] sm:$0xff] }
 0x2ba   : > { %19462 = vst [vmem:[#allocation134_spill] sm:$0xff] %v15220_v8  ;;  %v3130_v12 = vsel %vm2371_vm13, %v14744_v19, %v11446_v18  ;;  %v3131_v10 = vsel %vm2371_vm13, %v14760_v35, %v11447_v4  ;;  %5874 = vst.msk [vmem:[#allocation4 + $0x180] sm:$0xff] %vm2371_vm13, %v19386_v9  ;;  %v15232_v30 = vld [vmem:[#allocation4 + $0x168] sm:$0xff]  ;;  %v3239_v4 = vpack.c.bf16 %v3191_v42, %v3190_v14  ;;  %v2949_v21 = vrot.slane %v15220_v8, 1 }
 0x2bb   : > { %19465 = vst [vmem:[#allocation137_spill] sm:$0xff] %v15232_v30  ;;  %v2510_v22 = vld [vmem:[#allocation4 + $0x190] sm:$0x3]  ;;  %v15243_v18 = vpack.c.bf16 %v3131_v10, %v3130_v12  ;;  %v15245_v43 = vld [vmem:[#allocation4 + $0x188] sm:$0xff]  ;;  %v2986_v15 = vrot.slane %v15220_v8, 2  ;;  %5871 = vst.msk [vmem:[#allocation4 + $0x168] sm:$0xff] %vm2371_vm13, %v19386_v9 }
 0x2bc   : > { %v15241_v32 = vpop.permute.xlu1 %11464  ;;  %19469 = vst [vmem:[#allocation141_spill] sm:$0xff] %v15245_v43  ;;  %5876 = vst.msk [vmem:[#allocation4 + $0x190] sm:$0x3] %vm2374_vm14, %v19386_v9  ;;  %v2507_v1 = vld [vmem:[#allocation4 + $0x178] sm:$0x3]  ;;  %v2950_v14 = vrot.slane %v15245_v43, 1 }
 0x2bd   : > { %19467 = vst [vmem:[#allocation139_spill] sm:$0xff] %v15241_v32  ;;  %19468 = vst [vmem:[#allocation140_spill] sm:$0xff] %v15243_v18  ;;  %v15255_v32 = vpack.c.bf16 %v3133_v49, %v3132_v28  ;;  %v2952_v42 = vrot.slane %v2510_v22, 1  ;;  %v15260_v12 = vld [vmem:[#allocation4 + $0x170] sm:$0xff]  ;;  %v2637_v10 = vrot.slane %v15232_v30, 1  ;;  %3858 = vmatprep.mubr.bf16.mxu0 %v15243_v18  ;;  %v2987_v35 = vrot.slane %v15245_v43, 2 }
 0x2be   : > { %5875 = vst.msk [vmem:[#allocation4 + $0x188] sm:$0xff] %vm2371_vm13, %v19386_v9  ;;  %19471 = vst [vmem:[#allocation143_spill] sm:$0xff] %v15260_v12  ;;  %v2989_v19 = vrot.slane %v2510_v22, 2  ;;  %v2638_v28 = vrot.slane %v15260_v12, 1  ;;  %v2640_v49 = vrot.slane %v2507_v1, 1  ;;  %3859 = vmatmul.mubr.bf16.gmra.mrb[52].mxu0 %v3239_v4  ;;  %v15271_v24 = vsel %vm863_vm3, %v2949_v21, %v2950_v14 }
 0x2bf   : > { %19470 = vst [vmem:[#allocation142_spill] sm:$0xff] %v15255_v32  ;;  %5873 = vst.msk [vmem:[#allocation4 + $0x178] sm:$0x3] %vm2374_vm14, %v19386_v9  ;;  %v15274_v8 = vsel %vm863_vm3, %v2950_v14, %v2952_v42  ;;  %v4548_v18 = vrot.slane %v14867_v61, 2  ;;  %3866 = vmatprep.mubr.bf16.mxu0 %v15255_v32  ;;  %v15282_v43 = vsel %vm1040_vm2, %v2986_v15, %v2987_v35  ;;  %v2816_v15 = vrot.slane %v2507_v1, 2 }
 0x2c0   : > { %5872 = vst.msk [vmem:[#allocation4 + $0x170] sm:$0xff] %vm2371_vm13, %v19386_v9  ;;  %19472 = vst [vmem:[#allocation144_spill] sm:$0xff] %v15271_v24  ;;  %v11470_v59 = vpop.permute.xlu1 %11469  ;;  %v11553_v22 = vpack.i.bf16 %v15274_v8, %v15271_v24  ;;  %v15285_v4 = vsel %vm1040_vm2, %v2987_v35, %v2989_v19  ;;  %v15288_v21 = vsel %vm863_vm3, %v2637_v10, %v2638_v28  ;;  %v2813_v35 = vrot.slane %v15232_v30, 2  ;;  %v4255_v24 = vld [vmem:[#allocation3 + $0xe0] sm:$0xff] }
 0x2c1   : > { %19473 = vst [vmem:[#allocation145_spill] sm:$0xff] %v15274_v8  ;;  %19474 = vst [vmem:[#allocation146_spill] sm:$0xff] %v15282_v43  ;;  %v11472_v61 = vunpack.i.h.bf16 %v11470_v59  ;;  %v11471_v14 = vunpack.i.l.bf16 %v11470_v59  ;;  %v11558_v42 = vpack.i.bf16 %v15285_v4, %v15282_v43  ;;  %v15296_v9 = vsel %vm863_vm3, %v2638_v28, %v2640_v49  ;;  %v4254_v8 = vld [vmem:[#allocation3 + $0xd8] sm:$0xff] }
 0x2c2   : > { %19475 = vst [vmem:[#allocation147_spill] sm:$0xff] %v15285_v4  ;;  %19476 = vst [vmem:[#allocation148_spill] sm:$0xff] %v15288_v21  ;;  %11554 = vrot.lane.b32.xlu0 %v11553_v22, %s19357_s27  ;;  %v2814_v19 = vrot.slane %v15260_v12, 2  ;;  %v4547_v28 = vsel %vm1040_vm2, %v4545_v38, %v4546_v44  ;;  %v4549_v49 = vsel %vm1040_vm2, %v4546_v44, %v4548_v18  ;;  %v4374_v38 = vrot.slane %v4254_v8, 1 }
 0x2c3   : > { %19477 = vst [vmem:[#allocation149_spill] sm:$0xff] %v15296_v9  ;;  %11559 = vrot.lane.b32.xlu1 %v11558_v42, %s19357_s27  ;;  %v3192_v59 = vsel %vm2371_vm13, %v14789_v63, %v11471_v14  ;;  %v3193_v10 = vsel %vm2371_vm13, %v14792_v23, %v11472_v61  ;;  %v11563_v22 = vpack.i.bf16 %v15296_v9, %v15288_v21  ;;  %v4256_v23 = vld [vmem:[#allocation3 + $0xe8] sm:$0x3]  ;;  %v4375_v18 = vrot.slane %v4255_v24, 1  ;;  %v15321_v61 = vpop.permute.xlu0 %11449  ;;  %v19503_v9 = vld [vmem:[#allocation43_spill] sm:$0xff] }
 0x2c4   : > { %v15312_v32 = vsel %vm1040_vm2, %v2813_v35, %v2814_v19  ;;  %v15315_v1 = vsel %vm1040_vm2, %v2814_v19, %v2816_v15  ;;  %v3243_v42 = vpack.c.bf16 %v3193_v10, %v3192_v59  ;;  %v11578_v44 = vpack.i.bf16 %v4549_v49, %v4547_v28  ;;  %19480 = vst [vmem:[#allocation152_spill] sm:$0xff] %v15321_v61  ;;  %v4138_v10 = vld [vmem:[%s13353_s17 + $0xf0] sm:$0xff]  ;;  %v4139_v28 = vld [vmem:[%s13353_s17 + $0xf8] sm:$0xff]  ;;  %s8957_s17 = sand.u32 1, %s19898_s3  }
 0x2c5   : > { %19478 = vst [vmem:[#allocation150_spill] sm:$0xff] %v15312_v32  ;;  %19479 = vst [vmem:[#allocation151_spill] sm:$0xff] %v15315_v1  ;;  %v11573_v63 = vpack.i.bf16 %v15315_v1, %v15312_v32  ;;  %v4377_v14 = vrot.slane %v4256_v23, 1  ;;  %v5631_v35 = vsel %vm2174_vm4, %v12294_v17, 0  ;;  %v15329_v15 = vpack.i.bf16 %v4255_v24, %v4254_v8 }
 0x2c6   : > { %11564 = vrot.lane.b32.xlu0 %v11563_v22, %s19357_s27  ;;  %3867 = vmatmul.mubr.bf16.gmra.mrb[56].mxu0 %v3243_v42  ;;  %v4376_v59 = vsel %vm863_vm3, %v4374_v38, %v4375_v18  ;;  %v4550_v22 = vrot.slane %v4254_v8, 2  ;;  %v4551_v42 = vrot.slane %v4255_v24, 2  ;;  %v4553_v17 = vrot.slane %v4256_v23, 2  ;;  %4225 = vst.msk [vmem:[#allocation3 + $0x181] sm:$0xff] %vm672_vm0, %v4138_v10  ;;  %4226 = vst.msk [vmem:[#allocation3 + $0x189] sm:$0xff] %vm672_vm0, %v4139_v28  ;;  %v4257_v10 = vld [vmem:[#allocation3 + $0xf0] sm:$0xff] }
 0x2c7   : > { %11574 = vrot.lane.b32.xlu1 %v11573_v63, %s19357_s27  ;;  %10092 = vmatpush3.bf16.msra.mxu0 %v5631_v35  ;;  %v4378_v49 = vsel %vm863_vm3, %v4375_v18, %v4377_v14  ;;  %v11442_v18 = vunpack.i.h.bf16 %v15204_v47  ;;  %v11441_v14 = vunpack.i.l.bf16 %v15204_v47  ;;  %v4258_v28 = vld [vmem:[#allocation3 + $0xf8] sm:$0xff]  ;;  %v11191_v21 = vunpack.i.l.bf16 %v19503_v9 }
 0x2c8   : > { %v15343_v63 = vpack.i.bf16 %v4378_v49, %v4376_v59  ;;  %v4552_v38 = vsel %vm1040_vm2, %v4550_v22, %v4551_v42  ;;  %v4554_v8 = vsel %vm1040_vm2, %v4551_v42, %v4553_v17  ;;  %v4380_v19 = vrot.slane %v4258_v28, 1 }
 0x2c9   : > { %v15351_v24 = vpack.i.bf16 %v4554_v8, %v4552_v38  ;;  %v4259_v38 = vld [vmem:[#allocation3 + $0x100] sm:$0x3]  ;;  %v3194_v47 = vsel %vm2371_vm13, %v14765_v41, %v11441_v14  ;;  %v3195_v8 = vsel %vm2371_vm13, %v14768_v50, %v11442_v18 }
 0x2ca   : > { %11569 = vrot.lane.b32.xlu0 %v14698_v37, %s19336_s20  ;;  %v15339_v37 = vpop.permute.xlu0 %11459  ;;  %v4382_v50 = vrot.slane %v4259_v38, 1  ;;  %v3247_v4 = vpack.c.bf16 %v3195_v8, %v3194_v47  ;;  %v4558_v47 = vrot.slane %v4259_v38, 2 }
 0x2cb   : > { %11579 = vrot.lane.b32.xlu1 %v11578_v44, %s19336_s20  ;;  %19481 = vst [vmem:[#allocation153_spill] sm:$0xff] %v15339_v37 }
 0x2ce   : > { %11584 = vrot.lane.b32.xlu0 %v14927_v25, %s19337_s28 }
 0x2cf   : > { %11589 = vrot.lane.b32.xlu1 %v15329_v15, %s19337_s28 }
 0x2d2   : > { %11594 = vrot.lane.b32.xlu0 %v14937_v0, %s19338_s25 }
 0x2d3   : > { %11599 = vrot.lane.b32.xlu1 %v15343_v63, %s19338_s25  ;;  %v11475_v25 = vpop.permute.xlu0 %11474 }
 0x2d4   : > { %v15353_v23 = vpop.permute.xlu1 %11479  ;;  %v11477_v35 = vunpack.i.h.bf16 %v11475_v25  ;;  %v11476_v59 = vunpack.i.l.bf16 %v11475_v25  ;;  %v4379_v25 = vrot.slane %v4257_v10, 1 }
 0x2d6   : > { %11604 = vrot.lane.b32.xlu0 %v11578_v44, %s19339_s2  ;;  %v3137_v41 = vsel %vm2371_vm13, %v14871_v45, %v11477_v35  ;;  %v4555_v35 = vrot.slane %v4257_v10, 2  ;;  %v12400_v45 = vld [vmem:[#allocation3 + $0x90] sm:$0xff] }
 0x2d7   : > { %11609 = vrot.lane.b32.xlu1 %v15351_v24, %s19339_s2  ;;  %v11485_v49 = vpop.permute.xlu0 %11484 }
 0x2d8   : > { %v11487_v22 = vunpack.i.h.bf16 %v11485_v49  ;;  %v11486_v42 = vunpack.i.l.bf16 %v11485_v49  ;;  %v15360_v17 = vpop.permute.xlu1 %11494 }
 0x2d9   : > { %19482 = vst [vmem:[#allocation154_spill] sm:$0xff] %v15360_v17  ;;  %v4265_v17 = vld [vmem:[#allocation3 + $0x130] sm:$0x3] }
 0x2da   : > { %11614 = vrot.lane.b32.xlu0 %v14937_v0, %s19340_s26  ;;  %v3134_v49 = vsel %vm2371_vm13, %v14865_v33, %v11486_v42  ;;  %v3135_v43 = vsel %vm2371_vm13, %v14890_v5, %v11487_v22  ;;  %v3136_v0 = vsel %vm2371_vm13, %v14856_v36, %v11476_v59  ;;  %v11638_v59 = vpack.i.bf16 %v4258_v28, %v4257_v10  ;;  %v19491_v33 = vld [vmem:[#allocation35_spill] sm:$0xff] }
 0x2db   : > { %11619 = vrot.lane.b32.xlu1 %v15343_v63, %s19340_s26  ;;  %v15378_v14 = vpack.c.bf16 %v3135_v43, %v3134_v49  ;;  %v15384_v42 = vpack.c.bf16 %v3137_v41, %v3136_v0  ;;  %v4381_v22 = vsel %vm863_vm3, %v4379_v25, %v4380_v19  ;;  %v4383_v43 = vsel %vm863_vm3, %v4380_v19, %v4382_v50  ;;  %v4261_v25 = vld [vmem:[#allocation3 + $0x110] sm:$0xff] }
 0x2dc   : > { %v15380_v18 = vpop.permute.xlu1 %11504  ;;  %v4556_v49 = vrot.slane %v4258_v28, 2  ;;  %v11146_v0 = vunpack.i.l.bf16 %v14421_v7  ;;  %v11142_v50 = vunpack.i.h.bf16 %v14429_v62  ;;  %v4392_v61 = vrot.slane %v4265_v17, 1 }
 0x2dd   : > { %19483 = vst [vmem:[#allocation155_spill] sm:$0xff] %v15378_v14  ;;  %19484 = vst [vmem:[#allocation156_spill] sm:$0xff] %v15380_v18  ;;  %3874 = vmatprep.mubr.bf16.mxu0 %v15378_v14  ;;  %v11161_v18 = vunpack.i.l.bf16 %v19491_v33 }
 0x2de   : > { %11624 = vrot.lane.b32.xlu0 %v11578_v44, %s19333_s29  ;;  %19485 = vst [vmem:[#allocation157_spill] sm:$0xff] %v15384_v42  ;;  %3875 = vmatmul.mubr.bf16.gmra.mrb[60].mxu0 %v3247_v4  ;;  %v11147_v44 = vunpack.i.h.bf16 %v14421_v7  ;;  %v15396_v4 = vpack.i.bf16 %v4383_v43, %v4381_v22  ;;  %v4557_v28 = vsel %vm1040_vm2, %v4555_v35, %v4556_v49  ;;  %v4260_v7 = vld [vmem:[#allocation3 + $0x108] sm:$0xff]  ;;  %v4262_v43 = vld [vmem:[#allocation3 + $0x118] sm:$0x3]  ;;  %v11141_v35 = vunpack.i.l.bf16 %v14429_v62 }
 0x2df   : > { %11629 = vrot.lane.b32.xlu1 %v15351_v24, %s19333_s29  ;;  %3882 = vmatprep.mubr.bf16.mxu0 %v15384_v42  ;;  %v4559_v38 = vsel %vm1040_vm2, %v4556_v49, %v4558_v47  ;;  %v12386_v42 = vld [vmem:[#allocation3 + $0x20] sm:$0xff]  ;;  %v4384_v47 = vrot.slane %v4260_v7, 1 }
 0x2e0   : > { %v11510_v8 = vpop.permute.xlu1 %11509  ;;  %v15414_v49 = vpack.i.bf16 %v4559_v38, %v4557_v28 }
 0x2e1   : > { %v11512_v41 = vunpack.i.h.bf16 %v11510_v8  ;;  %v11511_v1 = vunpack.i.l.bf16 %v11510_v8  ;;  %v19486_v8 = vld [vmem:[#allocation30_spill] sm:$0xff] }
 0x2e2   : > { %11634 = vrot.lane.b32.xlu0 %v15329_v15, %s19334_s23  ;;  %v11157_v15 = vunpack.i.h.bf16 %v19486_v8  ;;  %v11156_v32 = vunpack.i.l.bf16 %v19486_v8  ;;  %v12389_v8 = vld [vmem:[#allocation3] sm:$0xff] }
 0x2e3   : > { %11639 = vrot.lane.b32.xlu1 %v11638_v59, %s19334_s23  ;;  %v3196_v19 = vsel %vm2371_vm13, %v14919_v6, %v11511_v1  ;;  %v3197_v10 = vsel %vm2371_vm13, %v14922_v3, %v11512_v41  ;;  %v5286_v6 = vsel %vm672_vm0, %v12386_v42, %v11147_v44  ;;  %v12387_v1 = vld [vmem:[#allocation3 + $0x18] sm:$0xff]  ;;  %v4385_v41 = vrot.slane %v4261_v25, 1  ;;  %v12388_v42 = vld [vmem:[#allocation3 + $0x8] sm:$0xff] }
 0x2e4   : > { %v3251_v22 = vpack.c.bf16 %v3197_v10, %v3196_v19  ;;  %v5285_v3 = vsel %vm672_vm0, %v12387_v1, %v11146_v0  ;;  %v15416_v19 = vpop.permute.xlu0 %11489  ;;  %v4387_v10 = vrot.slane %v4262_v43, 1  ;;  %v5284_v44 = vsel %vm672_vm0, %v12388_v42, %v11142_v50  ;;  %v19488_v1 = vld [vmem:[#allocation33_spill] sm:$0xff]  ;;  %v19490_v42 = vld [vmem:[#allocation36_spill] sm:$0xff] }
 0x2e5   : > { %19487 = vst [vmem:[#allocation30_spill] sm:$0xff] %v15416_v19  ;;  %v5317_v0 = vsel %vm1851_vm5, %v5285_v3, %v11156_v32  ;;  %v5318_v62 = vsel %vm1851_vm5, %v5286_v6, %v11157_v15  ;;  %v11152_v14 = vunpack.i.h.bf16 %v19488_v1  ;;  %v11151_v38 = vunpack.i.l.bf16 %v19488_v1 }
 0x2e6   : > { %11644 = vrot.lane.b32.xlu0 %v15343_v63, %s19335_s24  ;;  %3883 = vmatmul.mubr.bf16.gmra.mrb[64].mxu0 %v3251_v22  ;;  %v5283_v63 = vsel %vm672_vm0, %v12389_v8, %v11141_v35  ;;  %v19489_v22 = vld [vmem:[#allocation34_spill] sm:$0xff]  ;;  %v15430_v32 = vpack.i.bf16 %v4261_v25, %v4260_v7  ;;  %v4386_v50 = vsel %vm863_vm3, %v4384_v47, %v4385_v41  ;;  %v4560_v6 = vrot.slane %v4260_v7, 2 }
 0x2e7   : > { %11649 = vrot.lane.b32.xlu1 %v15396_v4, %s19335_s24  ;;  %v11166_v28 = vunpack.i.l.bf16 %v19489_v22  ;;  %v11167_v5 = vunpack.i.h.bf16 %v19489_v22  ;;  %v4388_v15 = vsel %vm863_vm3, %v4385_v41, %v4387_v10  ;;  %v4561_v3 = vrot.slane %v4261_v25, 2  ;;  %v19493_v41 = vld [vmem:[#allocation38_spill] sm:$0xff] }
 0x2e8   : > { %v4563_v35 = vrot.slane %v4262_v43, 2  ;;  %v11177_v8 = vunpack.i.h.bf16 %v19490_v42  ;;  %v11162_v22 = vunpack.i.h.bf16 %v19491_v33  ;;  %v15440_v19 = vpop.permute.xlu0 %11499  ;;  %v5315_v47 = vsel %vm1851_vm5, %v5283_v63, %v11151_v38 }
 0x2e9   : > { %v5349_v1 = vsel %vm1884_vm6, %v5317_v0, %v11166_v28  ;;  %19492 = vst [vmem:[#allocation33_spill] sm:$0xff] %v15440_v19  ;;  %v5316_v7 = vsel %vm1851_vm5, %v5284_v44, %v11152_v14  ;;  %v5350_v25 = vsel %vm1884_vm6, %v5318_v62, %v11167_v5  ;;  %v15447_v43 = vpack.i.bf16 %v4388_v15, %v4386_v50  ;;  %v19494_v28 = vld [vmem:[#allocation37_spill] sm:$0xff]  ;;  %v19495_v50 = vld [vmem:[#allocation23_spill] sm:$0xff] }
 0x2ea   : > { %11654 = vrot.lane.b32.xlu0 %v15351_v24, %s19336_s20  ;;  %v11176_v24 = vunpack.i.l.bf16 %v19490_v42  ;;  %v11186_v10 = vunpack.i.l.bf16 %v19493_v41  ;;  %v4562_v0 = vsel %vm1040_vm2, %v4560_v6, %v4561_v3  ;;  %v4564_v33 = vsel %vm1040_vm2, %v4561_v3, %v4563_v35  ;;  %v19496_v3 = vld [vmem:[#allocation42_spill] sm:$0xff] }
 0x2eb   : > { %11659 = vrot.lane.b32.xlu1 %v15414_v49, %s19336_s20  ;;  %v11172_v42 = vunpack.i.h.bf16 %v19494_v28  ;;  %v11171_v63 = vunpack.i.l.bf16 %v19494_v28  ;;  %v11187_v14 = vunpack.i.h.bf16 %v19493_v41  ;;  %v5347_v5 = vsel %vm1884_vm6, %v5315_v47, %v11161_v18  ;;  %v19497_v47 = vld [vmem:[#allocation25_spill] sm:$0xff]  ;;  %v15482_v28 = vld [vmem:[#allocation3 + $0x120] sm:$0xff] }
 0x2ec   : > { %v5348_v44 = vsel %vm1884_vm6, %v5316_v7, %v11162_v22  ;;  %v5382_v62 = vsel %vm1917_vm7, %v5350_v25, %v11177_v8  ;;  %v15463_v38 = vpack.i.bf16 %v4564_v33, %v4562_v0  ;;  %v11196_v35 = vunpack.i.l.bf16 %v19496_v3  ;;  %v19498_v7 = vld [vmem:[#allocation27_spill] sm:$0xff] }
 0x2ed   : > { %v5379_v18 = vsel %vm1917_vm7, %v5347_v5, %v11171_v63  ;;  %v5414_v8 = vsel %vm1950_vm8, %v5382_v62, %v11187_v14  ;;  %v11197_v41 = vunpack.i.h.bf16 %v19496_v3  ;;  %v11482_v0 = vunpack.i.h.bf16 %v15353_v23  ;;  %v19499_v63 = vld [vmem:[#allocation24_spill] sm:$0xff]  ;;  %v19500_v14 = vld [vmem:[#allocation26_spill] sm:$0xff] }
 0x2ee   : > { %11664 = vrot.lane.b32.xlu0 %v11638_v59, %s19337_s28  ;;  %v5381_v59 = vsel %vm1917_vm7, %v5349_v1, %v11176_v24  ;;  %v5380_v1 = vsel %vm1917_vm7, %v5348_v44, %v11172_v42  ;;  %v15484_v42 = vld [vmem:[#allocation3 + $0x128] sm:$0xff]  ;;  %v19501_v44 = vld [vmem:[#allocation39_spill] sm:$0xff] }
 0x2ef   : > { %11669 = vrot.lane.b32.xlu1 %v15430_v32, %s19337_s28  ;;  %v5413_v6 = vsel %vm1950_vm8, %v5381_v59, %v11186_v10  ;;  %v11481_v10 = vunpack.i.l.bf16 %v15353_v23  ;;  %v11182_v62 = vunpack.i.h.bf16 %v19501_v44  ;;  %v11181_v3 = vunpack.i.l.bf16 %v19501_v44 }
 0x2f0   : > { %v5445_v23 = vsel %vm1983_vm9, %v5413_v6, %v11196_v35  ;;  %v3199_v5 = vsel %vm2371_vm13, %v14899_v34, %v11482_v0  ;;  %v4389_v44 = vrot.slane %v15482_v28, 1  ;;  %v4390_v6 = vrot.slane %v15484_v42, 1 }
 0x2f1   : > { %v3198_v37 = vsel %vm2371_vm13, %v14896_v57, %v11481_v10  ;;  %v5411_v0 = vsel %vm1950_vm8, %v5379_v18, %v11181_v3  ;;  %v5446_v10 = vsel %vm1983_vm9, %v5414_v8, %v11197_v41  ;;  %v5412_v41 = vsel %vm1950_vm8, %v5380_v1, %v11182_v62 }
 0x2f2   : > { %11674 = vrot.lane.b32.xlu0 %v15396_v4, %s19338_s25  ;;  %v11192_v1 = vunpack.i.h.bf16 %v19503_v9  ;;  %v5443_v62 = vsel %vm1983_vm9, %v5411_v0, %v11191_v21  ;;  %v19510_v0 = vld [vmem:[#allocation55_spill] sm:$0xff] }
 0x2f3   : > { %11679 = vrot.lane.b32.xlu1 %v15447_v43, %s19338_s25  ;;  %v11515_v24 = vpop.permute.xlu0 %11514 }
 0x2f4   : > { %v11517_v33 = vunpack.i.h.bf16 %v11515_v24  ;;  %v11516_v59 = vunpack.i.l.bf16 %v11515_v24 }
 0x2f6   : > { %v15471_v22 = vpop.permute.xlu1 %11519  ;;  %11684 = vrot.lane.b32.xlu0 %v15414_v49, %s19339_s2  ;;  %v3140_v57 = vsel %vm2371_vm13, %v14984_v54, %v11516_v59  ;;  %v3141_v34 = vsel %vm2371_vm13, %v14998_v60, %v11517_v33  ;;  %v4565_v33 = vrot.slane %v15482_v28, 2  ;;  %v4566_v59 = vrot.slane %v15484_v42, 2  ;;  %v12399_v54 = vld [vmem:[#allocation3 + $0xa8] sm:$0xff] }
 0x2f7   : > { %11689 = vrot.lane.b32.xlu1 %v15463_v38, %s19339_s2  ;;  %v11525_v25 = vpop.permute.xlu0 %11524  ;;  %v15521_v18 = vpack.c.bf16 %v3141_v34, %v3140_v57 }
 0x2f8   : > { %v11527_v15 = vunpack.i.h.bf16 %v11525_v25  ;;  %v11526_v19 = vunpack.i.l.bf16 %v11525_v25 }
 0x2f9   : > { %19505 = vst [vmem:[#allocation36_spill] sm:$0xff] %v15521_v18 }
 0x2fa   : > { %11694 = vrot.lane.b32.xlu0 %v15396_v4, %s19340_s26  ;;  %v11530_v35 = vpop.permute.xlu1 %11529  ;;  %v3138_v25 = vsel %vm2371_vm13, %v14992_v29, %v11526_v19  ;;  %v3139_v4 = vsel %vm2371_vm13, %v15012_v13, %v11527_v15  ;;  %v11207_v19 = vunpack.i.h.bf16 %v19504_v58  ;;  %v11206_v29 = vunpack.i.l.bf16 %v19504_v58 }
 0x2fb   : > { %11699 = vrot.lane.b32.xlu1 %v15447_v43, %s19340_s26  ;;  %v15513_v24 = vpack.c.bf16 %v3139_v4, %v3138_v25  ;;  %v3255_v15 = vpack.c.bf16 %v3199_v5, %v3198_v37  ;;  %v11532_v13 = vunpack.i.h.bf16 %v11530_v35  ;;  %v11531_v56 = vunpack.i.l.bf16 %v11530_v35  ;;  %v19506_v25 = vld [vmem:[#allocation53_spill] sm:$0xff] }
 0x2fc   : > { %v15529_v58 = vpack.i.bf16 %v15484_v42, %v15482_v28  ;;  %v4391_v37 = vsel %vm863_vm3, %v4389_v44, %v4390_v6  ;;  %v4568_v5 = vrot.slane %v4265_v17, 2  ;;  %v5477_v3 = vsel %vm2016_vm10, %v5445_v23, %v11206_v29  ;;  %v19507_v17 = vld [vmem:[#allocation49_spill] sm:$0xff]  ;;  %v19508_v23 = vld [vmem:[#allocation48_spill] sm:$0xff] }
 0x2fd   : > { %19502 = vst [vmem:[#allocation34_spill] sm:$0xff] %v15513_v24  ;;  %3890 = vmatprep.mubr.bf16.mxu0 %v15513_v24  ;;  %v5478_v35 = vsel %vm2016_vm10, %v5446_v10, %v11207_v19  ;;  %v11226_v4 = vunpack.i.l.bf16 %v19506_v25  ;;  %v3201_v28 = vsel %vm2371_vm13, %v15046_v48, %v11532_v13  ;;  %v11217_v42 = vunpack.i.h.bf16 %v19507_v17  ;;  %v4266_v13 = vld [vmem:[#allocation3 + $0x138] sm:$0xff]  ;;  %v4267_v48 = vld [vmem:[#allocation3 + $0x140] sm:$0xff] }
 0x2fe   : > { %11704 = vrot.lane.b32.xlu0 %v15414_v49, %s19333_s29  ;;  %3891 = vmatmul.mubr.bf16.gmra.mrb[68].mxu0 %v3255_v15  ;;  %v4393_v49 = vsel %vm863_vm3, %v4390_v6, %v4392_v61  ;;  %v3200_v61 = vsel %vm2371_vm13, %v15041_v53, %v11531_v56  ;;  %v11216_v9 = vunpack.i.l.bf16 %v19507_v17  ;;  %v11227_v21 = vunpack.i.h.bf16 %v19506_v25  ;;  %v19509_v6 = vld [vmem:[#allocation54_spill] sm:$0xff]  ;;  %v4268_v15 = vld [vmem:[#allocation3 + $0x148] sm:$0x3] }
 0x2ff   : > { %11709 = vrot.lane.b32.xlu1 %v15463_v38, %s19333_s29  ;;  %3898 = vmatprep.mubr.bf16.mxu0 %v15521_v18  ;;  %v15552_v29 = vpack.i.bf16 %v4393_v49, %v4391_v37  ;;  %v11202_v44 = vunpack.i.h.bf16 %v19508_v23  ;;  %v4567_v56 = vsel %vm1040_vm2, %v4565_v33, %v4566_v59  ;;  %v4569_v53 = vsel %vm1040_vm2, %v4566_v59, %v4568_v5  ;;  %v12390_v49 = vld [vmem:[#allocation3 + $0x48] sm:$0xff]  ;;  %v12391_v33 = vld [vmem:[#allocation3 + $0x50] sm:$0xff] }
 0x300   : > { %v11222_v57 = vunpack.i.h.bf16 %v19509_v6  ;;  %v11221_v34 = vunpack.i.l.bf16 %v19509_v6  ;;  %v11236_v10 = vunpack.i.l.bf16 %v19510_v0  ;;  %v3259_v19 = vpack.c.bf16 %v3201_v28, %v3200_v61 }
 0x301   : > { %v5444_v37 = vsel %vm1983_vm9, %v5412_v41, %v11192_v1  ;;  %v5289_v25 = vsel %vm672_vm0, %v12390_v49, %v11226_v4  ;;  %v11237_v17 = vunpack.i.h.bf16 %v19510_v0  ;;  %v5290_v59 = vsel %vm672_vm0, %v12391_v33, %v11227_v21  ;;  %v12392_v21 = vld [vmem:[#allocation3 + $0x38] sm:$0xff]  ;;  %v12393_v0 = vld [vmem:[#allocation3 + $0x30] sm:$0xff]  ;;  %v19514_v33 = vld [vmem:[#allocation60_spill] sm:$0xff] }
 0x302   : > { %11714 = vrot.lane.b32.xlu0 %v15430_v32, %s19334_s23  ;;  %v11201_v32 = vunpack.i.l.bf16 %v19508_v23  ;;  %v15569_v5 = vpack.i.bf16 %v4569_v53, %v4567_v56  ;;  %v4394_v61 = vrot.slane %v4266_v13, 1  ;;  %v4395_v28 = vrot.slane %v4267_v48, 1 }
 0x303   : > { %11719 = vrot.lane.b32.xlu1 %v15529_v58, %s19334_s23  ;;  %v15573_v1 = vsel %vm2049_vm11, %v5477_v3, %v11216_v9  ;;  %v15576_v4 = vsel %vm2049_vm11, %v5478_v35, %v11217_v42  ;;  %v5476_v23 = vsel %vm2016_vm10, %v5444_v37, %v11202_v44  ;;  %v5288_v6 = vsel %vm672_vm0, %v12392_v21, %v11222_v57  ;;  %v19512_v3 = vld [vmem:[#allocation58_spill] sm:$0xff]  ;;  %v19515_v21 = vld [vmem:[#allocation65_spill] sm:$0xff] }
 0x304   : > { %v5475_v41 = vsel %vm2016_vm10, %v5443_v62, %v11201_v32  ;;  %v5287_v56 = vsel %vm672_vm0, %v12393_v0, %v11221_v34  ;;  %v5321_v53 = vsel %vm1851_vm5, %v5289_v25, %v11236_v10  ;;  %v19511_v62 = vld [vmem:[#allocation56_spill] sm:$0xff]  ;;  %v11246_v9 = vunpack.i.l.bf16 %v19512_v3 }
 0x305   : > { %v11232_v32 = vunpack.i.h.bf16 %v19511_v62  ;;  %v11231_v35 = vunpack.i.l.bf16 %v19511_v62  ;;  %v11247_v42 = vunpack.i.h.bf16 %v19512_v3  ;;  %v15591_v44 = vpack.i.bf16 %v4267_v48, %v4266_v13  ;;  %v19513_v25 = vld [vmem:[#allocation52_spill] sm:$0xff] }
 0x306   : > { %11724 = vrot.lane.b32.xlu0 %v15447_v43, %s19335_s24  ;;  %3899 = vmatmul.mubr.bf16.gmra.mrb[72].mxu0 %v3259_v19  ;;  %v4397_v43 = vrot.slane %v4268_v15, 1  ;;  %v5322_v19 = vsel %vm1851_vm5, %v5290_v59, %v11237_v17  ;;  %v4396_v57 = vsel %vm863_vm3, %v4394_v61, %v4395_v28  ;;  %v4570_v10 = vrot.slane %v4266_v13, 2 }
 0x307   : > { %11729 = vrot.lane.b32.xlu1 %v15552_v29, %s19335_s24  ;;  %v4571_v37 = vrot.slane %v4267_v48, 2  ;;  %v4573_v49 = vrot.slane %v4268_v15, 2  ;;  %v11212_v17 = vunpack.i.h.bf16 %v19513_v25  ;;  %v11242_v59 = vunpack.i.h.bf16 %v19514_v33 }
 0x308   : > { %v4398_v34 = vsel %vm863_vm3, %v4395_v28, %v4397_v43  ;;  %v11256_v0 = vunpack.i.l.bf16 %v19515_v21  ;;  %v5353_v62 = vsel %vm1884_vm6, %v5321_v53, %v11246_v9  ;;  %v11241_v3 = vunpack.i.l.bf16 %v19514_v33  ;;  %v19516_v43 = vld [vmem:[#allocation67_spill] sm:$0xff] }
 0x309   : > { %v11257_v8 = vunpack.i.h.bf16 %v19515_v21  ;;  %v5319_v13 = vsel %vm1851_vm5, %v5287_v56, %v11231_v35  ;;  %v5320_v48 = vsel %vm1851_vm5, %v5288_v6, %v11232_v32  ;;  %v5354_v15 = vsel %vm1884_vm6, %v5322_v19, %v11247_v42  ;;  %v19517_v35 = vld [vmem:[#allocation66_spill] sm:$0xff]  ;;  %v19519_v21 = vld [vmem:[#allocation68_spill] sm:$0xff]  ;;  %v15668_v28 = vld [vmem:[#allocation3 + $0x158] sm:$0xff] }
 0x30a   : > { %11734 = vrot.lane.b32.xlu0 %v15463_v38, %s19336_s20  ;;  %v11211_v38 = vunpack.i.l.bf16 %v19513_v25  ;;  %v15609_v61 = vpack.i.bf16 %v4398_v34, %v4396_v57  ;;  %v11266_v53 = vunpack.i.l.bf16 %v19516_v43  ;;  %v4572_v9 = vsel %vm1040_vm2, %v4570_v10, %v4571_v37 }
 0x30b   : > { %11739 = vrot.lane.b32.xlu1 %v15569_v5, %s19336_s20  ;;  %v5385_v56 = vsel %vm1917_vm7, %v5353_v62, %v11256_v0  ;;  %v11252_v6 = vunpack.i.h.bf16 %v19517_v35  ;;  %v11251_v19 = vunpack.i.l.bf16 %v19517_v35  ;;  %v11267_v32 = vunpack.i.h.bf16 %v19516_v43  ;;  %v19521_v43 = vld [vmem:[#allocation40_spill] sm:$0xff] }
 0x30c   : > { %v5351_v42 = vsel %vm1884_vm6, %v5319_v13, %v11241_v3  ;;  %v5352_v57 = vsel %vm1884_vm6, %v5320_v48, %v11242_v59  ;;  %v5386_v34 = vsel %vm1917_vm7, %v5354_v15, %v11257_v8  ;;  %v15626_v10 = vsel %vm2049_vm11, %v5475_v41, %v11211_v38  ;;  %v19520_v41 = vld [vmem:[#allocation44_spill] sm:$0xff] }
 0x30d   : > { %v5417_v59 = vsel %vm1950_vm8, %v5385_v56, %v11266_v53  ;;  %v11261_v8 = vunpack.i.l.bf16 %v19519_v21  ;;  %v5383_v3 = vsel %vm1917_vm7, %v5351_v42, %v11251_v19  ;;  %v5384_v13 = vsel %vm1917_vm7, %v5352_v57, %v11252_v6  ;;  %v19522_v53 = vld [vmem:[#allocation41_spill] sm:$0xff] }
 0x30e   : > { %11744 = vrot.lane.b32.xlu0 %v15529_v58, %s19337_s28  ;;  %v4574_v58 = vsel %vm1040_vm2, %v4571_v37, %v4573_v49  ;;  %v15629_v37 = vsel %vm2049_vm11, %v5476_v23, %v11212_v17  ;;  %v19518_v49 = vld [vmem:[#allocation71_spill] sm:$0xff]  ;;  %v12295_v23 = vld [vmem:[%s19346_s4 + $0x40] sm:$0xff]   ;;  %v5418_v48 = vsel %vm1950_vm8, %v5386_v34, %v11267_v32  ;;  %v11521_v56 = vunpack.i.l.bf16 %v15471_v22  ;;  %v19523_v34 = vld [vmem:[#allocation72_spill] sm:$0xff] }
 0x30f   : > { %11749 = vrot.lane.b32.xlu1 %v15591_v44, %s19337_s28  ;;  %v11276_v25 = vunpack.i.l.bf16 %v19518_v49  ;;  %v15634_v33 = vpack.i.bf16 %v4574_v58, %v4572_v9  ;;  %v11277_v0 = vunpack.i.h.bf16 %v19518_v49  ;;  %v12296_v17 = vld [vmem:[%s19346_s4] sm:$0xff]   ;;  %v11522_v58 = vunpack.i.h.bf16 %v15471_v22  ;;  %9403 = vmatprep.subr.bf16.mxu1 %v12295_v23  ;;  %v19524_v9 = vld [vmem:[#allocation73_spill] sm:$0xff] }
 0x310   : > { %v11262_v19 = vunpack.i.h.bf16 %v19519_v21  ;;  %v15662_v32 = vld [vmem:[#allocation3 + $0x150] sm:$0xff]  ;;  %9404 = vmatpush3.bf16.msra.mxu1 %v12296_v17  ;;  %v5415_v57 = vsel %vm1950_vm8, %v5383_v3, %v11261_v8  ;;  %v11271_v49 = vunpack.i.l.bf16 %v19523_v34  ;;  %v11286_v38 = vunpack.i.l.bf16 %v19524_v9  ;;  %v15676_v8 = vld [vmem:[#allocation3 + $0x160] sm:$0x3] }
 0x311   : > { %v5449_v6 = vsel %vm1983_vm9, %v5417_v59, %v11276_v25  ;;  %v5450_v22 = vsel %vm1983_vm9, %v5418_v48, %v11277_v0  ;;  %v12297_v25 = vld [vmem:[%s19346_s4 + $0x48] sm:$0xff]   ;;  %v3202_v0 = vsel %vm2371_vm13, %v15025_v39, %v11521_v56  ;;  %v3203_v17 = vsel %vm2371_vm13, %v15028_v40, %v11522_v58  ;;  %v19525_v39 = vld [vmem:[#allocation122_spill] sm:$0xff] }
 0x312   : > { %11754 = vrot.lane.b32.xlu0 %v15552_v29, %s19338_s25  ;;  %v12298_v59 = vld [vmem:[%s19346_s4 + $0x8] sm:$0xff]   ;;  %v4399_v48 = vrot.slane %v15662_v32, 1  ;;  %9405 = vmatprep.subr.bf16.mxu1 %v12297_v25  ;;  %v4400_v40 = vrot.slane %v15668_v28, 1  ;;  %v5416_v58 = vsel %vm1950_vm8, %v5384_v13, %v11262_v19  ;;  %v4402_v24 = vrot.slane %v15676_v8, 1  ;;  %v12300_v13 = vld [vmem:[%s19346_s4 + $0x10] sm:$0xff]  }
 0x313   : > { %11759 = vrot.lane.b32.xlu1 %v15609_v61, %s19338_s25  ;;  %v11535_v62 = vpop.permute.xlu0 %11534 }
 0x314   : > { %v11536_v35 = vunpack.i.l.bf16 %v11535_v62  ;;  %v11537_v42 = vunpack.i.h.bf16 %v11535_v62  ;;  %9406 = vmatpush3.bf16.msra.mxu1 %v12298_v59  ;;  %v3263_v59 = vpack.c.bf16 %v3203_v17, %v3202_v0  ;;  %v4576_v0 = vrot.slane %v15668_v28, 2 }
 0x315   : > { %v15650_v15 = vpop.permute.xlu1 %11539  ;;  %v4578_v17 = vrot.slane %v15676_v8, 2 }
 0x316   : > { %11764 = vrot.lane.b32.xlu0 %v15569_v5, %s19339_s2  ;;  %v3144_v3 = vsel %vm2371_vm13, %v15106_v27, %v11536_v35  ;;  %v3145_v56 = vsel %vm2371_vm13, %v19525_v39, %v11537_v42  ;;  %v11287_v35 = vunpack.i.h.bf16 %v19524_v9  ;;  %v5447_v27 = vsel %vm1983_vm9, %v5415_v57, %v11271_v49  ;;  %v19529_v57 = vld [vmem:[#allocation80_spill] sm:$0xff] }
 0x317   : > { %11769 = vrot.lane.b32.xlu1 %v15634_v33, %s19339_s2  ;;  %v11545_v23 = vpop.permute.xlu0 %11544  ;;  %v15707_v42 = vsel %vm2016_vm10, %v5449_v6, %v11286_v38  ;;  %v11307_v49 = vunpack.i.h.bf16 %v19529_v57  ;;  %v15723_v38 = vpack.i.bf16 %v15668_v28, %v15662_v32  ;;  %v4575_v6 = vrot.slane %v15662_v32, 2 }
 0x318   : > { %v11547_v21 = vunpack.i.h.bf16 %v11545_v23  ;;  %v11546_v62 = vunpack.i.l.bf16 %v11545_v23 }
 0x319   : > { %v11550_v18 = vpop.permute.xlu1 %11549 }
 0x31a   : > { %11774 = vrot.lane.b32.xlu0 %v15552_v29, %s19340_s26  ;;  %v3142_v23 = vsel %vm2371_vm13, %v15114_v26, %v11546_v62  ;;  %v3143_v29 = vsel %vm2371_vm13, %v15134_v55, %v11547_v21  ;;  %v12299_v62 = vld [vmem:[%s19346_s4 + $0x50] sm:$0xff]   ;;  %v11272_v21 = vunpack.i.h.bf16 %v19523_v34  ;;  %v11552_v9 = vunpack.i.h.bf16 %v11550_v18  ;;  %v19528_v34 = vld [vmem:[#allocation74_spill] sm:$0xff]  ;;  %v19537_v26 = vld [vmem:[#allocation89_spill] sm:$0xff] }
 0x31b   : > { %11779 = vrot.lane.b32.xlu1 %v15609_v61, %s19340_s26  ;;  %v15698_v25 = vpack.c.bf16 %v3143_v29, %v3142_v23  ;;  %v11551_v19 = vunpack.i.l.bf16 %v11550_v18  ;;  %v15715_v23 = vpack.c.bf16 %v3145_v56, %v3144_v3  ;;  %v11281_v29 = vunpack.i.l.bf16 %v19528_v34  ;;  %9407 = vmatprep.subr.bf16.mxu1 %v12299_v62  ;;  %v12301_v3 = vld [vmem:[%s19346_s4 + $0x58] sm:$0xff]  }
 0x31c   : > { %v4401_v18 = vsel %vm863_vm3, %v4399_v48, %v4400_v40  ;;  %v5448_v56 = vsel %vm1983_vm9, %v5416_v58, %v11272_v21  ;;  %v11282_v48 = vunpack.i.h.bf16 %v19528_v34  ;;  %9408 = vmatpush3.bf16.msra.mxu1 %v12300_v13  ;;  %v19531_v58 = vld [vmem:[#allocation84_spill] sm:$0xff]  ;;  %v19532_v13 = vld [vmem:[#allocation83_spill] sm:$0xff]  ;;  %v11321_v60 = vunpack.i.l.bf16 %v19537_v26 }
 0x31d   : > { %19526 = vst [vmem:[#allocation35_spill] sm:$0xff] %v15698_v25  ;;  %3906 = vmatprep.mubr.bf16.mxu0 %v15698_v25  ;;  %19527 = vst [vmem:[#allocation38_spill] sm:$0xff] %v15715_v23  ;;  %v3204_v32 = vsel %vm2371_vm13, %v15163_v16, %v11551_v19  ;;  %9409 = vmatprep.subr.bf16.mxu1 %v12301_v3  ;;  %v5479_v8 = vsel %vm2016_vm10, %v5447_v27, %v11281_v29  ;;  %v12394_v21 = vld [vmem:[#allocation3 + $0x80] sm:$0xff]  ;;  %v11301_v16 = vunpack.i.l.bf16 %v19532_v13  ;;  %v12303_v27 = vld [vmem:[%s19346_s4 + $0x60] sm:$0xff]  }
 0x31e   : > { %11784 = vrot.lane.b32.xlu0 %v15569_v5, %s19333_s29  ;;  %3907 = vmatmul.mubr.bf16.gmra.mrb[76].mxu0 %v3263_v59  ;;  %v4403_v5 = vsel %vm863_vm3, %v4400_v40, %v4402_v24  ;;  %v5482_v59 = vsel %vm2016_vm10, %v5450_v22, %v11287_v35  ;;  %v12302_v24 = vld [vmem:[%s19346_s4 + $0x18] sm:$0xff]   ;;  %v3205_v22 = vsel %vm2371_vm13, %v15168_v11, %v11552_v9  ;;  %v11306_v40 = vunpack.i.l.bf16 %v19529_v57  ;;  %v19533_v34 = vld [vmem:[#allocation76_spill] sm:$0xff] }
 0x31f   : > { %11789 = vrot.lane.b32.xlu1 %v15634_v33, %s19333_s29  ;;  %3914 = vmatprep.mubr.bf16.mxu0 %v15715_v23  ;;  %v19530_v23 = vld [vmem:[#allocation75_spill] sm:$0xff]  ;;  %v11317_v35 = vunpack.i.h.bf16 %v19531_v58  ;;  %v15753_v62 = vpack.i.bf16 %v4403_v5, %v4401_v18  ;;  %v4577_v19 = vsel %vm1040_vm2, %v4575_v6, %v4576_v0  ;;  %v4579_v11 = vsel %vm1040_vm2, %v4576_v0, %v4578_v17  ;;  %v15759_v9 = vld [vmem:[#allocation3 + $0x168] sm:$0xff]  ;;  %v12304_v6 = vld [vmem:[%s19346_s4 + $0x20] sm:$0xff]  }
 0x320   : > { %v11297_v25 = vunpack.i.h.bf16 %v19530_v23  ;;  %v11296_v28 = vunpack.i.l.bf16 %v19530_v23  ;;  %v5480_v23 = vsel %vm2016_vm10, %v5448_v56, %v11282_v48  ;;  %v11292_v29 = vunpack.i.h.bf16 %v19533_v34  ;;  %v15769_v5 = vld [vmem:[#allocation3 + $0x178] sm:$0x3]  ;;  %9410 = vmatpush3.bf16.msra.mxu1 %v12302_v24  ;;  %v19534_v3 = vld [vmem:[#allocation88_spill] sm:$0xff]  ;;  %v19535_v24 = vld [vmem:[#allocation85_spill] sm:$0xff] }
 0x321   : > { %v11302_v57 = vunpack.i.h.bf16 %v19532_v13  ;;  %v3267_v18 = vpack.c.bf16 %v3205_v22, %v3204_v32  ;;  %v11291_v0 = vunpack.i.l.bf16 %v19533_v34  ;;  %v11316_v17 = vunpack.i.l.bf16 %v19531_v58  ;;  %9411 = vmatprep.subr.bf16.mxu1 %v12303_v27  ;;  %v12395_v48 = vld [vmem:[#allocation3 + $0x78] sm:$0xff]  ;;  %v12396_v58 = vld [vmem:[#allocation3 + $0x60] sm:$0xff] }
 0x322   : > { %11794 = vrot.lane.b32.xlu0 %v15591_v44, %s19334_s23  ;;  %v5294_v44 = vsel %vm672_vm0, %v12394_v21, %v11307_v49  ;;  %v15767_v49 = vld [vmem:[#allocation3 + $0x170] sm:$0xff]  ;;  %v11327_v56 = vunpack.i.h.bf16 %v19534_v3  ;;  %v5293_v32 = vsel %vm672_vm0, %v12395_v48, %v11306_v40  ;;  %v11311_v21 = vunpack.i.l.bf16 %v19535_v24  ;;  %v12305_v40 = vld [vmem:[%s19346_s4 + $0x68] sm:$0xff]  }
 0x323   : > { %11799 = vrot.lane.b32.xlu1 %v15723_v38, %s19334_s23  ;;  %v5326_v22 = vsel %vm1851_vm5, %v5294_v44, %v11317_v35  ;;  %v15784_v13 = vpack.i.bf16 %v4579_v11, %v4577_v19  ;;  %v5291_v34 = vsel %vm672_vm0, %v12396_v58, %v11301_v16  ;;  %v4404_v39 = vrot.slane %v15759_v9, 1  ;;  %v12397_v35 = vld [vmem:[#allocation3 + $0x68] sm:$0xff]  ;;  %v19536_v11 = vld [vmem:[#allocation90_spill] sm:$0xff]  ;;  %v12306_v16 = vld [vmem:[%s19346_s4 + $0x28] sm:$0xff]  }
 0x324   : > { %v4407_v27 = vrot.slane %v15769_v5, 1  ;;  %v5292_v44 = vsel %vm672_vm0, %v12397_v35, %v11302_v57  ;;  %v11326_v19 = vunpack.i.l.bf16 %v19534_v3  ;;  %v11337_v48 = vunpack.i.h.bf16 %v19536_v11  ;;  %9412 = vmatpush3.bf16.msra.mxu1 %v12304_v6 }
 0x325   : > { %v5325_v58 = vsel %vm1851_vm5, %v5293_v32, %v11316_v17  ;;  %v5358_v55 = vsel %vm1884_vm6, %v5326_v22, %v11327_v56  ;;  %9413 = vmatprep.subr.bf16.mxu1 %v12305_v40  ;;  %v15807_v57 = vsel %vm2049_vm11, %v15707_v42, %v11296_v28  ;;  %v15810_v6 = vsel %vm2049_vm11, %v5482_v59, %v11297_v25 }
 0x326   : > { %11804 = vrot.lane.b32.xlu0 %v15609_v61, %s19335_s24  ;;  %3915 = vmatmul.mubr.bf16.gmra.mrb[80].mxu0 %v3267_v18  ;;  %v4405_v61 = vrot.slane %v15767_v49, 1  ;;  %v11312_v18 = vunpack.i.h.bf16 %v19535_v24  ;;  %v5323_v3 = vsel %vm1851_vm5, %v5291_v34, %v11311_v21  ;;  %v15817_v17 = vpack.i.bf16 %v15767_v49, %v15759_v9 }
 0x327   : > { %11809 = vrot.lane.b32.xlu1 %v15753_v62, %s19335_s24  ;;  %v15823_v56 = vsel %vm2049_vm11, %v5479_v8, %v11291_v0  ;;  %v15826_v42 = vsel %vm2049_vm11, %v5480_v23, %v11292_v29  ;;  %v5357_v32 = vsel %vm1884_vm6, %v5325_v58, %v11326_v19  ;;  %v11322_v22 = vunpack.i.h.bf16 %v19537_v26  ;;  %v12308_v8 = vld [vmem:[%s19346_s4 + $0x30] sm:$0xff]  }
 0x328   : > { %v4406_v25 = vsel %vm863_vm3, %v4404_v39, %v4405_v61  ;;  %v4408_v59 = vsel %vm863_vm3, %v4405_v61, %v4407_v27  ;;  %v5324_v28 = vsel %vm1851_vm5, %v5292_v44, %v11312_v18  ;;  %v5390_v24 = vsel %vm1917_vm7, %v5358_v55, %v11337_v48  ;;  %9414 = vmatpush3.bf16.msra.mxu1 %v12306_v16  ;;  %v19539_v0 = vld [vmem:[#allocation20_spill] sm:$0xff]  ;;  %v19541_v44 = vld [vmem:[#allocation21_spill] sm:$0xff] }
 0x329   : > { %v5355_v23 = vsel %vm1884_vm6, %v5323_v3, %v11321_v60  ;;  %v11336_v29 = vunpack.i.l.bf16 %v19536_v11  ;;  %v19538_v39 = vunpack.i.l.bf16 %v19495_v50  ;;  %v15849_v55 = vpack.i.bf16 %v4408_v59, %v4406_v25  ;;  %v19543_v11 = vld [vmem:[#allocation103_spill] sm:$0xff]  ;;  %v12310_v16 = vld [vmem:[%s19346_s4 + $0x38] sm:$0xff]   ;;  %v19548_v25 = vld [vmem:[#allocation106_spill] sm:$0xff] }
 0x32a   : > { %11814 = vrot.lane.b32.xlu0 %v15634_v33, %s19336_s20  ;;  %v12307_v33 = vld [vmem:[%s19346_s4 + $0x70] sm:$0xff]   ;;  %v4580_v26 = vrot.slane %v15759_v9, 2  ;;  %v4581_v60 = vrot.slane %v15767_v49, 2  ;;  %v4583_v34 = vrot.slane %v15769_v5, 2  ;;  %v2562_v61 = vrot.slane %v15222_v20, 1  ;;  %v19542_v49 = vld [vmem:[#allocation91_spill] sm:$0xff] }
 0x32b   : > { %11819 = vrot.lane.b32.xlu1 %v15784_v13, %s19336_s20  ;;  %v15845_v21 = vsel %vm2371_vm13, %v19539_v0, %v19538_v39  ;;  %9415 = vmatprep.subr.bf16.mxu1 %v12307_v33  ;;  %v2563_v27 = vrot.slane %v15224_v46, 1  ;;  %v2565_v40 = vrot.slane %v15235_v31, 1  ;;  %v19540_v35 = vunpack.i.h.bf16 %v19495_v50  ;;  %v19544_v59 = vld [vmem:[#allocation57_spill] sm:$0xff] }
 0x32c   : > { %v5356_v9 = vsel %vm1884_vm6, %v5324_v28, %v11322_v22  ;;  %v11332_v5 = vunpack.i.h.bf16 %v19542_v49  ;;  %v11331_v19 = vunpack.i.l.bf16 %v19542_v49  ;;  %v11376_v48 = vunpack.i.l.bf16 %v19543_v11  ;;  %9416 = vmatpush3.bf16.msra.mxu1 %v12308_v8  ;;  %v19545_v28 = vld [vmem:[#allocation61_spill] sm:$0xff]  ;;  %v19547_v49 = vld [vmem:[#allocation62_spill] sm:$0xff] }
 0x32d   : > { %v15864_v18 = vsel %vm2371_vm13, %v19541_v44, %v19540_v35  ;;  %v5389_v58 = vsel %vm1917_vm7, %v5357_v32, %v11336_v29  ;;  %v4582_v3 = vsel %vm1040_vm2, %v4580_v26, %v4581_v60  ;;  %v4584_v33 = vsel %vm1040_vm2, %v4581_v60, %v4583_v34  ;;  %v19546_v35 = vld [vmem:[#allocation59_spill] sm:$0xff] }
 0x32e   : > { %11824 = vrot.lane.b32.xlu0 %v15723_v38, %s19337_s28  ;;  %v12309_v38 = vld [vmem:[%s19346_s4 + $0x78] sm:$0xff]   ;;  %v11377_v22 = vunpack.i.h.bf16 %v19543_v11  ;;  %v2564_v39 = vsel %vm863_vm3, %v2562_v61, %v2563_v27  ;;  %v5387_v26 = vsel %vm1917_vm7, %v5355_v23, %v11331_v19  ;;  %v5388_v60 = vsel %vm1917_vm7, %v5356_v9, %v11332_v5 }
 0x32f   : > { %11829 = vrot.lane.b32.xlu1 %v15817_v17, %s19337_s28  ;;  %9417 = vmatprep.subr.bf16.mxu1 %v12309_v38  ;;  %v2566_v38 = vsel %vm863_vm3, %v2563_v27, %v2565_v40  ;;  %v5421_v34 = vsel %vm1950_vm8, %v5389_v58, %v11376_v48  ;;  %v11386_v44 = vunpack.i.l.bf16 %v19548_v25  ;;  %v11542_v0 = vunpack.i.h.bf16 %v15650_v15 }
 0x330   : > { %9418 = vmatpush3.bf16.msra.mxu1 %v12310_v16  ;;  %v11541_v61 = vunpack.i.l.bf16 %v15650_v15  ;;  %v15903_v40 = vpack.i.bf16 %v4584_v33, %v4582_v3  ;;  %v19550_v19 = vpack.i.bf16 %v19498_v7, %v19497_v47  ;;  %v11858_v16 = vpack.i.bf16 %v2566_v38, %v2564_v39  ;;  %v19553_v39 = vld [vmem:[#allocation116_spill] sm:$0xff] }
 0x331   : > { %v5422_v58 = vsel %vm1950_vm8, %v5390_v24, %v11377_v22  ;;  %v11382_v38 = vunpack.i.h.bf16 %v19553_v39  ;;  %v19554_v24 = vld [vmem:[#allocation125_spill] sm:$0xff]  ;;  %v19555_v22 = vld [vmem:[#allocation126_spill] sm:$0xff] }
 0x332   : > { %11834 = vrot.lane.b32.xlu0 %v15753_v62, %s19338_s25 }
 0x333   : > { %11839 = vrot.lane.b32.xlu1 %v15849_v55, %s19338_s25 }
 0x334   : > { %v11555_v8 = vpop.permute.xlu0 %11554  ;;  %v9531_v29 = vpop.f32.mrb[32].mxu0 }
 0x335   : > { %v15895_v32 = vpop.permute.xlu1 %11559  ;;  %v9532_v11 = vpop.f32.mrb[33].mxu0  ;;  %v11557_v9 = vunpack.i.h.bf16 %v11555_v8  ;;  %v11556_v5 = vunpack.i.l.bf16 %v11555_v8  ;;  %v5453_v8 = vsel %vm1983_vm9, %v5421_v34, %v11386_v44 }
 0x336   : > { %v15899_v27 = vadd.f32 %v9532_v11, %v9531_v29  ;;  %11844 = vrot.lane.b32.xlu0 %v15784_v13, %s19339_s2  ;;  %v9534_v23 = vpop.f32.mrb[34].mxu0  ;;  %v11387_v29 = vunpack.i.h.bf16 %v19548_v25  ;;  %v19551_v11 = vld [vmem:[#allocation115_spill] sm:$0xff]  ;;  %v3206_v25 = vsel %vm2371_vm13, %v19554_v24, %v11541_v61  ;;  %v11381_v61 = vunpack.i.l.bf16 %v19553_v39  ;;  %v19558_v24 = vld [vmem:[#allocation117_spill] sm:$0xff] }
 0x337   : > { %11849 = vrot.lane.b32.xlu1 %v19550_v19, %s19357_s27  ;;  %v9535_v48 = vpop.f32.mrb[35].mxu0  ;;  %v11372_v50 = vunpack.i.h.bf16 %v19551_v11  ;;  %v11417_v31 = vunpack.i.h.bf16 %v19558_v24  ;;  %v19561_v39 = vpack.i.bf16 %v19500_v14, %v19499_v63  ;;  %v19563_v14 = vld [vmem:[#allocation78_spill] sm:$0xff] }
 0x338   : > { %19549 = vst [vmem:[#allocation37_spill] sm:$0xff] %v15899_v27  ;;  %v15914_v3 = vadd.f32 %v9535_v48, %v9534_v23  ;;  %v11565_v33 = vpop.permute.xlu0 %11564  ;;  %v11371_v27 = vunpack.i.l.bf16 %v19551_v11  ;;  %v3207_v23 = vsel %vm2371_vm13, %v19555_v22, %v11542_v0  ;;  %v19556_v48 = vld [vmem:[#allocation134_spill] sm:$0xff]  ;;  %v11416_v0 = vunpack.i.l.bf16 %v19558_v24 }
 0x339   : > { %v11567_v7 = vunpack.i.h.bf16 %v11565_v33  ;;  %v11566_v19 = vunpack.i.l.bf16 %v11565_v33  ;;  %v11575_v47 = vpop.permute.xlu1 %11574  ;;  %v3212_v11 = vsel %vm2371_vm13, %v19556_v48, %v11556_v5  ;;  %v19557_v33 = vld [vmem:[#allocation141_spill] sm:$0xff]  ;;  %v3271_v46 = vpack.c.bf16 %v3207_v23, %v3206_v25  ;;  %v4277_v24 = vld [vmem:[#allocation3 + $0x190] sm:$0x3] }
 0x33a   : > { %19552 = vst [vmem:[#allocation23_spill] sm:$0xff] %v15914_v3  ;;  %11854 = vrot.lane.b32.xlu0 %v15903_v40, %s19339_s2  ;;  %v3213_v15 = vsel %vm2371_vm13, %v19557_v33, %v11557_v9  ;;  %v5420_v3 = vsel %vm1950_vm8, %v5388_v60, %v11372_v50  ;;  %v19560_v9 = vld [vmem:[#allocation131_spill] sm:$0xff]  ;;  %v11577_v50 = vunpack.i.h.bf16 %v11575_v47  ;;  %v11576_v60 = vunpack.i.l.bf16 %v11575_v47  ;;  %v12398_v48 = vld [vmem:[#allocation3 + $0xb0] sm:$0xff] }
 0x33b   : > { %11859 = vrot.lane.b32.xlu1 %v11858_v16, %s19357_s27  ;;  %v3146_v44 = vsel %vm2371_vm13, %v15232_v30, %v11566_v19  ;;  %v3147_v34 = vsel %vm2371_vm13, %v15260_v12, %v11567_v7  ;;  %v5454_v19 = vsel %vm1983_vm9, %v5422_v58, %v11387_v29  ;;  %v5419_v7 = vsel %vm1950_vm8, %v5387_v26, %v11371_v27  ;;  %v19562_v26 = vld [vmem:[#allocation120_spill] sm:$0xff] }
 0x33c   : > { %v15937_v22 = vpop.permute.xlu0 %11569  ;;  %v15939_v16 = vpack.c.bf16 %v3147_v34, %v3146_v44  ;;  %v11412_v20 = vunpack.i.h.bf16 %v19560_v9  ;;  %v3276_v44 = vpack.c.bf16 %v3213_v15, %v3212_v11  ;;  %v5452_v58 = vsel %vm1983_vm9, %v5420_v3, %v11382_v38  ;;  %v19564_v15 = vld [vmem:[#allocation79_spill] sm:$0xff]  ;;  %v19565_v34 = vld [vmem:[#allocation132_spill] sm:$0xff]  ;;  %v19570_v3 = vld [vmem:[#allocation149_spill] sm:$0xff] }
 0x33d   : > { %v15944_v5 = vpop.permute.xlu1 %11579  ;;  %v11426_v27 = vunpack.i.l.bf16 %v19562_v26  ;;  %v11411_v29 = vunpack.i.l.bf16 %v19560_v9  ;;  %v5451_v47 = vsel %vm1983_vm9, %v5419_v7, %v11381_v61  ;;  %v5485_v25 = vsel %vm2016_vm10, %v5453_v8, %v11416_v0  ;;  %v4276_v61 = vld [vmem:[#allocation3 + $0x188] sm:$0xff]  ;;  %v19566_v9 = vld [vmem:[#allocation92_spill] sm:$0xff] }
 0x33e   : > { %19559 = vst [vmem:[#allocation42_spill] sm:$0xff] %v15939_v16  ;;  %11864 = vrot.lane.b32.xlu0 %v19561_v39, %s19357_s27  ;;  %3922 = vmatprep.mubr.bf16.mxu0 %v15939_v16  ;;  %v15966_v38 = vsel %vm2016_vm10, %v5454_v19, %v11417_v31  ;;  %v11422_v11 = vunpack.i.h.bf16 %v19565_v34  ;;  %v5484_v7 = vsel %vm2016_vm10, %v5452_v58, %v11412_v20  ;;  %v19567_v39 = vld [vmem:[#allocation94_spill] sm:$0xff]  ;;  %v19569_v19 = vld [vmem:[#allocation148_spill] sm:$0xff]  ;;  %v19571_v20 = vld [vmem:[#allocation133_spill] sm:$0xff]  ;;  %v11562_v16 = vunpack.i.h.bf16 %v15895_v32 }
 0x33f   : > { %11869 = vrot.lane.b32.xlu1 %v15753_v62, %s19340_s26  ;;  %3923 = vmatmul.mubr.bf16.gmra.mrb[84].mxu0 %v3271_v46  ;;  %v4275_v46 = vld [vmem:[#allocation3 + $0x180] sm:$0xff]  ;;  %v19568_v31 = vpack.i.bf16 %v19566_v9, %v19567_v39  ;;  %v3209_v63 = vsel %vm2371_vm13, %v19570_v3, %v11577_v50  ;;  %v15986_v8 = vsel %vm2049_vm11, %v5485_v25, %v11426_v27  ;;  %v11457_v58 = vunpack.i.h.bf16 %v19571_v20 }
 0x340   : > { %v15959_v23 = vpop.permute.xlu0 %11584  ;;  %3930 = vmatprep.mubr.bf16.mxu0 %v3276_v44  ;;  %v3208_v44 = vsel %vm2371_vm13, %v19569_v19, %v11576_v60  ;;  %v5483_v0 = vsel %vm2016_vm10, %v5451_v47, %v11411_v29  ;;  %v4780_v39 = vrot.slane %v4275_v46, 1  ;;  %v4783_v60 = vrot.slane %v4277_v24, 1  ;;  %v19572_v47 = vld [vmem:[#allocation152_spill] sm:$0xff] }
 0x341   : > { %v15969_v62 = vpop.permute.xlu1 %11589  ;;  %v11421_v19 = vunpack.i.l.bf16 %v19565_v34  ;;  %v15996_v50 = vsel %vm2049_vm11, %v5484_v7, %v11422_v11  ;;  %v11456_v27 = vunpack.i.l.bf16 %v19571_v20  ;;  %v3275_v29 = vpack.c.bf16 %v3209_v63, %v3208_v44  ;;  %v19573_v44 = vld [vmem:[#allocation139_spill] sm:$0xff] }
 0x342   : > { %11874 = vrot.lane.b32.xlu0 %v19568_v31, %s19357_s27  ;;  %v4781_v31 = vrot.slane %v4276_v61, 1  ;;  %v11451_v3 = vunpack.i.l.bf16 %v19572_v47  ;;  %v11561_v33 = vunpack.i.l.bf16 %v15895_v32  ;;  %v16008_v34 = vpack.i.bf16 %v4276_v61, %v4275_v46 }
 0x343   : > { %11879 = vrot.lane.b32.xlu1 %v15849_v55, %s19340_s26  ;;  %v4881_v11 = vrot.slane %v4275_v46, 2  ;;  %v4882_v7 = vrot.slane %v4276_v61, 2  ;;  %v4884_v20 = vrot.slane %v4277_v24, 2  ;;  %v5298_v63 = vsel %vm672_vm0, %v12398_v48, %v11457_v58  ;;  %v19575_v48 = vld [vmem:[#allocation153_spill] sm:$0xff]  ;;  %s19308_s26 = sand.u32 1, %s12565_s30  }
 0x344   : > { %v15992_v9 = vpop.permute.xlu0 %11594  ;;  %v11466_v12 = vunpack.i.l.bf16 %v19573_v44  ;;  %v19574_v32 = vpack.c.bf16 %v15864_v18, %v15845_v21  ;;  %v5297_v46 = vsel %vm672_vm0, %v12399_v54, %v11456_v27  ;;  %v11467_v61 = vunpack.i.h.bf16 %v19573_v44  ;;  %v19576_v21 = vld [vmem:[#allocation144_spill] sm:$0xff]  ;;  %v4278_v44 = vld [vmem:[#allocation3 + $0x198] sm:$0xff] }
 0x345   : > { %v15999_v25 = vpop.permute.xlu1 %11599  ;;  %v11452_v24 = vunpack.i.h.bf16 %v19572_v47  ;;  %v11461_v58 = vunpack.i.l.bf16 %v19575_v48  ;;  %v5295_v51 = vsel %vm672_vm0, %v12400_v45, %v11451_v3  ;;  %v3210_v18 = vsel %vm2371_vm13, %v19576_v21, %v11561_v33  ;;  %v16041_v47 = vld [vmem:[#allocation3 + $0x1a0] sm:$0xff]  ;;  %v19578_v3 = vld [vmem:[#allocation154_spill] sm:$0xff] }
 0x346   : > { %11884 = vrot.lane.b32.xlu0 %v15784_v13, %s19333_s29  ;;  %v4782_v13 = vsel %vm863_vm3, %v4780_v39, %v4781_v31  ;;  %v19577_v39 = vld [vmem:[#allocation145_spill] sm:$0xff]  ;;  %v4883_v27 = vsel %vm1040_vm2, %v4881_v11, %v4882_v7  ;;  %v4885_v45 = vsel %vm1040_vm2, %v4882_v7, %v4884_v20  ;;  %v11462_v33 = vunpack.i.h.bf16 %v19575_v48 }
 0x347   : > { %11889 = vrot.lane.b32.xlu1 %v15903_v40, %s19333_s29  ;;  %3931 = vmatmul.mubr.bf16.gmra.mrb[88].mxu0 %v3275_v29  ;;  %v4784_v29 = vsel %vm863_vm3, %v4781_v31, %v4783_v60  ;;  %v3211_v54 = vsel %vm2371_vm13, %v19577_v39, %v11562_v16  ;;  %v16033_v31 = vsel %vm2049_vm11, %v5483_v0, %v11421_v19  ;;  %v11497_v16 = vunpack.i.h.bf16 %v19578_v3 }
 0x348   : > { %v16012_v30 = vpop.permute.xlu0 %11604  ;;  %3938 = vmatprep.mubr.bf16.mxu0 %v19574_v32  ;;  %v16037_v60 = vpack.i.bf16 %v4784_v29, %v4782_v13  ;;  %v11496_v0 = vunpack.i.l.bf16 %v19578_v3  ;;  %v5330_v32 = vsel %vm1851_vm5, %v5298_v63, %v11467_v61  ;;  %v12401_v13 = vld [vmem:[#allocation3 + $0x98] sm:$0xff]  ;;  %v5327_v7 = vsel %vm1851_vm5, %v5295_v51, %v11461_v58  ;;  %v19580_v3 = vld [vmem:[#allocation156_spill] sm:$0xff] }
 0x349   : > { %v16023_v36 = vpop.permute.xlu1 %11609  ;;  %v5296_v11 = vsel %vm672_vm0, %v12401_v13, %v11452_v24  ;;  %v3279_v29 = vpack.c.bf16 %v3211_v54, %v3210_v18  ;;  %v16057_v21 = vpack.i.bf16 %v4885_v45, %v4883_v27  ;;  %v5082_v39 = vrot.slane %v16041_v47, 1 }
 0x34a   : > { %11894 = vrot.lane.b32.xlu0 %v15817_v17, %s19334_s23  ;;  %v5329_v17 = vsel %vm1851_vm5, %v5297_v46, %v11466_v12  ;;  %v4280_v12 = vld [vmem:[#allocation3 + $0x1a8] sm:$0x3]  ;;  %v19579_v46 = vld [vmem:[#allocation30_spill] sm:$0xff]  ;;  %v11507_v63 = vunpack.i.h.bf16 %v19580_v3  ;;  %v11506_v61 = vunpack.i.l.bf16 %v19580_v3  ;;  %v5081_v51 = vrot.slane %v4278_v44, 1 }
 0x34b   : > { %11899 = vrot.lane.b32.xlu1 %v16008_v34, %s19334_s23  ;;  %v11491_v48 = vunpack.i.l.bf16 %v19579_v46  ;;  %v11492_v24 = vunpack.i.h.bf16 %v19579_v46  ;;  %v5328_v58 = vsel %vm1851_vm5, %v5296_v11, %v11462_v33  ;;  %v5361_v18 = vsel %vm1884_vm6, %v5329_v17, %v11496_v0  ;;  %s17698_s23 = sshll.u32 %s19308_s26, 8 }
 0x34c   : > { %v16047_v19 = vpop.permute.xlu0 %11614  ;;  %v19581_v27 = vpack.c.bf16 %v15629_v37, %v15626_v10  ;;  %v5084_v45 = vrot.slane %v4280_v12, 1  ;;  %v19582_v13 = vunpack.i.h.bf16 %v19562_v26  ;;  %v5183_v17 = vrot.slane %v16041_v47, 2  ;;  %s18192_s0 = scalar_lea.vmem [#allocation7], %s17698_s23 }
 0x34d   : > { %v16052_v20 = vpop.permute.xlu1 %11619  ;;  %v5182_v33 = vrot.slane %v4278_v44, 2  ;;  %v5359_v0 = vsel %vm1884_vm6, %v5327_v7, %v11491_v48  ;;  %v11928_v37 = vpack.i.bf16 %v16041_v47, %v4278_v44  ;;  %v5543_v26 = vpack.c.bf16 %v15996_v50, %v16033_v31  ;;  %v19583_v48 = vld [vmem:[#allocation33_spill] sm:$0xff]  ;;  %v12403_v31 = vld [vmem:[#allocation3 + $0xc0] sm:$0xff] }
 0x34e   : > { %11904 = vrot.lane.b32.xlu0 %v15849_v55, %s19335_s24  ;;  %v5362_v55 = vsel %vm1884_vm6, %v5330_v32, %v11497_v16  ;;  %v5185_v16 = vrot.slane %v4280_v12, 2  ;;  %v5360_v11 = vsel %vm1884_vm6, %v5328_v58, %v11492_v24  ;;  %v5083_v7 = vsel %vm863_vm3, %v5081_v51, %v5082_v39 }
 0x34f   : > { %11909 = vrot.lane.b32.xlu1 %v16037_v60, %s19335_s24  ;;  %3939 = vmatmul.mubr.bf16.gmra.mrb[92].mxu0 %v3279_v29  ;;  %v16078_v29 = vsel %vm2049_vm11, %v15966_v38, %v19582_v13  ;;  %v5393_v38 = vsel %vm1917_vm7, %v5361_v18, %v11506_v61  ;;  %v5394_v32 = vsel %vm1917_vm7, %v5362_v55, %v11507_v63  ;;  %v11501_v3 = vunpack.i.l.bf16 %v19583_v48  ;;  %s17719_s24 = scalar_lea.vmem [#allocation5], %s17698_s23 }
 0x350   : > { %v16068_v54 = vpop.permute.xlu0 %11624  ;;  %10093 = vmatprep.mubr.msk.bf16.mxu0 %vm2125_vm12, %v19581_v27  ;;  %v5085_v61 = vsel %vm863_vm3, %v5082_v39, %v5084_v45  ;;  %v11571_v63 = vunpack.i.l.bf16 %v15937_v22  ;;  %v16106_v18 = vsel %vm1040_vm2, %v5182_v33, %v5183_v17  ;;  %v16109_v51 = vsel %vm1040_vm2, %v5183_v17, %v5185_v16 }
 0x351   : > { %v16080_v46 = vpop.permute.xlu1 %11629  ;;  %v11572_v55 = vunpack.i.h.bf16 %v15937_v22  ;;  %v11582_v13 = vunpack.i.h.bf16 %v15944_v5  ;;  %v11587_v39 = vunpack.i.h.bf16 %v15959_v23  ;;  %v11586_v45 = vunpack.i.l.bf16 %v15959_v23 }
 0x352   : > { %11914 = vrot.lane.b32.xlu0 %v15903_v40, %s19336_s20  ;;  %v9537_v10 = vpop.f32.mrb[36].mxu0  ;;  %v11502_v40 = vunpack.i.h.bf16 %v19583_v48  ;;  %v19584_v17 = vpack.c.bf16 %v15576_v4, %v15573_v1  ;;  %v11938_v22 = vpack.i.bf16 %v5085_v61, %v5083_v7  ;;  %v5391_v33 = vsel %vm1917_vm7, %v5359_v0, %v11501_v3 }
 0x353   : > { %11919 = vrot.lane.b32.xlu1 %v16057_v21, %s19336_s20  ;;  %v9538_v12 = vpop.f32.mrb[37].mxu0  ;;  %v11596_v16 = vunpack.i.l.bf16 %v15992_v9  ;;  %v11953_v23 = vpack.i.bf16 %v16109_v51, %v16106_v18  ;;  %v5423_v1 = vsel %vm1950_vm8, %v5391_v33, %v11571_v63  ;;  %v11591_v4 = vunpack.i.l.bf16 %v15969_v62  ;;  %s8992_s20 = sshll.u32 %s18192_s0, 4  ;;  %s18700_s20 = int_to_ptr.vmem [resolvable:$true] %s8992_s20 }
 0x354   : > { %v16097_v47 = vadd.f32 %v9538_v12, %v9537_v10  ;;  %v16099_v44 = vpop.permute.xlu0 %11634  ;;  %v9540_v27 = vpop.f32.mrb[38].mxu0  ;;  %v11581_v10 = vunpack.i.l.bf16 %v15944_v5  ;;  %v5392_v5 = vsel %vm1917_vm7, %v5360_v11, %v11502_v40  ;;  %v11597_v0 = vunpack.i.h.bf16 %v15992_v9  ;;  %s12451_s3 = scalar_lea.vmem %s18700_s20, 4096 }
 0x355   : > { %v16103_v24 = vpop.permute.xlu1 %11639  ;;  %v9541_v58 = vpop.f32.mrb[39].mxu0  ;;  %v5424_v7 = vsel %vm1950_vm8, %v5392_v5, %v11572_v55  ;;  %v11592_v61 = vunpack.i.h.bf16 %v15969_v62  ;;  %v11601_v63 = vunpack.i.l.bf16 %v15999_v25  ;;  %p12452_p11 = scmp.ne.s32.totalorder %s18700_s20, %s12451_s3 }
 0x356   : > { %v16114_v12 = vadd.f32 %v9541_v58, %v9540_v27  ;;  %11924 = vrot.lane.b32.xlu0 %v16008_v34, %s19337_s28  ;;  %v19585_v34 = vpack.c.bf16 %v15826_v42, %v15823_v56  ;;  %v5425_v40 = vsel %vm1950_vm8, %v5393_v38, %v11581_v10  ;;  %v5426_v56 = vsel %vm1950_vm8, %v5394_v32, %v11582_v13 }
 0x357   : > { %11929 = vrot.lane.b32.xlu1 %v11928_v37, %s19337_s28  ;;  %10094 = vmatmul.mubr.msk.bf16.vlgmr.msra.gmra.mrb[96].mxu0 %vm2125_vm12, %v19584_v17  ;;  %v11606_v37 = vunpack.i.l.bf16 %v16012_v30  ;;  %v11607_v42 = vunpack.i.h.bf16 %v16012_v30  ;;  %v5455_v27 = vsel %vm1983_vm9, %v5423_v1, %v11586_v45  ;;  %v5456_v9 = vsel %vm1983_vm9, %v5424_v7, %v11587_v39  ;;  %s18703_s28 = scalar_lea.sflag [#allocation8], %s8957_s17  ;;  %p12453_p12 = pnand %p12452_p11, %p12731_p5 }
 0x358   : > { %v16128_v48 = vpop.permute.xlu0 %11644  ;;  %10097 = vmatprep.mubr.msk.bf16.mxu0 %vm2125_vm12, %v19585_v34  ;;  %v5487_v38 = vsel %vm2016_vm10, %v5455_v27, %v11596_v16  ;;  %v11602_v32 = vunpack.i.h.bf16 %v15999_v25  ;;  %v11611_v30 = vunpack.i.l.bf16 %v16023_v36  ;;  %v5457_v55 = vsel %vm1983_vm9, %v5425_v40, %v11591_v4  ;;  %v19589_v4 = vld [vmem:[#allocation98_spill] sm:$0xff] }
 0x359   : > { %v16140_v11 = vpop.permute.xlu1 %11649  ;;  %v5488_v62 = vsel %vm2016_vm10, %v5456_v9, %v11597_v0  ;;  %v16163_v13 = vsel %vm2049_vm11, %v5487_v38, %v11606_v37  ;;  %v11612_v10 = vunpack.i.h.bf16 %v16023_v36  ;;  %v11617_v17 = vunpack.i.h.bf16 %v16047_v19  ;;  %p12454_p13 = pneg %p12453_p12 }
 0x35a   : > { %11934 = vrot.lane.b32.xlu0 %v16037_v60, %s19338_s25  ;;  %v9543_v3 = vpop.f32.mrb[40].mxu0  ;;  %v16169_v25 = vsel %vm2049_vm11, %v5488_v62, %v11607_v42  ;;  %v5458_v5 = vsel %vm1983_vm9, %v5426_v56, %v11592_v61  ;;  %v5489_v16 = vsel %vm2016_vm10, %v5457_v55, %v11601_v63  ;;  %v11622_v36 = vunpack.i.h.bf16 %v16052_v20  ;;  %v12402_v42 = vld [vmem:[#allocation3 + $0xc8] sm:$0xff] }
 0x35b   : > { %11939 = vrot.lane.b32.xlu1 %v11938_v22, %s19338_s25  ;;  %v9544_v58 = vpop.f32.mrb[41].mxu0  ;;  %v11616_v22 = vunpack.i.l.bf16 %v16047_v19  ;;  %v19586_v34 = vpack.i.bf16 %v19520_v41, %v14516_v52  ;;  %v19587_v1 = vpack.c.bf16 %v15810_v6, %v15807_v57  ;;  %v19588_v19 = vld [vmem:[#allocation96_spill] sm:$0xff]  ;;  %v16192_v37 = vsel %vm2049_vm11, %v5489_v16, %v11611_v30 }
 0x35c   : > { %v16156_v18 = vadd.f32 %v9544_v58, %v9543_v3  ;;  %v16158_v60 = vpop.permute.xlu0 %11654  ;;  %v9546_v51 = vpop.f32.mrb[42].mxu0  ;;  %v11983_v0 = vpack.i.bf16 %v19589_v4, %v19588_v19  ;;  %v11621_v7 = vunpack.i.l.bf16 %v16052_v20  ;;  %v5544_v52 = vpack.c.bf16 %v16078_v29, %v15986_v8  ;;  %v12404_v3 = vld [vmem:[#allocation3 + $0xe0] sm:$0xff]  ;;  %v12405_v58 = vld [vmem:[#allocation3 + $0xd8] sm:$0xff]  ;;  %v19599_v19 = vld [vmem:[#allocation105_spill] sm:$0xff] }
 0x35d   : > { %v16166_v39 = vpop.permute.xlu1 %11659  ;;  %v9547_v45 = vpop.f32.mrb[43].mxu0  ;;  %v11627_v57 = vunpack.i.h.bf16 %v16068_v54  ;;  %v11626_v6 = vunpack.i.l.bf16 %v16068_v54  ;;  %v5545_v20 = vpack.c.bf16 %v16169_v25, %v16163_v13  ;;  %v5300_v50 = vsel %vm672_vm0, %v12402_v42, %v11617_v17  ;;  %v19600_v4 = vld [vmem:[#allocation110_spill] sm:$0xff] }
 0x35e   : > { %v16173_v33 = vadd.f32 %v9547_v45, %v9546_v51  ;;  %11944 = vrot.lane.b32.xlu0 %v16057_v21, %s19339_s2  ;;  %v5490_v21 = vsel %vm2016_vm10, %v5458_v5, %v11602_v32  ;;  %v11637_v8 = vunpack.i.h.bf16 %v16099_v44  ;;  %v11636_v29 = vunpack.i.l.bf16 %v16099_v44 }
 0x35f   : > { %11949 = vrot.lane.b32.xlu1 %v19586_v34, %s19357_s27  ;;  %10098 = vmatmul.mubr.msk.bf16.gmra.mrb[100].mxu0 %vm2125_vm12, %v19587_v1  ;;  %v16202_v41 = vsel %vm2049_vm11, %v5490_v21, %v11612_v10  ;;  %v5302_v54 = vsel %vm672_vm0, %v12404_v3, %v11622_v36  ;;  %v11631_v27 = vunpack.i.l.bf16 %v16080_v46  ;;  %v11647_v9 = vunpack.i.h.bf16 %v16128_v48 }
 0x360   : > { %v11665_v40 = vpop.permute.xlu0 %11664  ;;  %10101 = vmatprep.mubr.msk.bf16.mxu0 %vm2125_vm12, %v5543_v26  ;;  %v5299_v26 = vsel %vm672_vm0, %v12403_v31, %v11616_v22  ;;  %v11646_v61 = vunpack.i.l.bf16 %v16128_v48  ;;  %v19590_v63 = vpack.i.bf16 %v19522_v53, %v19521_v43  ;;  %v5301_v38 = vsel %vm672_vm0, %v12405_v58, %v11621_v7 }
 0x361   : > { %v16206_v56 = vpop.permute.xlu1 %11669  ;;  %v11632_v44 = vunpack.i.h.bf16 %v16080_v46  ;;  %v11656_v32 = vunpack.i.l.bf16 %v16158_v60  ;;  %v5331_v51 = vsel %vm1851_vm5, %v5299_v26, %v11626_v6  ;;  %v5332_v55 = vsel %vm1851_vm5, %v5300_v50, %v11627_v57 }
 0x362   : > { %11954 = vrot.lane.b32.xlu0 %v11953_v23, %s19339_s2  ;;  %v11657_v23 = vunpack.i.h.bf16 %v16158_v60  ;;  %v11667_v48 = vunpack.i.h.bf16 %v11665_v40  ;;  %v11666_v62 = vunpack.i.l.bf16 %v11665_v40  ;;  %v5363_v43 = vsel %vm1884_vm6, %v5331_v51, %v11636_v29  ;;  %s19900_s2 = sld [smem:[#allocation165_spill]] }
 0x363   : > { %11959 = vrot.lane.b32.xlu1 %v19590_v63, %s19357_s27  ;;  %v5364_v53 = vsel %vm1884_vm6, %v5332_v55, %v11637_v8  ;;  %v19591_v46 = vpack.i.bf16 %v19547_v49, %v19546_v35  ;;  %v5333_v60 = vsel %vm1851_vm5, %v5301_v38, %v11631_v27  ;;  %v11642_v25 = vunpack.i.h.bf16 %v16103_v24 }
 0x364   : > { %v11675_v30 = vpop.permute.xlu0 %11674  ;;  %v5395_v17 = vsel %vm1917_vm7, %v5363_v43, %v11646_v61  ;;  %v5396_v22 = vsel %vm1917_vm7, %v5364_v53, %v11647_v9  ;;  %v19592_v5 = vpack.i.bf16 %v19545_v28, %v19544_v59  ;;  %v11641_v16 = vunpack.i.l.bf16 %v16103_v24  ;;  %v19602_v43 = vld [vmem:[#allocation108_spill] sm:$0xff] }
 0x365   : > { %v11680_v13 = vpop.permute.xlu1 %11679  ;;  %v11677_v10 = vunpack.i.h.bf16 %v11675_v30  ;;  %v11676_v45 = vunpack.i.l.bf16 %v11675_v30  ;;  %v11651_v35 = vunpack.i.l.bf16 %v16140_v11  ;;  %v5427_v49 = vsel %vm1950_vm8, %v5395_v17, %v11656_v32 }
 0x366   : > { %11964 = vrot.lane.b32.xlu0 %v19591_v46, %s19357_s27  ;;  %v5428_v36 = vsel %vm1950_vm8, %v5396_v22, %v11657_v23  ;;  %v5459_v1 = vsel %vm1983_vm9, %v5427_v49, %v11666_v62  ;;  %v5334_v40 = vsel %vm1851_vm5, %v5302_v54, %v11632_v44  ;;  %v11652_v24 = vunpack.i.h.bf16 %v16140_v11  ;;  %v19594_v11 = vld [vmem:[#allocation77_spill] sm:$0xff] }
 0x367   : > { %11969 = vrot.lane.b32.xlu1 %v19592_v5, %s19357_s27  ;;  %10102 = vmatmul.mubr.msk.bf16.gmra.mrb[104].mxu0 %vm2125_vm12, %v5544_v52  ;;  %v5460_v21 = vsel %vm1983_vm9, %v5428_v36, %v11667_v48  ;;  %v5491_v52 = vsel %vm2016_vm10, %v5459_v1, %v11676_v45  ;;  %v19593_v6 = vpack.i.bf16 %v19564_v15, %v19563_v14  ;;  %v11661_v42 = vunpack.i.l.bf16 %v16166_v39  ;;  %v19597_v44 = vld [vmem:[#allocation93_spill] sm:$0xff]  ;;  %v19604_v5 = vld [vmem:[#allocation119_spill] sm:$0xff]  ;;  %v19607_v1 = vld [vmem:[#allocation122_spill] sm:$0xff] }
 0x368   : > { %v11685_v34 = vpop.permute.xlu0 %11684  ;;  %10105 = vmatprep.mubr.msk.bf16.mxu0 %vm2125_vm12, %v5545_v20  ;;  %v5492_v57 = vsel %vm2016_vm10, %v5460_v21, %v11677_v10  ;;  %v11662_v20 = vunpack.i.h.bf16 %v16166_v39  ;;  %v19595_v26 = vpack.i.bf16 %v14746_v2, %v19594_v11  ;;  %v5365_v8 = vsel %vm1884_vm6, %v5333_v60, %v11641_v16  ;;  %v19605_v16 = vld [vmem:[#allocation124_spill] sm:$0xff]  ;;  %s18696_s25 = scalar_lea.hbm %s19900_s2, %s18688_s21 }
 0x369   : > { %v11687_v7 = vunpack.i.h.bf16 %v11685_v34  ;;  %v11686_v59 = vunpack.i.l.bf16 %v11685_v34  ;;  %v11690_v28 = vpop.permute.xlu1 %11689  ;;  %v11672_v29 = vunpack.i.h.bf16 %v16206_v56  ;;  %v11671_v14 = vunpack.i.l.bf16 %v16206_v56  ;;  %v19606_v34 = vld [vmem:[#allocation118_spill] sm:$0xff] }
 0x36a   : > { %11974 = vrot.lane.b32.xlu0 %v19593_v6, %s19357_s27  ;;  %v5546_v39 = vpack.c.bf16 %v16202_v41, %v16192_v37  ;;  %v5366_v3 = vsel %vm1884_vm6, %v5334_v40, %v11642_v25  ;;  %v5397_v54 = vsel %vm1917_vm7, %v5365_v8, %v11651_v35  ;;  %v11682_v27 = vunpack.i.h.bf16 %v11680_v13  ;;  %v19596_v41 = vld [vmem:[#allocation97_spill] sm:$0xff] }
 0x36b   : > { %v5523_v50 = vsel %vm2049_vm11, %v5491_v52, %v11686_v59  ;;  %v5524_v31 = vsel %vm2049_vm11, %v5492_v57, %v11687_v7  ;;  %11979 = vrot.lane.b32.xlu1 %v19595_v26, %s19357_s27  ;;  %v11681_v9 = vunpack.i.l.bf16 %v11680_v13  ;;  %v5398_v2 = vsel %vm1917_vm7, %v5366_v3, %v11652_v24  ;;  %v19601_v13 = vld [vmem:[#allocation104_spill] sm:$0xff]  ;;  %v19609_v40 = vld [vmem:[#allocation137_spill] sm:$0xff]  ;;  %v19610_v24 = vld [vmem:[#allocation143_spill] sm:$0xff] }
 0x36c   : > { %v16270_v15 = vpop.permute.xlu0 %11694  ;;  %v11692_v63 = vunpack.i.h.bf16 %v11690_v28  ;;  %v11691_v58 = vunpack.i.l.bf16 %v11690_v28  ;;  %v5547_v56 = vpack.c.bf16 %v5524_v31, %v5523_v50  ;;  %v5429_v38 = vsel %vm1950_vm8, %v5397_v54, %v11661_v42  ;;  %v19611_v42 = vld [vmem:[#allocation134_spill] sm:$0xff]  ;;  %v19612_v50 = vld [vmem:[#allocation141_spill] sm:$0xff] }
 0x36d   : > { %v11700_v61 = vpop.permute.xlu1 %11699  ;;  %v5430_v37 = vsel %vm1950_vm8, %v5398_v2, %v11662_v20  ;;  %v19598_v23 = vpack.i.bf16 %v19596_v41, %v19597_v44  ;;  %v5461_v32 = vsel %vm1983_vm9, %v5429_v38, %v11671_v14  ;;  %v11998_v53 = vpack.i.bf16 %v19602_v43, %v19601_v13  ;;  %v12407_v2 = vld [vmem:[#allocation3 + $0x108] sm:$0xff] }
 0x36e   : > { %11984 = vrot.lane.b32.xlu0 %v11983_v0, %s19357_s27  ;;  %v5462_v30 = vsel %vm1983_vm9, %v5430_v37, %v11672_v29  ;;  %v11993_v0 = vpack.i.bf16 %v19600_v4, %v19599_v19  ;;  %v5493_v55 = vsel %vm2016_vm10, %v5461_v32, %v11681_v9  ;;  %v12003_v35 = vpack.i.bf16 %v19605_v16, %v19604_v5  ;;  %v12406_v9 = vld [vmem:[#allocation3 + $0x110] sm:$0xff] }
 0x36f   : > { %11989 = vrot.lane.b32.xlu1 %v19598_v23, %s19357_s27  ;;  %10106 = vmatmul.mubr.msk.bf16.gmra.mrb[108].mxu0 %vm2125_vm12, %v5546_v39  ;;  %v5494_v48 = vsel %vm2016_vm10, %v5462_v30, %v11682_v27  ;;  %v5525_v10 = vsel %vm2049_vm11, %v5493_v55, %v11691_v58  ;;  %v12008_v21 = vpack.i.bf16 %v19607_v1, %v19606_v34  ;;  %v11702_v57 = vunpack.i.h.bf16 %v11700_v61  ;;  %v12408_v30 = vld [vmem:[#allocation3 + $0xf8] sm:$0xff]  ;;  %v12409_v4 = vld [vmem:[#allocation3 + $0xf0] sm:$0xff] }
 0x370   : > { %v16290_v51 = vpop.permute.xlu0 %11704  ;;  %10109 = vmatprep.mubr.msk.bf16.mxu0 %vm2125_vm12, %v5547_v56  ;;  %v5526_v45 = vsel %vm2049_vm11, %v5494_v48, %v11692_v63  ;;  %v12013_v52 = vpack.i.bf16 %v19610_v24, %v19609_v40  ;;  %v11701_v6 = vunpack.i.l.bf16 %v11700_v61  ;;  %v12018_v31 = vpack.i.bf16 %v19612_v50, %v19611_v42 }
 0x371   : > { %v11710_v62 = vpop.permute.xlu1 %11709  ;;  %v5548_v7 = vpack.c.bf16 %v5526_v45, %v5525_v10  ;;  %v11697_v26 = vunpack.i.h.bf16 %v16270_v15  ;;  %v11696_v29 = vunpack.i.l.bf16 %v16270_v15  ;;  %v5306_v61 = vsel %vm672_vm0, %v12406_v9, %v11702_v57 }
 0x372   : > { %11994 = vrot.lane.b32.xlu0 %v11993_v0, %s19357_s27  ;;  %v9549_v46 = vpop.f32.mrb[44].mxu0  ;;  %v11712_v14 = vunpack.i.h.bf16 %v11710_v62  ;;  %v11711_v39 = vunpack.i.l.bf16 %v11710_v62  ;;  %v5305_v63 = vsel %vm672_vm0, %v12407_v2, %v11701_v6  ;;  %v11707_v58 = vunpack.i.h.bf16 %v16290_v51 }
 0x373   : > { %11999 = vrot.lane.b32.xlu1 %v11998_v53, %s19357_s27  ;;  %v9550_v60 = vpop.f32.mrb[45].mxu0  ;;  %v11706_v56 = vunpack.i.l.bf16 %v16290_v51  ;;  %v5304_v19 = vsel %vm672_vm0, %v12408_v30, %v11697_v26  ;;  %v5303_v0 = vsel %vm672_vm0, %v12409_v4, %v11696_v29 }
 0x374   : > { %v16303_v25 = vadd.f32 %v9550_v60, %v9549_v46  ;;  %v11715_v17 = vpop.permute.xlu0 %11714  ;;  %v9552_v22 = vpop.f32.mrb[46].mxu0  ;;  %v5337_v55 = vsel %vm1851_vm5, %v5305_v63, %v11711_v39  ;;  %v5338_v48 = vsel %vm1851_vm5, %v5306_v61, %v11712_v14  ;;  %v5336_v13 = vsel %vm1851_vm5, %v5304_v19, %v11707_v58 }
 0x375   : > { %v11720_v49 = vpop.permute.xlu1 %11719  ;;  %v9553_v36 = vpop.f32.mrb[47].mxu0  ;;  %v11717_v41 = vunpack.i.h.bf16 %v11715_v17  ;;  %v11716_v15 = vunpack.i.l.bf16 %v11715_v17  ;;  %v5335_v51 = vsel %vm1851_vm5, %v5303_v0, %v11706_v56 }
 0x376   : > { %19603 = vst [vmem:[#allocation24_spill] sm:$0xff] %v16303_v25  ;;  %v16309_v59 = vadd.f32 %v9553_v36, %v9552_v22  ;;  %12004 = vrot.lane.b32.xlu0 %v12003_v35, %s19357_s27  ;;  %v11722_v23 = vunpack.i.h.bf16 %v11720_v49  ;;  %v11721_v32 = vunpack.i.l.bf16 %v11720_v49 }
 0x377   : > { %12009 = vrot.lane.b32.xlu1 %v12008_v21, %s19357_s27  ;;  %10110 = vmatmul.mubr.msk.bf16.gmra.mrb[112].mxu0 %vm2125_vm12, %v5548_v7  ;;  %v5367_v45 = vsel %vm1884_vm6, %v5335_v51, %v11716_v15  ;;  %v5368_v46 = vsel %vm1884_vm6, %v5336_v13, %v11717_v41 }
 0x378   : > { %19608 = vst [vmem:[#allocation26_spill] sm:$0xff] %v16309_v59  ;;  %v11725_v28 = vpop.permute.xlu0 %11724  ;;  %v5369_v22 = vsel %vm1884_vm6, %v5337_v55, %v11721_v32  ;;  %v5370_v5 = vsel %vm1884_vm6, %v5338_v48, %v11722_v23 }
 0x379   : > { %v11730_v20 = vpop.permute.xlu1 %11729  ;;  %v11727_v43 = vunpack.i.h.bf16 %v11725_v28  ;;  %v11726_v53 = vunpack.i.l.bf16 %v11725_v28 }
 0x37a   : > { %12014 = vrot.lane.b32.xlu0 %v12013_v52, %s19357_s27  ;;  %v9555_v11 = vpop.f32.mrb[48].mxu0  ;;  %v11732_v60 = vunpack.i.h.bf16 %v11730_v20  ;;  %v11731_v17 = vunpack.i.l.bf16 %v11730_v20 }
 0x37b   : > { %12019 = vrot.lane.b32.xlu1 %v12018_v31, %s19357_s27  ;;  %v9556_v8 = vpop.f32.mrb[49].mxu0  ;;  %v5399_v7 = vsel %vm1917_vm7, %v5367_v45, %v11726_v53  ;;  %v5400_v28 = vsel %vm1917_vm7, %v5368_v46, %v11727_v43 }
 0x37c   : > { %v16322_v3 = vadd.f32 %v9556_v8, %v9555_v11  ;;  %v11735_v54 = vpop.permute.xlu0 %11734  ;;  %v9558_v27 = vpop.f32.mrb[50].mxu0  ;;  %v5401_v57 = vsel %vm1917_vm7, %v5369_v22, %v11731_v17  ;;  %v5402_v6 = vsel %vm1917_vm7, %v5370_v5, %v11732_v60 }
 0x37d   : > { %v11740_v38 = vpop.permute.xlu1 %11739  ;;  %v9559_v37 = vpop.f32.mrb[51].mxu0  ;;  %v11737_v16 = vunpack.i.h.bf16 %v11735_v54  ;;  %v11736_v35 = vunpack.i.l.bf16 %v11735_v54 }
 0x37e   : > { %19613 = vst [vmem:[#allocation39_spill] sm:$0xff] %v16322_v3  ;;  %v16328_v44 = vadd.f32 %v9559_v37, %v9558_v27  ;;  %v11742_v49 = vunpack.i.h.bf16 %v11740_v38  ;;  %v11741_v36 = vunpack.i.l.bf16 %v11740_v38  ;;  %v16353_v27 = vld [vmem:[%s19346_s4 + $0x100] sm:$0xff]  }
 0x37f   : > { %v5431_v50 = vsel %vm1950_vm8, %v5399_v7, %v11736_v35  ;;  %v5432_v31 = vsel %vm1950_vm8, %v5400_v28, %v11737_v16  ;;  %10047 = vmatprep.subr.bf16.mxu1 %v16353_v27  ;;  %v19617_v35 = vld [vmem:[#allocation135_spill] sm:$0xff] }
 0x380   : > { %19614 = vst [vmem:[#allocation43_spill] sm:$0xff] %v16328_v44  ;;  %v11745_v62 = vpop.permute.xlu0 %11744  ;;  %v5433_v8 = vsel %vm1950_vm8, %v5401_v57, %v11741_v36  ;;  %v5434_v29 = vsel %vm1950_vm8, %v5402_v6, %v11742_v49  ;;  %v2738_v49 = vrot.slane %v19617_v35, 2  ;;  %v19618_v36 = vld [vmem:[#allocation136_spill] sm:$0xff] }
 0x381   : > { %v11750_v10 = vpop.permute.xlu1 %11749  ;;  %v11747_v34 = vunpack.i.h.bf16 %v11745_v62  ;;  %v11746_v1 = vunpack.i.l.bf16 %v11745_v62 }
 0x382   : > { %v11752_v40 = vunpack.i.h.bf16 %v11750_v10  ;;  %v11751_v24 = vunpack.i.l.bf16 %v11750_v10 }
 0x383   : > { %v5463_v14 = vsel %vm1983_vm9, %v5431_v50, %v11746_v1  ;;  %v5464_v39 = vsel %vm1983_vm9, %v5432_v31, %v11747_v34  ;;  %v2739_v34 = vrot.slane %v19618_v36, 2 }
 0x384   : > { %v11755_v21 = vpop.permute.xlu0 %11754  ;;  %v5465_v9 = vsel %vm1983_vm9, %v5433_v8, %v11751_v24  ;;  %v5466_v61 = vsel %vm1983_vm9, %v5434_v29, %v11752_v40 }
 0x385   : > { %v11760_v52 = vpop.permute.xlu1 %11759  ;;  %v11757_v20 = vunpack.i.h.bf16 %v11755_v21  ;;  %v11756_v42 = vunpack.i.l.bf16 %v11755_v21  ;;  %v19619_v21 = vld [vmem:[#allocation138_spill] sm:$0xff] }
 0x386   : > { %v11762_v11 = vunpack.i.h.bf16 %v11760_v52  ;;  %v11761_v26 = vunpack.i.l.bf16 %v11760_v52  ;;  %v2741_v7 = vrot.slane %v19619_v21, 2 }
 0x387   : > { %v5495_v56 = vsel %vm2016_vm10, %v5463_v14, %v11756_v42  ;;  %v5496_v38 = vsel %vm2016_vm10, %v5464_v39, %v11757_v20  ;;  %v12410_v39 = vld [vmem:[#allocation3 + $0x140] sm:$0xff] }
 0x388   : > { %v11765_v54 = vpop.permute.xlu0 %11764  ;;  %v5497_v15 = vsel %vm2016_vm10, %v5465_v9, %v11761_v26  ;;  %v5498_v23 = vsel %vm2016_vm10, %v5466_v61, %v11762_v11  ;;  %v16380_v11 = vsel %vm1040_vm2, %v2738_v49, %v2739_v34  ;;  %v16385_v14 = vsel %vm1040_vm2, %v2739_v34, %v2741_v7  ;;  %v12411_v9 = vld [vmem:[#allocation3 + $0x138] sm:$0xff] }
 0x389   : > { %v11767_v2 = vunpack.i.h.bf16 %v11765_v54  ;;  %v11766_v63 = vunpack.i.l.bf16 %v11765_v54  ;;  %v11770_v58 = vpop.permute.xlu1 %11769 }
 0x38a   : > { %v11772_v37 = vunpack.i.h.bf16 %v11770_v58  ;;  %v11771_v41 = vunpack.i.l.bf16 %v11770_v58  ;;  %v12412_v58 = vld [vmem:[#allocation3 + $0x128] sm:$0xff] }
 0x38b   : > { %v5527_v32 = vsel %vm2049_vm11, %v5495_v56, %v11766_v63  ;;  %v5528_v30 = vsel %vm2049_vm11, %v5496_v38, %v11767_v2  ;;  %v12413_v38 = vld [vmem:[#allocation3 + $0x120] sm:$0xff] }
 0x38c   : > { %v5529_v19 = vsel %vm2049_vm11, %v5497_v15, %v11771_v41  ;;  %v5530_v4 = vsel %vm2049_vm11, %v5498_v23, %v11772_v37  ;;  %v11775_v0 = vpop.permute.xlu0 %11774  ;;  %v5549_v55 = vpack.c.bf16 %v5528_v30, %v5527_v32 }
 0x38d   : > { %v11780_v48 = vpop.permute.xlu1 %11779  ;;  %v5550_v62 = vpack.c.bf16 %v5530_v4, %v5529_v19  ;;  %v11777_v52 = vunpack.i.h.bf16 %v11775_v0  ;;  %v11776_v57 = vunpack.i.l.bf16 %v11775_v0 }
 0x38e   : > { %10113 = vmatprep.mubr.msk.bf16.mxu0 %vm2125_vm12, %v5549_v55  ;;  %v11782_v28 = vunpack.i.h.bf16 %v11780_v48  ;;  %v11781_v40 = vunpack.i.l.bf16 %v11780_v48 }
 0x38f   : > { %10114 = vmatmul.mubr.msk.bf16.gmra.mrb[116].mxu0 %vm2125_vm12, %v5550_v62  ;;  %v5308_v56 = vsel %vm672_vm0, %v12412_v58, %v11777_v52  ;;  %v5307_v37 = vsel %vm672_vm0, %v12413_v38, %v11776_v57 }
 0x390   : > { %v11785_v51 = vpop.permute.xlu0 %11784  ;;  %v5310_v54 = vsel %vm672_vm0, %v12410_v39, %v11782_v28  ;;  %v5309_v61 = vsel %vm672_vm0, %v12411_v9, %v11781_v40 }
 0x391   : > { %v11790_v13 = vpop.permute.xlu1 %11789  ;;  %v9561_v43 = vpop.f32.mrb[52].mxu0  ;;  %v11787_v2 = vunpack.i.h.bf16 %v11785_v51  ;;  %v11786_v63 = vunpack.i.l.bf16 %v11785_v51 }
 0x392   : > { %v9562_v53 = vpop.f32.mrb[53].mxu0  ;;  %v11792_v26 = vunpack.i.h.bf16 %v11790_v13  ;;  %v11791_v8 = vunpack.i.l.bf16 %v11790_v13 }
 0x393   : > { %v16368_v10 = vadd.f32 %v9562_v53, %v9561_v43  ;;  %v9564_v46 = vpop.f32.mrb[54].mxu0  ;;  %v5339_v13 = vsel %vm1851_vm5, %v5307_v37, %v11786_v63  ;;  %v5340_v43 = vsel %vm1851_vm5, %v5308_v56, %v11787_v2 }
 0x394   : > { %v11795_v45 = vpop.permute.xlu0 %11794  ;;  %v9565_v17 = vpop.f32.mrb[55].mxu0  ;;  %v5341_v55 = vsel %vm1851_vm5, %v5309_v61, %v11791_v8  ;;  %v5342_v48 = vsel %vm1851_vm5, %v5310_v54, %v11792_v26 }
 0x395   : > { %19615 = vst [vmem:[#allocation47_spill] sm:$0xff] %v16368_v10  ;;  %v11800_v60 = vpop.permute.xlu1 %11799  ;;  %v16370_v22 = vadd.f32 %v9565_v17, %v9564_v46  ;;  %v11797_v41 = vunpack.i.h.bf16 %v11795_v45  ;;  %v11796_v15 = vunpack.i.l.bf16 %v11795_v45 }
 0x396   : > { %v11802_v32 = vunpack.i.h.bf16 %v11800_v60  ;;  %v11801_v30 = vunpack.i.l.bf16 %v11800_v60 }
 0x397   : > { %19616 = vst [vmem:[#allocation53_spill] sm:$0xff] %v16370_v22  ;;  %v5371_v45 = vsel %vm1884_vm6, %v5339_v13, %v11796_v15  ;;  %v5372_v17 = vsel %vm1884_vm6, %v5340_v43, %v11797_v41 }
 0x398   : > { %v11805_v5 = vpop.permute.xlu0 %11804  ;;  %v5373_v34 = vsel %vm1884_vm6, %v5341_v55, %v11801_v30 }
 0x399   : > { %v11810_v16 = vpop.permute.xlu1 %11809  ;;  %v9567_v1 = vpop.f32.mrb[56].mxu0  ;;  %v11807_v19 = vunpack.i.h.bf16 %v11805_v5  ;;  %v11806_v4 = vunpack.i.l.bf16 %v11805_v5 }
 0x39a   : > { %v9568_v24 = vpop.f32.mrb[57].mxu0  ;;  %v11812_v62 = vunpack.i.h.bf16 %v11810_v16  ;;  %v11811_v51 = vunpack.i.l.bf16 %v11810_v16 }
 0x39b   : > { %v16375_v6 = vadd.f32 %v9568_v24, %v9567_v1  ;;  %v9570_v42 = vpop.f32.mrb[58].mxu0  ;;  %v5374_v1 = vsel %vm1884_vm6, %v5342_v48, %v11802_v32  ;;  %v5403_v21 = vsel %vm1917_vm7, %v5371_v45, %v11806_v4  ;;  %v5404_v16 = vsel %vm1917_vm7, %v5372_v17, %v11807_v19 }
 0x39c   : > { %v11815_v20 = vpop.permute.xlu0 %11814  ;;  %v9571_v31 = vpop.f32.mrb[59].mxu0  ;;  %v5405_v28 = vsel %vm1917_vm7, %v5373_v34, %v11811_v51  ;;  %v5406_v40 = vsel %vm1917_vm7, %v5374_v1, %v11812_v62 }
 0x39d   : > { %19620 = vst [vmem:[#allocation49_spill] sm:$0xff] %v16375_v6  ;;  %v16377_v50 = vpop.permute.xlu1 %11819  ;;  %v16382_v29 = vadd.f32 %v9571_v31, %v9570_v42  ;;  %v11817_v53 = vunpack.i.h.bf16 %v11815_v20  ;;  %v11816_v46 = vunpack.i.l.bf16 %v11815_v20 }
 0x39e   : > { %v11822_v42 = vunpack.i.h.bf16 %v16377_v50  ;;  %v11821_v31 = vunpack.i.l.bf16 %v16377_v50 }
 0x39f   : > { %19621 = vst [vmem:[#allocation48_spill] sm:$0xff] %v16382_v29  ;;  %v5435_v57 = vsel %vm1950_vm8, %v5403_v21, %v11816_v46  ;;  %v5436_v20 = vsel %vm1950_vm8, %v5404_v16, %v11817_v53 }
 0x3a0   : > { %v11825_v23 = vpop.permute.xlu0 %11824  ;;  %v5437_v50 = vsel %vm1950_vm8, %v5405_v28, %v11821_v31 }
 0x3a1   : > { %v11830_v0 = vpop.permute.xlu1 %11829  ;;  %v11827_v60 = vunpack.i.h.bf16 %v11825_v23  ;;  %v11826_v49 = vunpack.i.l.bf16 %v11825_v23  ;;  %v5438_v23 = vsel %vm1950_vm8, %v5406_v40, %v11822_v42  ;;  %v12312_v40 = vld [vmem:[%s19346_s4 + $0x108] sm:$0xff]  }
 0x3a2   : > { %v11832_v39 = vunpack.i.h.bf16 %v11830_v0  ;;  %v11831_v54 = vunpack.i.l.bf16 %v11830_v0 }
 0x3a3   : > { %v5467_v26 = vsel %vm1983_vm9, %v5435_v57, %v11826_v49  ;;  %v5468_v8 = vsel %vm1983_vm9, %v5436_v20, %v11827_v60  ;;  %v19622_v57 = vld [vmem:[#allocation31_spill] sm:$0xff]  ;;  %v19623_v20 = vld [vmem:[#allocation32_spill] sm:$0xff] }
 0x3a4   : > { %v11835_v5 = vpop.permute.xlu0 %11834  ;;  %v5469_v19 = vsel %vm1983_vm9, %v5437_v50, %v11831_v54  ;;  %v5470_v62 = vsel %vm1983_vm9, %v5438_v23, %v11832_v39 }
 0x3a5   : > { %v11840_v7 = vpop.permute.xlu1 %11839  ;;  %v11837_v24 = vunpack.i.h.bf16 %v11835_v5  ;;  %v11836_v52 = vunpack.i.l.bf16 %v11835_v5 }
 0x3a6   : > { %v11842_v61 = vunpack.i.h.bf16 %v11840_v7  ;;  %v11841_v2 = vunpack.i.l.bf16 %v11840_v7 }
 0x3a7   : > { %v5499_v38 = vsel %vm2016_vm10, %v5467_v26, %v11836_v52  ;;  %v5500_v37 = vsel %vm2016_vm10, %v5468_v8, %v11837_v24 }
 0x3a8   : > { %v11845_v9 = vpop.permute.xlu0 %11844  ;;  %v5501_v46 = vsel %vm2016_vm10, %v5469_v19, %v11841_v2  ;;  %v5502_v45 = vsel %vm2016_vm10, %v5470_v62, %v11842_v61  ;;  %v5914_v62 = vld [vmem:[#allocation4 + $0x10] sm:$0x3] }
 0x3a9   : > { %v11847_v63 = vunpack.i.h.bf16 %v11845_v9  ;;  %v11846_v58 = vunpack.i.l.bf16 %v11845_v9  ;;  %v11850_v56 = vpop.permute.xlu1 %11849 }
 0x3aa   : > { %v11852_v41 = vunpack.i.h.bf16 %v11850_v56  ;;  %v11851_v15 = vunpack.i.l.bf16 %v11850_v56  ;;  %v19627_v56 = vld [vmem:[#allocation27_spill] sm:$0xff] }
 0x3ab   : > { %v5531_v32 = vsel %vm2049_vm11, %v5499_v38, %v11846_v58  ;;  %v5532_v30 = vsel %vm2049_vm11, %v5500_v37, %v11847_v63  ;;  %v19626_v63 = vld [vmem:[#allocation25_spill] sm:$0xff] }
 0x3ac   : > { %v11855_v4 = vpop.permute.xlu0 %11854  ;;  %v3148_v0 = vsel %vm2371_vm13, %v16380_v11, %v11851_v15  ;;  %v3149_v55 = vsel %vm2371_vm13, %v16385_v14, %v11852_v41  ;;  %v5551_v48 = vpack.c.bf16 %v5532_v30, %v5531_v32 }
 0x3ad   : > { %v11857_v51 = vunpack.i.h.bf16 %v11855_v4  ;;  %v11856_v13 = vunpack.i.l.bf16 %v11855_v4  ;;  %v11860_v43 = vpop.permute.xlu1 %11859  ;;  %v3217_v53 = vpack.c.bf16 %v3149_v55, %v3148_v0  ;;  %v5912_v55 = vld [vmem:[#allocation4] sm:$0xff] }
 0x3ae   : > { %v11862_v17 = vunpack.i.h.bf16 %v11860_v43  ;;  %v11861_v60 = vunpack.i.l.bf16 %v11860_v43  ;;  %10117 = vmatprep.mubr.msk.bf16.mxu0 %vm2125_vm12, %v5551_v48  ;;  %v5913_v48 = vld [vmem:[#allocation4 + $0x8] sm:$0xff] }
 0x3af   : > { %v5533_v11 = vsel %vm2049_vm11, %v5501_v46, %v11856_v13  ;;  %v5534_v49 = vsel %vm2049_vm11, %v5502_v45, %v11857_v51  ;;  %3657 = vmatprep.mubr.bf16.mxu1 %v3217_v53  ;;  %v6014_v13 = vrot.slane %v5912_v55, 1  ;;  %v6015_v43 = vrot.slane %v5913_v48, 1 }
 0x3b0   : > { %v11865_v14 = vpop.permute.xlu0 %11864  ;;  %v3116_v5 = vsel %vm2371_vm13, %v19617_v35, %v11861_v60  ;;  %v3117_v34 = vsel %vm2371_vm13, %v19618_v36, %v11862_v17  ;;  %v5552_v1 = vpack.c.bf16 %v5534_v49, %v5533_v11  ;;  %v6017_v17 = vrot.slane %v5914_v62, 1  ;;  %v12313_v11 = vld [vmem:[%s19346_s4 + $0x110] sm:$0xff]  }
 0x3b1   : > { %v11867_v21 = vunpack.i.h.bf16 %v11865_v14  ;;  %v11866_v16 = vunpack.i.l.bf16 %v11865_v14  ;;  %v11870_v7 = vpop.permute.xlu1 %11869  ;;  %v3216_v28 = vpack.c.bf16 %v3117_v34, %v3116_v5  ;;  %v9573_v24 = vpop.f32.mrb[60].mxu0  ;;  %v6016_v60 = vsel %vm863_vm3, %v6014_v13, %v6015_v43 }
 0x3b2   : > { %10118 = vmatmul.mubr.msk.bf16.gmra.mrb[120].mxu0 %vm2125_vm12, %v5552_v1  ;;  %v9574_v52 = vpop.f32.mrb[61].mxu0  ;;  %v11872_v53 = vunpack.i.h.bf16 %v11870_v7  ;;  %v11871_v46 = vunpack.i.l.bf16 %v11870_v7  ;;  %v6018_v5 = vsel %vm863_vm3, %v6015_v43, %v6017_v17 }
 0x3b3   : > { %3658 = vmatmul.mubr.bf16.vlgmr.msra.gmra.mrb[0].mxu1 %v3216_v28  ;;  %v3150_v35 = vsel %vm2371_vm13, %v19622_v57, %v11866_v16  ;;  %v3151_v36 = vsel %vm2371_vm13, %v19623_v20, %v11867_v21  ;;  %v16438_v42 = vadd.f32 %v9574_v52, %v9573_v24  ;;  %v9576_v26 = vpop.f32.mrb[62].mxu0  ;;  %v12028_v16 = vpack.i.bf16 %v6018_v5, %v6016_v60  ;;  %v12414_v28 = vld [vmem:[#allocation3 + $0x158] sm:$0xff]  ;;  %v12416_v20 = vld [vmem:[#allocation3 + $0x170] sm:$0xff] }
 0x3b4   : > { %v11875_v31 = vpop.permute.xlu0 %11874  ;;  %v3222_v8 = vpack.c.bf16 %v3151_v36, %v3150_v35  ;;  %10048 = vmatpush3.bf16.msra.mxu1 %v16353_v27  ;;  %v9577_v61 = vpop.f32.mrb[63].mxu0  ;;  %v5312_v7 = vsel %vm672_vm0, %v12414_v28, %v11872_v53 }
 0x3b5   : > { %19624 = vst [vmem:[#allocation54_spill] sm:$0xff] %v16438_v42  ;;  %v11880_v39 = vpop.permute.xlu1 %11879  ;;  %v11877_v54 = vunpack.i.h.bf16 %v11875_v31  ;;  %v11876_v9 = vunpack.i.l.bf16 %v11875_v31  ;;  %10049 = vmatprep.subr.bf16.mxu1 %v12312_v40  ;;  %v16441_v2 = vadd.f32 %v9577_v61, %v9576_v26  ;;  %12029 = vrot.lane.b32.xlu1 %v12028_v16, %s19357_s27  ;;  %v12417_v31 = vld [vmem:[#allocation3 + $0x168] sm:$0xff] }
 0x3b6   : > { %3665 = vmatprep.mubr.bf16.mxu1 %v3222_v8  ;;  %v11882_v49 = vunpack.i.h.bf16 %v11880_v39  ;;  %v11881_v14 = vunpack.i.l.bf16 %v11880_v39 }
 0x3b7   : > { %19625 = vst [vmem:[#allocation55_spill] sm:$0xff] %v16441_v2  ;;  %v3118_v58 = vsel %vm2371_vm13, %v19626_v63, %v11876_v9  ;;  %v3119_v38 = vsel %vm2371_vm13, %v19627_v56, %v11877_v54  ;;  %v12314_v54 = vld [vmem:[%s19346_s4 + $0x118] sm:$0xff]  }
 0x3b8   : > { %v11885_v37 = vpop.permute.xlu0 %11884  ;;  %v3221_v41 = vpack.c.bf16 %v3119_v38, %v3118_v58  ;;  %10050 = vmatpush3.bf16.msra.mxu1 %v12312_v40  ;;  %v12415_v40 = vld [vmem:[#allocation3 + $0x150] sm:$0xff]  ;;  %v5314_v36 = vsel %vm672_vm0, %v12416_v20, %v11882_v49  ;;  %v5313_v26 = vsel %vm672_vm0, %v12417_v31, %v11881_v14 }
 0x3b9   : > { %v11890_v15 = vpop.permute.xlu1 %11889  ;;  %v9579_v50 = vpop.f32.mrb[64].mxu0  ;;  %v11887_v34 = vunpack.i.h.bf16 %v11885_v37  ;;  %v11886_v1 = vunpack.i.l.bf16 %v11885_v37  ;;  %10051 = vmatprep.subr.bf16.mxu1 %v12313_v11  ;;  %v5311_v24 = vsel %vm672_vm0, %v12415_v40, %v11871_v46 }
 0x3ba   : > { %v9580_v27 = vpop.f32.mrb[65].mxu0  ;;  %v11892_v57 = vunpack.i.h.bf16 %v11890_v15  ;;  %v11891_v35 = vunpack.i.l.bf16 %v11890_v15 }
 0x3bb   : > { %3666 = vmatmul.mubr.bf16.gmra.mrb[4].mxu1 %v3221_v41  ;;  %v16447_v23 = vadd.f32 %v9580_v27, %v9579_v50  ;;  %v9582_v30 = vpop.f32.mrb[66].mxu0  ;;  %v5344_v9 = vsel %vm1851_vm5, %v5312_v7, %v11887_v34  ;;  %v5343_v61 = vsel %vm1851_vm5, %v5311_v24, %v11886_v1 }
 0x3bc   : > { %v11895_v32 = vpop.permute.xlu0 %11894  ;;  %v9583_v4 = vpop.f32.mrb[67].mxu0  ;;  %10052 = vmatpush3.bf16.msra.mxu1 %v12313_v11  ;;  %v5345_v15 = vsel %vm1851_vm5, %v5313_v26, %v11891_v35  ;;  %v5346_v50 = vsel %vm1851_vm5, %v5314_v36, %v11892_v57 }
 0x3bd   : > { %19628 = vst [vmem:[#allocation56_spill] sm:$0xff] %v16447_v23  ;;  %v16449_v19 = vpop.permute.xlu1 %11899  ;;  %v16451_v0 = vadd.f32 %v9583_v4, %v9582_v30  ;;  %v11897_v8 = vunpack.i.h.bf16 %v11895_v32  ;;  %v11896_v39 = vunpack.i.l.bf16 %v11895_v32  ;;  %10053 = vmatprep.subr.bf16.mxu1 %v12314_v54 }
 0x3be   : > { %v11902_v58 = vunpack.i.h.bf16 %v16449_v19  ;;  %v11901_v56 = vunpack.i.l.bf16 %v16449_v19 }
 0x3bf   : > { %19629 = vst [vmem:[#allocation58_spill] sm:$0xff] %v16451_v0  ;;  %v5375_v30 = vsel %vm1884_vm6, %v5343_v61, %v11896_v39  ;;  %v5376_v4 = vsel %vm1884_vm6, %v5344_v9, %v11897_v8 }
 0x3c0   : > { %v11905_v51 = vpop.permute.xlu0 %11904  ;;  %10054 = vmatpush3.bf16.msra.mxu1 %v12314_v54  ;;  %v5377_v53 = vsel %vm1884_vm6, %v5345_v15, %v11901_v56  ;;  %v5378_v46 = vsel %vm1884_vm6, %v5346_v50, %v11902_v58  ;;  %v19631_v50 = vld [vmem:[#allocation28_spill] sm:$0xff] }
 0x3c1   : > { %v11910_v45 = vpop.permute.xlu1 %11909  ;;  %v11907_v38 = vunpack.i.h.bf16 %v11905_v51  ;;  %v11906_v37 = vunpack.i.l.bf16 %v11905_v51 }
 0x3c2   : > { %v11912_v27 = vunpack.i.h.bf16 %v11910_v45  ;;  %v11911_v32 = vunpack.i.l.bf16 %v11910_v45 }
 0x3c3   : > { %v5407_v17 = vsel %vm1917_vm7, %v5375_v30, %v11906_v37  ;;  %v5408_v45 = vsel %vm1917_vm7, %v5376_v4, %v11907_v38 }
 0x3c4   : > { %v11915_v21 = vpop.permute.xlu0 %11914  ;;  %v5409_v11 = vsel %vm1917_vm7, %v5377_v53, %v11911_v32  ;;  %v5410_v49 = vsel %vm1917_vm7, %v5378_v46, %v11912_v27  ;;  %v19632_v32 = vld [vmem:[#allocation29_spill] sm:$0xff] }
 0x3c5   : > { %v11920_v52 = vpop.permute.xlu1 %11919  ;;  %v11917_v55 = vunpack.i.h.bf16 %v11915_v21  ;;  %v11916_v48 = vunpack.i.l.bf16 %v11915_v21 }
 0x3c6   : > { %v11922_v62 = vunpack.i.h.bf16 %v11920_v52  ;;  %v11921_v13 = vunpack.i.l.bf16 %v11920_v52 }
 0x3c7   : > { %v5439_v34 = vsel %vm1950_vm8, %v5407_v17, %v11916_v48  ;;  %v5440_v1 = vsel %vm1950_vm8, %v5408_v45, %v11917_v55 }
 0x3c8   : > { %v11925_v63 = vpop.permute.xlu0 %11924  ;;  %v5441_v28 = vsel %vm1950_vm8, %v5409_v11, %v11921_v13  ;;  %v5442_v7 = vsel %vm1950_vm8, %v5410_v49, %v11922_v62  ;;  %v19634_v11 = vld [vmem:[#allocation95_spill] sm:$0xff] }
 0x3c9   : > { %v11930_v41 = vpop.permute.xlu1 %11929  ;;  %v11927_v19 = vunpack.i.h.bf16 %v11925_v63  ;;  %v11926_v43 = vunpack.i.l.bf16 %v11925_v63 }
 0x3ca   : > { %v11932_v21 = vunpack.i.h.bf16 %v11930_v41  ;;  %v11931_v16 = vunpack.i.l.bf16 %v11930_v41 }
 0x3cb   : > { %v5471_v40 = vsel %vm1983_vm9, %v5439_v34, %v11926_v43  ;;  %v5472_v24 = vsel %vm1983_vm9, %v5440_v1, %v11927_v19  ;;  %v19636_v34 = vld [vmem:[#allocation51_spill] sm:$0xff] }
 0x3cc   : > { %v11935_v51 = vpop.permute.xlu0 %11934  ;;  %v5473_v61 = vsel %vm1983_vm9, %v5441_v28, %v11931_v16  ;;  %v5474_v63 = vsel %vm1983_vm9, %v5442_v7, %v11932_v21 }
 0x3cd   : > { %v11940_v60 = vpop.permute.xlu1 %11939  ;;  %v11937_v14 = vunpack.i.h.bf16 %v11935_v51  ;;  %v11936_v5 = vunpack.i.l.bf16 %v11935_v51 }
 0x3ce   : > { %v11942_v57 = vunpack.i.h.bf16 %v11940_v60  ;;  %v11941_v35 = vunpack.i.l.bf16 %v11940_v60 }
 0x3cf   : > { %v5503_v26 = vsel %vm2016_vm10, %v5471_v40, %v11936_v5  ;;  %v5504_v8 = vsel %vm2016_vm10, %v5472_v24, %v11937_v14  ;;  %v19635_v14 = vld [vmem:[#allocation50_spill] sm:$0xff] }
 0x3d0   : > { %v11945_v52 = vpop.permute.xlu0 %11944  ;;  %v5505_v55 = vsel %vm2016_vm10, %v5473_v61, %v11941_v35  ;;  %v5506_v51 = vsel %vm2016_vm10, %v5474_v63, %v11942_v57  ;;  %v19638_v35 = vld [vmem:[#allocation45_spill] sm:$0xff]  ;;  %v19641_v63 = vld [vmem:[#allocation107_spill] sm:$0xff] }
 0x3d1   : > { %v11950_v20 = vpop.permute.xlu1 %11949  ;;  %v11947_v36 = vunpack.i.h.bf16 %v11945_v52  ;;  %v11946_v31 = vunpack.i.l.bf16 %v11945_v52  ;;  %v9585_v9 = vpop.f32.mrb[68].mxu0 }
 0x3d2   : > { %v11952_v39 = vunpack.i.h.bf16 %v11950_v20  ;;  %v11951_v54 = vunpack.i.l.bf16 %v11950_v20  ;;  %v9586_v38 = vpop.f32.mrb[69].mxu0 }
 0x3d3   : > { %v5535_v58 = vsel %vm2049_vm11, %v5503_v26, %v11946_v31  ;;  %v5536_v56 = vsel %vm2049_vm11, %v5504_v8, %v11947_v36  ;;  %v16492_v37 = vadd.f32 %v9586_v38, %v9585_v9  ;;  %v9588_v15 = vpop.f32.mrb[70].mxu0  ;;  %v19639_v36 = vld [vmem:[#allocation46_spill] sm:$0xff] }
 0x3d4   : > { %v11955_v41 = vpop.permute.xlu0 %11954  ;;  %v3152_v27 = vsel %vm2371_vm13, %v19631_v50, %v11951_v54  ;;  %v3153_v30 = vsel %vm2371_vm13, %v19632_v32, %v11952_v39  ;;  %v5553_v4 = vpack.c.bf16 %v5536_v56, %v5535_v58  ;;  %v9589_v19 = vpop.f32.mrb[71].mxu0  ;;  %v19642_v58 = vld [vmem:[#allocation69_spill] sm:$0xff]  ;;  %v19643_v38 = vld [vmem:[#allocation70_spill] sm:$0xff] }
 0x3d5   : > { %19630 = vst [vmem:[#allocation52_spill] sm:$0xff] %v16492_v37  ;;  %v11960_v48 = vpop.permute.xlu1 %11959  ;;  %v11957_v62 = vunpack.i.h.bf16 %v11955_v41  ;;  %v11956_v13 = vunpack.i.l.bf16 %v11955_v41  ;;  %v3226_v43 = vpack.c.bf16 %v3153_v30, %v3152_v27  ;;  %v16500_v17 = vadd.f32 %v9589_v19, %v9588_v15 }
 0x3d6   : > { %v11962_v53 = vunpack.i.h.bf16 %v11960_v48  ;;  %v11961_v46 = vunpack.i.l.bf16 %v11960_v48  ;;  %10121 = vmatprep.mubr.msk.bf16.mxu0 %vm2125_vm12, %v5553_v4  ;;  %v19645_v48 = vld [vmem:[#allocation63_spill] sm:$0xff] }
 0x3d7   : > { %19633 = vst [vmem:[#allocation60_spill] sm:$0xff] %v16500_v17  ;;  %v5538_v45 = vsel %vm2049_vm11, %v5506_v51, %v11957_v62  ;;  %v5537_v60 = vsel %vm2049_vm11, %v5505_v55, %v11956_v13  ;;  %3673 = vmatprep.mubr.bf16.mxu1 %v3226_v43  ;;  %v19644_v55 = vld [vmem:[#allocation109_spill] sm:$0xff]  ;;  %v19646_v13 = vld [vmem:[#allocation64_spill] sm:$0xff] }
 0x3d8   : > { %3674 = vmatmul.mubr.bf16.gmra.mrb[8].mxu1 %v19634_v11  ;;  %v11965_v49 = vpop.permute.xlu0 %11964  ;;  %v3154_v5 = vsel %vm2371_vm13, %v19635_v14, %v11961_v46  ;;  %v3155_v1 = vsel %vm2371_vm13, %v19636_v34, %v11962_v53  ;;  %v5554_v21 = vpack.c.bf16 %v5538_v45, %v5537_v60  ;;  %v19647_v45 = vld [vmem:[#allocation121_spill] sm:$0xff] }
 0x3d9   : > { %v11967_v16 = vunpack.i.h.bf16 %v11965_v49  ;;  %v11966_v28 = vunpack.i.l.bf16 %v11965_v49  ;;  %v3230_v7 = vpack.c.bf16 %v3155_v1, %v3154_v5  ;;  %v9591_v40 = vpop.f32.mrb[72].mxu0  ;;  %v11970_v26 = vpop.permute.xlu1 %11969  ;;  %v19649_v1 = vld [vmem:[#allocation86_spill] sm:$0xff] }
 0x3da   : > { %10122 = vmatmul.mubr.msk.bf16.gmra.mrb[124].mxu0 %vm2125_vm12, %v5554_v21  ;;  %v9592_v24 = vpop.f32.mrb[73].mxu0  ;;  %v11972_v9 = vunpack.i.h.bf16 %v11970_v26  ;;  %v11971_v61 = vunpack.i.l.bf16 %v11970_v26  ;;  %v19652_v26 = vld [vmem:[#allocation123_spill] sm:$0xff] }
 0x3db   : > { %3681 = vmatprep.mubr.bf16.mxu1 %v3230_v7  ;;  %v16511_v52 = vadd.f32 %v9592_v24, %v9591_v40  ;;  %v9594_v57 = vpop.f32.mrb[74].mxu0  ;;  %v3156_v20 = vsel %vm2371_vm13, %v19638_v35, %v11966_v28  ;;  %v3157_v31 = vsel %vm2371_vm13, %v19639_v36, %v11967_v16  ;;  %v19650_v16 = vld [vmem:[#allocation87_spill] sm:$0xff] }
 0x3dc   : > { %v9595_v8 = vpop.f32.mrb[75].mxu0  ;;  %v3234_v54 = vpack.c.bf16 %v3157_v31, %v3156_v20  ;;  %v3158_v56 = vsel %vm2371_vm13, %v19642_v58, %v11971_v61  ;;  %v3159_v41 = vsel %vm2371_vm13, %v19643_v38, %v11972_v9  ;;  %v11975_v15 = vpop.permute.xlu0 %11974 }
 0x3dd   : > { %19637 = vst [vmem:[#allocation65_spill] sm:$0xff] %v16511_v52  ;;  %v16517_v39 = vadd.f32 %v9595_v8, %v9594_v57  ;;  %v3238_v27 = vpack.c.bf16 %v3159_v41, %v3158_v56  ;;  %v11977_v30 = vunpack.i.h.bf16 %v11975_v15  ;;  %v11976_v4 = vunpack.i.l.bf16 %v11975_v15  ;;  %v11980_v43 = vpop.permute.xlu1 %11979  ;;  %v19655_v41 = vld [vmem:[#allocation82_spill] sm:$0xff] }
 0x3de   : > { %v11982_v53 = vunpack.i.h.bf16 %v11980_v43  ;;  %v11981_v46 = vunpack.i.l.bf16 %v11980_v43  ;;  %v19657_v43 = vld [vmem:[#allocation140_spill] sm:$0xff] }
 0x3df   : > { %19640 = vst [vmem:[#allocation67_spill] sm:$0xff] %v16517_v39  ;;  %v3160_v62 = vsel %vm2371_vm13, %v19645_v48, %v11976_v4  ;;  %v3161_v19 = vsel %vm2371_vm13, %v19646_v13, %v11977_v30  ;;  %v19681_v39 = vld [vmem:[#allocation35_spill] sm:$0xff] }
 0x3e0   : > { %3682 = vmatmul.mubr.bf16.gmra.mrb[12].mxu1 %v19641_v63  ;;  %v3242_v51 = vpack.c.bf16 %v3161_v19, %v3160_v62  ;;  %v3162_v21 = vsel %vm2371_vm13, %v19649_v1, %v11981_v46  ;;  %v3163_v28 = vsel %vm2371_vm13, %v19650_v16, %v11982_v53  ;;  %v11985_v7 = vpop.permute.xlu0 %11984  ;;  %v19654_v63 = vld [vmem:[#allocation81_spill] sm:$0xff]  ;;  %v19659_v46 = vld [vmem:[#allocation102_spill] sm:$0xff] }
 0x3e1   : > { %3689 = vmatprep.mubr.bf16.mxu1 %v3234_v54  ;;  %v3246_v57 = vpack.c.bf16 %v3163_v28, %v3162_v21  ;;  %v11987_v20 = vunpack.i.h.bf16 %v11985_v7  ;;  %v11986_v31 = vunpack.i.l.bf16 %v11985_v7  ;;  %v19660_v28 = vld [vmem:[#allocation142_spill] sm:$0xff]  ;;  %v19661_v7 = vld [vmem:[#allocation99_spill] sm:$0xff] }
 0x3e3   : > { %v3164_v56 = vsel %vm2371_vm13, %v19654_v63, %v11986_v31  ;;  %v3165_v15 = vsel %vm2371_vm13, %v19655_v41, %v11987_v20  ;;  %v12315_v31 = vld [vmem:[%s18968_s8 + $0x40] sm:$0xff]  }
 0x3e4   : > { %9666 = vmatprep.subr.bf16.mxu1 %v12315_v31 }
 0x3e8   : > { %3690 = vmatmul.mubr.bf16.gmra.mrb[16].mxu1 %v19644_v55  ;;  %v3250_v55 = vpack.c.bf16 %v3165_v15, %v3164_v56  ;;  %v19663_v56 = vld [vmem:[#allocation155_spill] sm:$0xff] }
 0x3e9   : > { %3697 = vmatprep.mubr.bf16.mxu1 %v3238_v27  ;;  %v11990_v27 = vpop.permute.xlu1 %11989 }
 0x3ea   : > { %v11992_v62 = vunpack.i.h.bf16 %v11990_v27  ;;  %v11991_v19 = vunpack.i.l.bf16 %v11990_v27 }
 0x3f0   : > { %3698 = vmatmul.mubr.bf16.gmra.mrb[20].mxu1 %v19647_v45  ;;  %v3167_v45 = vsel %vm2371_vm13, %v19659_v46, %v11992_v62  ;;  %v19665_v62 = vld [vmem:[#allocation113_spill] sm:$0xff] }
 0x3f1   : > { %3705 = vmatprep.mubr.bf16.mxu1 %v3242_v51  ;;  %v9597_v60 = vpop.f32.mrb[76].mxu0  ;;  %v19658_v51 = vld [vmem:[#allocation101_spill] sm:$0xff] }
 0x3f2   : > { %v9598_v11 = vpop.f32.mrb[77].mxu0  ;;  %v3166_v53 = vsel %vm2371_vm13, %v19658_v51, %v11991_v19 }
 0x3f3   : > { %v16530_v49 = vadd.f32 %v9598_v11, %v9597_v60  ;;  %v9600_v5 = vpop.f32.mrb[78].mxu0  ;;  %v11995_v60 = vpop.permute.xlu0 %11994  ;;  %v3254_v11 = vpack.c.bf16 %v3167_v45, %v3166_v53 }
 0x3f4   : > { %v9601_v40 = vpop.f32.mrb[79].mxu0  ;;  %v11996_v21 = vunpack.i.l.bf16 %v11995_v60 }
 0x3f5   : > { %19648 = vst [vmem:[#allocation66_spill] sm:$0xff] %v16530_v49  ;;  %v16536_v24 = vadd.f32 %v9601_v40, %v9600_v5  ;;  %v11997_v5 = vunpack.i.h.bf16 %v11995_v60 }
 0x3f6   : > { %v3168_v40 = vsel %vm2371_vm13, %v19661_v7, %v11996_v21 }
 0x3f7   : > { %19651 = vst [vmem:[#allocation71_spill] sm:$0xff] %v16536_v24  ;;  %v12005_v45 = vpop.permute.xlu0 %12004 }
 0x3f8   : > { %3706 = vmatmul.mubr.bf16.gmra.mrb[24].mxu1 %v19652_v26  ;;  %v12000_v26 = vpop.permute.xlu1 %11999  ;;  %v12007_v21 = vunpack.i.h.bf16 %v12005_v45 }
 0x3f9   : > { %3713 = vmatprep.mubr.bf16.mxu1 %v3246_v57  ;;  %v9603_v8 = vpop.f32.mrb[80].mxu0  ;;  %v19662_v57 = vld [vmem:[#allocation100_spill] sm:$0xff] }
 0x3fa   : > { %v9604_v54 = vpop.f32.mrb[81].mxu0  ;;  %v3169_v20 = vsel %vm2371_vm13, %v19662_v57, %v11997_v5 }
 0x3fb   : > { %v16539_v9 = vadd.f32 %v9604_v54, %v9603_v8  ;;  %v9606_v61 = vpop.f32.mrb[82].mxu0  ;;  %v3258_v8 = vpack.c.bf16 %v3169_v20, %v3168_v40  ;;  %v12002_v54 = vunpack.i.h.bf16 %v12000_v26  ;;  %v19668_v40 = vld [vmem:[#allocation157_spill] sm:$0xff] }
 0x3fc   : > { %v9607_v30 = vpop.f32.mrb[83].mxu0 }
 0x3fd   : > { %19653 = vst [vmem:[#allocation68_spill] sm:$0xff] %v16539_v9  ;;  %v16545_v4 = vadd.f32 %v9607_v30, %v9606_v61  ;;  %v12001_v61 = vunpack.i.l.bf16 %v12000_v26 }
 0x3ff   : > { %19656 = vst [vmem:[#allocation44_spill] sm:$0xff] %v16545_v4  ;;  %v3170_v19 = vsel %vm2371_vm13, %v19665_v62, %v12001_v61  ;;  %v12015_v4 = vpop.permute.xlu0 %12014 }
 0x400   : > { %3714 = vmatmul.mubr.bf16.gmra.mrb[28].mxu1 %v19657_v43  ;;  %v19666_v43 = vld [vmem:[#allocation114_spill] sm:$0xff] }
 0x401   : > { %3721 = vmatprep.mubr.bf16.mxu1 %v3250_v55  ;;  %v3171_v53 = vsel %vm2371_vm13, %v19666_v43, %v12002_v54 }
 0x402   : > { %v3262_v5 = vpack.c.bf16 %v3171_v53, %v3170_v19 }
 0x408   : > { %3722 = vmatmul.mubr.bf16.gmra.mrb[32].mxu1 %v19660_v28  ;;  %v12006_v28 = vunpack.i.l.bf16 %v12005_v45 }
 0x409   : > { %3729 = vmatprep.mubr.bf16.mxu1 %v3254_v11 }
 0x410   : > { %3730 = vmatmul.mubr.bf16.gmra.mrb[36].mxu1 %v19663_v56  ;;  %v19670_v56 = vld [vmem:[#allocation111_spill] sm:$0xff] }
 0x411   : > { %3737 = vmatprep.mubr.bf16.mxu1 %v3258_v8  ;;  %v3172_v61 = vsel %vm2371_vm13, %v19670_v56, %v12006_v28 }
 0x412   : > { %v9609_v15 = vpop.f32.mrb[84].mxu0 }
 0x413   : > { %v9610_v27 = vpop.f32.mrb[85].mxu0 }
 0x414   : > { %v16561_v30 = vadd.f32 %v9610_v27, %v9609_v15  ;;  %v9612_v55 = vpop.f32.mrb[86].mxu0  ;;  %v19671_v15 = vld [vmem:[#allocation112_spill] sm:$0xff]  ;;  %v12010_v27 = vpop.permute.xlu1 %12009 }
 0x415   : > { %v9613_v60 = vpop.f32.mrb[87].mxu0  ;;  %v3173_v54 = vsel %vm2371_vm13, %v19671_v15, %v12007_v21  ;;  %v12012_v53 = vunpack.i.h.bf16 %v12010_v27  ;;  %v12011_v45 = vunpack.i.l.bf16 %v12010_v27  ;;  %v12016_v27 = vunpack.i.l.bf16 %v12015_v4 }
 0x416   : > { %19664 = vst [vmem:[#allocation40_spill] sm:$0xff] %v16561_v30  ;;  %v16567_v11 = vadd.f32 %v9613_v60, %v9612_v55  ;;  %v3266_v19 = vpack.c.bf16 %v3173_v54, %v3172_v61  ;;  %v19676_v30 = vld [vmem:[#allocation130_spill] sm:$0xff]  ;;  %v12017_v54 = vunpack.i.h.bf16 %v12015_v4 }
 0x417   : > { %v3175_v21 = vsel %vm2371_vm13, %v19676_v30, %v12012_v53 }
 0x418   : > { %19667 = vst [vmem:[#allocation41_spill] sm:$0xff] %v16567_v11  ;;  %3738 = vmatmul.mubr.bf16.gmra.mrb[40].mxu1 %v19668_v40  ;;  %v19673_v40 = vld [vmem:[#allocation34_spill] sm:$0xff]  ;;  %v19675_v11 = vld [vmem:[#allocation129_spill] sm:$0xff] }
 0x419   : > { %3745 = vmatprep.mubr.bf16.mxu1 %v3262_v5  ;;  %v3174_v28 = vsel %vm2371_vm13, %v19675_v11, %v12011_v45 }
 0x41a   : > { %v9615_v20 = vpop.f32.mrb[88].mxu0  ;;  %v3270_v61 = vpack.c.bf16 %v3175_v21, %v3174_v28  ;;  %v19680_v21 = vld [vmem:[#allocation128_spill] sm:$0xff] }
 0x41b   : > { %v9616_v31 = vpop.f32.mrb[89].mxu0  ;;  %v3177_v4 = vsel %vm2371_vm13, %v19680_v21, %v12017_v54 }
 0x41c   : > { %v16570_v26 = vadd.f32 %v9616_v31, %v9615_v20  ;;  %v9618_v8 = vpop.f32.mrb[90].mxu0 }
 0x41d   : > { %v9619_v55 = vpop.f32.mrb[91].mxu0 }
 0x41e   : > { %19669 = vst [vmem:[#allocation72_spill] sm:$0xff] %v16570_v26  ;;  %v16576_v60 = vadd.f32 %v9619_v55, %v9618_v8 }
 0x420   : > { %19672 = vst [vmem:[#allocation73_spill] sm:$0xff] %v16576_v60  ;;  %3746 = vmatmul.mubr.bf16.gmra.mrb[44].mxu1 %v19673_v40  ;;  %v19678_v40 = vld [vmem:[#allocation36_spill] sm:$0xff] }
 0x421   : > { %3753 = vmatprep.mubr.bf16.mxu1 %v3266_v19  ;;  %v16591_v19 = vld [vmem:[%s18967_s7] ss:$0 sm:$0xff] }
 0x422   : > { %v9621_v5 = vpop.f32.mrb[92].mxu0 }
 0x423   : > { %v9622_v20 = vpop.f32.mrb[93].mxu0 }
 0x424   : > { %v16579_v31 = vadd.f32 %v9622_v20, %v9621_v5  ;;  %v9624_v26 = vpop.f32.mrb[94].mxu0 }
 0x425   : > { %v9625_v8 = vpop.f32.mrb[95].mxu0 }
 0x426   : > { %19674 = vst [vmem:[#allocation74_spill] sm:$0xff] %v16579_v31  ;;  %v16585_v55 = vadd.f32 %v9625_v8, %v9624_v26  ;;  %v19679_v26 = vld [vmem:[#allocation127_spill] sm:$0xff]  ;;  %v12020_v8 = vpop.permute.xlu1 %12019 }
 0x427   : > { %v3176_v28 = vsel %vm2371_vm13, %v19679_v26, %v12016_v27  ;;  %v12021_v49 = vunpack.i.l.bf16 %v12020_v8 }
 0x428   : > { %19677 = vst [vmem:[#allocation80_spill] sm:$0xff] %v16585_v55  ;;  %3754 = vmatmul.mubr.bf16.gmra.mrb[48].mxu1 %v19678_v40  ;;  %v3274_v24 = vpack.c.bf16 %v3177_v4, %v3176_v28  ;;  %v19683_v4 = vld [vmem:[#allocation151_spill] sm:$0xff] }
 0x429   : > { %3761 = vmatprep.mubr.bf16.mxu1 %v3270_v61 }
 0x42a   : > { %v10095_v5 = vpop.f32.mrb[96].mxu0 }
 0x42b   : > { %v5676_v45 = vadd.f32 %v10095_v5, %v16591_v19  ;;  %v5667_v20 = vpop.f32.mrb[97].mxu0 }
 0x42c   : > { %v5668_v53 = vadd.f32 %v16591_v19, %v5667_v20  ;;  %v10096_v31 = vpop.f32.mrb[98].mxu0  ;;  %v12022_v20 = vunpack.i.h.bf16 %v12020_v8 }
 0x42d   : > { %v5796_v40 = vmax.f32 %v5676_v45, 0.0  ;;  %v5679_v55 = vadd.f32 %v10096_v31, %v16591_v19  ;;  %v5670_v60 = vpop.f32.mrb[99].mxu0 }
 0x42e   : > { %v5794_v9 = vmax.f32 %v5668_v53, 0.0  ;;  %v5671_v61 = vadd.f32 %v16591_v19, %v5670_v60  ;;  %v19682_v53 = vld [vmem:[#allocation150_spill] sm:$0xff] }
 0x42f   : > { %5882 = vst.msk [vmem:[#allocation4 + $0x31] sm:$0xff] %vm2371_vm13, %v5796_v40  ;;  %v5797_v5 = vmax.f32 %v5679_v55, 0.0  ;;  %v3178_v28 = vsel %vm2371_vm13, %v19682_v53, %v12021_v49  ;;  %v19684_v49 = vld [vmem:[#allocation38_spill] sm:$0xff] }
 0x430   : > { %5880 = vst.msk [vmem:[#allocation4 + $0x19] sm:$0xff] %vm2371_vm13, %v5794_v9  ;;  %v5795_v27 = vmax.f32 %v5671_v61, 0.0  ;;  %3762 = vmatmul.mubr.bf16.gmra.mrb[52].mxu1 %v19681_v39  ;;  %v3179_v9 = vsel %vm2371_vm13, %v19683_v4, %v12022_v20 }
 0x431   : > { %5883 = vst.msk [vmem:[#allocation4 + $0x39] sm:$0xff] %vm2371_vm13, %v5797_v5  ;;  %3769 = vmatprep.mubr.bf16.mxu1 %v3274_v24 }
 0x432   : > { %5881 = vst.msk [vmem:[#allocation4 + $0x21] sm:$0xff] %vm2371_vm13, %v5795_v27  ;;  %v10099_v31 = vpop.f32.mrb[100].mxu0  ;;  %v3278_v27 = vpack.c.bf16 %v3179_v9, %v3178_v28 }
 0x433   : > { %v5692_v54 = vadd.f32 %v10099_v31, %v16591_v19  ;;  %v5683_v60 = vpop.f32.mrb[101].mxu0 }
 0x434   : > { %v5684_v45 = vadd.f32 %v16591_v19, %v5683_v60  ;;  %v10100_v55 = vpop.f32.mrb[102].mxu0 }
 0x435   : > { %v5800_v8 = vmax.f32 %v5692_v54, 0.0  ;;  %v5695_v39 = vadd.f32 %v10100_v55, %v16591_v19  ;;  %v5686_v40 = vpop.f32.mrb[103].mxu0 }
 0x436   : > { %v5798_v24 = vmax.f32 %v5684_v45, 0.0  ;;  %v5687_v61 = vadd.f32 %v16591_v19, %v5686_v40  ;;  %v16629_v28 = vld [vmem:[#allocation4 + $0x30] sm:$0xff] }
 0x437   : > { %5886 = vst.msk [vmem:[#allocation4 + $0x61] sm:$0xff] %vm2371_vm13, %v5800_v8  ;;  %v5801_v5 = vmax.f32 %v5695_v39, 0.0  ;;  %v16615_v31 = vld [vmem:[#allocation4 + $0x18] sm:$0xff]  ;;  %v6024_v0 = vrot.slane %v16629_v28, 1 }
 0x438   : > { %5884 = vst.msk [vmem:[#allocation4 + $0x49] sm:$0xff] %vm2371_vm13, %v5798_v24  ;;  %v5799_v60 = vmax.f32 %v5687_v61, 0.0  ;;  %3770 = vmatmul.mubr.bf16.gmra.mrb[56].mxu1 %v19684_v49  ;;  %v16619_v52 = vld [vmem:[#allocation4 + $0x38] sm:$0xff]  ;;  %v16621_v20 = vld [vmem:[#allocation4 + $0x40] sm:$0x3]  ;;  %v6019_v55 = vrot.slane %v16615_v31, 1 }
 0x439   : > { %5887 = vst.msk [vmem:[#allocation4 + $0x69] sm:$0xff] %vm2371_vm13, %v5801_v5  ;;  %3777 = vmatprep.mubr.bf16.mxu1 %v3278_v27  ;;  %v16624_v54 = vld [vmem:[#allocation4 + $0x20] sm:$0xff]  ;;  %v16626_v45 = vld [vmem:[#allocation4 + $0x28] sm:$0x3]  ;;  %v6025_v9 = vrot.slane %v16619_v52, 1  ;;  %v6027_v61 = vrot.slane %v16621_v20, 1 }
 0x43a   : > { %5885 = vst.msk [vmem:[#allocation4 + $0x51] sm:$0xff] %vm2371_vm13, %v5799_v60  ;;  %v10103_v8 = vpop.f32.mrb[104].mxu0  ;;  %v12023_v39 = vpack.i.bf16 %v16624_v54, %v16615_v31  ;;  %v6020_v40 = vrot.slane %v16624_v54, 1  ;;  %v6022_v24 = vrot.slane %v16626_v45, 1 }
 0x43b   : > { %v5708_v5 = vadd.f32 %v10103_v8, %v16591_v19  ;;  %v5699_v27 = vpop.f32.mrb[105].mxu0 }
 0x43c   : > { %v5700_v49 = vadd.f32 %v16591_v19, %v5699_v27  ;;  %v10104_v17 = vpop.f32.mrb[106].mxu0  ;;  %12024 = vrot.lane.b32.xlu0 %v12023_v39, %s19357_s27  ;;  %v16642_v60 = vsel %vm863_vm3, %v6019_v55, %v6020_v40  ;;  %v16645_v37 = vsel %vm863_vm3, %v6020_v40, %v6022_v24  ;;  %v12033_v27 = vpack.i.bf16 %v16619_v52, %v16629_v28 }
 0x43d   : > { %19685 = vst [vmem:[#allocation75_spill] sm:$0xff] %v16642_v60  ;;  %19686 = vst [vmem:[#allocation84_spill] sm:$0xff] %v16645_v37  ;;  %v5804_v23 = vmax.f32 %v5708_v5, 0.0  ;;  %v5711_v2 = vadd.f32 %v10104_v17, %v16591_v19  ;;  %v5702_v29 = vpop.f32.mrb[107].mxu0  ;;  %v12038_v8 = vpack.i.bf16 %v16645_v37, %v16642_v60  ;;  %v16655_v55 = vsel %vm863_vm3, %v6024_v0, %v6025_v9 }
 0x43e   : > { %v5802_v6 = vmax.f32 %v5700_v49, 0.0  ;;  %v5703_v39 = vadd.f32 %v16591_v19, %v5702_v29  ;;  %19687 = vst [vmem:[#allocation83_spill] sm:$0xff] %v16655_v55  ;;  %v16658_v40 = vsel %vm863_vm3, %v6025_v9, %v6027_v61  ;;  %v3220_v17 = vpack.c.bf16 %v19632_v32, %v19631_v50  ;;  %v19689_v29 = vld [vmem:[#allocation42_spill] sm:$0xff] }
 0x43f   : > { %19688 = vst [vmem:[#allocation76_spill] sm:$0xff] %v16658_v40  ;;  %5890 = vst.msk [vmem:[#allocation4 + $0x91] sm:$0xff] %vm2371_vm13, %v5804_v23  ;;  %v5805_v24 = vmax.f32 %v5711_v2, 0.0  ;;  %12039 = vrot.lane.b32.xlu1 %v12038_v8, %s19357_s27  ;;  %v16664_v5 = vld [vmem:[#allocation4 + $0x48] sm:$0xff]  ;;  %v12048_v2 = vpack.i.bf16 %v16658_v40, %v16655_v55  ;;  %v16682_v32 = vld [vmem:[#allocation4 + $0x60] sm:$0xff] }
 0x440   : > { %5888 = vst.msk [vmem:[#allocation4 + $0x79] sm:$0xff] %vm2371_vm13, %v5802_v6  ;;  %v5803_v49 = vmax.f32 %v5703_v39, 0.0  ;;  %3778 = vmatmul.mubr.bf16.gmra.mrb[60].mxu1 %v19689_v29  ;;  %12034 = vrot.lane.b32.xlu0 %v12033_v27, %s19357_s27  ;;  %v16669_v0 = vld [vmem:[#allocation4 + $0x68] sm:$0xff]  ;;  %v16671_v9 = vld [vmem:[#allocation4 + $0x70] sm:$0x3]  ;;  %v6029_v6 = vrot.slane %v16664_v5, 1  ;;  %v3225_v29 = vpack.c.bf16 %v19636_v34, %v19635_v14 }
 0x441   : > { %5891 = vst.msk [vmem:[#allocation4 + $0x99] sm:$0xff] %vm2371_vm13, %v5805_v24  ;;  %10055 = vmatprep.mubr.msk.bf16.mxu1 %vm2371_vm13, %v3220_v17  ;;  %v16677_v23 = vld [vmem:[#allocation4 + $0x50] sm:$0xff]  ;;  %v16679_v50 = vld [vmem:[#allocation4 + $0x58] sm:$0x3]  ;;  %v6035_v61 = vrot.slane %v16669_v0, 1  ;;  %v6037_v17 = vrot.slane %v16671_v9, 1 }
 0x442   : > { %5889 = vst.msk [vmem:[#allocation4 + $0x81] sm:$0xff] %vm2371_vm13, %v5803_v49  ;;  %v10107_v8 = vpop.f32.mrb[108].mxu0  ;;  %v12043_v27 = vpack.i.bf16 %v16677_v23, %v16664_v5  ;;  %v6030_v39 = vrot.slane %v16677_v23, 1  ;;  %v6032_v24 = vrot.slane %v16679_v50, 1  ;;  %v6034_v44 = vrot.slane %v16682_v32, 1 }
 0x443   : > { %v5724_v40 = vadd.f32 %v10107_v8, %v16591_v19  ;;  %v5715_v55 = vpop.f32.mrb[109].mxu0  ;;  %12049 = vrot.lane.b32.xlu1 %v12048_v2, %s19357_s27 }
 0x444   : > { %v5716_v49 = vadd.f32 %v16591_v19, %v5715_v55  ;;  %v10108_v60 = vpop.f32.mrb[110].mxu0  ;;  %12044 = vrot.lane.b32.xlu0 %v12043_v27, %s19357_s27  ;;  %v16698_v37 = vsel %vm863_vm3, %v6029_v6, %v6030_v39  ;;  %v16701_v42 = vsel %vm863_vm3, %v6030_v39, %v6032_v24  ;;  %v12053_v55 = vpack.i.bf16 %v16669_v0, %v16682_v32  ;;  %v12316_v6 = vld [vmem:[%s18968_s8] sm:$0xff]  }
 0x445   : > { %19690 = vst [vmem:[#allocation88_spill] sm:$0xff] %v16698_v37  ;;  %19691 = vst [vmem:[#allocation85_spill] sm:$0xff] %v16701_v42  ;;  %v5808_v22 = vmax.f32 %v5724_v40, 0.0  ;;  %v5727_v14 = vadd.f32 %v10108_v60, %v16591_v19  ;;  %v5718_v34 = vpop.f32.mrb[111].mxu0  ;;  %v12058_v2 = vpack.i.bf16 %v16701_v42, %v16698_v37  ;;  %v16714_v39 = vsel %vm863_vm3, %v6034_v44, %v6035_v61  ;;  %v12317_v60 = vld [vmem:[%s18968_s8 + $0x48] sm:$0xff]  }
 0x446   : > { %v5806_v8 = vmax.f32 %v5716_v49, 0.0  ;;  %v5719_v27 = vadd.f32 %v16591_v19, %v5718_v34  ;;  %19692 = vst [vmem:[#allocation90_spill] sm:$0xff] %v16714_v39  ;;  %v16717_v40 = vsel %vm863_vm3, %v6035_v61, %v6037_v17  ;;  %v3229_v49 = vpack.c.bf16 %v19639_v36, %v19638_v35  ;;  %v16747_v34 = vld [vmem:[#allocation4 + $0x90] sm:$0xff] }
 0x447   : > { %19693 = vst [vmem:[#allocation89_spill] sm:$0xff] %v16717_v40  ;;  %5894 = vst.msk [vmem:[#allocation4 + $0xc1] sm:$0xff] %vm2371_vm13, %v5808_v22  ;;  %v5809_v24 = vmax.f32 %v5727_v14, 0.0  ;;  %12059 = vrot.lane.b32.xlu1 %v12058_v2, %s19357_s27  ;;  %v16726_v42 = vld [vmem:[#allocation4 + $0x78] sm:$0xff]  ;;  %v12318_v22 = vld [vmem:[%s18968_s8 + $0x8] sm:$0xff]   ;;  %v12068_v35 = vpack.i.bf16 %v16717_v40, %v16714_v39  ;;  %v6044_v59 = vrot.slane %v16747_v34, 1 }
 0x448   : > { %5892 = vst.msk [vmem:[#allocation4 + $0xa9] sm:$0xff] %vm2371_vm13, %v5806_v8  ;;  %v5807_v44 = vmax.f32 %v5719_v27, 0.0  ;;  %10056 = vmatmul.mubr.msk.bf16.vlgmr.msra.gmra.mrb[64].mxu1 %vm2371_vm13, %v3225_v29  ;;  %12054 = vrot.lane.b32.xlu0 %v12053_v55, %s19357_s27  ;;  %v16731_v61 = vld [vmem:[#allocation4 + $0x98] sm:$0xff]  ;;  %v16733_v17 = vld [vmem:[#allocation4 + $0xa0] sm:$0x3]  ;;  %v6039_v14 = vrot.slane %v16726_v42, 1 }
 0x449   : > { %5895 = vst.msk [vmem:[#allocation4 + $0xc9] sm:$0xff] %vm2371_vm13, %v5809_v24  ;;  %10059 = vmatprep.mubr.msk.bf16.mxu1 %vm2371_vm13, %v3229_v49  ;;  %v16742_v36 = vld [vmem:[#allocation4 + $0x80] sm:$0xff]  ;;  %v16744_v29 = vld [vmem:[#allocation4 + $0x88] sm:$0x3]  ;;  %v6045_v2 = vrot.slane %v16731_v61, 1  ;;  %9667 = vmatpush3.bf16.msra.mxu1 %v12316_v6  ;;  %v6047_v49 = vrot.slane %v16733_v17, 1 }
 0x44a   : > { %5893 = vst.msk [vmem:[#allocation4 + $0xb1] sm:$0xff] %vm2371_vm13, %v5807_v44  ;;  %v10111_v55 = vpop.f32.mrb[112].mxu0  ;;  %v12063_v8 = vpack.i.bf16 %v16742_v36, %v16726_v42  ;;  %v6040_v27 = vrot.slane %v16742_v36, 1  ;;  %v6042_v24 = vrot.slane %v16744_v29, 1  ;;  %9668 = vmatprep.subr.bf16.mxu1 %v12317_v60  ;;  %v12319_v40 = vld [vmem:[%s18968_s8 + $0x50] sm:$0xff]   ;;  %v3233_v44 = vpack.c.bf16 %v19643_v38, %v19642_v58 }
 0x44b   : > { %v5740_v39 = vadd.f32 %v10111_v55, %v16591_v19  ;;  %v5731_v6 = vpop.f32.mrb[113].mxu0  ;;  %12069 = vrot.lane.b32.xlu1 %v12068_v35, %s19357_s27  ;;  %v12073_v38 = vpack.i.bf16 %v16731_v61, %v16747_v34 }
 0x44c   : > { %v5732_v37 = vadd.f32 %v16591_v19, %v5731_v6  ;;  %v10112_v3 = vpop.f32.mrb[114].mxu0  ;;  %12064 = vrot.lane.b32.xlu0 %v12063_v8, %s19357_s27  ;;  %v16766_v10 = vsel %vm863_vm3, %v6039_v14, %v6040_v27  ;;  %v16769_v60 = vsel %vm863_vm3, %v6040_v27, %v6042_v24  ;;  %v12320_v14 = vld [vmem:[%s18968_s8 + $0x10] sm:$0xff]   ;;  %v16782_v24 = vsel %vm863_vm3, %v6044_v59, %v6045_v2 }
 0x44d   : > { %19694 = vst [vmem:[#allocation91_spill] sm:$0xff] %v16766_v10  ;;  %19695 = vst [vmem:[#allocation103_spill] sm:$0xff] %v16769_v60  ;;  %v5812_v55 = vmax.f32 %v5740_v39, 0.0  ;;  %v5743_v25 = vadd.f32 %v10112_v3, %v16591_v19  ;;  %v5734_v35 = vpop.f32.mrb[115].mxu0  ;;  %v12078_v58 = vpack.i.bf16 %v16769_v60, %v16766_v10  ;;  %9669 = vmatpush3.bf16.msra.mxu1 %v12318_v22  ;;  %v12321_v39 = vld [vmem:[%s18968_s8 + $0x58] sm:$0xff]   ;;  %v12335_v60 = vld [vmem:[%s18968_s8 + $0x88] sm:$0xff]  }
 0x44e   : > { %v5810_v8 = vmax.f32 %v5732_v37, 0.0  ;;  %v5735_v27 = vadd.f32 %v16591_v19, %v5734_v35  ;;  %19696 = vst [vmem:[#allocation57_spill] sm:$0xff] %v16782_v24  ;;  %v16785_v3 = vsel %vm863_vm3, %v6045_v2, %v6047_v49  ;;  %9670 = vmatprep.subr.bf16.mxu1 %v12319_v40  ;;  %v3237_v37 = vpack.c.bf16 %v19646_v13, %v19645_v48 }
 0x44f   : > { %19697 = vst [vmem:[#allocation61_spill] sm:$0xff] %v16785_v3  ;;  %5898 = vst.msk [vmem:[#allocation4 + $0xf1] sm:$0xff] %vm2371_vm13, %v5812_v55  ;;  %v5813_v22 = vmax.f32 %v5743_v25, 0.0  ;;  %12079 = vrot.lane.b32.xlu1 %v12078_v58, %s19357_s27  ;;  %v16794_v6 = vld [vmem:[#allocation4 + $0xa8] sm:$0xff]  ;;  %v12322_v25 = vld [vmem:[%s18968_s8 + $0x18] sm:$0xff]   ;;  %v12088_v48 = vpack.i.bf16 %v16785_v3, %v16782_v24 }
 0x450   : > { %5896 = vst.msk [vmem:[#allocation4 + $0xd9] sm:$0xff] %vm2371_vm13, %v5810_v8  ;;  %v5811_v59 = vmax.f32 %v5735_v27, 0.0  ;;  %10060 = vmatmul.mubr.msk.bf16.gmra.mrb[68].mxu1 %vm2371_vm13, %v3233_v44  ;;  %12074 = vrot.lane.b32.xlu0 %v12073_v38, %s19357_s27  ;;  %v16799_v40 = vld [vmem:[#allocation4 + $0xc8] sm:$0xff]  ;;  %v16801_v2 = vld [vmem:[#allocation4 + $0xd0] sm:$0x3]  ;;  %v6049_v44 = vrot.slane %v16794_v6, 1 }
 0x451   : > { %5899 = vst.msk [vmem:[#allocation4 + $0xf9] sm:$0xff] %vm2371_vm13, %v5813_v22  ;;  %10063 = vmatprep.mubr.msk.bf16.mxu1 %vm2371_vm13, %v3237_v37  ;;  %v16810_v13 = vld [vmem:[#allocation4 + $0xb0] sm:$0xff]  ;;  %v16812_v49 = vld [vmem:[#allocation4 + $0xb8] sm:$0x3]  ;;  %v16815_v55 = vld [vmem:[#allocation4 + $0xc0] sm:$0xff]  ;;  %v6055_v35 = vrot.slane %v16799_v40, 1  ;;  %9671 = vmatpush3.bf16.msra.mxu1 %v12320_v14 }
 0x452   : > { %5897 = vst.msk [vmem:[#allocation4 + $0xe1] sm:$0xff] %vm2371_vm13, %v5811_v59  ;;  %v12083_v58 = vpack.i.bf16 %v16810_v13, %v16794_v6  ;;  %v6050_v38 = vrot.slane %v16810_v13, 1  ;;  %v6052_v8 = vrot.slane %v16812_v49, 1  ;;  %v6057_v27 = vrot.slane %v16801_v2, 1  ;;  %9672 = vmatprep.subr.bf16.mxu1 %v12321_v39  ;;  %v12323_v22 = vld [vmem:[%s18968_s8 + $0x60] sm:$0xff]   ;;  %v12327_v24 = vld [vmem:[%s18968_s8 + $0x70] sm:$0xff]  }
 0x453   : > { %12089 = vrot.lane.b32.xlu1 %v12088_v48, %s19357_s27  ;;  %v6054_v59 = vrot.slane %v16815_v55, 1  ;;  %v12324_v39 = vld [vmem:[%s18968_s8 + $0x20] sm:$0xff]   ;;  %v3241_v48 = vpack.c.bf16 %v19650_v16, %v19649_v1  ;;  %v12326_v16 = vld [vmem:[%s18968_s8 + $0x28] sm:$0xff]  }
 0x454   : > { %12084 = vrot.lane.b32.xlu0 %v12083_v58, %s19357_s27  ;;  %v16830_v14 = vsel %vm863_vm3, %v6049_v44, %v6050_v38  ;;  %v16833_v37 = vsel %vm863_vm3, %v6050_v38, %v6052_v8  ;;  %v12093_v44 = vpack.i.bf16 %v16799_v40, %v16815_v55  ;;  %v16849_v38 = vsel %vm863_vm3, %v6055_v35, %v6057_v27 }
 0x455   : > { %19698 = vst [vmem:[#allocation59_spill] sm:$0xff] %v16830_v14  ;;  %19699 = vst [vmem:[#allocation62_spill] sm:$0xff] %v16833_v37  ;;  %v12098_v3 = vpack.i.bf16 %v16833_v37, %v16830_v14  ;;  %9673 = vmatpush3.bf16.msra.mxu1 %v12322_v25  ;;  %v16846_v58 = vsel %vm863_vm3, %v6054_v59, %v6055_v35  ;;  %v12325_v25 = vld [vmem:[%s18968_s8 + $0x68] sm:$0xff]   ;;  %v3245_v8 = vpack.c.bf16 %v19655_v41, %v19654_v63  ;;  %v12332_v35 = vld [vmem:[%s18968_s8 + $0xc0] sm:$0xff]  }
 0x456   : > { %19700 = vst [vmem:[#allocation106_spill] sm:$0xff] %v16846_v58  ;;  %19701 = vst [vmem:[#allocation115_spill] sm:$0xff] %v16849_v38  ;;  %9674 = vmatprep.subr.bf16.mxu1 %v12323_v22  ;;  %v16867_v27 = vld [vmem:[#allocation4 + $0xf0] sm:$0xff]  ;;  %v12108_v63 = vpack.i.bf16 %v16849_v38, %v16846_v58  ;;  %9778 = vmatprep.subr.bf16.mxu0 %v12332_v35 }
 0x457   : > { %12099 = vrot.lane.b32.xlu1 %v12098_v3, %s19357_s27  ;;  %v16857_v1 = vld [vmem:[#allocation4 + $0xd8] sm:$0xff]  ;;  %v6064_v35 = vrot.slane %v16867_v27, 1 }
 0x458   : > { %10064 = vmatmul.mubr.msk.bf16.gmra.mrb[72].mxu1 %vm2371_vm13, %v3241_v48  ;;  %12094 = vrot.lane.b32.xlu0 %v12093_v44, %s19357_s27  ;;  %v16869_v3 = vld [vmem:[#allocation4 + $0xf8] sm:$0xff]  ;;  %v16871_v22 = vld [vmem:[#allocation4 + $0x100] sm:$0x3]  ;;  %v6059_v37 = vrot.slane %v16857_v1, 1 }
 0x459   : > { %19702 = vst [vmem:[#allocation116_spill] sm:$0xff] %v16871_v22  ;;  %10067 = vmatprep.mubr.msk.bf16.mxu1 %vm2371_vm13, %v3245_v8  ;;  %v16876_v41 = vld [vmem:[#allocation4 + $0xe0] sm:$0xff]  ;;  %v16878_v59 = vld [vmem:[#allocation4 + $0xe8] sm:$0x3]  ;;  %v6065_v48 = vrot.slane %v16869_v3, 1  ;;  %9675 = vmatpush3.bf16.msra.mxu1 %v12324_v39  ;;  %v6067_v58 = vrot.slane %v16871_v22, 1 }
 0x45a   : > { %v12333_v44 = vld [vmem:[%s18968_s8 + $0x80] sm:$0xff]   ;;  %v12103_v14 = vpack.i.bf16 %v16876_v41, %v16857_v1  ;;  %v6060_v8 = vrot.slane %v16876_v41, 1  ;;  %v6062_v38 = vrot.slane %v16878_v59, 1  ;;  %9676 = vmatprep.subr.bf16.mxu1 %v12325_v25  ;;  %v12334_v39 = vld [vmem:[%s18968_s8 + $0xc8] sm:$0xff]  }
 0x45b   : > { %12109 = vrot.lane.b32.xlu1 %v12108_v63, %s19357_s27  ;;  %9779 = vmatpush3.bf16.msra.mxu0 %v12333_v44  ;;  %v12328_v63 = vld [vmem:[%s18968_s8 + $0x30] sm:$0xff]   ;;  %v16921_v44 = vsel %vm863_vm3, %v6065_v48, %v6067_v58  ;;  %v16949_v58 = vld [vmem:[%s18968_s8 + $0x100] sm:$0xff]  }
 0x45c   : > { %12104 = vrot.lane.b32.xlu0 %v12103_v14, %s19357_s27  ;;  %v16902_v25 = vsel %vm863_vm3, %v6059_v37, %v6060_v8  ;;  %v16905_v10 = vsel %vm863_vm3, %v6060_v8, %v6062_v38  ;;  %9780 = vmatprep.subr.bf16.mxu0 %v12334_v39  ;;  %v3249_v14 = vpack.c.bf16 %v19659_v46, %v19658_v51  ;;  %v12336_v51 = vld [vmem:[%s18968_s8 + $0xd0] sm:$0xff]   ;;  %v12339_v39 = vld [vmem:[%s18968_s8 + $0x98] sm:$0xff]  }
 0x45d   : > { %19703 = vst [vmem:[#allocation125_spill] sm:$0xff] %v16902_v25  ;;  %19704 = vst [vmem:[#allocation126_spill] sm:$0xff] %v16905_v10  ;;  %v12118_v22 = vpack.i.bf16 %v16905_v10, %v16902_v25  ;;  %9677 = vmatpush3.bf16.msra.mxu1 %v12326_v16  ;;  %v12113_v37 = vpack.i.bf16 %v16869_v3, %v16867_v27  ;;  %v16918_v38 = vsel %vm863_vm3, %v6064_v35, %v6065_v48  ;;  %v12329_v16 = vld [vmem:[%s18968_s8 + $0x78] sm:$0xff]  }
 0x45e   : > { %19705 = vst [vmem:[#allocation117_spill] sm:$0xff] %v16918_v38  ;;  %19706 = vst [vmem:[#allocation131_spill] sm:$0xff] %v16921_v44  ;;  %9678 = vmatprep.subr.bf16.mxu1 %v12327_v24  ;;  %v3253_v8 = vpack.c.bf16 %v19662_v57, %v19661_v7  ;;  %v12128_v46 = vpack.i.bf16 %v16921_v44, %v16918_v38  ;;  %v12330_v24 = vld [vmem:[%s18968_s8 + $0x38] sm:$0xff]   ;;  %v12337_v7 = vld [vmem:[%s18968_s8 + $0x90] sm:$0xff]  }
 0x45f   : > { %12119 = vrot.lane.b32.xlu1 %v12118_v22, %s19357_s27  ;;  %9781 = vmatpush3.bf16.msra.mxu0 %v12335_v60  ;;  %v12338_v57 = vld [vmem:[%s18968_s8 + $0xd8] sm:$0xff]  }
 0x460   : > { %10068 = vmatmul.mubr.msk.bf16.gmra.mrb[76].mxu1 %vm2371_vm13, %v3249_v14  ;;  %12114 = vrot.lane.b32.xlu0 %v12113_v37, %s19357_s27 }
 0x461   : > { %10071 = vmatprep.mubr.msk.bf16.mxu1 %vm2371_vm13, %v3253_v8  ;;  %9679 = vmatpush3.bf16.msra.mxu1 %v12328_v63 }
 0x462   : > { %v10115_v60 = vpop.f32.mrb[116].mxu0  ;;  %9680 = vmatprep.subr.bf16.mxu1 %v12329_v16  ;;  %9782 = vmatprep.subr.bf16.mxu0 %v12336_v51 }
 0x463   : > { %v5756_v22 = vadd.f32 %v10115_v60, %v16591_v19  ;;  %v5747_v48 = vpop.f32.mrb[117].mxu0  ;;  %12129 = vrot.lane.b32.xlu1 %v12128_v46, %s19357_s27  ;;  %9783 = vmatpush3.bf16.msra.mxu0 %v12337_v7  ;;  %v3257_v46 = vpack.c.bf16 %v19666_v43, %v19665_v62  ;;  %v3261_v60 = vpack.c.bf16 %v19671_v15, %v19670_v56  ;;  %v12341_v62 = vld [vmem:[%s18968_s8 + $0xa0] sm:$0xff]   ;;  %v12343_v43 = vld [vmem:[%s18968_s8 + $0xe8] sm:$0xff]  }
 0x464   : > { %v5748_v35 = vadd.f32 %v16591_v19, %v5747_v48  ;;  %v10116_v63 = vpop.f32.mrb[118].mxu0  ;;  %9784 = vmatprep.subr.bf16.mxu0 %v12338_v57  ;;  %v12340_v57 = vld [vmem:[%s18968_s8 + $0xe0] sm:$0xff]   ;;  %v12344_v56 = vld [vmem:[%s18968_s8 + $0xa8] sm:$0xff]   ;;  %v3265_v15 = vpack.c.bf16 %v19676_v30, %v19675_v11 }
 0x465   : > { %v5816_v14 = vmax.f32 %v5756_v22, 0.0  ;;  %v5759_v37 = vadd.f32 %v10116_v63, %v16591_v19  ;;  %v5750_v16 = vpop.f32.mrb[119].mxu0  ;;  %9681 = vmatpush3.bf16.msra.mxu1 %v12330_v24  ;;  %v3269_v22 = vpack.c.bf16 %v19680_v21, %v19679_v26 }
 0x466   : > { %v5814_v8 = vmax.f32 %v5748_v35, 0.0  ;;  %v5751_v51 = vadd.f32 %v16591_v19, %v5750_v16  ;;  %10125 = vmatprep.subr.bf16.mxu1 %v16949_v58 }
 0x467   : > { %5902 = vst.msk [vmem:[#allocation4 + $0x121] sm:$0xff] %vm2371_vm13, %v5816_v14  ;;  %v5817_v7 = vmax.f32 %v5759_v37, 0.0  ;;  %9785 = vmatpush3.bf16.msra.mxu0 %v12339_v39  ;;  %v12345_v39 = vld [vmem:[%s18968_s8 + $0xf0] sm:$0xff]   ;;  %v12347_v37 = vld [vmem:[%s18968_s8 + $0xf8] sm:$0xff]  }
 0x468   : > { %5900 = vst.msk [vmem:[#allocation4 + $0x109] sm:$0xff] %vm2371_vm13, %v5814_v8  ;;  %v5815_v24 = vmax.f32 %v5751_v51, 0.0  ;;  %10072 = vmatmul.mubr.msk.bf16.gmra.mrb[80].mxu1 %vm2371_vm13, %v3257_v46  ;;  %9786 = vmatprep.subr.bf16.mxu0 %v12340_v57  ;;  %v12346_v14 = vld [vmem:[%s18968_s8 + $0xb0] sm:$0xff]   ;;  %v6196_v8 = vrot.slane %v16624_v54, 2  ;;  %v6198_v51 = vrot.slane %v16626_v45, 2  ;;  %v19710_v45 = vld [vmem:[#allocation21_spill] sm:$0xff] }
 0x469   : > { %5903 = vst.msk [vmem:[#allocation4 + $0x129] sm:$0xff] %vm2371_vm13, %v5817_v7  ;;  %10075 = vmatprep.mubr.msk.bf16.mxu1 %vm2371_vm13, %v3261_v60  ;;  %v19709_v60 = vld [vmem:[#allocation20_spill] sm:$0xff] }
 0x46a   : > { %5901 = vst.msk [vmem:[#allocation4 + $0x111] sm:$0xff] %vm2371_vm13, %v5815_v24  ;;  %v3107_v57 = vrot.slane %v19709_v60, 2  ;;  %v17041_v60 = vsel %vm1040_vm2, %v6196_v8, %v6198_v51 }
 0x46b   : > { %9787 = vmatpush3.bf16.msra.mxu0 %v12341_v62 }
 0x46c   : > { %9788 = vmatprep.subr.bf16.mxu0 %v12343_v43 }
 0x46e   : > { %v17024_v43 = vld [vmem:[#allocation4 + $0x120] sm:$0xff] }
 0x46f   : > { %v16986_v48 = vld [vmem:[#allocation4 + $0x108] sm:$0xff]  ;;  %9789 = vmatpush3.bf16.msra.mxu0 %v12344_v56  ;;  %v6195_v56 = vrot.slane %v16615_v31, 2 }
 0x470   : > { %10076 = vmatmul.mubr.msk.bf16.gmra.mrb[84].mxu1 %vm2371_vm13, %v3265_v15  ;;  %9790 = vmatprep.subr.bf16.mxu0 %v12345_v39  ;;  %v6069_v11 = vrot.slane %v16986_v48, 1  ;;  %v17008_v16 = vld [vmem:[#allocation4 + $0x128] sm:$0xff]  ;;  %v17020_v24 = vld [vmem:[#allocation4 + $0x130] sm:$0x3]  ;;  %v3108_v15 = vrot.slane %v19710_v45, 2 }
 0x471   : > { %10079 = vmatprep.mubr.msk.bf16.mxu1 %vm2371_vm13, %v3269_v22  ;;  %v16993_v35 = vld [vmem:[#allocation4 + $0x110] sm:$0xff]  ;;  %v16995_v63 = vld [vmem:[#allocation4 + $0x118] sm:$0x3]  ;;  %v19711_v22 = vld [vmem:[#allocation22_spill] sm:$0xff]  ;;  %v6077_v45 = vrot.slane %v17020_v24, 1 }
 0x472   : > { %v12123_v30 = vpack.i.bf16 %v16993_v35, %v16986_v48  ;;  %v6070_v26 = vrot.slane %v16993_v35, 1  ;;  %v6072_v21 = vrot.slane %v16995_v63, 1  ;;  %v3110_v39 = vrot.slane %v19711_v22, 2 }
 0x473   : > { %9791 = vmatpush3.bf16.msra.mxu0 %v12346_v14  ;;  %v6075_v14 = vrot.slane %v17008_v16, 1 }
 0x474   : > { %12124 = vrot.lane.b32.xlu0 %v12123_v30, %s19357_s27  ;;  %v17014_v46 = vsel %vm863_vm3, %v6069_v11, %v6070_v26  ;;  %v17017_v7 = vsel %vm863_vm3, %v6070_v26, %v6072_v21  ;;  %v12348_v30 = vld [vmem:[%s18968_s8 + $0xb8] sm:$0xff]   ;;  %v3273_v11 = vpack.c.bf16 %v19683_v4, %v19682_v53  ;;  %v12133_v26 = vpack.i.bf16 %v17008_v16, %v17024_v43  ;;  %v19712_v53 = vld [vmem:[#allocation147_spill] sm:$0xff]  ;;  %v19713_v4 = vld [vmem:[#allocation146_spill] sm:$0xff] }
 0x475   : > { %19707 = vst [vmem:[#allocation120_spill] sm:$0xff] %v17014_v46  ;;  %19708 = vst [vmem:[#allocation78_spill] sm:$0xff] %v17017_v7  ;;  %v12138_v62 = vpack.i.bf16 %v17017_v7, %v17014_v46  ;;  %9792 = vmatprep.subr.bf16.mxu0 %v12347_v37  ;;  %v17038_v21 = vsel %vm1040_vm2, %v6195_v56, %v6196_v8  ;;  %v19714_v22 = vpack.c.bf16 %v19712_v53, %v19713_v4 }
 0x476   : > { %v3109_v37 = vsel %vm1040_vm2, %v3107_v57, %v3108_v15  ;;  %v6074_v8 = vrot.slane %v17024_v43, 1  ;;  %v12143_v51 = vpack.i.bf16 %v17041_v60, %v17038_v21 }
 0x477   : > { %12139 = vrot.lane.b32.xlu1 %v12138_v62, %s19357_s27  ;;  %v3111_v62 = vsel %vm1040_vm2, %v3108_v15, %v3110_v39  ;;  %9793 = vmatpush3.bf16.msra.mxu0 %v12348_v30 }
 0x478   : > { %10080 = vmatmul.mubr.msk.bf16.gmra.mrb[88].mxu1 %vm2371_vm13, %v3273_v11  ;;  %12134 = vrot.lane.b32.xlu0 %v12133_v26, %s19357_s27  ;;  %v17057_v56 = vsel %vm863_vm3, %v6074_v8, %v6075_v14  ;;  %v17060_v11 = vsel %vm863_vm3, %v6075_v14, %v6077_v45  ;;  %v3281_v26 = vpack.c.bf16 %v3111_v62, %v3109_v37  ;;  %v17071_v14 = vld [vmem:[%s19717_s5] ss:$0 sm:$0xff] }
 0x479   : > { %10083 = vmatprep.mubr.msk.bf16.mxu1 %vm2371_vm13, %v19714_v22  ;;  %19715 = vst [vmem:[#allocation79_spill] sm:$0xff] %v17057_v56  ;;  %19716 = vst [vmem:[#allocation132_spill] sm:$0xff] %v17060_v11  ;;  %v12153_v57 = vpack.i.bf16 %v17060_v11, %v17057_v56 }
 0x47c   : > { %12144 = vrot.lane.b32.xlu0 %v12143_v51, %s19357_s27 }
 0x480   : > { %10084 = vmatmul.mubr.msk.bf16.gmra.mrb[92].mxu1 %vm2371_vm13, %v3281_v26  ;;  %12154 = vrot.lane.b32.xlu0 %v12153_v57, %s19357_s27 }
 0x485   : > { %v10119_v15 = vpop.f32.mrb[120].mxu0 }
 0x486   : > { %v9419_v39 = vpop.f32.mrb[0].mxu1  ;;  %v5772_v30 = vadd.f32 %v10119_v15, %v16591_v19  ;;  %v5763_v53 = vpop.f32.mrb[121].mxu0 }
 0x487   : > { %v9420_v45 = vpop.f32.mrb[1].mxu1  ;;  %v5764_v4 = vadd.f32 %v16591_v19, %v5763_v53  ;;  %v10120_v22 = vpop.f32.mrb[122].mxu0 }
 0x488   : > { %v5820_v37 = vmax.f32 %v5772_v30, 0.0  ;;  %v9421_v62 = vadd.f32 %v9420_v45, %v9419_v39  ;;  %v9422_v8 = vpop.f32.mrb[2].mxu1  ;;  %v5775_v51 = vadd.f32 %v10120_v22, %v16591_v19  ;;  %v5766_v26 = vpop.f32.mrb[123].mxu0  ;;  %v19718_v30 = vld [vmem:[#allocation37_spill] sm:$0xff]  ;;  %v19720_v22 = vld [vmem:[#allocation23_spill] sm:$0xff] }
 0x489   : > { %v5818_v57 = vmax.f32 %v5764_v4, 0.0  ;;  %v9423_v11 = vpop.f32.mrb[3].mxu1  ;;  %v5767_v15 = vadd.f32 %v16591_v19, %v5766_v26 }
 0x48a   : > { %5906 = vst.msk [vmem:[#allocation4 + $0x151] sm:$0xff] %vm2371_vm13, %v5820_v37  ;;  %v3660_v56 = vadd.f32 %v9421_v62, %v17071_v14  ;;  %v5821_v7 = vmax.f32 %v5775_v51, 0.0  ;;  %v9424_v46 = vadd.f32 %v9423_v11, %v9422_v8  ;;  %v6201_v62 = vrot.slane %v16619_v52, 2 }
 0x48b   : > { %5904 = vst.msk [vmem:[#allocation4 + $0x139] sm:$0xff] %vm2371_vm13, %v5818_v57  ;;  %v5819_v53 = vmax.f32 %v5767_v15, 0.0  ;;  %v6203_v11 = vrot.slane %v16621_v20, 2 }
 0x48c   : > { %5907 = vst.msk [vmem:[#allocation4 + $0x159] sm:$0xff] %vm2371_vm13, %v5821_v7  ;;  %v3663_v39 = vadd.f32 %v9424_v46, %v17071_v14  ;;  %v17082_v45 = vadd.f32 %v19718_v30, %v3660_v56  ;;  %v6206_v7 = vrot.slane %v16677_v23, 2  ;;  %v6208_v46 = vrot.slane %v16679_v50, 2 }
 0x48d   : > { %5905 = vst.msk [vmem:[#allocation4 + $0x141] sm:$0xff] %vm2371_vm13, %v5819_v53  ;;  %v6200_v56 = vrot.slane %v16629_v28, 2  ;;  %v6205_v53 = vrot.slane %v16664_v5, 2  ;;  %v17102_v20 = vsel %vm1040_vm2, %v6201_v62, %v6203_v11 }
 0x48e   : > { %19719 = vst [vmem:[#allocation92_spill] sm:$0xff] %v17082_v45  ;;  %v9425_v4 = vpop.f32.mrb[4].mxu1  ;;  %v17086_v26 = vadd.f32 %v19720_v22, %v3663_v39  ;;  %19725 = vst [vmem:[#allocation152_spill] sm:$0xff] %v17102_v20 }
 0x48f   : > { %v9426_v37 = vpop.f32.mrb[5].mxu1  ;;  %v17099_v22 = vsel %vm1040_vm2, %v6200_v56, %v6201_v62 }
 0x490   : > { %19721 = vst [vmem:[#allocation94_spill] sm:$0xff] %v17086_v26  ;;  %v9427_v8 = vadd.f32 %v9426_v37, %v9425_v4  ;;  %v9428_v51 = vpop.f32.mrb[6].mxu1  ;;  %19724 = vst [vmem:[#allocation133_spill] sm:$0xff] %v17099_v22 }
 0x491   : > { %v9429_v57 = vpop.f32.mrb[7].mxu1  ;;  %v17094_v30 = vld [vmem:[#allocation4 + $0x150] sm:$0xff] }
 0x492   : > { %v9430_v15 = vadd.f32 %v9429_v57, %v9428_v51  ;;  %19722 = vst [vmem:[#allocation148_spill] sm:$0xff] %v17094_v30  ;;  %v3668_v23 = vadd.f32 %v9427_v8, %v17071_v14  ;;  %v17109_v37 = vld [vmem:[#allocation4 + $0x138] sm:$0xff]  ;;  %v17114_v51 = vsel %vm1040_vm2, %v6205_v53, %v6206_v7  ;;  %v17117_v57 = vsel %vm1040_vm2, %v6206_v7, %v6208_v46 }
 0x493   : > { %v17096_v39 = vld [vmem:[#allocation4 + $0x158] sm:$0xff]  ;;  %v17104_v4 = vld [vmem:[#allocation4 + $0x160] sm:$0x3]  ;;  %19727 = vst [vmem:[#allocation153_spill] sm:$0xff] %v17109_v37  ;;  %19728 = vst [vmem:[#allocation144_spill] sm:$0xff] %v17114_v51  ;;  %v6084_v7 = vrot.slane %v17094_v30, 1  ;;  %v12173_v46 = vpack.i.bf16 %v17117_v57, %v17114_v51 }
 0x494   : > { %19723 = vst [vmem:[#allocation149_spill] sm:$0xff] %v17096_v39  ;;  %19726 = vst [vmem:[#allocation139_spill] sm:$0xff] %v17104_v4  ;;  %v12163_v50 = vpack.i.bf16 %v17096_v39, %v17094_v30  ;;  %v17111_v5 = vld [vmem:[#allocation4 + $0x140] sm:$0xff]  ;;  %v17119_v56 = vld [vmem:[#allocation4 + $0x148] sm:$0x3]  ;;  %v3671_v62 = vadd.f32 %v9430_v15, %v17071_v14  ;;  %v6085_v8 = vrot.slane %v17096_v39, 1  ;;  %v12158_v15 = vpack.i.bf16 %v17102_v20, %v17099_v22 }
 0x495   : > { %19729 = vst [vmem:[#allocation145_spill] sm:$0xff] %v17117_v57  ;;  %v12148_v11 = vpack.i.bf16 %v17111_v5, %v17109_v37  ;;  %v6087_v44 = vrot.slane %v17104_v4, 1  ;;  %v6080_v38 = vrot.slane %v17111_v5, 1  ;;  %v6082_v53 = vrot.slane %v17119_v56, 1 }
 0x496   : > { %12164 = vrot.lane.b32.xlu0 %v12163_v50, %s19357_s27  ;;  %v6079_v10 = vrot.slane %v17109_v37, 1  ;;  %v17137_v25 = vsel %vm863_vm3, %v6084_v7, %v6085_v8  ;;  %v17143_v26 = vadd.f32 %v16097_v47, %v3668_v23  ;;  %v12418_v7 = vld [vmem:[#allocation4] sm:$0xff] }
 0x497   : > { %12149 = vrot.lane.b32.xlu1 %v12148_v11, %s19357_s27  ;;  %19730 = vst [vmem:[#allocation154_spill] sm:$0xff] %v17137_v25  ;;  %v17140_v50 = vsel %vm863_vm3, %v6085_v8, %v6087_v44  ;;  %v17146_v11 = vadd.f32 %v16114_v12, %v3671_v62  ;;  %v17153_v4 = vsel %vm863_vm3, %v6080_v38, %v6082_v53  ;;  %v12030_v12 = vpop.permute.xlu1 %12029  ;;  %v6211_v8 = vrot.slane %v16669_v0, 2 }
 0x498   : > { %19731 = vst [vmem:[#allocation30_spill] sm:$0xff] %v17140_v50  ;;  %19732 = vst [vmem:[#allocation156_spill] sm:$0xff] %v17143_v26  ;;  %v17150_v45 = vsel %vm863_vm3, %v6079_v10, %v6080_v38  ;;  %v12183_v44 = vpack.i.bf16 %v17140_v50, %v17137_v25  ;;  %v12032_v23 = vunpack.i.h.bf16 %v12030_v12  ;;  %v12031_v62 = vunpack.i.l.bf16 %v12030_v12  ;;  %v12420_v25 = vld [vmem:[#allocation4 + $0x10] sm:$0x3] }
 0x499   : > { %19733 = vst [vmem:[#allocation33_spill] sm:$0xff] %v17146_v11  ;;  %19734 = vst [vmem:[#allocation96_spill] sm:$0xff] %v17150_v45  ;;  %v12168_v47 = vpack.i.bf16 %v17153_v4, %v17150_v45  ;;  %v6216_v10 = vrot.slane %v16742_v36, 2  ;;  %v6218_v38 = vrot.slane %v16744_v29, 2  ;;  %v6213_v53 = vrot.slane %v16671_v9, 2 }
 0x49a   : > { %12174 = vrot.lane.b32.xlu0 %v12173_v46, %s19357_s27  ;;  %19735 = vst [vmem:[#allocation98_spill] sm:$0xff] %v17153_v4  ;;  %v6190_v46 = vrot.slane %v12418_v7, 2  ;;  %v6193_v4 = vrot.slane %v12420_v25, 2  ;;  %v17171_v12 = vsel %vm2371_vm13, %v12418_v7, %v12031_v62  ;;  %v6210_v36 = vrot.slane %v16682_v32, 2 }
 0x49b   : > { %12159 = vrot.lane.b32.xlu1 %v12158_v15, %s19357_s27  ;;  %v12419_v15 = vld [vmem:[#allocation4 + $0x8] sm:$0xff]  ;;  %v17178_v9 = vsel %vm1040_vm2, %v6216_v10, %v6218_v38  ;;  %v6226_v29 = vrot.slane %v16810_v13, 2  ;;  %v6225_v38 = vrot.slane %v16794_v6, 2  ;;  %v6223_v6 = vrot.slane %v16733_v17, 2 }
 0x49c   : > { %v6191_v50 = vrot.slane %v12419_v15, 2  ;;  %v17182_v25 = vsel %vm1040_vm2, %v6210_v36, %v6211_v8 }
 0x49d   : > { %19736 = vst [vmem:[#allocation77_spill] sm:$0xff] %v17182_v25 }
 0x49e   : > { %12184 = vrot.lane.b32.xlu0 %v12183_v44, %s19357_s27  ;;  %v6215_v44 = vrot.slane %v16726_v42, 2  ;;  %v17185_v42 = vsel %vm1040_vm2, %v6211_v8, %v6213_v53  ;;  %v6192_v7 = vsel %vm1040_vm2, %v6190_v46, %v6191_v50  ;;  %v6220_v8 = vrot.slane %v16747_v34, 2 }
 0x49f   : > { %12169 = vrot.lane.b32.xlu1 %v12168_v47, %s19357_s27  ;;  %v17168_v47 = vsel %vm2371_vm13, %v12419_v15, %v12032_v23  ;;  %19737 = vst [vmem:[#allocation97_spill] sm:$0xff] %v17185_v42  ;;  %v6228_v23 = vrot.slane %v16812_v49, 2  ;;  %v6221_v49 = vrot.slane %v16731_v61, 2 }
 0x4a0   : > { %v17175_v0 = vsel %vm1040_vm2, %v6215_v44, %v6216_v10  ;;  %v6194_v10 = vsel %vm1040_vm2, %v6191_v50, %v6193_v4  ;;  %v17201_v4 = vsel %vm1040_vm2, %v6225_v38, %v6226_v29 }
 0x4a1   : > { %19738 = vst [vmem:[#allocation93_spill] sm:$0xff] %v17201_v4  ;;  %v17207_v61 = vsel %vm1040_vm2, %v6226_v29, %v6228_v23  ;;  %v17219_v23 = vsel %vm1040_vm2, %v6220_v8, %v6221_v49 }
 0x4a2   : > { %19739 = vst [vmem:[#allocation105_spill] sm:$0xff] %v17207_v61  ;;  %19740 = vst [vmem:[#allocation110_spill] sm:$0xff] %v17219_v23 }
 0x4ab   : > { %v9431_v45 = vpop.f32.mrb[8].mxu1 }
 0x4ac   : > { %v9432_v62 = vpop.f32.mrb[9].mxu1 }
 0x4ad   : > { %v9433_v13 = vadd.f32 %v9432_v62, %v9431_v45  ;;  %v9434_v15 = vpop.f32.mrb[10].mxu1  ;;  %v10123_v44 = vpop.f32.mrb[124].mxu0 }
 0x4ae   : > { %v9435_v53 = vpop.f32.mrb[11].mxu1  ;;  %v5788_v11 = vadd.f32 %v10123_v44, %v16591_v19  ;;  %v5779_v32 = vpop.f32.mrb[125].mxu0 }
 0x4af   : > { %v3676_v45 = vadd.f32 %v9433_v13, %v17071_v14  ;;  %v9436_v50 = vadd.f32 %v9435_v53, %v9434_v15  ;;  %v5780_v62 = vadd.f32 %v16591_v19, %v5779_v32  ;;  %v12025_v34 = vpop.permute.xlu0 %12024  ;;  %v10124_v36 = vpop.f32.mrb[126].mxu0 }
 0x4b0   : > { %v5824_v44 = vmax.f32 %v5788_v11, 0.0  ;;  %v12027_v26 = vunpack.i.h.bf16 %v12025_v34  ;;  %v12026_v30 = vunpack.i.l.bf16 %v12025_v34  ;;  %v5791_v46 = vadd.f32 %v10124_v36, %v16591_v19  ;;  %v5782_v39 = vpop.f32.mrb[127].mxu0 }
 0x4b1   : > { %v3679_v38 = vadd.f32 %v9436_v50, %v17071_v14  ;;  %v5822_v37 = vmax.f32 %v5780_v62, 0.0  ;;  %v5783_v17 = vadd.f32 %v16591_v19, %v5782_v39  ;;  %v12040_v13 = vpop.permute.xlu1 %12039  ;;  %v17213_v15 = vadd.f32 %v16156_v18, %v3676_v45 }
 0x4b2   : > { %5910 = vst.msk [vmem:[#allocation4 + $0x181] sm:$0xff] %vm2371_vm13, %v5824_v44  ;;  %v5825_v32 = vmax.f32 %v5791_v46, 0.0  ;;  %v6600_v29 = vsel %vm2371_vm13, %v6192_v7, %v12026_v30  ;;  %v6235_v11 = vrot.slane %v16857_v1, 2  ;;  %v6601_v19 = vsel %vm2371_vm13, %v6194_v10, %v12027_v26  ;;  %v12350_v1 = vld [vmem:[%s18968_s8 + $0x118] sm:$0xff]  }
 0x4b3   : > { %5908 = vst.msk [vmem:[#allocation4 + $0x169] sm:$0xff] %vm2371_vm13, %v5822_v37  ;;  %v5823_v36 = vmax.f32 %v5783_v17, 0.0  ;;  %v9437_v53 = vpop.f32.mrb[12].mxu1  ;;  %v12035_v50 = vpop.permute.xlu0 %12034  ;;  %v12213_v18 = vpack.i.bf16 %v17207_v61, %v17201_v4  ;;  %v17226_v39 = vadd.f32 %v16173_v33, %v3679_v38  ;;  %v6669_v8 = vpack.c.bf16 %v6601_v19, %v6600_v29  ;;  %v12342_v33 = vld [vmem:[%s18968_s8 + $0x108] sm:$0xff]  }
 0x4b4   : > { %5911 = vst.msk [vmem:[#allocation4 + $0x189] sm:$0xff] %vm2371_vm13, %v5825_v32  ;;  %v12037_v30 = vunpack.i.h.bf16 %v12035_v50  ;;  %v12036_v7 = vunpack.i.l.bf16 %v12035_v50  ;;  %v9438_v46 = vpop.f32.mrb[13].mxu1  ;;  %v6236_v45 = vrot.slane %v16876_v41, 2  ;;  %v12042_v37 = vunpack.i.h.bf16 %v12040_v13 }
 0x4b5   : > { %5909 = vst.msk [vmem:[#allocation4 + $0x171] sm:$0xff] %vm2371_vm13, %v5823_v36  ;;  %v12041_v62 = vunpack.i.l.bf16 %v12040_v13  ;;  %v9439_v34 = vadd.f32 %v9438_v46, %v9437_v53  ;;  %v9440_v26 = vpop.f32.mrb[14].mxu1  ;;  %v12050_v10 = vpop.permute.xlu1 %12049  ;;  %v6238_v44 = vrot.slane %v16878_v59, 2  ;;  %7109 = vmatprep.mubr.bf16.mxu1 %v6669_v8  ;;  %v19741_v59 = vpack.c.bf16 %v17168_v47, %v17171_v12 }
 0x4b6   : > { %v9441_v38 = vpop.f32.mrb[15].mxu1  ;;  %v12052_v17 = vunpack.i.h.bf16 %v12050_v10  ;;  %v12051_v32 = vunpack.i.l.bf16 %v12050_v10  ;;  %v6602_v41 = vsel %vm2371_vm13, %v17038_v21, %v12036_v7  ;;  %v6603_v29 = vsel %vm2371_vm13, %v17041_v60, %v12037_v30 }
 0x4b7   : > { %v3684_v13 = vadd.f32 %v9439_v34, %v17071_v14  ;;  %v9442_v36 = vadd.f32 %v9441_v38, %v9440_v26  ;;  %7110 = vmatmul.mubr.bf16.vlgmr.msra.gmra.mrb[96].mxu1 %v19741_v59  ;;  %v12045_v53 = vpop.permute.xlu0 %12044  ;;  %v6674_v50 = vpack.c.bf16 %v6603_v29, %v6602_v41  ;;  %v17244_v19 = vsel %vm1040_vm2, %v6221_v49, %v6223_v6  ;;  %v12349_v49 = vld [vmem:[%s18968_s8 + $0x110] sm:$0xff]  }
 0x4b8   : > { %19742 = vst [vmem:[#allocation104_spill] sm:$0xff] %v17244_v19  ;;  %v12047_v46 = vunpack.i.h.bf16 %v12045_v53  ;;  %v12046_v8 = vunpack.i.l.bf16 %v12045_v53  ;;  %v6572_v21 = vsel %vm2371_vm13, %v16629_v28, %v12051_v32  ;;  %v6573_v60 = vsel %vm2371_vm13, %v16619_v52, %v12052_v17  ;;  %10126 = vmatpush3.bf16.msra.mxu1 %v16949_v58  ;;  %v19743_v6 = vld [vmem:[#allocation24_spill] sm:$0xff] }
 0x4b9   : > { %v3687_v30 = vadd.f32 %v9442_v36, %v17071_v14  ;;  %7117 = vmatprep.mubr.bf16.mxu1 %v6674_v50  ;;  %v17252_v47 = vpack.c.bf16 %v6573_v60, %v6572_v21  ;;  %v6231_v12 = vrot.slane %v16799_v40, 2  ;;  %10127 = vmatprep.subr.bf16.mxu1 %v12342_v33  ;;  %v17259_v7 = vadd.f32 %v19743_v6, %v3684_v13  ;;  %v17268_v40 = vld [vmem:[#allocation4 + $0x180] sm:$0xff]  ;;  %v19749_v6 = vld [vmem:[#allocation116_spill] sm:$0xff] }
 0x4ba   : > { %v6570_v52 = vsel %vm2371_vm13, %v16615_v31, %v12041_v62  ;;  %v6571_v28 = vsel %vm2371_vm13, %v16624_v54, %v12042_v37  ;;  %v6230_v58 = vrot.slane %v16815_v55, 2  ;;  %v6233_v34 = vrot.slane %v16801_v2, 2  ;;  %v19744_v54 = vld [vmem:[#allocation26_spill] sm:$0xff]  ;;  %v17282_v32 = vld [vmem:[#allocation4 + $0x168] sm:$0xff] }
 0x4bb   : > { %v9443_v26 = vpop.f32.mrb[16].mxu1  ;;  %7270 = vmatprep.mubr.bf16.mxu0 %v17252_v47  ;;  %v17270_v10 = vld [vmem:[#allocation4 + $0x188] sm:$0xff]  ;;  %v6604_v38 = vsel %vm2371_vm13, %v17099_v22, %v12046_v8  ;;  %v6605_v31 = vsel %vm2371_vm13, %v17102_v20, %v12047_v46  ;;  %v6240_v62 = vrot.slane %v16867_v27, 2  ;;  %v17278_v37 = vadd.f32 %v19744_v54, %v3687_v30  ;;  %v12055_v55 = vpop.permute.xlu0 %12054 }
 0x4bc   : > { %v9444_v2 = vpop.f32.mrb[17].mxu1  ;;  %v12193_v17 = vpack.i.bf16 %v17270_v10, %v17268_v40  ;;  %v17284_v41 = vld [vmem:[#allocation4 + $0x170] sm:$0xff]  ;;  %v17286_v29 = vld [vmem:[#allocation4 + $0x178] sm:$0x3]  ;;  %v17291_v13 = vsel %vm1040_vm2, %v6235_v11, %v6236_v45  ;;  %v17294_v27 = vsel %vm1040_vm2, %v6236_v45, %v6238_v44  ;;  %v6241_v36 = vrot.slane %v16869_v3, 2  ;;  %10128 = vmatpush3.bf16.msra.mxu1 %v12342_v33 }
 0x4bd   : > { %19745 = vst [vmem:[#allocation108_spill] sm:$0xff] %v17291_v13  ;;  %19746 = vst [vmem:[#allocation119_spill] sm:$0xff] %v17294_v27  ;;  %v17297_v59 = vadd.f32 %v9444_v2, %v9443_v26  ;;  %v9446_v53 = vpop.f32.mrb[18].mxu1  ;;  %v6673_v50 = vpack.c.bf16 %v6571_v28, %v6570_v52  ;;  %v12178_v46 = vpack.i.bf16 %v17284_v41, %v17282_v32  ;;  %10129 = vmatprep.subr.bf16.mxu1 %v12349_v49 }
 0x4be   : > { %v17302_v8 = vsel %vm1040_vm2, %v6230_v58, %v6231_v12  ;;  %v9447_v11 = vpop.f32.mrb[19].mxu1  ;;  %12194 = vrot.lane.b32.xlu0 %v12193_v17, %s19357_s27  ;;  %v6678_v3 = vpack.c.bf16 %v6605_v31, %v6604_v38  ;;  %v6090_v45 = vrot.slane %v17284_v41, 1  ;;  %v6092_v44 = vrot.slane %v17286_v29, 1 }
 0x4bf   : > { %19747 = vst [vmem:[#allocation124_spill] sm:$0xff] %v17302_v8  ;;  %v17311_v33 = vsel %vm1040_vm2, %v6231_v12, %v6233_v34  ;;  %v12057_v21 = vunpack.i.h.bf16 %v12055_v55  ;;  %v12056_v60 = vunpack.i.l.bf16 %v12055_v55  ;;  %v17313_v30 = vadd.f32 %v9447_v11, %v9446_v53  ;;  %7118 = vmatmul.mubr.bf16.gmra.mrb[100].mxu1 %v6673_v50  ;;  %12179 = vrot.lane.b32.xlu1 %v12178_v46, %s19357_s27  ;;  %v12060_v55 = vpop.permute.xlu1 %12059 }
 0x4c0   : > { %19748 = vst [vmem:[#allocation118_spill] sm:$0xff] %v17311_v33  ;;  %v6243_v52 = vrot.slane %v19749_v6, 2  ;;  %7125 = vmatprep.mubr.bf16.mxu1 %v6678_v3  ;;  %v6089_v28 = vrot.slane %v17282_v32, 1  ;;  %v6246_v26 = vrot.slane %v16993_v35, 2  ;;  %v6251_v12 = vrot.slane %v17008_v16, 2  ;;  %10130 = vmatpush3.bf16.msra.mxu1 %v12349_v49 }
 0x4c1   : > { %v12223_v34 = vpack.i.bf16 %v17294_v27, %v17291_v13  ;;  %v6248_v38 = vrot.slane %v16995_v63, 2  ;;  %v17328_v54 = vsel %vm1040_vm2, %v6240_v62, %v6241_v36  ;;  %10131 = vmatprep.subr.bf16.mxu1 %v12350_v1  ;;  %v19751_v35 = vpack.i.bf16 %v17178_v9, %v17175_v0 }
 0x4c2   : > { %19750 = vst [vmem:[#allocation122_spill] sm:$0xff] %v17328_v54  ;;  %v17335_v16 = vsel %vm863_vm3, %v6089_v28, %v6090_v45  ;;  %v17338_v49 = vsel %vm863_vm3, %v6090_v45, %v6092_v44  ;;  %v6245_v63 = vrot.slane %v16986_v48, 2  ;;  %v6250_v2 = vrot.slane %v17024_v43, 2  ;;  %v12065_v48 = vpop.permute.xlu0 %12064 }
 0x4c3   : > { %12204 = vrot.lane.b32.xlu0 %v19751_v35, %s19357_s27  ;;  %19752 = vst [vmem:[#allocation137_spill] sm:$0xff] %v17335_v16  ;;  %19753 = vst [vmem:[#allocation143_spill] sm:$0xff] %v17338_v49  ;;  %v9449_v17 = vpop.f32.mrb[20].mxu1  ;;  %v19754_v62 = vpack.i.bf16 %v17185_v42, %v17182_v25  ;;  %v6606_v53 = vsel %vm2371_vm13, %v17114_v51, %v12056_v60  ;;  %v6607_v50 = vsel %vm2371_vm13, %v17117_v57, %v12057_v21 }
 0x4c4   : > { %v17351_v46 = vsel %vm1040_vm2, %v6241_v36, %v6243_v52  ;;  %v6253_v11 = vrot.slane %v17020_v24, 2  ;;  %v9450_v3 = vpop.f32.mrb[21].mxu1  ;;  %v17355_v43 = vsel %vm1040_vm2, %v6245_v63, %v6246_v26  ;;  %v6256_v45 = vrot.slane %v17111_v5, 2  ;;  %10132 = vmatpush3.bf16.msra.mxu1 %v12350_v1  ;;  %v19758_v52 = vld [vmem:[#allocation153_spill] sm:$0xff] }
 0x4c5   : > { %12189 = vrot.lane.b32.xlu1 %v19754_v62, %s19357_s27  ;;  %19755 = vst [vmem:[#allocation134_spill] sm:$0xff] %v17351_v46  ;;  %19756 = vst [vmem:[#allocation141_spill] sm:$0xff] %v17355_v43  ;;  %v6258_v44 = vrot.slane %v17119_v56, 2  ;;  %v17360_v6 = vsel %vm1040_vm2, %v6250_v2, %v6251_v12  ;;  %v9451_v60 = vadd.f32 %v9450_v3, %v9449_v17  ;;  %v9452_v21 = vpop.f32.mrb[22].mxu1  ;;  %v6255_v28 = vrot.slane %v19758_v52, 2  ;;  %v19759_v56 = vld [vmem:[#allocation149_spill] sm:$0xff] }
 0x4c6   : > { %v12198_v36 = vpack.i.bf16 %v17338_v49, %v17335_v16  ;;  %v17365_v24 = vsel %vm1040_vm2, %v6246_v26, %v6248_v38  ;;  %v12062_v35 = vunpack.i.h.bf16 %v12060_v55  ;;  %v12061_v63 = vunpack.i.l.bf16 %v12060_v55  ;;  %v9453_v62 = vpop.f32.mrb[23].mxu1  ;;  %v5963_v2 = vld [vmem:[#allocation4 + $0x198] sm:$0xff]  ;;  %v5964_v17 = vld [vmem:[#allocation4 + $0x1a0] sm:$0xff]  ;;  %v5965_v3 = vld [vmem:[#allocation4 + $0x1a8] sm:$0x3]  ;;  %v12070_v55 = vpop.permute.xlu1 %12069 }
 0x4c7   : > { %19757 = vst [vmem:[#allocation135_spill] sm:$0xff] %v17365_v24  ;;  %12214 = vrot.lane.b32.xlu0 %v12213_v18, %s19357_s27  ;;  %v6682_v5 = vpack.c.bf16 %v6607_v50, %v6606_v53  ;;  %v6261_v1 = vrot.slane %v19759_v56, 2  ;;  %v12067_v31 = vunpack.i.h.bf16 %v12065_v48  ;;  %v12066_v58 = vunpack.i.l.bf16 %v12065_v48  ;;  %7126 = vmatmul.mubr.bf16.gmra.mrb[104].mxu1 %v17252_v47  ;;  %v19762_v48 = vld [vmem:[#allocation148_spill] sm:$0xff] }
 0x4c8   : > { %v17373_v26 = vadd.f32 %v9453_v62, %v9452_v21  ;;  %v17378_v38 = vsel %vm1040_vm2, %v6251_v12, %v6253_v11  ;;  %v17381_v18 = vsel %vm1040_vm2, %v6255_v28, %v6256_v45  ;;  %v17384_v53 = vsel %vm1040_vm2, %v6256_v45, %v6258_v44  ;;  %v12075_v62 = vpop.permute.xlu0 %12074  ;;  %v12421_v28 = vld [vmem:[#allocation4 + $0x48] sm:$0xff]  ;;  %v12422_v44 = vld [vmem:[#allocation4 + $0x50] sm:$0xff] }
 0x4c9   : > { %12199 = vrot.lane.b32.xlu1 %v12198_v36, %s19357_s27  ;;  %7133 = vmatprep.mubr.bf16.mxu1 %v6682_v5  ;;  %19760 = vst [vmem:[#allocation136_spill] sm:$0xff] %v17381_v18  ;;  %19761 = vst [vmem:[#allocation138_spill] sm:$0xff] %v17384_v53  ;;  %v12228_v50 = vpack.i.bf16 %v17351_v46, %v17328_v54  ;;  %v6260_v21 = vrot.slane %v19762_v48, 2  ;;  %v12233_v47 = vpack.i.bf16 %v17365_v24, %v17355_v43  ;;  %v17391_v36 = vld [vmem:[#allocation4 + $0x190] sm:$0x3] }
 0x4ca   : > { %v6542_v12 = vrot.slane %v5963_v2, 1  ;;  %v6543_v11 = vrot.slane %v5964_v17, 1  ;;  %v6545_v52 = vrot.slane %v5965_v3, 1  ;;  %v6574_v45 = vsel %vm2371_vm13, %v12421_v28, %v12061_v63  ;;  %v19764_v17 = vld [vmem:[#allocation139_spill] sm:$0xff] }
 0x4cb   : > { %12224 = vrot.lane.b32.xlu0 %v12223_v34, %s19357_s27  ;;  %v6575_v5 = vsel %vm2371_vm13, %v12422_v44, %v12062_v35  ;;  %v17399_v48 = vsel %vm1040_vm2, %v6260_v21, %v6261_v1  ;;  %v9455_v49 = vpop.f32.mrb[24].mxu1  ;;  %v19763_v2 = vpack.i.bf16 %v17244_v19, %v17219_v23  ;;  %v6608_v34 = vsel %vm2371_vm13, %v17182_v25, %v12066_v58 }
 0x4cc   : > { %v6609_v63 = vsel %vm2371_vm13, %v17185_v42, %v12067_v31  ;;  %v12243_v35 = vpack.i.bf16 %v17384_v53, %v17381_v18  ;;  %v6263_v3 = vrot.slane %v19764_v17, 2  ;;  %v12072_v28 = vunpack.i.h.bf16 %v12070_v55  ;;  %v9456_v44 = vpop.f32.mrb[25].mxu1  ;;  %v17422_v42 = vpop.permute.xlu1 %12079 }
 0x4cd   : > { %12209 = vrot.lane.b32.xlu1 %v19763_v2, %s19357_s27  ;;  %v12071_v21 = vunpack.i.l.bf16 %v12070_v55  ;;  %v6402_v56 = vrot.slane %v17270_v10, 1  ;;  %v6404_v16 = vrot.slane %v17391_v36, 1  ;;  %v9457_v57 = vadd.f32 %v9456_v44, %v9455_v49  ;;  %v9458_v2 = vpop.f32.mrb[26].mxu1 }
 0x4ce   : > { %v17414_v51 = vpack.c.bf16 %v6575_v5, %v6574_v45  ;;  %v17417_v58 = vsel %vm863_vm3, %v6542_v12, %v6543_v11  ;;  %v17420_v31 = vsel %vm863_vm3, %v6543_v11, %v6545_v52  ;;  %v12077_v17 = vunpack.i.h.bf16 %v12075_v62  ;;  %v9459_v55 = vpop.f32.mrb[27].mxu1  ;;  %v17435_v52 = vpop.permute.xlu0 %12084  ;;  %v12424_v5 = vld [vmem:[#allocation4 + $0x68] sm:$0xff] }
 0x4cf   : > { %v12076_v25 = vunpack.i.l.bf16 %v12075_v62  ;;  %12234 = vrot.lane.b32.xlu0 %v12233_v47, %s19357_s27  ;;  %v6686_v20 = vpack.c.bf16 %v6609_v63, %v6608_v34  ;;  %v6401_v22 = vrot.slane %v17268_v40, 1  ;;  %v3700_v49 = vadd.f32 %v9451_v60, %v17071_v14  ;;  %v12423_v47 = vld [vmem:[#allocation4 + $0x60] sm:$0xff] }
 0x4d0   : > { %v9460_v45 = vadd.f32 %v9459_v55, %v9458_v2  ;;  %7134 = vmatmul.mubr.bf16.gmra.mrb[108].mxu1 %v17414_v51  ;;  %v19765_v12 = vpack.i.bf16 %v17311_v33, %v17302_v8  ;;  %v17433_v11 = vsel %vm1040_vm2, %v6261_v1, %v6263_v3  ;;  %v6576_v62 = vsel %vm2371_vm13, %v12423_v47, %v12071_v21  ;;  %v19768_v2 = vld [vmem:[#allocation47_spill] sm:$0xff] }
 0x4d1   : > { %7141 = vmatprep.mubr.bf16.mxu1 %v6686_v20  ;;  %v6577_v60 = vsel %vm2371_vm13, %v12424_v5, %v12072_v28  ;;  %v17440_v34 = vsel %vm863_vm3, %v6401_v22, %v6402_v56  ;;  %v17443_v63 = vsel %vm863_vm3, %v6402_v56, %v6404_v16  ;;  %v3692_v44 = vadd.f32 %v17297_v59, %v17071_v14 }
 0x4d2   : > { %12219 = vrot.lane.b32.xlu1 %v19765_v12, %s19357_s27  ;;  %19766 = vst [vmem:[#allocation31_spill] sm:$0xff] %v17440_v34  ;;  %19767 = vst [vmem:[#allocation32_spill] sm:$0xff] %v17443_v63  ;;  %v3695_v1 = vadd.f32 %v17313_v30, %v17071_v14  ;;  %v12082_v20 = vunpack.i.h.bf16 %v17422_v42  ;;  %v12263_v3 = vpack.i.bf16 %v17420_v31, %v17417_v58  ;;  %v12081_v21 = vunpack.i.l.bf16 %v17422_v42 }
 0x4d3   : > { %12244 = vrot.lane.b32.xlu0 %v12243_v35, %s19357_s27  ;;  %v6610_v22 = vsel %vm2371_vm13, %v17175_v0, %v12076_v25  ;;  %v6611_v16 = vsel %vm2371_vm13, %v17178_v9, %v12077_v17  ;;  %v6439_v59 = vrot.slane %v17270_v10, 2  ;;  %v9461_v56 = vpop.f32.mrb[28].mxu1  ;;  %v17460_v30 = vpack.c.bf16 %v6577_v60, %v6576_v62  ;;  %v19769_v62 = vld [vmem:[#allocation39_spill] sm:$0xff] }
 0x4d4   : > { %v12253_v28 = vpack.i.bf16 %v17443_v63, %v17440_v34  ;;  %v6441_v42 = vrot.slane %v17391_v36, 2  ;;  %v17466_v35 = vadd.f32 %v19768_v2, %v3700_v49  ;;  %v3703_v25 = vadd.f32 %v17373_v26, %v17071_v14  ;;  %v9462_v31 = vpop.f32.mrb[29].mxu1  ;;  %v17477_v49 = vpop.permute.xlu0 %12094 }
 0x4d5   : > { %v12087_v58 = vunpack.i.h.bf16 %v17435_v52  ;;  %v6265_v10 = vrot.slane %v17282_v32, 2  ;;  %v9463_v17 = vadd.f32 %v9462_v31, %v9461_v56  ;;  %v9464_v55 = vpop.f32.mrb[30].mxu1  ;;  %v6690_v12 = vpack.c.bf16 %v6611_v16, %v6610_v22  ;;  %v12425_v56 = vld [vmem:[#allocation4 + $0x78] sm:$0xff] }
 0x4d6   : > { %12229 = vrot.lane.b32.xlu1 %v12228_v50, %s19357_s27  ;;  %v6438_v50 = vrot.slane %v17268_v40, 2  ;;  %v6266_v47 = vrot.slane %v17284_v41, 2  ;;  %v17475_v36 = vadd.f32 %v19769_v62, %v3692_v44  ;;  %v3708_v5 = vadd.f32 %v9457_v57, %v17071_v14  ;;  %v9465_v60 = vpop.f32.mrb[31].mxu1 }
 0x4d7   : > { %v3711_v26 = vadd.f32 %v9460_v45, %v17071_v14  ;;  %12254 = vrot.lane.b32.xlu0 %v12253_v28, %s19357_s27  ;;  %v6268_v2 = vrot.slane %v17286_v29, 2  ;;  %v12086_v22 = vunpack.i.l.bf16 %v17435_v52  ;;  %v3716_v16 = vadd.f32 %v9463_v17, %v17071_v14  ;;  %v12426_v28 = vld [vmem:[#allocation4 + $0x80] sm:$0xff] }
 0x4d8   : > { %v17484_v40 = vsel %vm1040_vm2, %v6438_v50, %v6439_v59  ;;  %v9466_v44 = vadd.f32 %v9465_v60, %v9464_v55  ;;  %7142 = vmatmul.mubr.bf16.gmra.mrb[112].mxu1 %v17460_v30  ;;  %v19771_v57 = vpack.i.bf16 %v17378_v38, %v17360_v6  ;;  %v17494_v45 = vsel %vm1040_vm2, %v6439_v59, %v6441_v42  ;;  %v19773_v50 = vld [vmem:[#allocation53_spill] sm:$0xff]  ;;  %v19774_v59 = vld [vmem:[#allocation43_spill] sm:$0xff] }
 0x4d9   : > { %19770 = vst [vmem:[#allocation25_spill] sm:$0xff] %v17484_v40  ;;  %19772 = vst [vmem:[#allocation27_spill] sm:$0xff] %v17494_v45  ;;  %7149 = vmatprep.mubr.bf16.mxu1 %v6690_v12  ;;  %v12248_v29 = vpack.i.bf16 %v17433_v11, %v17399_v48  ;;  %v6578_v52 = vsel %vm2371_vm13, %v12425_v56, %v12081_v21  ;;  %v6579_v31 = vsel %vm2371_vm13, %v12426_v28, %v12082_v20  ;;  %v19775_v12 = vld [vmem:[#allocation54_spill] sm:$0xff]  ;;  %v19776_v20 = vld [vmem:[#allocation49_spill] sm:$0xff] }
 0x4da   : > { %12239 = vrot.lane.b32.xlu1 %v19771_v57, %s19357_s27  ;;  %v17501_v17 = vadd.f32 %v19773_v50, %v3703_v25  ;;  %v3719_v55 = vadd.f32 %v9466_v44, %v17071_v14  ;;  %v17505_v62 = vsel %vm1040_vm2, %v6265_v10, %v6266_v47  ;;  %v17508_v42 = vadd.f32 %v19774_v59, %v3695_v1  ;;  %v19777_v25 = vld [vmem:[#allocation48_spill] sm:$0xff]  ;;  %v12090_v44 = vpop.permute.xlu1 %12089 }
 0x4db   : > { %v17511_v60 = vadd.f32 %v19775_v12, %v3716_v16  ;;  %v17514_v57 = vsel %vm1040_vm2, %v6266_v47, %v6268_v2  ;;  %12264 = vrot.lane.b32.xlu0 %v12263_v3, %s19357_s27  ;;  %v17518_v21 = vadd.f32 %v19776_v20, %v3708_v5  ;;  %v17521_v56 = vadd.f32 %v19777_v25, %v3711_v26  ;;  %v9467_v1 = vpop.f32.mrb[32].mxu1  ;;  %v19778_v3 = vld [vmem:[#allocation55_spill] sm:$0xff]  ;;  %v12105_v5 = vpop.permute.xlu0 %12104 }
 0x4dc   : > { %v6612_v16 = vsel %vm2371_vm13, %v17219_v23, %v12086_v22  ;;  %v6613_v47 = vsel %vm2371_vm13, %v17244_v19, %v12087_v58  ;;  %v17531_v2 = vadd.f32 %v19778_v3, %v3719_v55  ;;  %v9468_v28 = vpop.f32.mrb[33].mxu1  ;;  %v17533_v59 = vpack.c.bf16 %v6579_v31, %v6578_v52 }
 0x4dd   : > { %v9469_v26 = vadd.f32 %v9468_v28, %v9467_v1  ;;  %v9470_v50 = vpop.f32.mrb[34].mxu1  ;;  %v12258_v12 = vpack.i.bf16 %v17514_v57, %v17505_v62  ;;  %v12092_v20 = vunpack.i.h.bf16 %v12090_v44  ;;  %v6694_v10 = vpack.c.bf16 %v6613_v47, %v6612_v16  ;;  %v12427_v47 = vld [vmem:[#allocation4 + $0x90] sm:$0xff]  ;;  %v12428_v28 = vld [vmem:[#allocation4 + $0x98] sm:$0xff] }
 0x4de   : > { %12249 = vrot.lane.b32.xlu1 %v12248_v29, %s19357_s27  ;;  %v12091_v29 = vunpack.i.l.bf16 %v12090_v44  ;;  %v9471_v25 = vpop.f32.mrb[35].mxu1  ;;  %v12097_v22 = vunpack.i.h.bf16 %v17477_v49  ;;  %v12096_v58 = vunpack.i.l.bf16 %v17477_v49  ;;  %v12268_v31 = vpack.i.bf16 %v17494_v45, %v17484_v40  ;;  %v19779_v44 = vld [vmem:[#allocation56_spill] sm:$0xff] }
 0x4df   : > { %v3724_v55 = vadd.f32 %v9469_v26, %v17071_v14  ;;  %v9472_v3 = vadd.f32 %v9471_v25, %v9470_v50  ;;  %v17548_v16 = vpop.permute.xlu0 %12114  ;;  %v6581_v26 = vsel %vm2371_vm13, %v12428_v28, %v12092_v20  ;;  %v12100_v50 = vpop.permute.xlu1 %12099  ;;  %v12107_v45 = vunpack.i.h.bf16 %v12105_v5 }
 0x4e0   : > { %7150 = vmatmul.mubr.bf16.gmra.mrb[116].mxu1 %v17533_v59  ;;  %v6580_v49 = vsel %vm2371_vm13, %v12427_v47, %v12091_v29  ;;  %v12102_v47 = vunpack.i.h.bf16 %v12100_v50  ;;  %v12101_v20 = vunpack.i.l.bf16 %v12100_v50  ;;  %v12106_v19 = vunpack.i.l.bf16 %v12105_v5  ;;  %v12429_v50 = vld [vmem:[#allocation4 + $0xa8] sm:$0xff] }
 0x4e1   : > { %7157 = vmatprep.mubr.bf16.mxu1 %v6694_v10  ;;  %v3727_v52 = vadd.f32 %v9472_v3, %v17071_v14  ;;  %v17546_v1 = vadd.f32 %v19779_v44, %v3724_v55  ;;  %v6614_v10 = vsel %vm2371_vm13, %v17201_v4, %v12096_v58  ;;  %v19780_v55 = vld [vmem:[#allocation58_spill] sm:$0xff]  ;;  %v17560_v29 = vpack.c.bf16 %v6581_v26, %v6580_v49 }
 0x4e2   : > { %12259 = vrot.lane.b32.xlu1 %v12258_v12, %s19357_s27  ;;  %v6615_v12 = vsel %vm2371_vm13, %v17207_v61, %v12097_v22 }
 0x4e3   : > { %v9473_v25 = vpop.f32.mrb[36].mxu1  ;;  %v17558_v3 = vadd.f32 %v19780_v55, %v3727_v52  ;;  %v19781_v52 = vld [vmem:[#allocation52_spill] sm:$0xff]  ;;  %v12110_v49 = vpop.permute.xlu1 %12109  ;;  %v6582_v55 = vsel %vm2371_vm13, %v12429_v50, %v12101_v20  ;;  %v12117_v50 = vunpack.i.h.bf16 %v17548_v16 }
 0x4e4   : > { %v9474_v44 = vpop.f32.mrb[37].mxu1  ;;  %v12111_v20 = vunpack.i.l.bf16 %v12110_v49 }
 0x4e5   : > { %v9475_v63 = vadd.f32 %v9474_v44, %v9473_v25  ;;  %v9476_v34 = vpop.f32.mrb[38].mxu1 }
 0x4e6   : > { %12269 = vrot.lane.b32.xlu1 %v12268_v31, %s19357_s27  ;;  %v9477_v28 = vpop.f32.mrb[39].mxu1  ;;  %v17562_v40 = vpop.permute.xlu0 %12124  ;;  %v6698_v31 = vpack.c.bf16 %v6615_v12, %v6614_v10  ;;  %v12430_v10 = vld [vmem:[#allocation4 + $0xb0] sm:$0xff] }
 0x4e7   : > { %v3732_v58 = vadd.f32 %v9475_v63, %v17071_v14  ;;  %v9478_v4 = vadd.f32 %v9477_v28, %v9476_v34  ;;  %v6583_v5 = vsel %vm2371_vm13, %v12430_v10, %v12102_v47  ;;  %v6616_v34 = vsel %vm2371_vm13, %v17302_v8, %v12106_v19 }
 0x4e8   : > { %7158 = vmatmul.mubr.bf16.gmra.mrb[120].mxu1 %v17560_v29  ;;  %v6617_v63 = vsel %vm2371_vm13, %v17311_v33, %v12107_v45  ;;  %v17581_v61 = vpack.c.bf16 %v6583_v5, %v6582_v55  ;;  %v12116_v47 = vunpack.i.l.bf16 %v17548_v16  ;;  %v19783_v55 = vld [vmem:[#allocation84_spill] sm:$0xff]  ;;  %v19784_v5 = vld [vmem:[#allocation75_spill] sm:$0xff]  ;;  %v19785_v16 = vld [vmem:[#allocation65_spill] sm:$0xff] }
 0x4e9   : > { %7165 = vmatprep.mubr.bf16.mxu1 %v6698_v31  ;;  %v3735_v22 = vadd.f32 %v9478_v4, %v17071_v14  ;;  %v17568_v25 = vadd.f32 %v19781_v52, %v3732_v58  ;;  %v19782_v4 = vld [vmem:[#allocation60_spill] sm:$0xff]  ;;  %v12112_v31 = vunpack.i.h.bf16 %v12110_v49  ;;  %v6702_v19 = vpack.c.bf16 %v6617_v63, %v6616_v34  ;;  %v12431_v63 = vld [vmem:[#allocation4 + $0xc0] sm:$0xff] }
 0x4ea   : > { %v17570_v26 = vpop.permute.xlu0 %12134 }
 0x4eb   : > { %v9479_v12 = vpop.f32.mrb[40].mxu1  ;;  %v17579_v44 = vadd.f32 %v19782_v4, %v3735_v22 }
 0x4ec   : > { %v9480_v28 = vpop.f32.mrb[41].mxu1 }
 0x4ed   : > { %v9481_v58 = vadd.f32 %v9480_v28, %v9479_v12  ;;  %v9482_v52 = vpop.f32.mrb[42].mxu1 }
 0x4ee   : > { %v9483_v10 = vpop.f32.mrb[43].mxu1  ;;  %v12145_v23 = vpop.permute.xlu0 %12144 }
 0x4ef   : > { %v3740_v8 = vadd.f32 %v9481_v58, %v17071_v14  ;;  %v9484_v45 = vadd.f32 %v9483_v10, %v9482_v52  ;;  %v12147_v22 = vunpack.i.h.bf16 %v12145_v23  ;;  %v12146_v4 = vunpack.i.l.bf16 %v12145_v23  ;;  %v12432_v52 = vld [vmem:[#allocation4 + $0xc8] sm:$0xff]  ;;  %v12120_v23 = vpop.permute.xlu1 %12119 }
 0x4f0   : > { %7166 = vmatmul.mubr.bf16.gmra.mrb[124].mxu1 %v17581_v61  ;;  %v6584_v58 = vsel %vm2371_vm13, %v12431_v63, %v12111_v20  ;;  %v6585_v10 = vsel %vm2371_vm13, %v12432_v52, %v12112_v31  ;;  %v12122_v31 = vunpack.i.h.bf16 %v12120_v23  ;;  %v12121_v20 = vunpack.i.l.bf16 %v12120_v23 }
 0x4f1   : > { %7173 = vmatprep.mubr.bf16.mxu1 %v6702_v19  ;;  %v3743_v12 = vadd.f32 %v9484_v45, %v17071_v14  ;;  %v6633_v49 = vsel %vm2371_vm13, %v19783_v55, %v12147_v22  ;;  %v6632_v28 = vsel %vm2371_vm13, %v19784_v5, %v12146_v4  ;;  %v17593_v33 = vadd.f32 %v19785_v16, %v3740_v8  ;;  %v19786_v55 = vld [vmem:[#allocation67_spill] sm:$0xff] }
 0x4f2   : > { %v6670_v34 = vpack.c.bf16 %v6633_v49, %v6632_v28  ;;  %v6618_v45 = vsel %vm2371_vm13, %v17291_v13, %v12116_v47  ;;  %v6619_v22 = vsel %vm2371_vm13, %v17294_v27, %v12117_v50  ;;  %v17604_v28 = vpack.c.bf16 %v6585_v10, %v6584_v58  ;;  %v19787_v58 = vld [vmem:[#allocation66_spill] sm:$0xff] }
 0x4f3   : > { %v9485_v19 = vpop.f32.mrb[44].mxu1  ;;  %v17602_v4 = vadd.f32 %v19786_v55, %v3743_v12  ;;  %v6706_v63 = vpack.c.bf16 %v6619_v22, %v6618_v45  ;;  %v12127_v47 = vunpack.i.h.bf16 %v17562_v40  ;;  %v12126_v52 = vunpack.i.l.bf16 %v17562_v40  ;;  %v12130_v22 = vpop.permute.xlu1 %12129 }
 0x4f4   : > { %v9486_v8 = vpop.f32.mrb[45].mxu1  ;;  %7271 = vmatmul.mubr.bf16.vlgmr.msra.gmra.mrb[128].mxu0 %v6670_v34  ;;  %v12136_v27 = vunpack.i.l.bf16 %v17570_v26 }
 0x4f5   : > { %v9487_v49 = vadd.f32 %v9486_v8, %v9485_v19  ;;  %v9488_v5 = vpop.f32.mrb[46].mxu1  ;;  %7278 = vmatprep.mubr.bf16.mxu0 %v17414_v51  ;;  %v12433_v51 = vld [vmem:[#allocation4 + $0xd8] sm:$0xff]  ;;  %v12434_v19 = vld [vmem:[#allocation4 + $0xe0] sm:$0xff]  ;;  %v6620_v40 = vsel %vm2371_vm13, %v17328_v54, %v12126_v52  ;;  %v6621_v8 = vsel %vm2371_vm13, %v17351_v46, %v12127_v47 }
 0x4f6   : > { %v9489_v16 = vpop.f32.mrb[47].mxu1  ;;  %v6586_v23 = vsel %vm2371_vm13, %v12433_v51, %v12121_v20  ;;  %v6587_v45 = vsel %vm2371_vm13, %v12434_v19, %v12122_v31  ;;  %v12132_v20 = vunpack.i.h.bf16 %v12130_v22  ;;  %v6710_v31 = vpack.c.bf16 %v6621_v8, %v6620_v40  ;;  %v12436_v40 = vld [vmem:[#allocation4 + $0xf8] sm:$0xff] }
 0x4f7   : > { %v3748_v50 = vadd.f32 %v9487_v49, %v17071_v14  ;;  %v9490_v12 = vadd.f32 %v9489_v16, %v9488_v5  ;;  %v19788_v49 = vld [vmem:[#allocation71_spill] sm:$0xff]  ;;  %v12137_v19 = vunpack.i.h.bf16 %v17570_v26  ;;  %v6622_v26 = vsel %vm2371_vm13, %v17355_v43, %v12136_v27  ;;  %v17648_v27 = vld [vmem:[%s19717_s5] ss:$0 sm:$0xff] }
 0x4f8   : > { %7174 = vmatmul.mubr.bf16.gmra.mrb[128].mxu1 %v17604_v28  ;;  %v6589_v8 = vsel %vm2371_vm13, %v12436_v40, %v12132_v20 }
 0x4f9   : > { %7181 = vmatprep.mubr.bf16.mxu1 %v6706_v63  ;;  %v3751_v34 = vadd.f32 %v9490_v12, %v17071_v14  ;;  %v17613_v10 = vadd.f32 %v19787_v58, %v3748_v50  ;;  %v17624_v12 = vpack.c.bf16 %v6587_v45, %v6586_v23  ;;  %v12131_v58 = vunpack.i.l.bf16 %v12130_v22  ;;  %v12140_v23 = vpop.permute.xlu1 %12139  ;;  %v12435_v45 = vld [vmem:[#allocation4 + $0xf0] sm:$0xff] }
 0x4fb   : > { %v9491_v55 = vpop.f32.mrb[48].mxu1  ;;  %v17622_v5 = vadd.f32 %v19788_v49, %v3751_v34  ;;  %19789 = vst [vmem:[#allocation28_spill] sm:$0xff] %v17624_v12  ;;  %v19790_v34 = vld [vmem:[#allocation68_spill] sm:$0xff]  ;;  %v6588_v22 = vsel %vm2371_vm13, %v12435_v45, %v12131_v58 }
 0x4fc   : > { %v9492_v16 = vpop.f32.mrb[49].mxu1  ;;  %v17643_v58 = vpack.c.bf16 %v6589_v8, %v6588_v22  ;;  %v12439_v8 = vld [vmem:[#allocation4 + $0x110] sm:$0xff] }
 0x4fd   : > { %v9493_v63 = vadd.f32 %v9492_v16, %v9491_v55  ;;  %v9494_v50 = vpop.f32.mrb[50].mxu1  ;;  %v6623_v16 = vsel %vm2371_vm13, %v17365_v24, %v12137_v19 }
 0x4fe   : > { %v9495_v51 = vpop.f32.mrb[51].mxu1  ;;  %19793 = vst [vmem:[#allocation95_spill] sm:$0xff] %v17643_v58  ;;  %v6714_v20 = vpack.c.bf16 %v6623_v16, %v6622_v26  ;;  %v19794_v16 = vld [vmem:[#allocation40_spill] sm:$0xff] }
 0x4ff   : > { %v3756_v52 = vadd.f32 %v9493_v63, %v17071_v14  ;;  %v9496_v54 = vadd.f32 %v9495_v51, %v9494_v50  ;;  %v19791_v63 = vld [vmem:[#allocation44_spill] sm:$0xff]  ;;  %v12141_v51 = vunpack.i.l.bf16 %v12140_v23 }
 0x500   : > { %7182 = vmatmul.mubr.bf16.gmra.mrb[132].mxu1 %v17624_v12 }
 0x501   : > { %7189 = vmatprep.mubr.bf16.mxu1 %v6710_v31  ;;  %v3759_v47 = vadd.f32 %v9496_v54, %v17071_v14  ;;  %v17632_v55 = vadd.f32 %v19790_v34, %v3756_v52  ;;  %v12142_v54 = vunpack.i.h.bf16 %v12140_v23  ;;  %v12155_v31 = vpop.permute.xlu0 %12154 }
 0x503   : > { %v9497_v49 = vpop.f32.mrb[52].mxu1  ;;  %v17641_v50 = vadd.f32 %v19791_v63, %v3759_v47  ;;  %v12438_v63 = vld [vmem:[#allocation4 + $0x108] sm:$0xff]  ;;  %v6591_v26 = vsel %vm2371_vm13, %v12439_v8, %v12142_v54  ;;  %v12157_v54 = vunpack.i.h.bf16 %v12155_v31 }
 0x504   : > { %v9498_v14 = vpop.f32.mrb[53].mxu1  ;;  %v6590_v22 = vsel %vm2371_vm13, %v12438_v63, %v12141_v51 }
 0x505   : > { %19792 = vst [vmem:[#allocation29_spill] sm:$0xff] %v17641_v50  ;;  %v9499_v52 = vadd.f32 %v9498_v14, %v9497_v49  ;;  %v9500_v34 = vpop.f32.mrb[54].mxu1 }
 0x506   : > { %v9501_v45 = vpop.f32.mrb[55].mxu1 }
 0x507   : > { %v3764_v19 = vadd.f32 %v17648_v27, %v9499_v52  ;;  %v9502_v40 = vadd.f32 %v9501_v45, %v9500_v34  ;;  %v19795_v34 = vld [vmem:[#allocation41_spill] sm:$0xff] }
 0x508   : > { %7190 = vmatmul.mubr.bf16.gmra.mrb[136].mxu1 %v17643_v58  ;;  %v12165_v23 = vpop.permute.xlu0 %12164 }
 0x509   : > { %7197 = vmatprep.mubr.bf16.mxu1 %v6714_v20  ;;  %v3767_v47 = vadd.f32 %v17648_v27, %v9502_v40  ;;  %v12150_v49 = vpop.permute.xlu1 %12149  ;;  %v17656_v14 = vadd.f32 %v19794_v16, %v3764_v19  ;;  %v12156_v20 = vunpack.i.l.bf16 %v12155_v31  ;;  %v17661_v40 = vpack.c.bf16 %v6591_v26, %v6590_v22  ;;  %v19797_v31 = vld [vmem:[#allocation76_spill] sm:$0xff] }
 0x50a   : > { %v12152_v24 = vunpack.i.h.bf16 %v12150_v49  ;;  %v12151_v43 = vunpack.i.l.bf16 %v12150_v49  ;;  %v12166_v63 = vunpack.i.l.bf16 %v12165_v23  ;;  %v12167_v58 = vunpack.i.h.bf16 %v12165_v23 }
 0x50b   : > { %v9503_v52 = vpop.f32.mrb[56].mxu1  ;;  %v17659_v45 = vadd.f32 %v19795_v34, %v3767_v47 }
 0x50c   : > { %v9504_v46 = vpop.f32.mrb[57].mxu1  ;;  %v6624_v13 = vsel %vm2371_vm13, %v17360_v6, %v12151_v43  ;;  %v6625_v51 = vsel %vm2371_vm13, %v17378_v38, %v12152_v24  ;;  %v12175_v22 = vpop.permute.xlu0 %12174  ;;  %v19796_v43 = vld [vmem:[#allocation83_spill] sm:$0xff] }
 0x50d   : > { %v9505_v19 = vadd.f32 %v9504_v46, %v9503_v52  ;;  %v9506_v8 = vpop.f32.mrb[58].mxu1  ;;  %v12160_v16 = vpop.permute.xlu1 %12159  ;;  %v6718_v49 = vpack.c.bf16 %v6625_v51, %v6624_v13  ;;  %v12440_v52 = vld [vmem:[#allocation4 + $0x120] sm:$0xff] }
 0x50e   : > { %v9507_v12 = vpop.f32.mrb[59].mxu1  ;;  %v12162_v47 = vunpack.i.h.bf16 %v12160_v16  ;;  %v12161_v34 = vunpack.i.l.bf16 %v12160_v16  ;;  %v6592_v13 = vsel %vm2371_vm13, %v12440_v52, %v12156_v20  ;;  %v12441_v16 = vld [vmem:[#allocation4 + $0x128] sm:$0xff] }
 0x50f   : > { %v3772_v50 = vadd.f32 %v17648_v27, %v9505_v19  ;;  %v9508_v26 = vadd.f32 %v9507_v12, %v9506_v8  ;;  %v6593_v19 = vsel %vm2371_vm13, %v12441_v16, %v12157_v54  ;;  %v6626_v12 = vsel %vm2371_vm13, %v17381_v18, %v12166_v63 }
 0x510   : > { %7198 = vmatmul.mubr.bf16.gmra.mrb[140].mxu1 %v17661_v40  ;;  %v6634_v24 = vsel %vm2371_vm13, %v19796_v43, %v12161_v34  ;;  %v6635_v46 = vsel %vm2371_vm13, %v19797_v31, %v12162_v47  ;;  %v12177_v8 = vunpack.i.h.bf16 %v12175_v22  ;;  %v6627_v34 = vsel %vm2371_vm13, %v17384_v53, %v12167_v58  ;;  %v19798_v43 = vld [vmem:[#allocation72_spill] sm:$0xff] }
 0x511   : > { %7205 = vmatprep.mubr.bf16.mxu1 %v6718_v49  ;;  %v3775_v23 = vadd.f32 %v17648_v27, %v9508_v26  ;;  %v6675_v51 = vpack.c.bf16 %v6635_v46, %v6634_v24  ;;  %v12176_v49 = vunpack.i.l.bf16 %v12175_v22  ;;  %v17681_v47 = vadd.f32 %v19798_v43, %v3772_v50  ;;  %v12170_v31 = vpop.permute.xlu1 %12169  ;;  %v19799_v26 = vld [vmem:[#allocation73_spill] sm:$0xff]  ;;  %v19800_v43 = vld [vmem:[#allocation88_spill] sm:$0xff] }
 0x512   : > { %v17687_v52 = vpack.c.bf16 %v6593_v19, %v6592_v13  ;;  %v6722_v22 = vpack.c.bf16 %v6627_v34, %v6626_v12  ;;  %v12172_v58 = vunpack.i.h.bf16 %v12170_v31  ;;  %v12171_v16 = vunpack.i.l.bf16 %v12170_v31  ;;  %v19802_v19 = vld [vmem:[#allocation74_spill] sm:$0xff] }
 0x513   : > { %v9509_v20 = vpop.f32.mrb[60].mxu1  ;;  %7279 = vmatmul.mubr.bf16.gmra.mrb[132].mxu0 %v6675_v51  ;;  %v17684_v24 = vadd.f32 %v19799_v26, %v3775_v23  ;;  %v6636_v53 = vsel %vm2371_vm13, %v19800_v43, %v12176_v49  ;;  %v19801_v51 = vld [vmem:[#allocation85_spill] sm:$0xff] }
 0x514   : > { %v9510_v46 = vpop.f32.mrb[61].mxu1  ;;  %7286 = vmatprep.mubr.bf16.mxu0 %v17460_v30  ;;  %v6637_v23 = vsel %vm2371_vm13, %v19801_v51, %v12177_v8  ;;  %v12442_v49 = vld [vmem:[#allocation4 + $0x138] sm:$0xff]  ;;  %v12443_v8 = vld [vmem:[#allocation4 + $0x140] sm:$0xff] }
 0x515   : > { %v9511_v54 = vadd.f32 %v9510_v46, %v9509_v20  ;;  %v9512_v63 = vpop.f32.mrb[62].mxu1  ;;  %v6679_v13 = vpack.c.bf16 %v6637_v23, %v6636_v53  ;;  %v6594_v34 = vsel %vm2371_vm13, %v12442_v49, %v12171_v16  ;;  %v6595_v31 = vsel %vm2371_vm13, %v12443_v8, %v12172_v58  ;;  %v19803_v46 = vld [vmem:[#allocation80_spill] sm:$0xff]  ;;  %v19806_v58 = vld [vmem:[#allocation33_spill] sm:$0xff] }
 0x516   : > { %v9513_v50 = vpop.f32.mrb[63].mxu1  ;;  %v19805_v53 = vld [vmem:[#allocation92_spill] sm:$0xff]  ;;  %v17716_v43 = vpack.c.bf16 %v6595_v31, %v6594_v34 }
 0x517   : > { %v3780_v26 = vadd.f32 %v17648_v27, %v9511_v54  ;;  %v9514_v18 = vadd.f32 %v9513_v50, %v9512_v63  ;;  %v19804_v63 = vld [vmem:[#allocation156_spill] sm:$0xff] }
 0x518   : > { %7206 = vmatmul.mubr.bf16.gmra.mrb[144].mxu1 %v17687_v52 }
 0x519   : > { %7213 = vmatprep.mubr.bf16.mxu1 %v6722_v22  ;;  %v3783_v30 = vadd.f32 %v17648_v27, %v9514_v18  ;;  %v17702_v12 = vadd.f32 %v19802_v19, %v3780_v26  ;;  %v7568_v26 = vld [vmem:[%s18971_s11] sm:$0xff] }
 0x51b   : > { %v10057_v20 = vpop.f32.mrb[64].mxu1  ;;  %7287 = vmatmul.mubr.bf16.gmra.mrb[136].mxu0 %v6679_v13  ;;  %v17707_v54 = vadd.f32 %v19803_v46, %v3783_v30  ;;  %v7569_v30 = vld [vmem:[%s18971_s11 + $0x8] sm:$0xff] }
 0x51c   : > { %v17710_v22 = vadd.f32 %v10057_v20, %v19804_v63  ;;  %v3981_v18 = vpop.f32.mrb[65].mxu1  ;;  %7294 = vmatprep.mubr.bf16.mxu0 %v17533_v59  ;;  %v19807_v59 = vld [vmem:[#allocation94_spill] sm:$0xff]  ;;  %v17746_v19 = vpack.c.bf16 %v7569_v30, %v7568_v26 }
 0x51d   : > { %v17714_v27 = vadd.f32 %v3981_v18, %v19805_v53  ;;  %v10058_v50 = vpop.f32.mrb[66].mxu1 }
 0x51e   : > { %8858 = vst.msk [vmem:[%s17719_s24 + $0x10] sm:$0xff] %vm2371_vm13, %v17710_v22  ;;  %v17725_v16 = vadd.f32 %v10058_v50, %v19806_v58  ;;  %v3984_v51 = vpop.f32.mrb[67].mxu1  ;;  %10334 = vmatprep.subr.bf16.mxu0 %v17746_v19  ;;  %10389 = vmatprep.subr.bf16.mxu1 %v17746_v19 }
 0x51f   : > { %8856 = vst.msk [vmem:[%s17719_s24] sm:$0xff] %vm2371_vm13, %v17714_v27  ;;  %v17731_v23 = vadd.f32 %v3984_v51, %v19807_v59  ;;  %10336 = vmatpush3.bf16.msra.mxu0 %v17746_v19 }
 0x520   : > { %7214 = vmatmul.mubr.bf16.gmra.mrb[148].mxu1 %v17716_v43  ;;  %8859 = vst.msk [vmem:[%s17719_s24 + $0x18] sm:$0xff] %vm2371_vm13, %v17725_v16 }
 0x521   : > { %8857 = vst.msk [vmem:[%s17719_s24 + $0x8] sm:$0xff] %vm2371_vm13, %v17731_v23 }
 0x523   : > { %v10061_v13 = vpop.f32.mrb[68].mxu1 }
 0x524   : > { %v17749_v49 = vadd.f32 %v10061_v13, %v17259_v7  ;;  %v3997_v34 = vpop.f32.mrb[69].mxu1 }
 0x525   : > { %v17752_v8 = vadd.f32 %v3997_v34, %v17213_v15  ;;  %v10062_v31 = vpop.f32.mrb[70].mxu1 }
 0x526   : > { %8862 = vst.msk [vmem:[%s17719_s24 + $0x30] sm:$0xff] %vm2371_vm13, %v17749_v49  ;;  %v17760_v20 = vadd.f32 %v10062_v31, %v17278_v37  ;;  %v4000_v46 = vpop.f32.mrb[71].mxu1  ;;  %v12185_v37 = vpop.permute.xlu0 %12184 }
 0x527   : > { %8860 = vst.msk [vmem:[%s17719_s24 + $0x20] sm:$0xff] %vm2371_vm13, %v17752_v8  ;;  %v17767_v15 = vadd.f32 %v4000_v46, %v17226_v39  ;;  %v12187_v51 = vunpack.i.h.bf16 %v12185_v37  ;;  %v12186_v59 = vunpack.i.l.bf16 %v12185_v37  ;;  %v12444_v46 = vld [vmem:[#allocation4 + $0x150] sm:$0xff]  ;;  %v12445_v37 = vld [vmem:[#allocation4 + $0x158] sm:$0xff] }
 0x528   : > { %8863 = vst.msk [vmem:[%s17719_s24 + $0x38] sm:$0xff] %vm2371_vm13, %v17760_v20 }
 0x529   : > { %8861 = vst.msk [vmem:[%s17719_s24 + $0x28] sm:$0xff] %vm2371_vm13, %v17767_v15 }
 0x52b   : > { %v10065_v7 = vpop.f32.mrb[72].mxu1 }
 0x52c   : > { %v17776_v63 = vadd.f32 %v10065_v7, %v17466_v35  ;;  %v4013_v18 = vpop.f32.mrb[73].mxu1  ;;  %v6596_v7 = vsel %vm2371_vm13, %v12444_v46, %v12186_v59 }
 0x52d   : > { %v17779_v53 = vadd.f32 %v4013_v18, %v17475_v36  ;;  %v10066_v50 = vpop.f32.mrb[74].mxu1 }
 0x52e   : > { %8866 = vst.msk [vmem:[%s17719_s24 + $0x50] sm:$0xff] %vm2371_vm13, %v17776_v63  ;;  %v17785_v39 = vadd.f32 %v10066_v50, %v17501_v17  ;;  %v4016_v58 = vpop.f32.mrb[75].mxu1 }
 0x52f   : > { %8864 = vst.msk [vmem:[%s17719_s24 + $0x40] sm:$0xff] %vm2371_vm13, %v17779_v53  ;;  %v17791_v35 = vadd.f32 %v4016_v58, %v17508_v42  ;;  %v6597_v42 = vsel %vm2371_vm13, %v12445_v37, %v12187_v51 }
 0x530   : > { %19808 = vst [vmem:[#allocation50_spill] sm:$0xff] %v17785_v39  ;;  %8867 = vst.msk [vmem:[%s17719_s24 + $0x58] sm:$0xff] %vm2371_vm13, %v17785_v39  ;;  %v12195_v36 = vpop.permute.xlu0 %12194  ;;  %v17821_v39 = vpack.c.bf16 %v6597_v42, %v6596_v7 }
 0x531   : > { %8865 = vst.msk [vmem:[%s17719_s24 + $0x48] sm:$0xff] %vm2371_vm13, %v17791_v35  ;;  %v12197_v26 = vunpack.i.h.bf16 %v12195_v36  ;;  %v12196_v30 = vunpack.i.l.bf16 %v12195_v36  ;;  %v12180_v17 = vpop.permute.xlu1 %12179 }
 0x532   : > { %v12182_v13 = vunpack.i.h.bf16 %v12180_v17  ;;  %v12181_v34 = vunpack.i.l.bf16 %v12180_v17 }
 0x533   : > { %v10069_v31 = vpop.f32.mrb[76].mxu1  ;;  %v6630_v18 = vsel %vm2371_vm13, %v17505_v62, %v12196_v30  ;;  %v6631_v59 = vsel %vm2371_vm13, %v17514_v57, %v12197_v26 }
 0x534   : > { %v17804_v50 = vadd.f32 %v10069_v31, %v17511_v60  ;;  %v4029_v58 = vpop.f32.mrb[77].mxu1  ;;  %v6628_v36 = vsel %vm2371_vm13, %v17399_v48, %v12181_v34  ;;  %v6629_v17 = vsel %vm2371_vm13, %v17433_v11, %v12182_v13 }
 0x535   : > { %v17813_v51 = vadd.f32 %v4029_v58, %v17518_v21  ;;  %v10070_v46 = vpop.f32.mrb[78].mxu1  ;;  %v6726_v37 = vpack.c.bf16 %v6629_v17, %v6628_v36  ;;  %v12205_v21 = vpop.permute.xlu0 %12204  ;;  %v6730_v58 = vpack.c.bf16 %v6631_v59, %v6630_v18  ;;  %v19810_v17 = vld [vmem:[#allocation89_spill] sm:$0xff] }
 0x536   : > { %8870 = vst.msk [vmem:[%s17719_s24 + $0x70] sm:$0xff] %vm2371_vm13, %v17804_v50  ;;  %v17819_v60 = vadd.f32 %v10070_v46, %v17531_v2  ;;  %v4032_v34 = vpop.f32.mrb[79].mxu1  ;;  %v19809_v2 = vld [vmem:[#allocation90_spill] sm:$0xff]  ;;  %v12207_v46 = vunpack.i.h.bf16 %v12205_v21  ;;  %v12206_v18 = vunpack.i.l.bf16 %v12205_v21 }
 0x537   : > { %v12190_v30 = vpop.permute.xlu1 %12189  ;;  %8868 = vst.msk [vmem:[%s17719_s24 + $0x60] sm:$0xff] %vm2371_vm13, %v17813_v51  ;;  %v17827_v26 = vadd.f32 %v4032_v34, %v17521_v56  ;;  %7221 = vmatprep.mubr.bf16.mxu1 %v6726_v37 }
 0x538   : > { %v12192_v31 = vunpack.i.h.bf16 %v12190_v30  ;;  %v12191_v13 = vunpack.i.l.bf16 %v12190_v30  ;;  %8871 = vst.msk [vmem:[%s17719_s24 + $0x78] sm:$0xff] %vm2371_vm13, %v17819_v60  ;;  %7222 = vmatmul.mubr.bf16.gmra.mrb[152].mxu1 %v17821_v39 }
 0x539   : > { %8869 = vst.msk [vmem:[%s17719_s24 + $0x68] sm:$0xff] %vm2371_vm13, %v17827_v26  ;;  %7229 = vmatprep.mubr.bf16.mxu1 %v6730_v58 }
 0x53a   : > { %v6638_v36 = vsel %vm2371_vm13, %v19809_v2, %v12191_v13  ;;  %v6639_v7 = vsel %vm2371_vm13, %v19810_v17, %v12192_v31  ;;  %v19813_v17 = vld [vmem:[#allocation91_spill] sm:$0xff] }
 0x53b   : > { %v12200_v42 = vpop.permute.xlu1 %12199  ;;  %v6683_v56 = vpack.c.bf16 %v6639_v7, %v6638_v36  ;;  %v10073_v37 = vpop.f32.mrb[80].mxu1  ;;  %v19814_v7 = vld [vmem:[#allocation103_spill] sm:$0xff] }
 0x53c   : > { %v12202_v59 = vunpack.i.h.bf16 %v12200_v42  ;;  %v12201_v30 = vunpack.i.l.bf16 %v12200_v42  ;;  %v17841_v34 = vadd.f32 %v10073_v37, %v17568_v25  ;;  %v4045_v13 = vpop.f32.mrb[81].mxu1  ;;  %v6641_v42 = vsel %vm2371_vm13, %v19814_v7, %v12207_v46  ;;  %v7571_v37 = vld [vmem:[%s18971_s11 + $0x18] sm:$0xff] }
 0x53d   : > { %7295 = vmatmul.mubr.bf16.gmra.mrb[140].mxu0 %v6683_v56  ;;  %v17849_v21 = vadd.f32 %v4045_v13, %v17546_v1  ;;  %v10074_v2 = vpop.f32.mrb[82].mxu1  ;;  %v19815_v56 = vld [vmem:[#allocation133_spill] sm:$0xff] }
 0x53e   : > { %19811 = vst [vmem:[#allocation51_spill] sm:$0xff] %v17841_v34  ;;  %7302 = vmatprep.mubr.bf16.mxu0 %v17560_v29  ;;  %v6598_v31 = vsel %vm2371_vm13, %v17282_v32, %v12201_v30  ;;  %v6599_v58 = vsel %vm2371_vm13, %v17284_v41, %v12202_v59  ;;  %8874 = vst.msk [vmem:[%s17719_s24 + $0x90] sm:$0xff] %vm2371_vm13, %v17841_v34  ;;  %v17857_v25 = vadd.f32 %v10074_v2, %v17579_v44  ;;  %v4048_v29 = vpop.f32.mrb[83].mxu1  ;;  %v19816_v59 = vld [vmem:[#allocation152_spill] sm:$0xff]  ;;  %v19820_v7 = vld [vmem:[#allocation145_spill] sm:$0xff] }
 0x53f   : > { %v17851_v36 = vpack.c.bf16 %v6599_v58, %v6598_v31  ;;  %v6640_v32 = vsel %vm2371_vm13, %v19813_v17, %v12206_v18  ;;  %8872 = vst.msk [vmem:[%s17719_s24 + $0x80] sm:$0xff] %vm2371_vm13, %v17849_v21  ;;  %v17867_v41 = vadd.f32 %v4048_v29, %v17558_v3  ;;  %v12210_v1 = vpop.permute.xlu1 %12209  ;;  %v6672_v30 = vpack.c.bf16 %v19816_v59, %v19815_v56  ;;  %v7570_v3 = vld [vmem:[%s18971_s11 + $0x10] sm:$0xff]  ;;  %v19822_v56 = vld [vmem:[#allocation57_spill] sm:$0xff] }
 0x540   : > { %19812 = vst [vmem:[#allocation45_spill] sm:$0xff] %v17857_v25  ;;  %8875 = vst.msk [vmem:[%s17719_s24 + $0x98] sm:$0xff] %vm2371_vm13, %v17857_v25  ;;  %v6687_v44 = vpack.c.bf16 %v6641_v42, %v6640_v32  ;;  %v12212_v46 = vunpack.i.h.bf16 %v12210_v1  ;;  %v12211_v18 = vunpack.i.l.bf16 %v12210_v1  ;;  %v10337_v31 = vpack.c.bf16 %v7571_v37, %v7570_v3  ;;  %v19819_v32 = vld [vmem:[#allocation144_spill] sm:$0xff]  ;;  %v19825_v3 = vld [vmem:[#allocation77_spill] sm:$0xff] }
 0x541   : > { %7230 = vmatmul.mubr.bf16.gmra.mrb[156].mxu1 %v17851_v36  ;;  %8873 = vst.msk [vmem:[%s17719_s24 + $0x88] sm:$0xff] %vm2371_vm13, %v17867_v41  ;;  %v6677_v42 = vpack.c.bf16 %v19820_v7, %v19819_v32  ;;  %v19826_v37 = vld [vmem:[#allocation97_spill] sm:$0xff] }
 0x542   : > { %10133 = vmatprep.mubr.msk.bf16.mxu1 %vm2371_vm13, %v6672_v30  ;;  %10338 = vmatprep.subr.bf16.mxu0 %v10337_v31  ;;  %v6642_v59 = vsel %vm2371_vm13, %v19822_v56, %v12211_v18  ;;  %v12215_v30 = vpop.permute.xlu0 %12214 }
 0x543   : > { %v10077_v13 = vpop.f32.mrb[84].mxu1  ;;  %10340 = vmatpush3.bf16.msra.mxu0 %v10337_v31 }
 0x544   : > { %v17886_v58 = vadd.f32 %v10077_v13, %v17613_v10  ;;  %v4061_v2 = vpop.f32.mrb[85].mxu1  ;;  %v6681_v13 = vpack.c.bf16 %v19826_v37, %v19825_v3 }
 0x545   : > { %7303 = vmatmul.mubr.bf16.gmra.mrb[144].mxu0 %v6687_v44  ;;  %v17890_v29 = vadd.f32 %v4061_v2, %v17593_v33  ;;  %v10078_v17 = vpop.f32.mrb[86].mxu1 }
 0x546   : > { %19817 = vst [vmem:[#allocation46_spill] sm:$0xff] %v17886_v58  ;;  %7310 = vmatprep.mubr.bf16.mxu0 %v17581_v61  ;;  %8878 = vst.msk [vmem:[%s17719_s24 + $0xb0] sm:$0xff] %vm2371_vm13, %v17886_v58  ;;  %v17898_v1 = vadd.f32 %v10078_v17, %v17622_v5  ;;  %v4064_v10 = vpop.f32.mrb[87].mxu1  ;;  %v19823_v61 = vld [vmem:[#allocation61_spill] sm:$0xff] }
 0x547   : > { %19818 = vst [vmem:[#allocation107_spill] sm:$0xff] %v17890_v29  ;;  %v6643_v33 = vsel %vm2371_vm13, %v19823_v61, %v12212_v46  ;;  %8876 = vst.msk [vmem:[%s17719_s24 + $0xa0] sm:$0xff] %vm2371_vm13, %v17890_v29  ;;  %v17908_v44 = vadd.f32 %v4064_v10, %v17602_v4  ;;  %v12217_v46 = vunpack.i.h.bf16 %v12215_v30  ;;  %v12216_v4 = vunpack.i.l.bf16 %v12215_v30  ;;  %v19830_v10 = vld [vmem:[#allocation59_spill] sm:$0xff] }
 0x548   : > { %19821 = vst [vmem:[#allocation69_spill] sm:$0xff] %v17898_v1  ;;  %8879 = vst.msk [vmem:[%s17719_s24 + $0xb8] sm:$0xff] %vm2371_vm13, %v17898_v1  ;;  %v6691_v5 = vpack.c.bf16 %v6643_v33, %v6642_v59  ;;  %v19834_v33 = vld [vmem:[#allocation110_spill] sm:$0xff] }
 0x549   : > { %19824 = vst [vmem:[#allocation70_spill] sm:$0xff] %v17908_v44  ;;  %10134 = vmatmul.mubr.msk.bf16.vlgmr.msra.gmra.mrb[160].mxu1 %vm2371_vm13, %v6677_v42  ;;  %8877 = vst.msk [vmem:[%s17719_s24 + $0xa8] sm:$0xff] %vm2371_vm13, %v17908_v44  ;;  %v6644_v56 = vsel %vm2371_vm13, %v19830_v10, %v12216_v4 }
 0x54a   : > { %10137 = vmatprep.mubr.msk.bf16.mxu1 %vm2371_vm13, %v6681_v13  ;;  %10393 = vmatpush3.bf16.msra.mxu1 %v17746_v19 }
 0x54b   : > { %10390 = vmatprep.subr.bf16.mxu1 %v10337_v31  ;;  %v10081_v18 = vpop.f32.mrb[88].mxu1 }
 0x54c   : > { %v17922_v2 = vadd.f32 %v10081_v18, %v17656_v14  ;;  %v4077_v17 = vpop.f32.mrb[89].mxu1  ;;  %v6685_v14 = vpack.c.bf16 %v17178_v9, %v17175_v0 }
 0x54d   : > { %7311 = vmatmul.mubr.bf16.gmra.mrb[148].mxu0 %v6691_v5  ;;  %v17926_v32 = vadd.f32 %v4077_v17, %v17632_v55  ;;  %v10082_v7 = vpop.f32.mrb[90].mxu1  ;;  %v12220_v55 = vpop.permute.xlu1 %12219 }
 0x54e   : > { %19827 = vst [vmem:[#allocation109_spill] sm:$0xff] %v17922_v2  ;;  %7318 = vmatprep.mubr.bf16.mxu0 %v17604_v28  ;;  %10394 = vmatpush3.bf16.msra.mxu1 %v10337_v31  ;;  %8882 = vst.msk [vmem:[%s17719_s24 + $0xd0] sm:$0xff] %vm2371_vm13, %v17922_v2  ;;  %v17932_v19 = vadd.f32 %v10082_v7, %v17659_v45  ;;  %v4080_v42 = vpop.f32.mrb[91].mxu1  ;;  %v19831_v28 = vld [vmem:[#allocation62_spill] sm:$0xff]  ;;  %v19832_v31 = vld [vmem:[#allocation29_spill] sm:$0xff]  ;;  %v12222_v9 = vunpack.i.h.bf16 %v12220_v55  ;;  %v12221_v3 = vunpack.i.l.bf16 %v12220_v55  ;;  %v12225_v55 = vpop.permute.xlu0 %12224 }
 0x54f   : > { %19828 = vst [vmem:[#allocation63_spill] sm:$0xff] %v17926_v32  ;;  %v6645_v59 = vsel %vm2371_vm13, %v19831_v28, %v12217_v46  ;;  %8880 = vst.msk [vmem:[%s17719_s24 + $0xc0] sm:$0xff] %vm2371_vm13, %v17926_v32  ;;  %v17944_v61 = vadd.f32 %v4080_v42, %v19832_v31  ;;  %v19835_v45 = vld [vmem:[#allocation104_spill] sm:$0xff]  ;;  %v19840_v42 = vld [vmem:[#allocation93_spill] sm:$0xff] }
 0x550   : > { %19829 = vst [vmem:[#allocation64_spill] sm:$0xff] %v17932_v19  ;;  %v6689_v30 = vpack.c.bf16 %v19835_v45, %v19834_v33  ;;  %8883 = vst.msk [vmem:[%s17719_s24 + $0xd8] sm:$0xff] %vm2371_vm13, %v17932_v19  ;;  %v6695_v0 = vpack.c.bf16 %v6645_v59, %v6644_v56  ;;  %v19837_v46 = vld [vmem:[#allocation28_spill] sm:$0xff]  ;;  %v19843_v28 = vld [vmem:[#allocation115_spill] sm:$0xff] }
 0x551   : > { %19833 = vst [vmem:[#allocation121_spill] sm:$0xff] %v17944_v61  ;;  %10138 = vmatmul.mubr.msk.bf16.gmra.mrb[164].mxu1 %vm2371_vm13, %v6685_v14  ;;  %8881 = vst.msk [vmem:[%s17719_s24 + $0xc8] sm:$0xff] %vm2371_vm13, %v17944_v61  ;;  %v19841_v14 = vld [vmem:[#allocation105_spill] sm:$0xff]  ;;  %v6647_v59 = vsel %vm2371_vm13, %v19843_v28, %v12222_v9  ;;  %v19845_v31 = vld [vmem:[#allocation124_spill] sm:$0xff] }
 0x552   : > { %10141 = vmatprep.mubr.msk.bf16.mxu1 %vm2371_vm13, %v6689_v30  ;;  %v6693_v10 = vpack.c.bf16 %v19841_v14, %v19840_v42  ;;  %v12227_v30 = vunpack.i.h.bf16 %v12225_v55  ;;  %v19847_v9 = vld [vmem:[#allocation95_spill] sm:$0xff]  ;;  %v12230_v42 = vpop.permute.xlu1 %12229  ;;  %v19852_v14 = vld [vmem:[#allocation122_spill] sm:$0xff] }
 0x553   : > { %v10085_v37 = vpop.f32.mrb[92].mxu1  ;;  %v12232_v28 = vunpack.i.h.bf16 %v12230_v42 }
 0x554   : > { %v17957_v13 = vadd.f32 %v10085_v37, %v17702_v12  ;;  %v4093_v5 = vpop.f32.mrb[93].mxu1  ;;  %v19842_v12 = vld [vmem:[#allocation106_spill] sm:$0xff] }
 0x555   : > { %7319 = vmatmul.mubr.bf16.gmra.mrb[152].mxu0 %v6695_v0  ;;  %v17961_v4 = vadd.f32 %v4093_v5, %v17681_v47  ;;  %v10086_v18 = vpop.f32.mrb[94].mxu1  ;;  %v6646_v56 = vsel %vm2371_vm13, %v19842_v12, %v12221_v3  ;;  %v12226_v0 = vunpack.i.l.bf16 %v12225_v55  ;;  %v19849_v3 = vld [vmem:[#allocation119_spill] sm:$0xff]  ;;  %v19850_v5 = vld [vmem:[#allocation125_spill] sm:$0xff]  ;;  %v7572_v55 = vld [vmem:[%s18971_s11 + $0x20] sm:$0xff] }
 0x556   : > { %19836 = vst [vmem:[#allocation86_spill] sm:$0xff] %v17957_v13  ;;  %7326 = vmatprep.mubr.bf16.mxu0 %v19837_v46  ;;  %8886 = vst.msk [vmem:[%s17719_s24 + $0xf0] sm:$0xff] %vm2371_vm13, %v17957_v13  ;;  %v17967_v17 = vadd.f32 %v10086_v18, %v17707_v54  ;;  %v4096_v7 = vpop.f32.mrb[95].mxu1  ;;  %v19846_v54 = vld [vmem:[#allocation118_spill] sm:$0xff]  ;;  %v6699_v45 = vpack.c.bf16 %v6647_v59, %v6646_v56  ;;  %v12231_v59 = vunpack.i.l.bf16 %v12230_v42 }
 0x557   : > { %19838 = vst [vmem:[#allocation87_spill] sm:$0xff] %v17961_v4  ;;  %8884 = vst.msk [vmem:[%s17719_s24 + $0xe0] sm:$0xff] %vm2371_vm13, %v17961_v4  ;;  %v17979_v47 = vadd.f32 %v4096_v7, %v17684_v24  ;;  %v6697_v33 = vpack.c.bf16 %v19846_v54, %v19845_v31  ;;  %v19848_v24 = vld [vmem:[#allocation108_spill] sm:$0xff]  ;;  %v6648_v46 = vsel %vm2371_vm13, %v19850_v5, %v12226_v0  ;;  %v19851_v18 = vld [vmem:[#allocation126_spill] sm:$0xff] }
 0x558   : > { %19839 = vst [vmem:[#allocation123_spill] sm:$0xff] %v17967_v17  ;;  %8887 = vst.msk [vmem:[%s17719_s24 + $0xf8] sm:$0xff] %vm2371_vm13, %v17967_v17  ;;  %v6701_v37 = vpack.c.bf16 %v19849_v3, %v19848_v24  ;;  %v6649_v7 = vsel %vm2371_vm13, %v19851_v18, %v12227_v30  ;;  %v7573_v31 = vld [vmem:[%s18971_s11 + $0x28] sm:$0xff]  ;;  %v19856_v0 = vld [vmem:[#allocation117_spill] sm:$0xff]  ;;  %v6713_v5 = vpack.c.bf16 %v17378_v38, %v17360_v6  ;;  %v12240_v6 = vpop.permute.xlu1 %12239 }
 0x559   : > { %19844 = vst [vmem:[#allocation81_spill] sm:$0xff] %v17979_v47  ;;  %10142 = vmatmul.mubr.msk.bf16.gmra.mrb[168].mxu1 %vm2371_vm13, %v6693_v10  ;;  %8885 = vst.msk [vmem:[%s17719_s24 + $0xe8] sm:$0xff] %vm2371_vm13, %v17979_v47  ;;  %v19853_v10 = vld [vmem:[#allocation134_spill] sm:$0xff]  ;;  %v6703_v56 = vpack.c.bf16 %v6649_v7, %v6648_v46  ;;  %v10341_v54 = vpack.c.bf16 %v7573_v31, %v7572_v55  ;;  %v19857_v24 = vld [vmem:[#allocation131_spill] sm:$0xff]  ;;  %v6721_v38 = vpack.c.bf16 %v17433_v11, %v17399_v48 }
 0x55a   : > { %10145 = vmatprep.mubr.msk.bf16.mxu1 %vm2371_vm13, %v6697_v33  ;;  %v6705_v12 = vpack.c.bf16 %v19853_v10, %v19852_v14  ;;  %v19854_v33 = vld [vmem:[#allocation141_spill] sm:$0xff]  ;;  %v6651_v3 = vsel %vm2371_vm13, %v19857_v24, %v12232_v28  ;;  %v19858_v7 = vld [vmem:[#allocation136_spill] sm:$0xff]  ;;  %v19859_v42 = vld [vmem:[#allocation138_spill] sm:$0xff]  ;;  %v12242_v55 = vunpack.i.h.bf16 %v12240_v6 }
 0x55b   : > { %10342 = vmatprep.subr.bf16.mxu0 %v10341_v54  ;;  %10391 = vmatprep.subr.bf16.mxu1 %v10341_v54  ;;  %v6717_v14 = vpack.c.bf16 %v19859_v42, %v19858_v7  ;;  %v19860_v10 = vld [vmem:[#allocation120_spill] sm:$0xff]  ;;  %v12446_v31 = vld [vmem:[#allocation4 + $0x198] sm:$0xff]  ;;  %v19862_v48 = vld [vmem:[#allocation79_spill] sm:$0xff] }
 0x55c   : > { %10344 = vmatpush3.bf16.msra.mxu0 %v10341_v54  ;;  %10395 = vmatpush3.bf16.msra.mxu1 %v10341_v54  ;;  %v6559_v54 = vrot.slane %v12446_v31, 2  ;;  %v19863_v24 = vld [vmem:[#allocation132_spill] sm:$0xff] }
 0x55d   : > { %7327 = vmatmul.mubr.bf16.gmra.mrb[156].mxu0 %v6699_v45  ;;  %v19855_v45 = vld [vmem:[#allocation135_spill] sm:$0xff] }
 0x55e   : > { %7334 = vmatprep.mubr.bf16.mxu0 %v19847_v9  ;;  %v6709_v30 = vpack.c.bf16 %v19855_v45, %v19854_v33  ;;  %v6650_v9 = vsel %vm2371_vm13, %v19856_v0, %v12231_v59  ;;  %v12447_v33 = vld [vmem:[#allocation4 + $0x1a0] sm:$0xff] }
 0x55f   : > { %v6560_v45 = vrot.slane %v12447_v33, 2 }
 0x561   : > { %10146 = vmatmul.mubr.msk.bf16.gmra.mrb[172].mxu1 %vm2371_vm13, %v6701_v37  ;;  %v12235_v37 = vpop.permute.xlu0 %12234 }
 0x562   : > { %10149 = vmatprep.mubr.msk.bf16.mxu1 %vm2371_vm13, %v6705_v12  ;;  %v12237_v46 = vunpack.i.h.bf16 %v12235_v37  ;;  %v12236_v18 = vunpack.i.l.bf16 %v12235_v37 }
 0x564   : > { %v6652_v12 = vsel %vm2371_vm13, %v19860_v10, %v12236_v18  ;;  %v6561_v18 = vsel %vm1040_vm2, %v6559_v54, %v6560_v45 }
 0x565   : > { %7335 = vmatmul.mubr.bf16.gmra.mrb[160].mxu0 %v6703_v56  ;;  %v19861_v56 = vld [vmem:[#allocation78_spill] sm:$0xff]  ;;  %v12245_v37 = vpop.permute.xlu0 %12244 }
 0x566   : > { %7342 = vmatprep.mubr.bf16.mxu0 %v17661_v40  ;;  %v6707_v40 = vpack.c.bf16 %v6651_v3, %v6650_v9  ;;  %v6653_v28 = vsel %vm2371_vm13, %v19861_v56, %v12237_v46  ;;  %v6725_v9 = vpack.c.bf16 %v17514_v57, %v17505_v62  ;;  %v6655_v3 = vsel %vm2371_vm13, %v19863_v24, %v12242_v55  ;;  %v19865_v46 = vld [vmem:[#allocation25_spill] sm:$0xff]  ;;  %v19867_v56 = vld [vmem:[#allocation96_spill] sm:$0xff] }
 0x567   : > { %v6711_v59 = vpack.c.bf16 %v6653_v28, %v6652_v12  ;;  %v12246_v10 = vunpack.i.l.bf16 %v12245_v37  ;;  %v19869_v55 = vmov 0.0  }
 0x569   : > { %10150 = vmatmul.mubr.msk.bf16.gmra.mrb[176].mxu1 %vm2371_vm13, %v6709_v30  ;;  %v12448_v30 = vld [vmem:[#allocation4 + $0x1a8] sm:$0x3]  ;;  %v6656_v28 = vsel %vm2371_vm13, %v19867_v56, %v12246_v10 }
 0x56a   : > { %10153 = vmatprep.mubr.msk.bf16.mxu1 %vm2371_vm13, %v6713_v5  ;;  %v6562_v0 = vrot.slane %v12448_v30, 2  ;;  %v7575_v5 = vld [vmem:[%s18971_s11 + $0x38] sm:$0xff] }
 0x56c   : > { %v6563_v7 = vsel %vm1040_vm2, %v6560_v45, %v6562_v0 }
 0x56d   : > { %7343 = vmatmul.mubr.bf16.gmra.mrb[164].mxu0 %v6707_v40  ;;  %v19864_v40 = vld [vmem:[#allocation27_spill] sm:$0xff]  ;;  %v6733_v12 = vpack.c.bf16 %v6563_v7, %v6561_v18 }
 0x56e   : > { %7350 = vmatprep.mubr.bf16.mxu0 %v17687_v52  ;;  %v12241_v52 = vunpack.i.l.bf16 %v12240_v6  ;;  %v19866_v62 = vpack.c.bf16 %v19864_v40, %v19865_v46  ;;  %v19868_v6 = vld [vmem:[#allocation98_spill] sm:$0xff]  ;;  %v12450_v40 = vld [vmem:[#allocation4 + $0x188] sm:$0xff] }
 0x570   : > { %v6654_v11 = vsel %vm2371_vm13, %v19862_v48, %v12241_v52  ;;  %v12255_v52 = vpop.permute.xlu0 %12254 }
 0x571   : > { %10154 = vmatmul.mubr.msk.bf16.gmra.mrb[180].mxu1 %vm2371_vm13, %v6717_v14  ;;  %v6715_v57 = vpack.c.bf16 %v6655_v3, %v6654_v11  ;;  %v12247_v14 = vunpack.i.h.bf16 %v12245_v37  ;;  %v12256_v0 = vunpack.i.l.bf16 %v12255_v52  ;;  %v19871_v11 = vld [vmem:[#allocation30_spill] sm:$0xff] }
 0x572   : > { %10157 = vmatprep.mubr.msk.bf16.mxu1 %vm2371_vm13, %v6721_v38 }
 0x573   : > { %v6657_v38 = vsel %vm2371_vm13, %v19868_v6, %v12247_v14 }
 0x574   : > { %v6719_v54 = vpack.c.bf16 %v6657_v38, %v6656_v28  ;;  %v12265_v3 = vpop.permute.xlu0 %12264 }
 0x575   : > { %7351 = vmatmul.mubr.bf16.gmra.mrb[168].mxu0 %v6711_v59  ;;  %v12250_v59 = vpop.permute.xlu1 %12249  ;;  %v12266_v18 = vunpack.i.l.bf16 %v12265_v3 }
 0x576   : > { %7358 = vmatprep.mubr.bf16.mxu0 %v17716_v43  ;;  %v7574_v43 = vld [vmem:[%s18971_s11 + $0x30] sm:$0xff]  ;;  %v12252_v45 = vunpack.i.h.bf16 %v12250_v59  ;;  %v12251_v30 = vunpack.i.l.bf16 %v12250_v59 }
 0x577   : > { %v10345_v42 = vpack.c.bf16 %v7575_v5, %v7574_v43  ;;  %v12449_v43 = vld [vmem:[#allocation4 + $0x180] sm:$0xff]  ;;  %v6666_v6 = vsel %vm2371_vm13, %v12446_v31, %v12266_v18 }
 0x578   : > { %v6659_v24 = vsel %vm2371_vm13, %v19871_v11, %v12252_v45  ;;  %v6664_v5 = vsel %vm2371_vm13, %v12449_v43, %v12256_v0  ;;  %v19873_v45 = vld [vmem:[#allocation143_spill] sm:$0xff] }
 0x579   : > { %10158 = vmatmul.mubr.msk.bf16.gmra.mrb[184].mxu1 %vm2371_vm13, %v6725_v9  ;;  %10346 = vmatprep.subr.bf16.mxu0 %v10345_v42  ;;  %v19870_v9 = vld [vmem:[#allocation154_spill] sm:$0xff]  ;;  %v12260_v37 = vpop.permute.xlu1 %12259 }
 0x57a   : > { %10161 = vmatprep.mubr.msk.bf16.mxu1 %vm2371_vm13, %v19866_v62  ;;  %10348 = vmatpush3.bf16.msra.mxu0 %v10345_v42  ;;  %v6658_v48 = vsel %vm2371_vm13, %v19870_v9, %v12251_v30  ;;  %v12262_v7 = vunpack.i.h.bf16 %v12260_v37 }
 0x57b   : > { %10392 = vmatprep.subr.bf16.mxu1 %v10345_v42  ;;  %v6723_v62 = vpack.c.bf16 %v6659_v24, %v6658_v48 }
 0x57c   : > { %10396 = vmatpush3.bf16.msra.mxu1 %v10345_v42  ;;  %v12261_v42 = vunpack.i.l.bf16 %v12260_v37  ;;  %v6661_v30 = vsel %vm2371_vm13, %v19873_v45, %v12262_v7 }
 0x57d   : > { %7359 = vmatmul.mubr.bf16.gmra.mrb[172].mxu0 %v6715_v57  ;;  %10293 = vmatprep.subr.mxu1 %v19869_v55  ;;  %v12267_v57 = vunpack.i.h.bf16 %v12265_v3 }
 0x57e   : > { %7366 = vmatprep.mubr.bf16.mxu0 %v17821_v39  ;;  %v12257_v39 = vunpack.i.h.bf16 %v12255_v52  ;;  %v19872_v52 = vld [vmem:[#allocation137_spill] sm:$0xff] }
 0x57f   : > { %v6667_v38 = vsel %vm2371_vm13, %v12447_v33, %v12267_v57 }
 0x580   : > { %v6665_v46 = vsel %vm2371_vm13, %v12450_v40, %v12257_v39  ;;  %v12270_v39 = vpop.permute.xlu1 %12269  ;;  %v6732_v0 = vpack.c.bf16 %v6667_v38, %v6666_v6 }
 0x581   : > { %10162 = vmatmul.mubr.msk.bf16.gmra.mrb[188].mxu1 %vm2371_vm13, %v6733_v12  ;;  %v6728_v14 = vpack.c.bf16 %v6665_v46, %v6664_v5  ;;  %v12272_v48 = vunpack.i.h.bf16 %v12270_v39  ;;  %v12271_v11 = vunpack.i.l.bf16 %v12270_v39  ;;  %v19874_v5 = vld [vmem:[#allocation31_spill] sm:$0xff]  ;;  %v19875_v46 = vld [vmem:[#allocation32_spill] sm:$0xff] }
 0x583   : > { %v6662_v40 = vsel %vm2371_vm13, %v19874_v5, %v12271_v11 }
 0x585   : > { %7367 = vmatmul.mubr.bf16.gmra.mrb[176].mxu0 %v6719_v54  ;;  %v6660_v54 = vsel %vm2371_vm13, %v19872_v52, %v12261_v42 }
 0x586   : > { %7374 = vmatprep.mubr.bf16.mxu0 %v17851_v36  ;;  %v6727_v9 = vpack.c.bf16 %v6661_v30, %v6660_v54 }
 0x58a   : > { %v9682_v36 = vpop.f32.mrb[96].mxu1 }
 0x58b   : > { %v9683_v10 = vpop.f32.mrb[97].mxu1 }
 0x58c   : > { %v18064_v12 = vadd.f32 %v9683_v10, %v9682_v36  ;;  %v9685_v56 = vpop.f32.mrb[98].mxu1 }
 0x58d   : > { %7375 = vmatmul.mubr.bf16.gmra.mrb[180].mxu0 %v6723_v62  ;;  %v9686_v28 = vpop.f32.mrb[99].mxu1  ;;  %v6663_v62 = vsel %vm2371_vm13, %v19875_v46, %v12272_v48 }
 0x58e   : > { %7382 = vmatprep.mubr.bf16.mxu0 %v6728_v14  ;;  %v18068_v59 = vadd.f32 %v9686_v28, %v9685_v56  ;;  %v6731_v57 = vpack.c.bf16 %v6663_v62, %v6662_v40  ;;  %v7560_v56 = vld [vmem:[%s18970_s10] sm:$0xff]  ;;  %v7561_v28 = vld [vmem:[%s18970_s10 + $0x8] sm:$0xff] }
 0x58f   : > { %v18092_v38 = vpack.c.bf16 %v7561_v28, %v7560_v56 }
 0x591   : > { %10350 = vmatprep.subr.bf16.mxu0 %v18092_v38 }
 0x592   : > { %v9688_v24 = vpop.f32.mrb[100].mxu1 }
 0x593   : > { %v9689_v3 = vpop.f32.mrb[101].mxu1 }
 0x594   : > { %v18074_v37 = vadd.f32 %v9689_v3, %v9688_v24  ;;  %v9691_v31 = vpop.f32.mrb[102].mxu1 }
 0x595   : > { %7383 = vmatmul.mubr.bf16.gmra.mrb[184].mxu0 %v6727_v9  ;;  %v9692_v33 = vpop.f32.mrb[103].mxu1 }
 0x596   : > { %7390 = vmatprep.mubr.bf16.mxu0 %v6732_v0  ;;  %v18076_v43 = vadd.f32 %v9692_v33, %v9691_v31 }
 0x59a   : > { %v9694_v18 = vpop.f32.mrb[104].mxu1 }
 0x59b   : > { %v9695_v7 = vpop.f32.mrb[105].mxu1 }
 0x59c   : > { %v18082_v42 = vadd.f32 %v9695_v7, %v9694_v18  ;;  %v9697_v36 = vpop.f32.mrb[106].mxu1 }
 0x59d   : > { %7391 = vmatmul.mubr.bf16.gmra.mrb[188].mxu0 %v6731_v57  ;;  %v9698_v14 = vpop.f32.mrb[107].mxu1 }
 0x59e   : > { %v18084_v10 = vadd.f32 %v9698_v14, %v9697_v36 }
 0x5a3   : > { %v9700_v6 = vpop.f32.mrb[108].mxu1 }
 0x5a4   : > { %v9701_v52 = vpop.f32.mrb[109].mxu1 }
 0x5a5   : > { %v18094_v54 = vadd.f32 %v9701_v52, %v9700_v6  ;;  %v9703_v45 = vpop.f32.mrb[110].mxu1 }
 0x5a6   : > { %v9704_v30 = vpop.f32.mrb[111].mxu1 }
 0x5a7   : > { %v18097_v39 = vadd.f32 %v9704_v30, %v9703_v45 }
 0x5ab   : > { %v9706_v0 = vpop.f32.mrb[112].mxu1 }
 0x5ac   : > { %v9707_v9 = vpop.f32.mrb[113].mxu1 }
 0x5ad   : > { %v18099_v48 = vadd.f32 %v9707_v9, %v9706_v0  ;;  %v9709_v11 = vpop.f32.mrb[114].mxu1 }
 0x5ae   : > { %v9710_v24 = vpop.f32.mrb[115].mxu1 }
 0x5af   : > { %v18101_v3 = vadd.f32 %v9710_v24, %v9709_v11  ;;  %v18118_v11 = vld [vmem:[%s18969_s9] ss:$0 sm:$0xff] }
 0x5b3   : > { %v9712_v31 = vpop.f32.mrb[116].mxu1 }
 0x5b4   : > { %v9713_v33 = vpop.f32.mrb[117].mxu1 }
 0x5b5   : > { %v18103_v5 = vadd.f32 %v9713_v33, %v9712_v31  ;;  %v9715_v40 = vpop.f32.mrb[118].mxu1  ;;  %v7112_v31 = vadd.f32 %v18064_v12, %v18118_v11 }
 0x5b6   : > { %v9716_v46 = vpop.f32.mrb[119].mxu1 }
 0x5b7   : > { %v18105_v62 = vadd.f32 %v9716_v46, %v9715_v40 }
 0x5bb   : > { %v9718_v57 = vpop.f32.mrb[120].mxu1 }
 0x5bc   : > { %v9719_v18 = vpop.f32.mrb[121].mxu1 }
 0x5bd   : > { %v18107_v7 = vadd.f32 %v9719_v18, %v9718_v57  ;;  %v9721_v36 = vpop.f32.mrb[122].mxu1  ;;  %v7115_v18 = vadd.f32 %v18068_v59, %v18118_v11 }
 0x5be   : > { %v9722_v14 = vpop.f32.mrb[123].mxu1 }
 0x5bf   : > { %v18109_v56 = vadd.f32 %v9722_v14, %v9721_v36 }
 0x5c3   : > { %v9724_v28 = vpop.f32.mrb[124].mxu1 }
 0x5c4   : > { %v9725_v6 = vpop.f32.mrb[125].mxu1 }
 0x5c5   : > { %v18111_v52 = vadd.f32 %v9725_v6, %v9724_v28  ;;  %v9727_v45 = vpop.f32.mrb[126].mxu1 }
 0x5c6   : > { %v9728_v30 = vpop.f32.mrb[127].mxu1 }
 0x5c7   : > { %v18113_v0 = vadd.f32 %v9728_v30, %v9727_v45  ;;  %v9794_v9 = vpop.f32.mrb[128].mxu0 }
 0x5c8   : > { %v9795_v24 = vpop.f32.mrb[129].mxu0 }
 0x5c9   : > { %v9796_v33 = vadd.f32 %v9795_v24, %v9794_v9  ;;  %v9797_v40 = vpop.f32.mrb[130].mxu0 }
 0x5ca   : > { %v9798_v57 = vpop.f32.mrb[131].mxu0 }
 0x5cb   : > { %v9730_v46 = vpop.f32.mrb[128].mxu1  ;;  %v9799_v14 = vadd.f32 %v9798_v57, %v9797_v40  ;;  %v18124_v28 = vadd.f32 %v9796_v33, %v7112_v31 }
 0x5cc   : > { %v9731_v36 = vpop.f32.mrb[129].mxu1 }
 0x5cd   : > { %v18126_v6 = vadd.f32 %v9731_v36, %v9730_v46  ;;  %v9733_v45 = vpop.f32.mrb[130].mxu1  ;;  %v18128_v55 = vadd.f32 %v9799_v14, %v7115_v18 }
 0x5ce   : > { %v9734_v30 = vpop.f32.mrb[131].mxu1 }
 0x5cf   : > { %v18130_v17 = vadd.f32 %v9734_v30, %v9733_v45 }
 0x5d3   : > { %v9736_v12 = vpop.f32.mrb[132].mxu1 }
 0x5d4   : > { %v9737_v9 = vpop.f32.mrb[133].mxu1 }
 0x5d5   : > { %v18132_v24 = vadd.f32 %v9737_v9, %v9736_v12  ;;  %v9739_v13 = vpop.f32.mrb[134].mxu1 }
 0x5d6   : > { %v9740_v47 = vpop.f32.mrb[135].mxu1 }
 0x5d7   : > { %v18134_v4 = vadd.f32 %v9740_v47, %v9739_v13  ;;  %v7120_v13 = vadd.f32 %v18074_v37, %v18118_v11 }
 0x5db   : > { %v9742_v59 = vpop.f32.mrb[136].mxu1 }
 0x5dc   : > { %v9743_v40 = vpop.f32.mrb[137].mxu1 }
 0x5dd   : > { %v18136_v31 = vadd.f32 %v9743_v40, %v9742_v59  ;;  %v9745_v33 = vpop.f32.mrb[138].mxu1 }
 0x5de   : > { %v9746_v46 = vpop.f32.mrb[139].mxu1 }
 0x5df   : > { %v18138_v57 = vadd.f32 %v9746_v46, %v9745_v33  ;;  %v7123_v33 = vadd.f32 %v18076_v43, %v18118_v11  ;;  %v7131_v43 = vadd.f32 %v18084_v10, %v18118_v11 }
 0x5e3   : > { %v9748_v18 = vpop.f32.mrb[140].mxu1 }
 0x5e4   : > { %v9749_v36 = vpop.f32.mrb[141].mxu1 }
 0x5e5   : > { %v18140_v14 = vadd.f32 %v9749_v36, %v9748_v18  ;;  %v9751_v45 = vpop.f32.mrb[142].mxu1 }
 0x5e6   : > { %v9752_v30 = vpop.f32.mrb[143].mxu1  ;;  %v9800_v9 = vpop.f32.mrb[132].mxu0 }
 0x5e7   : > { %v18142_v12 = vadd.f32 %v9752_v30, %v9751_v45  ;;  %v9801_v19 = vpop.f32.mrb[133].mxu0 }
 0x5e8   : > { %v9802_v47 = vadd.f32 %v9801_v19, %v9800_v9  ;;  %v9803_v59 = vpop.f32.mrb[134].mxu0  ;;  %v7128_v19 = vadd.f32 %v18082_v42, %v18118_v11 }
 0x5e9   : > { %v9804_v40 = vpop.f32.mrb[135].mxu0 }
 0x5ea   : > { %v9805_v2 = vadd.f32 %v9804_v40, %v9803_v59  ;;  %v7281_v61 = vadd.f32 %v9802_v47, %v7120_v13 }
 0x5eb   : > { %v9754_v46 = vpop.f32.mrb[144].mxu1 }
 0x5ec   : > { %v9755_v18 = vpop.f32.mrb[145].mxu1  ;;  %v7284_v45 = vadd.f32 %v9805_v2, %v7123_v33 }
 0x5ed   : > { %v18148_v36 = vadd.f32 %v9755_v18, %v9754_v46  ;;  %v9757_v32 = vpop.f32.mrb[146].mxu1 }
 0x5ee   : > { %v9758_v30 = vpop.f32.mrb[147].mxu1  ;;  %v9806_v58 = vpop.f32.mrb[136].mxu0 }
 0x5ef   : > { %v18150_v1 = vadd.f32 %v9758_v30, %v9757_v32  ;;  %v9807_v44 = vpop.f32.mrb[137].mxu0 }
 0x5f0   : > { %v9808_v37 = vadd.f32 %v9807_v44, %v9806_v58  ;;  %v9809_v9 = vpop.f32.mrb[138].mxu0 }
 0x5f1   : > { %v9810_v29 = vpop.f32.mrb[139].mxu0 }
 0x5f2   : > { %v9811_v47 = vadd.f32 %v9810_v29, %v9809_v9  ;;  %v18156_v59 = vadd.f32 %v9808_v37, %v7128_v19  ;;  %v7136_v19 = vadd.f32 %v18094_v54, %v18118_v11  ;;  %v7144_v54 = vadd.f32 %v18099_v48, %v18118_v11  ;;  %v7563_v48 = vld [vmem:[%s18970_s10 + $0x18] sm:$0xff] }
 0x5f3   : > { %v9760_v13 = vpop.f32.mrb[148].mxu1 }
 0x5f4   : > { %v9761_v40 = vpop.f32.mrb[149].mxu1  ;;  %v18160_v33 = vadd.f32 %v9811_v47, %v7131_v43 }
 0x5f5   : > { %v18158_v2 = vadd.f32 %v9761_v40, %v9760_v13  ;;  %v9763_v32 = vpop.f32.mrb[150].mxu1  ;;  %v7139_v13 = vadd.f32 %v18097_v39, %v18118_v11 }
 0x5f6   : > { %v9764_v46 = vpop.f32.mrb[151].mxu1 }
 0x5f7   : > { %v18162_v18 = vadd.f32 %v9764_v46, %v9763_v32 }
 0x5f9   : > { %19876 = vst [vmem:[#allocation82_spill] sm:$0xff] %v18162_v18 }
 0x60b   : > { %v9766_v42 = vpop.f32.mrb[152].mxu1 }
 0x60c   : > { %v9767_v58 = vpop.f32.mrb[153].mxu1 }
 0x60d   : > { %v18164_v44 = vadd.f32 %v9767_v58, %v9766_v42  ;;  %v9769_v30 = vpop.f32.mrb[154].mxu1 }
 0x60e   : > { %v9770_v25 = vpop.f32.mrb[155].mxu1 }
 0x60f   : > { %19877 = vst [vmem:[#allocation140_spill] sm:$0xff] %v18164_v44  ;;  %v18166_v34 = vadd.f32 %v9770_v25, %v9769_v30 }
 0x610   : > { %v9812_v10 = vpop.f32.mrb[140].mxu0 }
 0x611   : > { %19878 = vst [vmem:[#allocation101_spill] sm:$0xff] %v18166_v34  ;;  %v9813_v29 = vpop.f32.mrb[141].mxu0 }
 0x612   : > { %v9814_v37 = vadd.f32 %v9813_v29, %v9812_v10  ;;  %v9815_v9 = vpop.f32.mrb[142].mxu0 }
 0x613   : > { %v9816_v43 = vpop.f32.mrb[143].mxu0 }
 0x614   : > { %v9817_v47 = vadd.f32 %v9816_v43, %v9815_v9  ;;  %v7297_v40 = vadd.f32 %v9814_v37, %v7136_v19  ;;  %v9772_v32 = vpop.f32.mrb[156].mxu1  ;;  %v7147_v19 = vadd.f32 %v18101_v3, %v18118_v11 }
 0x615   : > { %v9773_v46 = vpop.f32.mrb[157].mxu1 }
 0x616   : > { %v7300_v42 = vadd.f32 %v9817_v47, %v7139_v13  ;;  %v18172_v58 = vadd.f32 %v9773_v46, %v9772_v32  ;;  %v9775_v44 = vpop.f32.mrb[158].mxu1 }
 0x617   : > { %v9776_v25 = vpop.f32.mrb[159].mxu1 }
 0x618   : > { %v9818_v30 = vpop.f32.mrb[144].mxu0  ;;  %v18174_v34 = vadd.f32 %v9776_v25, %v9775_v44  ;;  %v7562_v44 = vld [vmem:[%s18970_s10 + $0x10] sm:$0xff] }
 0x619   : > { %v9819_v18 = vpop.f32.mrb[145].mxu0 }
 0x61a   : > { %v9820_v10 = vadd.f32 %v9819_v18, %v9818_v30  ;;  %v9821_v29 = vpop.f32.mrb[146].mxu0 }
 0x61b   : > { %v9822_v39 = vpop.f32.mrb[147].mxu0 }
 0x61c   : > { %v9823_v37 = vadd.f32 %v9822_v39, %v9821_v29  ;;  %v18180_v9 = vadd.f32 %v9820_v10, %v7144_v54  ;;  %v10135_v43 = vpop.f32.mrb[160].mxu1  ;;  %v7152_v10 = vadd.f32 %v18103_v5, %v18118_v11  ;;  %v7564_v39 = vld [vmem:[%s18970_s10 + $0x20] sm:$0xff]  ;;  %v7155_v5 = vadd.f32 %v18105_v62, %v18118_v11 }
 0x61d   : > { %v7442_v13 = vadd.f32 %v10135_v43, %v7281_v61  ;;  %v7433_v47 = vpop.f32.mrb[161].mxu1 }
 0x61e   : > { %v18188_v18 = vadd.f32 %v9823_v37, %v7147_v19  ;;  %v7434_v32 = vadd.f32 %v7433_v47, %v18124_v28  ;;  %v10136_v46 = vpop.f32.mrb[162].mxu1  ;;  %v10353_v28 = vpack.c.bf16 %v7563_v48, %v7562_v44 }
 0x61f   : > { %8890 = vst.msk [vmem:[%s18192_s0 + $0x10] sm:$0xff] %vm2371_vm13, %v7442_v13  ;;  %v7445_v61 = vadd.f32 %v10136_v46, %v7284_v45  ;;  %v7436_v25 = vpop.f32.mrb[163].mxu1  ;;  %8572 = vrot.lane.b32.xlu0 %v7442_v13, %s19357_s27 }
 0x620   : > { %v9824_v3 = vpop.f32.mrb[148].mxu0  ;;  %8888 = vst.msk [vmem:[%s18192_s0] sm:$0xff] %vm2371_vm13, %v7434_v32  ;;  %v7437_v30 = vadd.f32 %v7436_v25, %v18128_v55  ;;  %10181 = vmatprep.mubr.msk.f32.mxu0 %vm2371_vm13, %v7434_v32  ;;  %v7565_v55 = vld [vmem:[%s18970_s10 + $0x28] sm:$0xff] }
 0x621   : > { %v9825_v54 = vpop.f32.mrb[149].mxu0  ;;  %8891 = vst.msk [vmem:[%s18192_s0 + $0x18] sm:$0xff] %vm2371_vm13, %v7445_v61  ;;  %8574 = vrot.lane.b32.xlu1 %v7445_v61, %s19357_s27  ;;  %v10357_v44 = vpack.c.bf16 %v7565_v55, %v7564_v39 }
 0x622   : > { %v9826_v29 = vadd.f32 %v9825_v54, %v9824_v3  ;;  %v9827_v45 = vpop.f32.mrb[150].mxu0  ;;  %8889 = vst.msk [vmem:[%s18192_s0 + $0x8] sm:$0xff] %vm2371_vm13, %v7437_v30  ;;  %10182 = vmatmul.mubr.msk.f32.vlgmr.msra.gmra.mrb[192].mxu0 %vm2371_vm13, %v7437_v30  ;;  %v7160_v54 = vadd.f32 %v18107_v7, %v18118_v11 }
 0x623   : > { %v9828_v19 = vpop.f32.mrb[151].mxu0  ;;  %10352 = vmatpush3.bf16.msra.mxu0 %v18092_v38  ;;  %8568 = vrot.lane.b32.xlu0 %v7434_v32, %s19357_s27  ;;  %v7566_v38 = vld [vmem:[%s18970_s10 + $0x30] sm:$0xff] }
 0x624   : > { %v9829_v37 = vadd.f32 %v9828_v19, %v9827_v45  ;;  %v7313_v43 = vadd.f32 %v9826_v29, %v7152_v10  ;;  %10184 = vmatprep.mubr.msk.f32.mxu0 %vm2371_vm13, %v7442_v13  ;;  %v10139_v47 = vpop.f32.mrb[164].mxu1  ;;  %10354 = vmatprep.subr.bf16.mxu0 %v10353_v28  ;;  %v7567_v13 = vld [vmem:[%s18970_s10 + $0x38] sm:$0xff] }
 0x625   : > { %v7458_v48 = vadd.f32 %v10139_v47, %v7297_v40  ;;  %v7449_v46 = vpop.f32.mrb[165].mxu1  ;;  %8570 = vrot.lane.b32.xlu1 %v7437_v30, %s19357_s27  ;;  %v10361_v29 = vpack.c.bf16 %v7567_v13, %v7566_v38 }
 0x626   : > { %v7316_v3 = vadd.f32 %v9829_v37, %v7155_v5  ;;  %v7450_v62 = vadd.f32 %v7449_v46, %v18156_v59  ;;  %v10140_v25 = vpop.f32.mrb[166].mxu1  ;;  %10185 = vmatmul.mubr.msk.f32.gmra.mrb[194].mxu0 %vm2371_vm13, %v7445_v61 }
 0x627   : > { %8894 = vst.msk [vmem:[%s18192_s0 + $0x30] sm:$0xff] %vm2371_vm13, %v7458_v48  ;;  %v7461_v40 = vadd.f32 %v10140_v25, %v7300_v42  ;;  %v7452_v30 = vpop.f32.mrb[167].mxu1  ;;  %8580 = vrot.lane.b32.xlu0 %v7458_v48, %s19357_s27  ;;  %10356 = vmatpush3.bf16.msra.mxu0 %v10353_v28 }
 0x628   : > { %v9830_v32 = vpop.f32.mrb[152].mxu0  ;;  %8892 = vst.msk [vmem:[%s18192_s0 + $0x20] sm:$0xff] %vm2371_vm13, %v7450_v62  ;;  %v7453_v59 = vadd.f32 %v7452_v30, %v18160_v33  ;;  %10187 = vmatprep.mubr.msk.f32.mxu0 %vm2371_vm13, %v7450_v62  ;;  %10358 = vmatprep.subr.bf16.mxu0 %v10357_v44  ;;  %v7163_v33 = vadd.f32 %v18109_v56, %v18118_v11 }
 0x629   : > { %v9831_v61 = vpop.f32.mrb[153].mxu0  ;;  %8895 = vst.msk [vmem:[%s18192_s0 + $0x38] sm:$0xff] %vm2371_vm13, %v7461_v40  ;;  %8582 = vrot.lane.b32.xlu1 %v7461_v40, %s19357_s27 }
 0x62a   : > { %v9832_v42 = vadd.f32 %v9831_v61, %v9830_v32  ;;  %v9833_v10 = vpop.f32.mrb[154].mxu0  ;;  %8893 = vst.msk [vmem:[%s18192_s0 + $0x28] sm:$0xff] %vm2371_vm13, %v7453_v59  ;;  %10188 = vmatmul.mubr.msk.f32.gmra.mrb[196].mxu0 %vm2371_vm13, %v7453_v59 }
 0x62b   : > { %v9834_v28 = vpop.f32.mrb[155].mxu0  ;;  %8576 = vrot.lane.b32.xlu0 %v7450_v62, %s19357_s27  ;;  %10190 = vmatprep.mubr.msk.f32.mxu0 %vm2371_vm13, %v7458_v48 }
 0x62c   : > { %v9835_v45 = vadd.f32 %v9834_v28, %v9833_v10  ;;  %v7321_v7 = vadd.f32 %v9832_v42, %v7160_v54  ;;  %v10143_v39 = vpop.f32.mrb[168].mxu1  ;;  %10360 = vmatpush3.bf16.msra.mxu0 %v10357_v44  ;;  %v7176_v28 = vadd.f32 %v18126_v6, %v18118_v11 }
 0x62d   : > { %v7474_v55 = vadd.f32 %v10143_v39, %v7313_v43  ;;  %v7465_v19 = vpop.f32.mrb[169].mxu1  ;;  %8578 = vrot.lane.b32.xlu1 %v7453_v59, %s19357_s27  ;;  %10362 = vmatprep.subr.bf16.mxu0 %v10361_v29  ;;  %v7179_v39 = vadd.f32 %v18130_v17, %v18118_v11 }
 0x62e   : > { %v7324_v5 = vadd.f32 %v9835_v45, %v7163_v33  ;;  %v7466_v37 = vadd.f32 %v7465_v19, %v18180_v9  ;;  %v10144_v47 = vpop.f32.mrb[170].mxu1  ;;  %10191 = vmatmul.mubr.msk.f32.gmra.mrb[198].mxu0 %vm2371_vm13, %v7461_v40  ;;  %v7168_v9 = vadd.f32 %v18111_v52, %v18118_v11 }
 0x62f   : > { %8898 = vst.msk [vmem:[%s18192_s0 + $0x50] sm:$0xff] %vm2371_vm13, %v7474_v55  ;;  %v7477_v56 = vadd.f32 %v10144_v47, %v7316_v3  ;;  %v7468_v46 = vpop.f32.mrb[171].mxu1  ;;  %8588 = vrot.lane.b32.xlu0 %v7474_v55, %s19357_s27 }
 0x630   : > { %v9836_v48 = vpop.f32.mrb[156].mxu0  ;;  %8896 = vst.msk [vmem:[%s18192_s0 + $0x40] sm:$0xff] %vm2371_vm13, %v7466_v37  ;;  %v7469_v43 = vadd.f32 %v7468_v46, %v18188_v18  ;;  %10193 = vmatprep.mubr.msk.f32.mxu0 %vm2371_vm13, %v7466_v37  ;;  %10364 = vmatpush3.bf16.msra.mxu0 %v10361_v29  ;;  %v7171_v18 = vadd.f32 %v18113_v0, %v18118_v11 }
 0x631   : > { %v9837_v44 = vpop.f32.mrb[157].mxu0  ;;  %8899 = vst.msk [vmem:[%s18192_s0 + $0x58] sm:$0xff] %vm2371_vm13, %v7477_v56  ;;  %8590 = vrot.lane.b32.xlu1 %v7477_v56, %s19357_s27 }
 0x632   : > { %v9838_v62 = vadd.f32 %v9837_v44, %v9836_v48  ;;  %v9839_v25 = vpop.f32.mrb[158].mxu0  ;;  %8897 = vst.msk [vmem:[%s18192_s0 + $0x48] sm:$0xff] %vm2371_vm13, %v7469_v43  ;;  %10194 = vmatmul.mubr.msk.f32.gmra.mrb[200].mxu0 %vm2371_vm13, %v7469_v43  ;;  %v7184_v44 = vadd.f32 %v18132_v24, %v18118_v11 }
 0x633   : > { %v9840_v3 = vpop.f32.mrb[159].mxu0  ;;  %8584 = vrot.lane.b32.xlu0 %v7466_v37, %s19357_s27  ;;  %10196 = vmatprep.mubr.msk.f32.mxu0 %vm2371_vm13, %v7474_v55 }
 0x634   : > { %v9841_v38 = vadd.f32 %v9840_v3, %v9839_v25  ;;  %v7329_v52 = vadd.f32 %v9838_v62, %v7168_v9  ;;  %v10147_v13 = vpop.f32.mrb[172].mxu1  ;;  %v7187_v3 = vadd.f32 %v18134_v4, %v18118_v11 }
 0x635   : > { %v7481_v32 = vpop.f32.mrb[173].mxu1  ;;  %8586 = vrot.lane.b32.xlu1 %v7469_v43, %s19357_s27 }
 0x636   : > { %v7490_v40 = vadd.f32 %v10147_v13, %v7329_v52  ;;  %v7332_v30 = vadd.f32 %v9841_v38, %v7171_v18  ;;  %v7482_v59 = vadd.f32 %v7481_v32, %v7321_v7  ;;  %v10148_v61 = vpop.f32.mrb[174].mxu1  ;;  %10197 = vmatmul.mubr.msk.f32.gmra.mrb[202].mxu0 %vm2371_vm13, %v7477_v56 }
 0x637   : > { %v7484_v42 = vpop.f32.mrb[175].mxu1 }
 0x638   : > { %8902 = vst.msk [vmem:[%s18192_s0 + $0x70] sm:$0xff] %vm2371_vm13, %v7490_v40  ;;  %v7493_v0 = vadd.f32 %v10148_v61, %v7332_v30  ;;  %v9842_v54 = vpop.f32.mrb[160].mxu0  ;;  %10202 = vmatprep.mubr.msk.f32.mxu1 %vm2371_vm13, %v7490_v40  ;;  %8596 = vrot.lane.b32.xlu0 %v7490_v40, %s19357_s27  ;;  %8900 = vst.msk [vmem:[%s18192_s0 + $0x60] sm:$0xff] %vm2371_vm13, %v7482_v59  ;;  %v7485_v10 = vadd.f32 %v7484_v42, %v7324_v5 }
 0x639   : > { %v9843_v29 = vpop.f32.mrb[161].mxu0  ;;  %10199 = vmatprep.mubr.msk.f32.mxu0 %vm2371_vm13, %v7482_v59 }
 0x63a   : > { %8903 = vst.msk [vmem:[%s18192_s0 + $0x78] sm:$0xff] %vm2371_vm13, %v7493_v0  ;;  %v9844_v33 = vadd.f32 %v9843_v29, %v9842_v54  ;;  %v9845_v45 = vpop.f32.mrb[162].mxu0  ;;  %10203 = vmatmul.mubr.msk.f32.vlgmr.msra.gmra.mrb[192].mxu1 %vm2371_vm13, %v7493_v0  ;;  %8598 = vrot.lane.b32.xlu1 %v7493_v0, %s19357_s27  ;;  %8901 = vst.msk [vmem:[%s18192_s0 + $0x68] sm:$0xff] %vm2371_vm13, %v7485_v10  ;;  %v7192_v0 = vadd.f32 %v18136_v31, %v18118_v11 }
 0x63b   : > { %v9846_v7 = vpop.f32.mrb[163].mxu0  ;;  %10200 = vmatmul.mubr.msk.f32.gmra.mrb[204].mxu0 %vm2371_vm13, %v7485_v10  ;;  %v7195_v29 = vadd.f32 %v18138_v57, %v18118_v11 }
 0x63c   : > { %v9847_v55 = vadd.f32 %v9846_v7, %v9845_v45  ;;  %8592 = vrot.lane.b32.xlu0 %v7482_v59, %s19357_s27  ;;  %10245 = vmatprep.mubr.msk.f32.mxu0 %vm2371_vm13, %v17714_v27  ;;  %v7337_v6 = vadd.f32 %v9844_v33, %v7176_v28  ;;  %v10151_v19 = vpop.f32.mrb[176].mxu1 }
 0x63d   : > { %v7497_v5 = vpop.f32.mrb[177].mxu1 }
 0x63e   : > { %8594 = vrot.lane.b32.xlu1 %v7485_v10, %s19357_s27  ;;  %v7340_v37 = vadd.f32 %v9847_v55, %v7179_v39  ;;  %v7498_v47 = vadd.f32 %v7497_v5, %v7337_v6  ;;  %v10152_v56 = vpop.f32.mrb[178].mxu1 }
 0x63f   : > { %10246 = vmatmul.mubr.msk.f32.vlgmr.msra.gmra.mrb[192].mxu0 %vm2371_vm13, %v17731_v23  ;;  %v7500_v17 = vpop.f32.mrb[179].mxu1 }
 0x640   : > { %v9848_v48 = vpop.f32.mrb[164].mxu0  ;;  %10248 = vmatprep.mubr.msk.f32.mxu0 %vm2371_vm13, %v17710_v22  ;;  %8904 = vst.msk [vmem:[%s18192_s0 + $0x80] sm:$0xff] %vm2371_vm13, %v7498_v47  ;;  %v7501_v46 = vadd.f32 %v7500_v17, %v7340_v37  ;;  %10205 = vmatprep.mubr.msk.f32.mxu1 %vm2371_vm13, %v7498_v47  ;;  %v7200_v37 = vadd.f32 %v18140_v14, %v18118_v11  ;;  %v19879_v17 = vld [vmem:[#allocation50_spill] sm:$0xff] }
 0x641   : > { %v9849_v43 = vpop.f32.mrb[165].mxu0 }
 0x642   : > { %v9850_v9 = vadd.f32 %v9849_v43, %v9848_v48  ;;  %v9851_v62 = vpop.f32.mrb[166].mxu0  ;;  %8905 = vst.msk [vmem:[%s18192_s0 + $0x88] sm:$0xff] %vm2371_vm13, %v7501_v46  ;;  %10206 = vmatmul.mubr.msk.f32.gmra.mrb[194].mxu1 %vm2371_vm13, %v7501_v46 }
 0x643   : > { %v9852_v25 = vpop.f32.mrb[167].mxu0  ;;  %10249 = vmatmul.mubr.msk.f32.gmra.mrb[194].mxu0 %vm2371_vm13, %v17725_v16 }
 0x644   : > { %v7345_v18 = vadd.f32 %v9850_v9, %v7184_v44  ;;  %v9853_v38 = vadd.f32 %v9852_v25, %v9851_v62  ;;  %10251 = vmatprep.mubr.msk.f32.mxu0 %vm2371_vm13, %v17752_v8  ;;  %v10155_v24 = vpop.f32.mrb[180].mxu1 }
 0x645   : > { %v7513_v40 = vpop.f32.mrb[181].mxu1 }
 0x646   : > { %v7506_v52 = vadd.f32 %v10151_v19, %v7345_v18  ;;  %v7348_v13 = vadd.f32 %v9853_v38, %v7187_v3  ;;  %v10156_v32 = vpop.f32.mrb[182].mxu1 }
 0x647   : > { %10252 = vmatmul.mubr.msk.f32.gmra.mrb[196].mxu0 %vm2371_vm13, %v17767_v15  ;;  %v7516_v61 = vpop.f32.mrb[183].mxu1 }
 0x648   : > { %8906 = vst.msk [vmem:[%s18192_s0 + $0x90] sm:$0xff] %vm2371_vm13, %v7506_v52  ;;  %v7509_v30 = vadd.f32 %v10152_v56, %v7348_v13  ;;  %v9854_v59 = vpop.f32.mrb[168].mxu0  ;;  %10208 = vmatprep.mubr.msk.f32.mxu1 %vm2371_vm13, %v7506_v52  ;;  %8604 = vrot.lane.b32.xlu0 %v7506_v52, %s19357_s27  ;;  %v7208_v52 = vadd.f32 %v18148_v36, %v18118_v11 }
 0x649   : > { %10254 = vmatprep.mubr.msk.f32.mxu0 %vm2371_vm13, %v17749_v49  ;;  %v9855_v4 = vpop.f32.mrb[169].mxu0 }
 0x64a   : > { %8907 = vst.msk [vmem:[%s18192_s0 + $0x98] sm:$0xff] %vm2371_vm13, %v7509_v30  ;;  %v9856_v54 = vadd.f32 %v9855_v4, %v9854_v59  ;;  %v9857_v42 = vpop.f32.mrb[170].mxu0  ;;  %10209 = vmatmul.mubr.msk.f32.gmra.mrb[196].mxu1 %vm2371_vm13, %v7509_v30  ;;  %8606 = vrot.lane.b32.xlu1 %v7509_v30, %s19357_s27  ;;  %v7211_v30 = vadd.f32 %v18150_v1, %v18118_v11  ;;  %v19880_v1 = vld [vmem:[#allocation51_spill] sm:$0xff] }
 0x64b   : > { %v9858_v10 = vpop.f32.mrb[171].mxu0  ;;  %10255 = vmatmul.mubr.msk.f32.gmra.mrb[198].mxu0 %vm2371_vm13, %v17760_v20 }
 0x64c   : > { %v7353_v28 = vadd.f32 %v9856_v54, %v7192_v0  ;;  %v9859_v33 = vadd.f32 %v9858_v10, %v9857_v42  ;;  %8600 = vrot.lane.b32.xlu0 %v7498_v47, %s19357_s27  ;;  %10257 = vmatprep.mubr.msk.f32.mxu0 %vm2371_vm13, %v17779_v53  ;;  %v18333_v31 = vpop.f32.mrb[184].mxu1  ;;  %v7216_v10 = vadd.f32 %v18158_v2, %v18118_v11 }
 0x64d   : > { %v7529_v39 = vpop.f32.mrb[185].mxu1 }
 0x64e   : > { %v7514_v45 = vadd.f32 %v7513_v40, %v7353_v28  ;;  %v7356_v7 = vadd.f32 %v9859_v33, %v7195_v29  ;;  %8602 = vrot.lane.b32.xlu1 %v7501_v46, %s19357_s27  ;;  %v18336_v55 = vpop.f32.mrb[186].mxu1  ;;  %v7203_v46 = vadd.f32 %v18142_v12, %v18118_v11 }
 0x64f   : > { %10258 = vmatmul.mubr.msk.f32.gmra.mrb[200].mxu0 %vm2371_vm13, %v17791_v35  ;;  %v7532_v19 = vpop.f32.mrb[187].mxu1 }
 0x650   : > { %8908 = vst.msk [vmem:[%s18192_s0 + $0xa0] sm:$0xff] %vm2371_vm13, %v7514_v45  ;;  %v7517_v57 = vadd.f32 %v7516_v61, %v7356_v7  ;;  %v9860_v6 = vpop.f32.mrb[172].mxu0  ;;  %10211 = vmatprep.mubr.msk.f32.mxu1 %vm2371_vm13, %v7514_v45  ;;  %10260 = vmatprep.mubr.msk.f32.mxu0 %vm2371_vm13, %v17776_v63  ;;  %v19882_v7 = vld [vmem:[#allocation82_spill] sm:$0xff] }
 0x651   : > { %v9861_v5 = vpop.f32.mrb[173].mxu0 }
 0x652   : > { %8909 = vst.msk [vmem:[%s18192_s0 + $0xa8] sm:$0xff] %vm2371_vm13, %v7517_v57  ;;  %v9862_v47 = vadd.f32 %v9861_v5, %v9860_v6  ;;  %v9863_v56 = vpop.f32.mrb[174].mxu0  ;;  %10212 = vmatmul.mubr.msk.f32.gmra.mrb[198].mxu1 %vm2371_vm13, %v7517_v57 }
 0x653   : > { %v9864_v48 = vpop.f32.mrb[175].mxu0  ;;  %10261 = vmatmul.mubr.msk.f32.gmra.mrb[202].mxu0 %vm2371_vm13, %v19879_v17 }
 0x654   : > { %v7361_v43 = vadd.f32 %v9862_v47, %v7200_v37  ;;  %v9865_v44 = vadd.f32 %v9864_v48, %v9863_v56  ;;  %10263 = vmatprep.mubr.msk.f32.mxu0 %vm2371_vm13, %v17813_v51  ;;  %v18356_v14 = vpop.f32.mrb[188].mxu1  ;;  %v19884_v37 = vld [vmem:[#allocation70_spill] sm:$0xff] }
 0x655   : > { %v18358_v25 = vpop.f32.mrb[189].mxu1  ;;  %v19885_v48 = vld [vmem:[#allocation46_spill] sm:$0xff] }
 0x656   : > { %v7522_v9 = vadd.f32 %v10155_v24, %v7361_v43  ;;  %v7364_v62 = vadd.f32 %v9865_v44, %v7203_v46  ;;  %v18362_v3 = vpop.f32.mrb[190].mxu1  ;;  %v19886_v43 = vld [vmem:[#allocation140_spill] sm:$0xff] }
 0x657   : > { %10264 = vmatmul.mubr.msk.f32.gmra.mrb[204].mxu0 %vm2371_vm13, %v17827_v26  ;;  %v18368_v38 = vpop.f32.mrb[191].mxu1 }
 0x658   : > { %8910 = vst.msk [vmem:[%s18192_s0 + $0xb0] sm:$0xff] %vm2371_vm13, %v7522_v9  ;;  %v7525_v12 = vadd.f32 %v10156_v32, %v7364_v62  ;;  %v9866_v18 = vpop.f32.mrb[176].mxu0  ;;  %10214 = vmatprep.mubr.msk.f32.mxu1 %vm2371_vm13, %v7522_v9  ;;  %8612 = vrot.lane.b32.xlu0 %v7522_v9, %s19357_s27  ;;  %v19887_v62 = vld [vmem:[#allocation69_spill] sm:$0xff] }
 0x659   : > { %10266 = vmatprep.mubr.msk.f32.mxu0 %vm2371_vm13, %v17804_v50  ;;  %v9867_v24 = vpop.f32.mrb[177].mxu0 }
 0x65a   : > { %8911 = vst.msk [vmem:[%s18192_s0 + $0xb8] sm:$0xff] %vm2371_vm13, %v7525_v12  ;;  %v9868_v13 = vadd.f32 %v9867_v24, %v9866_v18  ;;  %v9869_v40 = vpop.f32.mrb[178].mxu0  ;;  %10215 = vmatmul.mubr.msk.f32.gmra.mrb[200].mxu1 %vm2371_vm13, %v7525_v12  ;;  %8614 = vrot.lane.b32.xlu1 %v7525_v12, %s19357_s27  ;;  %v19888_v12 = vld [vmem:[#allocation101_spill] sm:$0xff] }
 0x65b   : > { %v9870_v32 = vpop.f32.mrb[179].mxu0  ;;  %10267 = vmatmul.mubr.msk.f32.gmra.mrb[206].mxu0 %vm2371_vm13, %v17819_v60  ;;  %v7227_v18 = vadd.f32 %v19888_v12, %v18118_v11 }
 0x65c   : > { %v7369_v59 = vadd.f32 %v9868_v13, %v7208_v52  ;;  %v9871_v61 = vadd.f32 %v9870_v32, %v9869_v40  ;;  %8608 = vrot.lane.b32.xlu0 %v7514_v45, %s19357_s27  ;;  %10269 = vmatprep.mubr.msk.f32.mxu0 %vm2371_vm13, %v17849_v21  ;;  %v19881_v45 = vld [vmem:[#allocation45_spill] sm:$0xff]  ;;  %v19889_v52 = vld [vmem:[#allocation63_spill] sm:$0xff] }
 0x65e   : > { %v7530_v36 = vadd.f32 %v7529_v39, %v7369_v59  ;;  %v7372_v4 = vadd.f32 %v9871_v61, %v7211_v30  ;;  %8610 = vrot.lane.b32.xlu1 %v7517_v57, %s19357_s27  ;;  %v7219_v39 = vadd.f32 %v19882_v7, %v18118_v11  ;;  %v19890_v30 = vld [vmem:[#allocation121_spill] sm:$0xff] }
 0x65f   : > { %10270 = vmatmul.mubr.msk.f32.gmra.mrb[208].mxu0 %vm2371_vm13, %v17867_v41 }
 0x660   : > { %8912 = vst.msk [vmem:[%s18192_s0 + $0xc0] sm:$0xff] %vm2371_vm13, %v7530_v36  ;;  %v7533_v0 = vadd.f32 %v7532_v19, %v7372_v4  ;;  %v9872_v54 = vpop.f32.mrb[180].mxu0  ;;  %10217 = vmatprep.mubr.msk.f32.mxu1 %vm2371_vm13, %v7530_v36  ;;  %10272 = vmatprep.mubr.msk.f32.mxu0 %vm2371_vm13, %v19880_v1  ;;  %v19883_v19 = vld [vmem:[#allocation107_spill] sm:$0xff] }
 0x661   : > { %v9873_v42 = vpop.f32.mrb[181].mxu0 }
 0x662   : > { %8913 = vst.msk [vmem:[%s18192_s0 + $0xc8] sm:$0xff] %vm2371_vm13, %v7533_v0  ;;  %v9874_v29 = vadd.f32 %v9873_v42, %v9872_v54  ;;  %v9875_v28 = vpop.f32.mrb[182].mxu0  ;;  %10218 = vmatmul.mubr.msk.f32.gmra.mrb[202].mxu1 %vm2371_vm13, %v7533_v0 }
 0x663   : > { %v9876_v33 = vpop.f32.mrb[183].mxu0  ;;  %10273 = vmatmul.mubr.msk.f32.gmra.mrb[210].mxu0 %vm2371_vm13, %v19881_v45 }
 0x664   : > { %v7377_v57 = vadd.f32 %v9874_v29, %v7216_v10  ;;  %v9877_v6 = vadd.f32 %v9876_v33, %v9875_v28  ;;  %10275 = vmatprep.mubr.msk.f32.mxu0 %vm2371_vm13, %v19883_v19  ;;  %v7235_v10 = vadd.f32 %v18174_v34, %v18118_v11  ;;  %v19893_v33 = vld [vmem:[#allocation87_spill] sm:$0xff]  ;;  %v19895_v34 = vld [vmem:[#allocation86_spill] sm:$0xff] }
 0x666   : > { %v7538_v2 = vadd.f32 %v18333_v31, %v7377_v57  ;;  %v7380_v5 = vadd.f32 %v9877_v6, %v7219_v39  ;;  %v7224_v31 = vadd.f32 %v19886_v43, %v18118_v11  ;;  %v19894_v39 = vld [vmem:[#allocation81_spill] sm:$0xff]  ;;  %v12586_v6 = vmov 0.0|0.0  }
 0x667   : > { %10276 = vmatmul.mubr.msk.f32.gmra.mrb[212].mxu0 %vm2371_vm13, %v19884_v37 }
 0x668   : > { %8914 = vst.msk [vmem:[%s18192_s0 + $0xd0] sm:$0xff] %vm2371_vm13, %v7538_v2  ;;  %v7541_v47 = vadd.f32 %v18336_v55, %v7380_v5  ;;  %v9878_v56 = vpop.f32.mrb[184].mxu0  ;;  %10220 = vmatprep.mubr.msk.f32.mxu1 %vm2371_vm13, %v7538_v2  ;;  %8620 = vrot.lane.b32.xlu0 %v7538_v2, %s19357_s27 }
 0x669   : > { %10278 = vmatprep.mubr.msk.f32.mxu0 %vm2371_vm13, %v19885_v48  ;;  %v9879_v46 = vpop.f32.mrb[185].mxu0 }
 0x66a   : > { %8915 = vst.msk [vmem:[%s18192_s0 + $0xd8] sm:$0xff] %vm2371_vm13, %v7541_v47  ;;  %v9880_v44 = vadd.f32 %v9879_v46, %v9878_v56  ;;  %v9881_v9 = vpop.f32.mrb[186].mxu0  ;;  %10221 = vmatmul.mubr.msk.f32.gmra.mrb[204].mxu1 %vm2371_vm13, %v7541_v47  ;;  %8622 = vrot.lane.b32.xlu1 %v7541_v47, %s19357_s27  ;;  %v18479_v47 = vld [vmem:[%s18972_s12] ss:$0 sm:$0xff] }
 0x66b   : > { %v9882_v55 = vpop.f32.mrb[187].mxu0  ;;  %10279 = vmatmul.mubr.msk.f32.gmra.mrb[214].mxu0 %vm2371_vm13, %v19887_v62 }
 0x66c   : > { %v9883_v24 = vadd.f32 %v9882_v55, %v9881_v9  ;;  %8616 = vrot.lane.b32.xlu0 %v7530_v36, %s19357_s27  ;;  %10281 = vmatprep.mubr.msk.f32.mxu0 %vm2371_vm13, %v19889_v52  ;;  %v7385_v13 = vadd.f32 %v9880_v44, %v7224_v31  ;;  %v19891_v36 = vld [vmem:[#allocation109_spill] sm:$0xff] }
 0x66e   : > { %v7546_v40 = vadd.f32 %v18358_v25, %v7385_v13  ;;  %8618 = vrot.lane.b32.xlu1 %v7533_v0, %s19357_s27  ;;  %v7388_v32 = vadd.f32 %v9883_v24, %v7227_v18  ;;  %v7232_v25 = vadd.f32 %v18172_v58, %v18118_v11  ;;  %v19896_v11 = vld [vmem:[#allocation123_spill] sm:$0xff] }
 0x66f   : > { %10282 = vmatmul.mubr.msk.f32.gmra.mrb[216].mxu0 %vm2371_vm13, %v19890_v30 }
 0x670   : > { %8916 = vst.msk [vmem:[%s18192_s0 + $0xe0] sm:$0xff] %vm2371_vm13, %v7546_v40  ;;  %v7549_v59 = vadd.f32 %v18368_v38, %v7388_v32  ;;  %v9884_v61 = vpop.f32.mrb[188].mxu0  ;;  %10223 = vmatprep.mubr.msk.f32.mxu1 %vm2371_vm13, %v7546_v40  ;;  %10284 = vmatprep.mubr.msk.f32.mxu0 %vm2371_vm13, %v19891_v36  ;;  %v19892_v38 = vld [vmem:[#allocation64_spill] sm:$0xff] }
 0x671   : > { %v9885_v4 = vpop.f32.mrb[189].mxu0 }
 0x672   : > { %8917 = vst.msk [vmem:[%s18192_s0 + $0xe8] sm:$0xff] %vm2371_vm13, %v7549_v59  ;;  %v9886_v0 = vadd.f32 %v9885_v4, %v9884_v61  ;;  %v9887_v54 = vpop.f32.mrb[190].mxu0  ;;  %10224 = vmatmul.mubr.msk.f32.gmra.mrb[206].mxu1 %vm2371_vm13, %v7549_v59 }
 0x673   : > { %v9888_v42 = vpop.f32.mrb[191].mxu0  ;;  %10285 = vmatmul.mubr.msk.f32.gmra.mrb[218].mxu0 %vm2371_vm13, %v19892_v38 }
 0x674   : > { %v7393_v29 = vadd.f32 %v9886_v0, %v7232_v25  ;;  %v9889_v28 = vadd.f32 %v9888_v42, %v9887_v54  ;;  %10287 = vmatprep.mubr.msk.f32.mxu0 %vm2371_vm13, %v19893_v33 }
 0x676   : > { %v7554_v58 = vadd.f32 %v18356_v14, %v7393_v29  ;;  %v7396_v7 = vadd.f32 %v9889_v28, %v7235_v10  ;;  %v8360_v14 = vld [vmem:[%s18973_s13] sm:$0xf] }
 0x677   : > { %10288 = vmatmul.mubr.msk.f32.gmra.mrb[220].mxu0 %vm2371_vm13, %v19894_v39  ;;  %10294 = vmatpush3.msk.msra.mxu1 %vm8365_vm15, %v8360_v14 }
 0x678   : > { %8918 = vst.msk [vmem:[%s18192_s0 + $0xf0] sm:$0xff] %vm2371_vm13, %v7554_v58  ;;  %v7557_v57 = vadd.f32 %v18362_v3, %v7396_v7  ;;  %10226 = vmatprep.mubr.msk.f32.mxu1 %vm2371_vm13, %v7554_v58  ;;  %8628 = vrot.lane.b32.xlu0 %v7554_v58, %s19357_s27  ;;  %v19897_v3 = vmov 0.0  }
 0x679   : > { %10290 = vmatprep.mubr.msk.f32.mxu0 %vm2371_vm13, %v19895_v34  ;;  %10365 = vmatprep.subr.bf16.mxu1 %v12586_v6 }
 0x67a   : > { %8919 = vst.msk [vmem:[%s18192_s0 + $0xf8] sm:$0xff] %vm2371_vm13, %v7557_v57  ;;  %10227 = vmatmul.mubr.msk.f32.gmra.mrb[208].mxu1 %vm2371_vm13, %v7557_v57  ;;  %8630 = vrot.lane.b32.xlu1 %v7557_v57, %s19357_s27  ;;  %s12455_s0 = sshll.u32 %s12587_s19, 4  ;;  %s12456_s0 = int_to_ptr.vmem [resolvable:$false] %s12455_s0 }
 0x67b   : > { %10291 = vmatmul.mubr.msk.f32.gmra.mrb[222].mxu0 %vm2371_vm13, %v19896_v11  ;;  %10295 = vmatprep.mubr.msk.f32.mxu1 %vm12585_vm1, %v19897_v3  ;;  %s12457_s1 = scalar_lea.vmem %s12456_s0, 8192  ;;  %p12458_p0 = scmp.lt.s32.totalorder %s18700_s20, %s12456_s0 }
 0x67c   : > { %8624 = vrot.lane.b32.xlu0 %v7546_v40, %s19357_s27  ;;  %p12459_p1 = scmp.lt.s32.totalorder %s12457_s1, %s12451_s3 }
 0x67e   : > { %8626 = vrot.lane.b32.xlu1 %v7549_v59, %s19357_s27  ;;  %p12460_p2 = por %p12459_p1, %p12458_p0 }
 0x680   : > { %p12461_p3 = pnand %p12460_p2, %p12454_p13 }
 0x70d   : > { %v18472_v2 = vpop.f32.mrb[192].mxu1 }
 0x70e   : > { %v18474_v5 = vpop.f32.mrb[193].mxu1 }
 0x712   : > { %v10247_v56 = vpop.f32.mrb[192].mxu0 }
 0x713   : > { %v8226_v46 = vadd.f32 %v10247_v56, %v18479_v47  ;;  %v8059_v43 = vpop.f32.mrb[193].mxu0 }
 0x714   : > { %v8225_v31 = vadd.f32 %v18479_v47, %v8059_v43 }
 0x715   : > { %v8258_v44 = vmax.f32 %v8226_v46, 0.0  ;;  %v18483_v55 = vpop.f32.mrb[194].mxu1 }
 0x716   : > { %v8257_v9 = vmax.f32 %v8225_v31, 0.0  ;;  %v10250_v12 = vpop.f32.mrb[194].mxu0  ;;  %v18487_v13 = vpop.f32.mrb[195].mxu1 }
 0x717   : > { %v8290_v18 = vsel %vm672_vm0, %v8258_v44, 0.0  ;;  %v8228_v24 = vadd.f32 %v10250_v12, %v18479_v47  ;;  %v8069_v40 = vpop.f32.mrb[195].mxu0 }
 0x718   : > { %v8289_v32 = vsel %vm672_vm0, %v8257_v9, 0.0  ;;  %v8227_v59 = vadd.f32 %v18479_v47, %v8069_v40 }
 0x719   : > { %v8291_v61 = vadd.f32 %v8290_v18, %v8289_v32  ;;  %v8260_v4 = vmax.f32 %v8228_v24, 0.0 }
 0x71a   : > { %v8259_v25 = vmax.f32 %v8227_v59, 0.0  ;;  %v10253_v0 = vpop.f32.mrb[196].mxu0 }
 0x71b   : > { %v8230_v54 = vadd.f32 %v10253_v0, %v18479_v47  ;;  %v8079_v42 = vpop.f32.mrb[197].mxu0  ;;  %v8294_v7 = vsel %vm672_vm0, %v8260_v4, 0.0 }
 0x71c   : > { %v8292_v10 = vsel %vm672_vm0, %v8259_v25, 0.0  ;;  %v8229_v29 = vadd.f32 %v18479_v47, %v8079_v42 }
 0x71d   : > { %v8293_v28 = vadd.f32 %v8292_v10, %v8291_v61  ;;  %v18494_v58 = vpop.f32.mrb[196].mxu1  ;;  %v8262_v57 = vmax.f32 %v8230_v54, 0.0 }
 0x71e   : > { %v8261_v14 = vmax.f32 %v8229_v29, 0.0  ;;  %v18497_v56 = vpop.f32.mrb[197].mxu1  ;;  %v10256_v46 = vpop.f32.mrb[198].mxu0 }
 0x71f   : > { %v8295_v43 = vadd.f32 %v8294_v7, %v8293_v28  ;;  %v8232_v31 = vadd.f32 %v10256_v46, %v18479_v47  ;;  %v8089_v44 = vpop.f32.mrb[199].mxu0  ;;  %v8298_v24 = vsel %vm672_vm0, %v8262_v57, 0.0 }
 0x720   : > { %v8296_v9 = vsel %vm672_vm0, %v8261_v14, 0.0  ;;  %v8231_v12 = vadd.f32 %v18479_v47, %v8089_v44 }
 0x721   : > { %v8297_v18 = vadd.f32 %v8296_v9, %v8295_v43  ;;  %v8264_v40 = vmax.f32 %v8232_v31, 0.0 }
 0x722   : > { %v8263_v32 = vmax.f32 %v8231_v12, 0.0  ;;  %v10259_v59 = vpop.f32.mrb[200].mxu0 }
 0x723   : > { %v8299_v61 = vadd.f32 %v8298_v24, %v8297_v18  ;;  %v8234_v4 = vadd.f32 %v10259_v59, %v18479_v47  ;;  %v8099_v25 = vpop.f32.mrb[201].mxu0  ;;  %v8302_v29 = vsel %vm672_vm0, %v8264_v40, 0.0 }
 0x724   : > { %v8300_v0 = vsel %vm672_vm0, %v8263_v32, 0.0  ;;  %v8233_v54 = vadd.f32 %v18479_v47, %v8099_v25 }
 0x725   : > { %v8301_v42 = vadd.f32 %v8300_v0, %v8299_v61  ;;  %v18506_v10 = vpop.f32.mrb[198].mxu1  ;;  %v8266_v28 = vmax.f32 %v8234_v4, 0.0 }
 0x726   : > { %v8265_v7 = vmax.f32 %v8233_v54, 0.0  ;;  %v18509_v14 = vpop.f32.mrb[199].mxu1  ;;  %v10262_v57 = vpop.f32.mrb[202].mxu0 }
 0x727   : > { %v8303_v46 = vadd.f32 %v8302_v29, %v8301_v42  ;;  %v8236_v43 = vadd.f32 %v10262_v57, %v18479_v47  ;;  %v8109_v31 = vpop.f32.mrb[203].mxu0  ;;  %v8306_v18 = vsel %vm672_vm0, %v8266_v28, 0.0 }
 0x728   : > { %v8304_v44 = vsel %vm672_vm0, %v8265_v7, 0.0  ;;  %v8235_v9 = vadd.f32 %v18479_v47, %v8109_v31 }
 0x729   : > { %v8305_v12 = vadd.f32 %v8304_v44, %v8303_v46  ;;  %v8268_v24 = vmax.f32 %v8236_v43, 0.0 }
 0x72a   : > { %v8267_v32 = vmax.f32 %v8235_v9, 0.0  ;;  %v10265_v59 = vpop.f32.mrb[204].mxu0 }
 0x72b   : > { %v8307_v40 = vadd.f32 %v8306_v18, %v8305_v12  ;;  %v8238_v61 = vadd.f32 %v10265_v59, %v18479_v47  ;;  %v8119_v4 = vpop.f32.mrb[205].mxu0  ;;  %v8310_v29 = vsel %vm672_vm0, %v8268_v24, 0.0 }
 0x72c   : > { %v8308_v25 = vsel %vm672_vm0, %v8267_v32, 0.0  ;;  %v8237_v0 = vadd.f32 %v18479_v47, %v8119_v4 }
 0x72d   : > { %v8309_v54 = vadd.f32 %v8308_v25, %v8307_v40  ;;  %v10216_v42 = vpop.f32.mrb[200].mxu1  ;;  %v8270_v7 = vmax.f32 %v8238_v61, 0.0 }
 0x72e   : > { %v8269_v57 = vmax.f32 %v8237_v0, 0.0  ;;  %v7848_v46 = vpop.f32.mrb[201].mxu1  ;;  %v10268_v31 = vpop.f32.mrb[206].mxu0 }
 0x72f   : > { %v8311_v28 = vadd.f32 %v8310_v29, %v8309_v54  ;;  %v8135_v43 = vadd.f32 %v10268_v31, %v18472_v2  ;;  %v8129_v44 = vpop.f32.mrb[207].mxu0  ;;  %v8314_v59 = vsel %vm672_vm0, %v8270_v7, 0.0 }
 0x730   : > { %v8312_v9 = vsel %vm672_vm0, %v8269_v57, 0.0  ;;  %v8130_v12 = vadd.f32 %v8129_v44, %v18474_v5 }
 0x731   : > { %v8313_v18 = vadd.f32 %v8312_v9, %v8311_v28  ;;  %v8240_v32 = vadd.f32 %v18479_v47, %v8135_v43 }
 0x732   : > { %v8239_v40 = vadd.f32 %v18479_v47, %v8130_v12  ;;  %v10271_v24 = vpop.f32.mrb[208].mxu0 }
 0x733   : > { %v8315_v61 = vadd.f32 %v8314_v59, %v8313_v18  ;;  %v8145_v4 = vadd.f32 %v10271_v24, %v18483_v55  ;;  %v8139_v25 = vpop.f32.mrb[209].mxu0  ;;  %v8272_v0 = vmax.f32 %v8240_v32, 0.0 }
 0x734   : > { %v8271_v54 = vmax.f32 %v8239_v40, 0.0  ;;  %v8140_v2 = vadd.f32 %v8139_v25, %v18487_v13 }
 0x735   : > { %v8242_v29 = vadd.f32 %v18479_v47, %v8145_v4  ;;  %v10219_v57 = vpop.f32.mrb[202].mxu1  ;;  %v8318_v55 = vsel %vm672_vm0, %v8272_v0, 0.0 }
 0x736   : > { %v8316_v5 = vsel %vm672_vm0, %v8271_v54, 0.0  ;;  %v8241_v31 = vadd.f32 %v18479_v47, %v8140_v2  ;;  %v7858_v28 = vpop.f32.mrb[203].mxu1  ;;  %v10274_v7 = vpop.f32.mrb[210].mxu0 }
 0x737   : > { %v8317_v43 = vadd.f32 %v8316_v5, %v8315_v61  ;;  %v8155_v44 = vadd.f32 %v10274_v7, %v18494_v58  ;;  %v8149_v9 = vpop.f32.mrb[211].mxu0  ;;  %v8274_v12 = vmax.f32 %v8242_v29, 0.0 }
 0x738   : > { %v8273_v18 = vmax.f32 %v8241_v31, 0.0  ;;  %v8150_v32 = vadd.f32 %v8149_v9, %v18497_v56 }
 0x739   : > { %v8319_v13 = vadd.f32 %v8318_v55, %v8317_v43  ;;  %v8244_v59 = vadd.f32 %v18479_v47, %v8155_v44  ;;  %v8322_v58 = vsel %vm672_vm0, %v8274_v12, 0.0 }
 0x73a   : > { %v8320_v40 = vsel %vm672_vm0, %v8273_v18, 0.0  ;;  %v8243_v24 = vadd.f32 %v18479_v47, %v8150_v32  ;;  %v10277_v4 = vpop.f32.mrb[212].mxu0 }
 0x73b   : > { %v8321_v25 = vadd.f32 %v8320_v40, %v8319_v13  ;;  %v8165_v61 = vadd.f32 %v10277_v4, %v18506_v10  ;;  %v8159_v54 = vpop.f32.mrb[213].mxu0  ;;  %v8276_v2 = vmax.f32 %v8244_v59, 0.0 }
 0x73c   : > { %v8275_v0 = vmax.f32 %v8243_v24, 0.0  ;;  %v8160_v29 = vadd.f32 %v8159_v54, %v18509_v14 }
 0x73d   : > { %v8323_v5 = vadd.f32 %v8322_v58, %v8321_v25  ;;  %v8246_v56 = vadd.f32 %v18479_v47, %v8165_v61  ;;  %v10222_v31 = vpop.f32.mrb[204].mxu1  ;;  %v8326_v32 = vsel %vm672_vm0, %v8276_v2, 0.0 }
 0x73e   : > { %v8324_v7 = vsel %vm672_vm0, %v8275_v0, 0.0  ;;  %v8245_v43 = vadd.f32 %v18479_v47, %v8160_v29  ;;  %v7868_v44 = vpop.f32.mrb[205].mxu1  ;;  %v10280_v9 = vpop.f32.mrb[214].mxu0 }
 0x73f   : > { %v8325_v55 = vadd.f32 %v8324_v7, %v8323_v5  ;;  %v8175_v18 = vadd.f32 %v10280_v9, %v10216_v42  ;;  %v8169_v10 = vpop.f32.mrb[215].mxu0  ;;  %v8278_v12 = vmax.f32 %v8246_v56, 0.0 }
 0x740   : > { %v8277_v13 = vmax.f32 %v8245_v43, 0.0  ;;  %v8170_v59 = vadd.f32 %v8169_v10, %v7848_v46 }
 0x741   : > { %v8327_v40 = vadd.f32 %v8326_v32, %v8325_v55  ;;  %v8248_v14 = vadd.f32 %v18479_v47, %v8175_v18  ;;  %v8330_v0 = vsel %vm672_vm0, %v8278_v12, 0.0 }
 0x742   : > { %v8328_v24 = vsel %vm672_vm0, %v8277_v13, 0.0  ;;  %v8247_v4 = vadd.f32 %v18479_v47, %v8170_v59  ;;  %v10283_v25 = vpop.f32.mrb[216].mxu0 }
 0x743   : > { %v8329_v61 = vadd.f32 %v8328_v24, %v8327_v40  ;;  %v8185_v54 = vadd.f32 %v10283_v25, %v10219_v57  ;;  %v8179_v58 = vpop.f32.mrb[217].mxu0  ;;  %v8280_v42 = vmax.f32 %v8248_v14, 0.0 }
 0x744   : > { %v8279_v29 = vmax.f32 %v8247_v4, 0.0  ;;  %v8180_v5 = vadd.f32 %v8179_v58, %v7858_v28 }
 0x745   : > { %v8331_v2 = vadd.f32 %v8330_v0, %v8329_v61  ;;  %v8250_v56 = vadd.f32 %v18479_v47, %v8185_v54  ;;  %v10225_v46 = vpop.f32.mrb[206].mxu1  ;;  %v8334_v57 = vsel %vm672_vm0, %v8280_v42, 0.0 }
 0x746   : > { %v8332_v7 = vsel %vm672_vm0, %v8279_v29, 0.0  ;;  %v8249_v43 = vadd.f32 %v18479_v47, %v8180_v5  ;;  %v7878_v9 = vpop.f32.mrb[207].mxu1  ;;  %v10286_v55 = vpop.f32.mrb[218].mxu0 }
 0x747   : > { %v8333_v18 = vadd.f32 %v8332_v7, %v8331_v2  ;;  %v8195_v10 = vadd.f32 %v10286_v55, %v10222_v31  ;;  %v8189_v32 = vpop.f32.mrb[219].mxu0  ;;  %v8282_v13 = vmax.f32 %v8250_v56, 0.0 }
 0x748   : > { %v8281_v12 = vmax.f32 %v8249_v43, 0.0  ;;  %v8190_v59 = vadd.f32 %v8189_v32, %v7868_v44 }
 0x749   : > { %v8335_v40 = vadd.f32 %v8334_v57, %v8333_v18  ;;  %v8252_v28 = vadd.f32 %v18479_v47, %v8195_v10  ;;  %v8338_v58 = vsel %vm672_vm0, %v8282_v13, 0.0 }
 0x74a   : > { %v8336_v14 = vsel %vm672_vm0, %v8281_v12, 0.0  ;;  %v8251_v24 = vadd.f32 %v18479_v47, %v8190_v59  ;;  %v10289_v4 = vpop.f32.mrb[220].mxu0 }
 0x74b   : > { %v8337_v25 = vadd.f32 %v8336_v14, %v8335_v40  ;;  %v8205_v61 = vadd.f32 %v10289_v4, %v10225_v46  ;;  %v8199_v54 = vpop.f32.mrb[221].mxu0  ;;  %v8284_v31 = vmax.f32 %v8252_v28, 0.0 }
 0x74c   : > { %v8283_v0 = vmax.f32 %v8251_v24, 0.0  ;;  %v8200_v29 = vadd.f32 %v8199_v54, %v7878_v9 }
 0x74d   : > { %v8339_v42 = vadd.f32 %v8338_v58, %v8337_v25  ;;  %v8254_v5 = vadd.f32 %v18479_v47, %v8205_v61  ;;  %v10228_v44 = vpop.f32.mrb[208].mxu1  ;;  %v8342_v46 = vsel %vm672_vm0, %v8284_v31, 0.0 }
 0x74e   : > { %v8340_v2 = vsel %vm672_vm0, %v8283_v0, 0.0  ;;  %v8253_v56 = vadd.f32 %v18479_v47, %v8200_v29  ;;  %v7888_v7 = vpop.f32.mrb[209].mxu1  ;;  %v10292_v43 = vpop.f32.mrb[222].mxu0 }
 0x74f   : > { %v8341_v55 = vadd.f32 %v8340_v2, %v8339_v42  ;;  %v8215_v18 = vadd.f32 %v10292_v43, %v10228_v44  ;;  %v8209_v10 = vpop.f32.mrb[223].mxu0  ;;  %v8286_v32 = vmax.f32 %v8254_v5, 0.0  ;;  %v8440_v2 = vld [vmem:[%s18975_s15 + $0x8] sm:$0xff] }
 0x750   : > { %v8285_v57 = vmax.f32 %v8253_v56, 0.0  ;;  %v8210_v13 = vadd.f32 %v8209_v10, %v7888_v7 }
 0x751   : > { %v8343_v12 = vadd.f32 %v8342_v46, %v8341_v55  ;;  %v8256_v9 = vadd.f32 %v18479_v47, %v8215_v18  ;;  %v8346_v14 = vsel %vm672_vm0, %v8286_v32, 0.0  ;;  %v8441_v55 = vld [vmem:[%s18975_s15 + $0x10] sm:$0xff]  ;;  %v8442_v18 = vld [vmem:[%s18975_s15 + $0x18] sm:$0xff]  ;;  %v8443_v46 = vld [vmem:[%s18975_s15 + $0x20] sm:$0xff] }
 0x752   : > { %v8344_v59 = vsel %vm672_vm0, %v8285_v57, 0.0  ;;  %v8255_v40 = vadd.f32 %v18479_v47, %v8210_v13  ;;  %v8439_v47 = vld [vmem:[%s18975_s15] sm:$0xff]  ;;  %v10369_v10 = vpack.c.bf16 %v8442_v18, %v8441_v55  ;;  %v8444_v32 = vld [vmem:[%s18975_s15 + $0x28] sm:$0xff]  ;;  %v8445_v13 = vld [vmem:[%s18975_s15 + $0x30] sm:$0xff] }
 0x753   : > { %v8345_v28 = vadd.f32 %v8344_v59, %v8343_v12  ;;  %v8288_v24 = vmax.f32 %v8256_v9, 0.0  ;;  %v10366_v7 = vpack.c.bf16 %v8440_v2, %v8439_v47  ;;  %v10372_v57 = vpack.c.bf16 %v8444_v32, %v8443_v46  ;;  %v8447_v9 = vld [vmem:[%s18975_s15 + $0x40] sm:$0xff]  ;;  %v8448_v59 = vld [vmem:[%s18975_s15 + $0x48] sm:$0xff] }
 0x754   : > { %v8287_v4 = vmax.f32 %v8255_v40, 0.0  ;;  %v10378_v40 = vpack.c.bf16 %v8448_v59, %v8447_v9 }
 0x755   : > { %v8347_v25 = vadd.f32 %v8346_v14, %v8345_v28  ;;  %v8350_v58 = vsel %vm672_vm0, %v8288_v24, 0.0  ;;  %v8449_v28 = vld [vmem:[%s18975_s15 + $0x50] sm:$0xff]  ;;  %v8450_v14 = vld [vmem:[%s18975_s15 + $0x58] sm:$0xff] }
 0x756   : > { %v8348_v61 = vsel %vm672_vm0, %v8287_v4, 0.0  ;;  %v10381_v24 = vpack.c.bf16 %v8450_v14, %v8449_v28  ;;  %v8451_v4 = vld [vmem:[%s18975_s15 + $0x60] sm:$0xff] }
 0x757   : > { %v8349_v54 = vadd.f32 %v8348_v61, %v8347_v25  ;;  %v8452_v25 = vld [vmem:[%s18975_s15 + $0x68] sm:$0xff] }
 0x758   : > { %v10384_v61 = vpack.c.bf16 %v8452_v25, %v8451_v4 }
 0x759   : > { %v8351_v31 = vadd.f32 %v8350_v58, %v8349_v54  ;;  %v8453_v54 = vld [vmem:[%s18975_s15 + $0x70] sm:$0xff]  ;;  %v8454_v58 = vld [vmem:[%s18975_s15 + $0x78] sm:$0xff] }
 0x75b   : > { %v8352_v0 = vrot.slane %v8351_v31, 4 }
 0x75d   : > { %v8353_v29 = vadd.f32 %v8352_v0, %v8351_v31  ;;  %v10387_v31 = vpack.c.bf16 %v8454_v58, %v8453_v54  ;;  %v8361_v0 = vld [vmem:[%s18974_s14] sm:$0x1] }
 0x75f   : > { %v8354_v42 = vrot.slane %v8353_v29, 2 }
 0x761   : > { %v8355_v5 = vadd.f32 %v8354_v42, %v8353_v29 }
 0x763   : > { %v8356_v44 = vrot.slane %v8355_v5, 1 }
 0x765   : > { %v8357_v56 = vadd.f32 %v8356_v44, %v8355_v5 }
 0x767   : > { %v8359_v43 = vmul.f32 0.00390625, %v8357_v56 }
 0x769   : > { %10296 = vmatmul.mubr.msk.f32.vlgmr.msra.gmra.mrb[210].mxu1 %vm672_vm0, %v8359_v43  ;;  %v8573_v43 = vpop.permute.xlu0 %8572 }
 0x76a   : > { %10367 = vmatpush3.bf16.msra.mxu1 %v10366_v7  ;;  %10330 = vmatprep.mubr.msk.f32.mxu1 %vm12585_vm1, %v19897_v3  ;;  %v8446_v3 = vld [vmem:[%s18975_s15 + $0x38] sm:$0xff]  ;;  %v8575_v7 = vpop.permute.xlu1 %8574 }
 0x76b   : > { %10368 = vmatprep.subr.bf16.mxu1 %v12586_v6  ;;  %v10375_v12 = vpack.c.bf16 %v8446_v3, %v8445_v13  ;;  %v8532_v13 = vlaneseq }
 0x76d   : > { %v8569_v18 = vpop.permute.xlu0 %8568  ;;  %v8533_v3 = vshrl.u32 %v8532_v13, 7 }
 0x76e   : > { %10370 = vmatpush3.bf16.msra.mxu1 %v10369_v10  ;;  %v8571_v55 = vpop.permute.xlu1 %8570 }
 0x76f   : > { %10371 = vmatprep.subr.bf16.mxu1 %v12586_v6  ;;  %v8534_v59 = vsub.s32 0, %v8533_v3 }
 0x772   : > { %10373 = vmatpush3.bf16.msra.mxu1 %v10372_v57  ;;  %v8583_v46 = vpop.permute.xlu1 %8582  ;;  %v8581_v57 = vpop.permute.xlu0 %8580 }
 0x773   : > { %10374 = vmatprep.subr.bf16.mxu1 %v12586_v6 }
 0x776   : > { %10376 = vmatpush3.bf16.msra.mxu1 %v10375_v12  ;;  %v8579_v12 = vpop.permute.xlu1 %8578  ;;  %v8577_v9 = vpop.permute.xlu0 %8576 }
 0x777   : > { %10377 = vmatprep.subr.bf16.mxu1 %v12586_v6 }
 0x77a   : > { %10379 = vmatpush3.bf16.msra.mxu1 %v10378_v40  ;;  %v8591_v28 = vpop.permute.xlu1 %8590  ;;  %v8589_v14 = vpop.permute.xlu0 %8588 }
 0x77b   : > { %10380 = vmatprep.subr.bf16.mxu1 %v12586_v6 }
 0x77e   : > { %10382 = vmatpush3.bf16.msra.mxu1 %v10381_v24  ;;  %v8585_v54 = vpop.permute.xlu0 %8584 }
 0x77f   : > { %10383 = vmatprep.subr.bf16.mxu1 %v12586_v6 }
 0x782   : > { %10385 = vmatpush3.bf16.msra.mxu1 %v10384_v61  ;;  %v8587_v61 = vpop.permute.xlu1 %8586 }
 0x783   : > { %10386 = vmatprep.subr.bf16.mxu1 %v12586_v6  ;;  %v8455_v6 = vld [vmem:[%s18976_s16] sm:$0x1] }
 0x786   : > { %10388 = vmatpush3.bf16.msra.mxu1 %v10387_v31 }
 0x83c   : > { %v8435_v29 = vpop.f32.mrb[210].mxu1 }
 0x83d   : > { %v8436_v42 = vadd.f32 %v8435_v29, %v8361_v0  ;;  %v10297_v5 = vpop.f32.mrb[211].mxu1  ;;  %v8599_v29 = vpop.permute.xlu1 %8598 }
 0x83e   : > { %v8597_v5 = vpop.permute.xlu0 %8596 }
 0x83f   : > { %10331 = vmatmul.mubr.f32.vlgmr.msra.gmra.mrb[212].mxu1 %v8436_v42 }
 0x912   : > { %v8522_v44 = vpop.f32.mrb[212].mxu1 }
 0x913   : > { %v8523_v47 = vadd.f32 %v8522_v44, %v8455_v6  ;;  %v10332_v2 = vpop.f32.mrb[213].mxu1 }
 0x914   : > { %v8593_v2 = vpop.permute.xlu0 %8592 }
 0x915   : > { %v9367_v56 = vmul.f32 -1.442695, %v8523_v47  ;;  %v8595_v47 = vpop.permute.xlu1 %8594 }
 0x917   : > { %12351 = vpow2.f32 %v9367_v56 }
 0x921   : > { %v12352_v10 = vpop.eup %12351 }
 0x922   : > { %v8529_v32 = vadd.f32 1.0, %v12352_v10 }
 0x924   : > { %12353 = vrcp.f32 %v8529_v32 }
 0x92e   : > { %v12354_v40 = vpop.eup %12353 }
 0x92f   : > { %v18629_v24 = vrot.slane %v12354_v40, %v8534_v59 }
 0x931   : > { %v8664_v4 = vmul.f32 %v8569_v18, %v18629_v24  ;;  %v8665_v25 = vmul.f32 %v8571_v55, %v18629_v24  ;;  %v8667_v58 = vmul.f32 %v8575_v7, %v18629_v24  ;;  %v8666_v31 = vmul.f32 %v8573_v43, %v18629_v24  ;;  %v8607_v43 = vpop.permute.xlu1 %8606  ;;  %v8605_v55 = vpop.permute.xlu0 %8604 }
 0x932   : > { %v8669_v0 = vmul.f32 %v8579_v12, %v18629_v24  ;;  %v8668_v42 = vmul.f32 %v8577_v9, %v18629_v24  ;;  %v8671_v6 = vmul.f32 %v8583_v46, %v18629_v24  ;;  %v8670_v44 = vmul.f32 %v8581_v57, %v18629_v24 }
 0x933   : > { %8730 = vrot.lane.b32.xlu1 %v8665_v25, %s19357_s27  ;;  %8728 = vrot.lane.b32.xlu0 %v8664_v4, %s19357_s27  ;;  %v8673_v56 = vmul.f32 %v8587_v61, %v18629_v24  ;;  %v8672_v7 = vmul.f32 %v8585_v54, %v18629_v24  ;;  %v8675_v18 = vmul.f32 %v8591_v28, %v18629_v24 }
 0x934   : > { %v8674_v10 = vmul.f32 %v8589_v14, %v18629_v24  ;;  %v8677_v46 = vmul.f32 %v8595_v47, %v18629_v24  ;;  %v8676_v57 = vmul.f32 %v8593_v2, %v18629_v24  ;;  %v8679_v3 = vmul.f32 %v8599_v29, %v18629_v24 }
 0x935   : > { %v8603_v32 = vpop.permute.xlu1 %8602  ;;  %v8601_v13 = vpop.permute.xlu0 %8600  ;;  %v8678_v9 = vmul.f32 %v8597_v5, %v18629_v24  ;;  %v8683_v25 = vmul.f32 %v8607_v43, %v18629_v24  ;;  %v8682_v61 = vmul.f32 %v8605_v55, %v18629_v24 }
 0x936   : > { %v8681_v40 = vmul.f32 %v8603_v32, %v18629_v24  ;;  %v8680_v28 = vmul.f32 %v8601_v13, %v18629_v24 }
 0x937   : > { %8734 = vrot.lane.b32.xlu1 %v8667_v58, %s19357_s27  ;;  %8732 = vrot.lane.b32.xlu0 %v8666_v31, %s19357_s27 }
 0x939   : > { %v8615_v12 = vpop.permute.xlu1 %8614  ;;  %v8613_v59 = vpop.permute.xlu0 %8612 }
 0x93a   : > { %v8687_v29 = vmul.f32 %v8615_v12, %v18629_v24  ;;  %v8686_v5 = vmul.f32 %v8613_v59, %v18629_v24 }
 0x93b   : > { %8738 = vrot.lane.b32.xlu1 %v8669_v0, %s19357_s27  ;;  %8736 = vrot.lane.b32.xlu0 %v8668_v42, %s19357_s27 }
 0x93d   : > { %v8611_v14 = vpop.permute.xlu1 %8610  ;;  %v8609_v4 = vpop.permute.xlu0 %8608 }
 0x93e   : > { %v8685_v31 = vmul.f32 %v8611_v14, %v18629_v24  ;;  %v8684_v0 = vmul.f32 %v8609_v4, %v18629_v24 }
 0x93f   : > { %8742 = vrot.lane.b32.xlu1 %v8671_v6, %s19357_s27  ;;  %8740 = vrot.lane.b32.xlu0 %v8670_v44, %s19357_s27 }
 0x941   : > { %v8623_v54 = vpop.permute.xlu1 %8622  ;;  %v8621_v58 = vpop.permute.xlu0 %8620 }
 0x942   : > { %v8690_v43 = vmul.f32 %v8621_v58, %v18629_v24 }
 0x943   : > { %8746 = vrot.lane.b32.xlu1 %v8673_v56, %s19357_s27  ;;  %8744 = vrot.lane.b32.xlu0 %v8672_v7, %s19357_s27  ;;  %v8691_v7 = vmul.f32 %v8623_v54, %v18629_v24 }
 0x945   : > { %v8619_v42 = vpop.permute.xlu1 %8618  ;;  %v8617_v6 = vpop.permute.xlu0 %8616 }
 0x946   : > { %v8689_v44 = vmul.f32 %v8619_v42, %v18629_v24  ;;  %v8688_v2 = vmul.f32 %v8617_v6, %v18629_v24 }
 0x947   : > { %8750 = vrot.lane.b32.xlu1 %v8675_v18, %s19357_s27  ;;  %8748 = vrot.lane.b32.xlu0 %v8674_v10, %s19357_s27 }
 0x949   : > { %v8631_v47 = vpop.permute.xlu1 %8630  ;;  %v18681_v56 = vpop.permute.xlu0 %8628 }
 0x94b   : > { %8754 = vrot.lane.b32.xlu1 %v8677_v46, %s19357_s27  ;;  %8752 = vrot.lane.b32.xlu0 %v8676_v57, %s19357_s27 }
 0x94d   : > { %v8627_v55 = vpop.permute.xlu1 %8626  ;;  %v8625_v18 = vpop.permute.xlu0 %8624 }
 0x94e   : > { %v8693_v10 = vmul.f32 %v8627_v55, %v18629_v24 }
 0x94f   : > { %8758 = vrot.lane.b32.xlu1 %v8679_v3, %s19357_s27  ;;  %8756 = vrot.lane.b32.xlu0 %v8678_v9, %s19357_s27 }
 0x953   : > { %8762 = vrot.lane.b32.xlu1 %v8681_v40, %s19357_s27  ;;  %8760 = vrot.lane.b32.xlu0 %v8680_v28, %s19357_s27 }
 0x957   : > { %8766 = vrot.lane.b32.xlu1 %v8683_v25, %s19357_s27  ;;  %8764 = vrot.lane.b32.xlu0 %v8682_v61, %s19357_s27 }
 0x95b   : > { %8770 = vrot.lane.b32.xlu1 %v8685_v31, %s19357_s27  ;;  %8768 = vrot.lane.b32.xlu0 %v8684_v0, %s19357_s27 }
 0x95f   : > { %8774 = vrot.lane.b32.xlu1 %v8687_v29, %s19357_s27  ;;  %8772 = vrot.lane.b32.xlu0 %v8686_v5, %s19357_s27 }
 0x963   : > { %8778 = vrot.lane.b32.xlu1 %v8689_v44, %s19357_s27  ;;  %8776 = vrot.lane.b32.xlu0 %v8688_v2, %s19357_s27 }
 0x967   : > { %8782 = vrot.lane.b32.xlu1 %v8691_v7, %s19357_s27  ;;  %8780 = vrot.lane.b32.xlu0 %v8690_v43, %s19357_s27 }
 0x968   : > { %12464 = shalt.err (!%p12461_p3)
}
 0x969   : > { %s12465_s17 = scalar_lea.hbm %s18696_s25, 4096  ;;  %s12469_s19 = scalar_lea.hbm %s19900_s2, 8192 }
 0x96a   : > { %p12466_p4 = scmp.ne.s32.totalorder %s18696_s25, %s12465_s17  ;;  %p12470_p9 = scmp.lt.u32.totalorder %s18696_s25, %s19900_s2 }
 0x96b   : > { %p12471_p10 = scmp.lt.u32.totalorder %s12469_s19, %s12465_s17  ;;  %p12473_p12 = scmp.lt.u32.totalorder %s12465_s17, %s18696_s25 }
 0x96c   : > { %p12467_p7 = pnand %p12466_p4, %p12731_p5 }
 0x96d   : > { %p12472_p11 = por %p12471_p10, %p12470_p9 }
 0x96e   : > { %p12468_p8 = pneg %p12467_p7 }
 0x96f   : > { %p12474_p13 = por %p12473_p12, %p12472_p11 }
 0x971   : > { %p12475_p0 = pnand %p12474_p13, %p12468_p8 }
 0x973   : > { %12478 = shalt.err (!%p12475_p0)
}
 0x974   : > { %s19309_s3 = smov 128   ;;  %v8692_v46 = vmul.f32 %v8625_v18, %v18629_v24  ;;  %s19901_s26 = sld [smem:[#allocation164_spill]]  ;;  %8786 = vrot.lane.b32.xlu1 %v8693_v10, %s19357_s27  ;;  %v8695_v32 = vmul.f32 %v8631_v47, %v18629_v24 }
 0x975   : > { %10432 = dma.vmem_to_hbm [thread:$0]  (%p12731_p5), %s18700_s20, 4096, %s18696_s25, %s18703_s28, %s19309_s3, %s19309_s3, %s19333_s29  }
 0x976   : > { %s8976_s17 = sshll.u32 %s17719_s24, 4  ;;  %8784 = vrot.lane.b32.xlu0 %v8692_v46, %s19357_s27  ;;  %s19902_s25 = sand.u32 1, %s12565_s30   ;;  %s18740_s17 = int_to_ptr.vmem [resolvable:$true] %s8976_s17 }
 0x977   : > { %s18745_s20 = scalar_lea.sflag [#allocation6], %s19902_s25  ;;  %s12479_s19 = scalar_lea.vmem %s18740_s17, 4096 }
 0x978   : > { %p12480_p1 = scmp.ne.s32.totalorder %s18740_s17, %s12479_s19  ;;  %s12589_s0 = smov [#allocation5]  }
 0x979   : > { %s12483_s4 = sshll.u32 %s12589_s0, 4  ;;  %s12484_s4 = int_to_ptr.vmem [resolvable:$false] %s12483_s4 }
 0x97a   : > { %s18735_s1 = scalar_lea.hbm %s19901_s26, %s18688_s21  ;;  %p12481_p2 = pnand %p12480_p1, %p12731_p5 }
 0x97b   : > { %s12485_s24 = scalar_lea.vmem %s12484_s4, 8192  ;;  %p12486_p4 = scmp.lt.s32.totalorder %s18740_s17, %s12484_s4 }
 0x97c   : > { %p12482_p3 = pneg %p12481_p2  ;;  %p12487_p7 = scmp.lt.s32.totalorder %s12485_s24, %s12479_s19 }
 0x97e   : > { %p12488_p8 = por %p12487_p7, %p12486_p4 }
 0x980   : > { %p12489_p9 = pnand %p12488_p8, %p12482_p3 }
 0x982   : > { %12492 = shalt.err (!%p12489_p9)
}
 0x983   : > { %s12493_s5 = scalar_lea.hbm %s18735_s1, 4096  ;;  %s12497_s0 = scalar_lea.hbm %s19901_s26, 8192 }
 0x984   : > { %p12494_p10 = scmp.ne.s32.totalorder %s18735_s1, %s12493_s5  ;;  %p12498_p13 = scmp.lt.u32.totalorder %s18735_s1, %s19901_s26 }
 0x985   : > { %p12499_p0 = scmp.lt.u32.totalorder %s12497_s0, %s12493_s5  ;;  %p12501_p2 = scmp.lt.u32.totalorder %s12493_s5, %s18735_s1 }
 0x986   : > { %p12495_p11 = pnand %p12494_p10, %p12731_p5 }
 0x987   : > { %p12500_p1 = por %p12499_p0, %p12498_p13 }
 0x988   : > { %p12496_p12 = pneg %p12495_p11 }
 0x989   : > { %p12502_p3 = por %p12501_p2, %p12500_p1 }
 0x98b   : > { %p12503_p4 = pnand %p12502_p3, %p12496_p12 }
 0x98d   : > { %12506 = shalt.err (!%p12503_p4)
}
 0x98e   : > { %s19903_s19 = smov 128   ;;  %v8694_v57 = vmul.f32 %v18681_v56, %v18629_v24  ;;  %8790 = vrot.lane.b32.xlu1 %v8695_v32, %s19357_s27  ;;  %v8537_v13 = vmul.f32 %v18629_v24, %v17731_v23  ;;  %v8536_v12 = vmul.f32 %v18629_v24, %v17714_v27  ;;  %s18781_s2 = scalar_lea.vmem [#allocation9], %s17698_s23  ;;  %v8539_v28 = vmul.f32 %v18629_v24, %v17725_v16 }
 0x98f   : > { %10431 = dma.vmem_to_hbm [thread:$0]  (%p12731_p5), %s18740_s17, 4096, %s18735_s1, %s18745_s20, %s19903_s19, %s19903_s19, %s19333_s29   ;;  %v8538_v27 = vmul.f32 %v18629_v24, %v17710_v22  ;;  %v8541_v61 = vmul.f32 %v18629_v24, %v17767_v15  ;;  %v8540_v54 = vmul.f32 %v18629_v24, %v17752_v8  ;;  %v8543_v22 = vmul.f32 %v18629_v24, %v17760_v20 }
 0x990   : > { %8788 = vrot.lane.b32.xlu0 %v8694_v57, %s19357_s27  ;;  %v8542_v29 = vmul.f32 %v18629_v24, %v17749_v49  ;;  %v8545_v8 = vmul.f32 %v18629_v24, %v17791_v35  ;;  %v8544_v44 = vmul.f32 %v18629_v24, %v17779_v53  ;;  %v8547_v49 = vmul.f32 %v18629_v24, %v19879_v17  ;;  %s9008_s27 = sshll.u32 %s18781_s2, 4  ;;  %s19904_s1 = sld [smem:[#allocation166_spill]]  ;;  %s18910_s27 = int_to_ptr.vmem [resolvable:$true] %s9008_s27 }
 0x991   : > { %v8546_v7 = vmul.f32 %v18629_v24, %v17776_v63  ;;  %v8549_v53 = vmul.f32 %v18629_v24, %v17827_v26  ;;  %v8548_v10 = vmul.f32 %v18629_v24, %v17813_v51  ;;  %v8551_v63 = vmul.f32 %v18629_v24, %v17819_v60  ;;  %s12507_s20 = scalar_lea.vmem %s18910_s27, 4096  ;;  %s12590_s24 = smov [#allocation9]  }
 0x992   : > { %v8553_v51 = vmul.f32 %v18629_v24, %v17867_v41  ;;  %p12508_p7 = scmp.ne.s32.totalorder %s18910_s27, %s12507_s20  ;;  %s12511_s5 = sshll.u32 %s12590_s24, 4  ;;  %s12512_s5 = int_to_ptr.vmem [resolvable:$false] %s12511_s5 }
 0x993   : > { %s12513_s25 = scalar_lea.vmem %s12512_s5, 8192  ;;  %p12514_p10 = scmp.lt.s32.totalorder %s18910_s27, %s12512_s5 }
 0x994   : > { %p12509_p8 = pnand %p12508_p7, %p12731_p5  ;;  %p12515_p11 = scmp.lt.s32.totalorder %s12513_s25, %s12507_s20 }
 0x996   : > { %s18908_s17 = scalar_lea.hbm %s19904_s1, %s18688_s21  ;;  %p12510_p9 = pneg %p12509_p8 }
 0x997   : > { %p12516_p12 = por %p12515_p11, %p12514_p10 }
 0x999   : > { %p12517_p13 = pnand %p12516_p12, %p12510_p9 }
 0x9a5   : > { %v8731_v3 = vpop.permute.xlu1 %8730  ;;  %v8729_v59 = vpop.permute.xlu0 %8728 }
 0x9a6   : > { %v8825_v9 = vadd.f32 %v8731_v3, %v8537_v13  ;;  %v8824_v40 = vadd.f32 %v8729_v59, %v8536_v12  ;;  %v8550_v13 = vmul.f32 %v18629_v24, %v17804_v50  ;;  %v8552_v59 = vmul.f32 %v18629_v24, %v17849_v21 }
 0x9a7   : > { %v8555_v50 = vmul.f32 %v18629_v24, %v19881_v45  ;;  %v8557_v21 = vmul.f32 %v18629_v24, %v19884_v37 }
 0x9a8   : > { %8921 = vst.msk [vmem:[%s18781_s2 + $0x8] sm:$0xff] %vm2371_vm13, %v8825_v9  ;;  %8920 = vst.msk [vmem:[%s18781_s2] sm:$0xff] %vm2371_vm13, %v8824_v40 }
 0x9a9   : > { %v8735_v23 = vpop.permute.xlu1 %8734  ;;  %v8733_v4 = vpop.permute.xlu0 %8732 }
 0x9aa   : > { %v8827_v14 = vadd.f32 %v8735_v23, %v8539_v28  ;;  %v8826_v25 = vadd.f32 %v8733_v4, %v8538_v27  ;;  %v8554_v27 = vmul.f32 %v18629_v24, %v19880_v1  ;;  %v8559_v1 = vmul.f32 %v18629_v24, %v19887_v62 }
 0x9ac   : > { %8923 = vst.msk [vmem:[%s18781_s2 + $0x18] sm:$0xff] %vm2371_vm13, %v8827_v14  ;;  %8922 = vst.msk [vmem:[%s18781_s2 + $0x10] sm:$0xff] %vm2371_vm13, %v8826_v25 }
 0x9ad   : > { %v8739_v16 = vpop.permute.xlu1 %8738  ;;  %v8737_v31 = vpop.permute.xlu0 %8736 }
 0x9ae   : > { %v8829_v58 = vadd.f32 %v8739_v16, %v8541_v61  ;;  %v8828_v0 = vadd.f32 %v8737_v31, %v8540_v54  ;;  %v8556_v61 = vmul.f32 %v18629_v24, %v19883_v19  ;;  %v8558_v31 = vmul.f32 %v18629_v24, %v19885_v48 }
 0x9af   : > { %v8561_v19 = vmul.f32 %v18629_v24, %v19890_v30  ;;  %v8563_v48 = vmul.f32 %v18629_v24, %v19892_v38 }
 0x9b0   : > { %8925 = vst.msk [vmem:[%s18781_s2 + $0x28] sm:$0xff] %vm2371_vm13, %v8829_v58  ;;  %8924 = vst.msk [vmem:[%s18781_s2 + $0x20] sm:$0xff] %vm2371_vm13, %v8828_v0 }
 0x9b1   : > { %v8743_v15 = vpop.permute.xlu1 %8742  ;;  %v8741_v5 = vpop.permute.xlu0 %8740 }
 0x9b2   : > { %v8831_v42 = vadd.f32 %v8743_v15, %v8543_v22  ;;  %v8830_v6 = vadd.f32 %v8741_v5, %v8542_v29  ;;  %v8560_v29 = vmul.f32 %v18629_v24, %v19889_v52 }
 0x9b4   : > { %8927 = vst.msk [vmem:[%s18781_s2 + $0x38] sm:$0xff] %vm2371_vm13, %v8831_v42  ;;  %8926 = vst.msk [vmem:[%s18781_s2 + $0x30] sm:$0xff] %vm2371_vm13, %v8830_v6 }
 0x9b5   : > { %v8747_v20 = vpop.permute.xlu1 %8746  ;;  %v8745_v2 = vpop.permute.xlu0 %8744 }
 0x9b6   : > { %v8833_v47 = vadd.f32 %v8747_v20, %v8545_v8  ;;  %v8832_v56 = vadd.f32 %v8745_v2, %v8544_v44  ;;  %v8562_v8 = vmul.f32 %v18629_v24, %v19891_v36  ;;  %v8564_v2 = vmul.f32 %v18629_v24, %v19893_v33 }
 0x9b8   : > { %8929 = vst.msk [vmem:[%s18781_s2 + $0x48] sm:$0xff] %vm2371_vm13, %v8833_v47  ;;  %8928 = vst.msk [vmem:[%s18781_s2 + $0x40] sm:$0xff] %vm2371_vm13, %v8832_v56  ;;  %v8565_v47 = vmul.f32 %v18629_v24, %v19894_v39 }
 0x9b9   : > { %v8751_v35 = vpop.permute.xlu1 %8750  ;;  %v8749_v55 = vpop.permute.xlu0 %8748 }
 0x9ba   : > { %v8835_v43 = vadd.f32 %v8751_v35, %v8547_v49  ;;  %v8834_v18 = vadd.f32 %v8749_v55, %v8546_v7  ;;  %v8567_v35 = vmul.f32 %v18629_v24, %v19896_v11  ;;  %v8566_v7 = vmul.f32 %v18629_v24, %v19895_v34 }
 0x9bc   : > { %8931 = vst.msk [vmem:[%s18781_s2 + $0x58] sm:$0xff] %vm2371_vm13, %v8835_v43  ;;  %8930 = vst.msk [vmem:[%s18781_s2 + $0x50] sm:$0xff] %vm2371_vm13, %v8834_v18 }
 0x9bd   : > { %v8755_v17 = vpop.permute.xlu1 %8754  ;;  %v8753_v32 = vpop.permute.xlu0 %8752 }
 0x9be   : > { %v8837_v46 = vadd.f32 %v8755_v17, %v8549_v53  ;;  %v8836_v57 = vadd.f32 %v8753_v32, %v8548_v10 }
 0x9c0   : > { %8933 = vst.msk [vmem:[%s18781_s2 + $0x68] sm:$0xff] %vm2371_vm13, %v8837_v46  ;;  %8932 = vst.msk [vmem:[%s18781_s2 + $0x60] sm:$0xff] %vm2371_vm13, %v8836_v57 }
 0x9c1   : > { %v8759_v26 = vpop.permute.xlu1 %8758  ;;  %v8757_v12 = vpop.permute.xlu0 %8756 }
 0x9c2   : > { %v8839_v3 = vadd.f32 %v8759_v26, %v8551_v63  ;;  %v8838_v9 = vadd.f32 %v8757_v12, %v8550_v13 }
 0x9c4   : > { %8935 = vst.msk [vmem:[%s18781_s2 + $0x78] sm:$0xff] %vm2371_vm13, %v8839_v3  ;;  %8934 = vst.msk [vmem:[%s18781_s2 + $0x70] sm:$0xff] %vm2371_vm13, %v8838_v9 }
 0x9c5   : > { %v8763_v60 = vpop.permute.xlu1 %8762  ;;  %v8761_v28 = vpop.permute.xlu0 %8760 }
 0x9c6   : > { %v8841_v40 = vadd.f32 %v8763_v60, %v8553_v51  ;;  %v8840_v23 = vadd.f32 %v8761_v28, %v8552_v59 }
 0x9c8   : > { %8937 = vst.msk [vmem:[%s18781_s2 + $0x88] sm:$0xff] %vm2371_vm13, %v8841_v40  ;;  %8936 = vst.msk [vmem:[%s18781_s2 + $0x80] sm:$0xff] %vm2371_vm13, %v8840_v23 }
 0x9c9   : > { %v8767_v41 = vpop.permute.xlu1 %8766  ;;  %v8765_v4 = vpop.permute.xlu0 %8764 }
 0x9ca   : > { %v8843_v14 = vadd.f32 %v8767_v41, %v8555_v50  ;;  %v8842_v25 = vadd.f32 %v8765_v4, %v8554_v27 }
 0x9cc   : > { %8939 = vst.msk [vmem:[%s18781_s2 + $0x98] sm:$0xff] %vm2371_vm13, %v8843_v14  ;;  %8938 = vst.msk [vmem:[%s18781_s2 + $0x90] sm:$0xff] %vm2371_vm13, %v8842_v25 }
 0x9cd   : > { %v8771_v45 = vpop.permute.xlu1 %8770  ;;  %v8769_v54 = vpop.permute.xlu0 %8768 }
 0x9ce   : > { %v8845_v16 = vadd.f32 %v8771_v45, %v8557_v21  ;;  %v8844_v58 = vadd.f32 %v8769_v54, %v8556_v61 }
 0x9d0   : > { %8941 = vst.msk [vmem:[%s18781_s2 + $0xa8] sm:$0xff] %vm2371_vm13, %v8845_v16  ;;  %8940 = vst.msk [vmem:[%s18781_s2 + $0xa0] sm:$0xff] %vm2371_vm13, %v8844_v58 }
 0x9d1   : > { %v8775_v37 = vpop.permute.xlu1 %8774  ;;  %v8773_v22 = vpop.permute.xlu0 %8772 }
 0x9d2   : > { %v8847_v0 = vadd.f32 %v8775_v37, %v8559_v1  ;;  %v8846_v15 = vadd.f32 %v8773_v22, %v8558_v31 }
 0x9d4   : > { %8943 = vst.msk [vmem:[%s18781_s2 + $0xb8] sm:$0xff] %vm2371_vm13, %v8847_v0  ;;  %8942 = vst.msk [vmem:[%s18781_s2 + $0xb0] sm:$0xff] %vm2371_vm13, %v8846_v15 }
 0x9d5   : > { %v8779_v62 = vpop.permute.xlu1 %8778  ;;  %v8777_v5 = vpop.permute.xlu0 %8776 }
 0x9d6   : > { %v8849_v42 = vadd.f32 %v8779_v62, %v8561_v19  ;;  %v8848_v6 = vadd.f32 %v8777_v5, %v8560_v29 }
 0x9d8   : > { %8945 = vst.msk [vmem:[%s18781_s2 + $0xc8] sm:$0xff] %vm2371_vm13, %v8849_v42  ;;  %8944 = vst.msk [vmem:[%s18781_s2 + $0xc0] sm:$0xff] %vm2371_vm13, %v8848_v6 }
 0x9d9   : > { %v8783_v30 = vpop.permute.xlu1 %8782  ;;  %v8781_v44 = vpop.permute.xlu0 %8780 }
 0x9da   : > { %v8851_v20 = vadd.f32 %v8783_v30, %v8563_v48  ;;  %v8850_v52 = vadd.f32 %v8781_v44, %v8562_v8 }
 0x9dc   : > { %8947 = vst.msk [vmem:[%s18781_s2 + $0xd8] sm:$0xff] %vm2371_vm13, %v8851_v20  ;;  %8946 = vst.msk [vmem:[%s18781_s2 + $0xd0] sm:$0xff] %vm2371_vm13, %v8850_v52 }
 0x9e6   : > { %v8787_v38 = vpop.permute.xlu1 %8786 }
 0x9e7   : > { %v8853_v56 = vadd.f32 %v8787_v38, %v8565_v47 }
 0x9e8   : > { %v8785_v49 = vpop.permute.xlu0 %8784 }
 0x9e9   : > { %v8852_v36 = vadd.f32 %v8785_v49, %v8564_v2  ;;  %8949 = vst.msk [vmem:[%s18781_s2 + $0xe8] sm:$0xff] %vm2371_vm13, %v8853_v56 }
 0x9eb   : > { %8948 = vst.msk [vmem:[%s18781_s2 + $0xe0] sm:$0xff] %vm2371_vm13, %v8852_v36 }
 0xa00   : > { %v8791_v39 = vpop.permute.xlu1 %8790 }
 0xa01   : > { %v8855_v43 = vadd.f32 %v8791_v39, %v8567_v35 }
 0xa02   : > { %v8789_v55 = vpop.permute.xlu0 %8788 }
 0xa03   : > { %v8854_v33 = vadd.f32 %v8789_v55, %v8566_v7  ;;  %8951 = vst.msk [vmem:[%s18781_s2 + $0xf8] sm:$0xff] %vm2371_vm13, %v8855_v43 }
 0xa05   : > { %8950 = vst.msk [vmem:[%s18781_s2 + $0xf0] sm:$0xff] %vm2371_vm13, %v8854_v33 }
 0xa06   : > { %12520 = shalt.err (!%p12517_p13)
}
 0xa07   : > { %s12521_s21 = scalar_lea.hbm %s18908_s17, 4096  ;;  %s12525_s2 = scalar_lea.hbm %s19904_s1, 8192 }
 0xa08   : > { %p12522_p0 = scmp.ne.s32.totalorder %s18908_s17, %s12521_s21  ;;  %p12526_p3 = scmp.lt.u32.totalorder %s18908_s17, %s19904_s1 }
 0xa09   : > { %p12527_p4 = scmp.lt.u32.totalorder %s12525_s2, %s12521_s21  ;;  %p12529_p8 = scmp.lt.u32.totalorder %s12521_s21, %s18908_s17 }
 0xa0a   : > { %p12523_p1 = pnand %p12522_p0, %p12731_p5 }
 0xa0b   : > { %p12528_p7 = por %p12527_p4, %p12526_p3 }
 0xa0c   : > { %p12524_p2 = pneg %p12523_p1 }
 0xa0d   : > { %p12530_p9 = por %p12529_p8, %p12528_p7 }
 0xa0f   : > { %p12531_p10 = pnand %p12530_p9, %p12524_p2 }
 0xa11   : > { %12534 = shalt.err (!%p12531_p10)
}
 0xa12   : > { %10433 = dma.vmem_to_hbm [thread:$0]  (%p12731_p5), %s18910_s27, 4096, %s18908_s17, %s18703_s28, %s19903_s19, %s19903_s19, %s19333_s29  }
 0xa13 PF: > { %s19905_s20 = sld [smem:[#allocation14_spill]]  ;;  %s19906_s24 = sld [smem:[#allocation12_spill]] }
 0xa19   : > { %p10447_p11 = scmp.ge.s32.totalorder %s19905_s20, 2  ;;  %s9023_s25 = sand.u32 1, %s19906_s24  }
 0xa1a   : > { %s9024_s21 = scalar_lea.sflag [#allocation6], %s9023_s25 }
 0xa1b   : > { %p10438_p12 = pnand %p10447_p11, %p12735_p6 }
 0xa1d   : > { %12552 = dma.done.wait (!%p10438_p12), %s9024_s21, 4096  }
 0xa1e   : > { %12554 = vsyncadd (!%p10438_p12), %s9024_s21, 4294963200  ;;  %s19908_s22 = sadd.s32 4294967294, %s19905_s20  }
 0xa1f   : > { %s9032_s0 = sand.u32 1, %s19908_s22  }
 0xa20   : > { %s9033_s4 = scalar_lea.sflag [#allocation8], %s9032_s0 }
 0xa21   : > { %12556 = dma.done.wait (!%p10438_p12), %s9033_s4, 8192  }
 0xa22   : > { %12558 = vsyncadd (!%p10438_p12), %s9033_s4, 4294959104  ;;  %s19909_s21 = sld [smem:[#allocation16_spill]]  ;;  %s19910_s29 = sld [smem:[#allocation13_spill]] }
 0xa23   : > { %s19911_s20 = sld [smem:[#allocation17_spill]]  ;;  %s19912_s0 = smov %s12565_s30 }
 0xa28   : > { %p33_p5 = scmp.ge.s32.totalorder %s19909_s21, 4   ;;  %s19913_s30 = smov %s19910_s29 }
 0xa2a   :  { %35 = sbr.rel (!%p33_p5) target bundleno = 15 (0xf), region = 161 }
 0xa31   :  { %9047 = vsyncpa [#allocation6], 1 }
 0xa32   :  { %9049 = vsyncpa [#allocation6 + $0x1], 1 }
 0xa33   :  { %9050 = vsyncpa [#allocation8], 1 }
 0xa34   :  { %9052 = vsyncpa [#allocation8 + $0x1], 1 }

</bundles_post_ra>
